<compile_context>
chip_gen: v5e
topology: v5e:2x2
jax: 0.10.0
libtpu: 0.0.40
codegen_flags: <defaults>
</compile_context>

<pallas_src>
import functools

import jax
import jax.numpy as jnp
import numpy as np
from jax.experimental import pallas as pl
from jax.experimental.pallas import tpu as pltpu

# ---- module hyper-parameters (small but shape-consistent with the module) ----
NET_DEPTH = 8        # net_depth
NET_WIDTH = 128      # net_width (lane-aligned small stand-in for 256)
SKIP_LAYER = 4       # skip_layer
INPUT_DIM = 16       # input_dim
OUTPUT_DIM = 8       # output_dim
N_POINTS = 1024      # batch of points for the test
TILE_M = 512         # row tile -> grid of 2 at N=1024 (feeds both v7x TCs)
LANES = 128          # TPU lane width
OUT_DTYPE = jnp.bfloat16  # lane-dense output slab dtype (halves HBM writeback)

assert INPUT_DIM <= LANES and NET_WIDTH <= LANES and OUTPUT_DIM <= LANES


def _consumes_skip(i):
    """Layer i consumes concat([h, inputs]) iff layer i-1 was a skip point.

    i runs 1..NET_DEPTH, where i == NET_DEPTH denotes the output layer.
    """
    return (SKIP_LAYER is not None) and (i - 1 > 0) and ((i - 1) % SKIP_LAYER == 0)


NUM_SMALL = 1 + sum(_consumes_skip(i) for i in range(1, NET_DEPTH + 1))  # K=INPUT_DIM pieces
NUM_BIG = NET_DEPTH                                                      # K=NET_WIDTH pieces
NUM_BIAS = NET_DEPTH + 1


def _layer_dims():
    """Replicates the in_features bookkeeping of MLP.__init__."""
    dims = []
    in_features = INPUT_DIM
    for i in range(NET_DEPTH):
        dims.append((in_features, NET_WIDTH))
        if SKIP_LAYER is not None and i % SKIP_LAYER == 0 and i > 0:
            in_features = NET_WIDTH + INPUT_DIM
        else:
            in_features = NET_WIDTH
    dims.append((in_features, OUTPUT_DIM))  # output layer
    return dims


def init_params(key):
    """Deterministic xavier_uniform weights + zero biases (torch defaults)."""
    params = []
    for (fan_in, fan_out) in _layer_dims():
        key, sub = jax.random.split(key)
        bound = float(np.sqrt(6.0 / (fan_in + fan_out)))
        w = jax.random.uniform(sub, (fan_in, fan_out), jnp.float32, -bound, bound)
        b = jnp.zeros((fan_out,), jnp.float32)
        params.append((w, b))
    return params


def _pad_to(x, shape):
    """Zero-pad an array up to `shape` (same dtype)."""
    out = jnp.zeros(shape, x.dtype)
    return out.at[tuple(slice(0, s) for s in x.shape)].set(x)


def pack_params(params):
    """Pack per-layer (W, b) into bf16 weight slabs and an f32 bias slab.

    * w_small (NUM_SMALL, INPUT_DIM, 128): layer-0 weight plus, for every
      skip-consuming layer, the W_x rows (rows that multiply the skip input).
    * w_big (NUM_BIG, 128, 128): the NET_WIDTH-row (h-multiplying) weight of
      layers 1..NET_DEPTH, output layer zero-padded to 128 output lanes.
    * b_slab (NUM_BIAS, 128) f32: one padded bias per layer (added once).
    Zero padding is exact (padded lanes only ever contribute zeros).
    """
    small, big, biases = [], [], []
    w0, b0 = params[0]
    small.append(_pad_to(w0, (INPUT_DIM, LANES)))
    biases.append(_pad_to(b0, (LANES,)))
    for i in range(1, NET_DEPTH + 1):
        w, b = params[i]
        if _consumes_skip(i):
            big.append(_pad_to(w[:NET_WIDTH], (LANES, LANES)))   # W_h
            small.append(_pad_to(w[NET_WIDTH:], (INPUT_DIM, LANES)))  # W_x
        else:
            big.append(_pad_to(w, (LANES, LANES)))
        biases.append(_pad_to(b, (LANES,)))
    w_small = jnp.stack(small).astype(jnp.bfloat16)   # (NUM_SMALL, 16, 128)
    w_big = jnp.stack(big).astype(jnp.bfloat16)       # (NUM_BIG, 128, 128)
    b_slab = jnp.stack(biases)                        # (NUM_BIAS, 128) f32
    assert w_small.shape[0] == NUM_SMALL and w_big.shape[0] == NUM_BIG
    return w_small, w_big, b_slab


def mlp_kernel(x_ref, w_small_ref, w_big_ref, b_ref, o_ref):
    """Whole MLP forward for one row tile, entirely in VMEM.

    x_ref:       (tile_m, INPUT_DIM) f32 inputs (no lane padding)
    w_small_ref: (NUM_SMALL, INPUT_DIM, 128) bf16  (layer 0 + skip W_x pieces)
    w_big_ref:   (NUM_BIG, 128, 128) bf16          (layers 1..depth, + output)
    b_ref:       (NUM_BIAS, 128) f32 biases
    o_ref:       (tile_m, 128) bf16 lane-dense output slab (valid: :OUTPUT_DIM)
    """
    x_bf = x_ref[...].astype(jnp.bfloat16)            # (tile_m, INPUT_DIM)

    # layer 0: INPUT_DIM -> NET_WIDTH (K = INPUT_DIM matmul, single MXU pass)
    z = (jnp.dot(x_bf, w_small_ref[0], preferred_element_type=jnp.float32)
         + b_ref[pl.ds(0, 1), :])
    h = jnp.maximum(z, 0.0)                            # hidden_activation = ReLU

    small_slot = 1
    for i in range(1, NET_DEPTH + 1):                  # i == NET_DEPTH is output layer
        h_bf = h.astype(jnp.bfloat16)
        z = jnp.dot(h_bf, w_big_ref[i - 1], preferred_element_type=jnp.float32)
        if _consumes_skip(i):
            # concat([h, inputs]) @ W  ==  h @ W_h + inputs @ W_x  (no concat)
            z = z + jnp.dot(x_bf, w_small_ref[small_slot],
                            preferred_element_type=jnp.float32)
            small_slot += 1
        z = z + b_ref[pl.ds(i, 1), :]
        if i < NET_DEPTH:
            h = jnp.maximum(z, 0.0)
        else:
            o_ref[...] = z.astype(o_ref.dtype)         # output_activation = Identity


def _param_specs(single_buffer):
    """BlockSpecs for the constant parameter slabs (same block on every step)."""
    kw = {"pipeline_mode": pl.Buffered(1)} if single_buffer else {}
    return [
        pl.BlockSpec((NUM_SMALL, INPUT_DIM, LANES), lambda i: (0, 0, 0), **kw),
        pl.BlockSpec((NUM_BIG, LANES, LANES), lambda i: (0, 0, 0), **kw),
        pl.BlockSpec((NUM_BIAS, LANES), lambda i: (0, 0), **kw),
    ]


@functools.partial(jax.jit, static_argnames=("tile_m", "single_buffer_params"))
def mlp_forward(x, w_small, w_big, b_slab, *, tile_m=TILE_M,
                single_buffer_params=True):
    n, d_in = x.shape
    assert d_in == INPUT_DIM

    # Only the row axis is padded (to a multiple of tile_m); feature lanes stay
    # native width.  At NeRF-scale N pick tile_m so n_pad/tile_m is even (v7x
    # has 2 TensorCores; dimension_semantics 'parallel' shards the grid).
    n_pad = -(-n // tile_m) * tile_m
    xp = x if n_pad == n else _pad_to(x, (n_pad, d_in))

    out_padded = pl.pallas_call(
        mlp_kernel,
        out_shape=jax.ShapeDtypeStruct((n_pad, LANES), OUT_DTYPE),
        grid=(n_pad // tile_m,),
        in_specs=[pl.BlockSpec((tile_m, INPUT_DIM), lambda i: (i, 0))]
                 + _param_specs(single_buffer_params),
        out_specs=pl.BlockSpec((tile_m, LANES), lambda i: (i, 0)),
        compiler_params=pltpu.CompilerParams(
            dimension_semantics=("parallel",)),
    )(xp, w_small, w_big, b_slab)
    return out_padded[:n, :OUTPUT_DIM].astype(x.dtype)


def mlp_reference(x, params, matmul_dtype=jnp.float32):
    """Pure-JAX reference mirroring the PyTorch forward pass (with concat).

    matmul_dtype=bfloat16 reproduces the kernel's rounding points (bf16 matmul
    inputs, f32 accumulation / bias / ReLU) for a tight correctness check.
    """
    inputs = x
    h = x
    for i in range(NET_DEPTH):
        w, b = params[i]
        z = jnp.dot(h.astype(matmul_dtype), w.astype(matmul_dtype),
                    preferred_element_type=jnp.float32) + b
        h = jnp.maximum(z, 0.0)
        if SKIP_LAYER is not None and i % SKIP_LAYER == 0 and i > 0:
            h = jnp.concatenate([h, inputs], axis=-1)
    w, b = params[NET_DEPTH]
    return jnp.dot(h.astype(matmul_dtype), w.astype(matmul_dtype),
                   preferred_element_type=jnp.float32) + b


if __name__ == "__main__":
    key = jax.random.PRNGKey(0)
    k_params, k_x = jax.random.split(key)
    params = init_params(k_params)
    w_small, w_big, b_slab = pack_params(params)
    x = jax.random.normal(k_x, (N_POINTS, INPUT_DIM), jnp.float32)

    try:
        out = jax.block_until_ready(mlp_forward(x, w_small, w_big, b_slab))
    except Exception:
        # Fallback if single-buffered parameter specs (pl.Buffered(1)) are not
        # supported in this environment; math and structure are unchanged.
        out = jax.block_until_ready(
            mlp_forward(x, w_small, w_big, b_slab, single_buffer_params=False))

    assert out.shape == (N_POINTS, OUTPUT_DIM)

    # Tight check against a reference with the kernel's bf16 rounding points.
    ref_bf = mlp_reference(x, params, jnp.bfloat16)
    ref_bf = ref_bf.astype(OUT_DTYPE).astype(jnp.float32)
    np.testing.assert_allclose(np.asarray(out), np.asarray(ref_bf),
                               rtol=5e-3, atol=5e-3)

    # Loose sanity check against the exact f32 module semantics
    # (bf16 matmul inputs -> ~1% relative error over depth 8).
    ref_f32 = mlp_reference(x, params, jnp.float32)
    np.testing.assert_allclose(np.asarray(out), np.asarray(ref_f32),
                               rtol=1e-1, atol=1e-1)

    print("KERNEL_OK")
</pallas_src>

<mosaic_0001>
module attributes {stable_mosaic.version = 11 : i64} {
  func.func @mlp_kernel(%arg0: i32, %arg1: memref<512x16xf32, #tpu.memory_space<vmem>>, %arg2: memref<2x16x128xbf16, #tpu.memory_space<vmem>>, %arg3: memref<8x128x128xbf16, #tpu.memory_space<vmem>>, %arg4: memref<9x128xf32, #tpu.memory_space<vmem>>, %arg5: memref<512x128xbf16, #tpu.memory_space<vmem>>) attributes {dimension_semantics = [#tpu.dimension_semantics<parallel>], iteration_bounds = array<i64: 2>, scalar_prefetch = 0 : i64, scratch_operands = 0 : i64, tpu.core_type = #tpu.core_type<tc>, window_params = [{transform_indices = @transform_0, window_bounds = array<i64: 512, 16>}, {pipeline_mode = #tpu.pipeline_mode<synchronous>, transform_indices = @transform_1, window_bounds = array<i64: 2, 16, 128>}, {pipeline_mode = #tpu.pipeline_mode<synchronous>, transform_indices = @transform_2, window_bounds = array<i64: 8, 128, 128>}, {pipeline_mode = #tpu.pipeline_mode<synchronous>, transform_indices = @transform_3, window_bounds = array<i64: 9, 128>}, {transform_indices = @transform_4, window_bounds = array<i64: 512, 128>}]} {
    %c0 = arith.constant 0 : index
    %c0_0 = arith.constant 0 : index
    %0 = vector.load %arg1[%c0, %c0_0] : memref<512x16xf32, #tpu.memory_space<vmem>>, vector<512x16xf32>
    %1 = arith.truncf %0 : vector<512x16xf32> to vector<512x16xbf16>
    %c0_1 = arith.constant 0 : index
    %c0_2 = arith.constant 0 : index
    %c0_3 = arith.constant 0 : index
    %2 = vector.load %arg2[%c0_1, %c0_2, %c0_3] : memref<2x16x128xbf16, #tpu.memory_space<vmem>>, vector<1x16x128xbf16>
    %3 = vector.shape_cast %2 : vector<1x16x128xbf16> to vector<16x128xbf16>
    %cst = arith.constant dense<0.000000e+00> : vector<512x128xf32>
    %4 = tpu.matmul %1, %3, %cst {dimension_numbers = #tpu.dot_dimension_numbers<[1], [0], [0], [1], [0, 0, 1, 1], [], []>} : vector<512x16xbf16>, vector<16x128xbf16>, vector<512x128xf32> -> vector<512x128xf32>
    %c0_4 = arith.constant 0 : index
    %c0_5 = arith.constant 0 : index
    %5 = vector.load %arg4[%c0_4, %c0_5] : memref<9x128xf32, #tpu.memory_space<vmem>>, vector<1x128xf32>
    %6 = vector.broadcast %5 : vector<1x128xf32> to vector<512x128xf32>
    %7 = arith.addf %4, %6 : vector<512x128xf32>
    %cst_6 = arith.constant 0.000000e+00 : f32
    %8 = vector.broadcast %cst_6 : f32 to vector<512x128xf32>
    %9 = arith.maximumf %7, %8 : vector<512x128xf32>
    %10 = arith.truncf %9 : vector<512x128xf32> to vector<512x128xbf16>
    %c0_7 = arith.constant 0 : index
    %c0_8 = arith.constant 0 : index
    %c0_9 = arith.constant 0 : index
    %11 = vector.load %arg3[%c0_7, %c0_8, %c0_9] : memref<8x128x128xbf16, #tpu.memory_space<vmem>>, vector<1x128x128xbf16>
    %12 = vector.shape_cast %11 : vector<1x128x128xbf16> to vector<128x128xbf16>
    %cst_10 = arith.constant dense<0.000000e+00> : vector<512x128xf32>
    %13 = tpu.matmul %10, %12, %cst_10 {dimension_numbers = #tpu.dot_dimension_numbers<[1], [0], [0], [1], [0, 0, 1, 1], [], []>} : vector<512x128xbf16>, vector<128x128xbf16>, vector<512x128xf32> -> vector<512x128xf32>
    %c1 = arith.constant 1 : index
    %c0_11 = arith.constant 0 : index
    %14 = vector.load %arg4[%c1, %c0_11] : memref<9x128xf32, #tpu.memory_space<vmem>>, vector<1x128xf32>
    %15 = vector.broadcast %14 : vector<1x128xf32> to vector<512x128xf32>
    %16 = arith.addf %13, %15 : vector<512x128xf32>
    %cst_12 = arith.constant 0.000000e+00 : f32
    %17 = vector.broadcast %cst_12 : f32 to vector<512x128xf32>
    %18 = arith.maximumf %16, %17 : vector<512x128xf32>
    %19 = arith.truncf %18 : vector<512x128xf32> to vector<512x128xbf16>
    %c1_13 = arith.constant 1 : index
    %c0_14 = arith.constant 0 : index
    %c0_15 = arith.constant 0 : index
    %20 = vector.load %arg3[%c1_13, %c0_14, %c0_15] : memref<8x128x128xbf16, #tpu.memory_space<vmem>>, vector<1x128x128xbf16>
    %21 = vector.shape_cast %20 : vector<1x128x128xbf16> to vector<128x128xbf16>
    %cst_16 = arith.constant dense<0.000000e+00> : vector<512x128xf32>
    %22 = tpu.matmul %19, %21, %cst_16 {dimension_numbers = #tpu.dot_dimension_numbers<[1], [0], [0], [1], [0, 0, 1, 1], [], []>} : vector<512x128xbf16>, vector<128x128xbf16>, vector<512x128xf32> -> vector<512x128xf32>
    %c2 = arith.constant 2 : index
    %c0_17 = arith.constant 0 : index
    %23 = vector.load %arg4[%c2, %c0_17] : memref<9x128xf32, #tpu.memory_space<vmem>>, vector<1x128xf32>
    %24 = vector.broadcast %23 : vector<1x128xf32> to vector<512x128xf32>
    %25 = arith.addf %22, %24 : vector<512x128xf32>
    %cst_18 = arith.constant 0.000000e+00 : f32
    %26 = vector.broadcast %cst_18 : f32 to vector<512x128xf32>
    %27 = arith.maximumf %25, %26 : vector<512x128xf32>
    %28 = arith.truncf %27 : vector<512x128xf32> to vector<512x128xbf16>
    %c2_19 = arith.constant 2 : index
    %c0_20 = arith.constant 0 : index
    %c0_21 = arith.constant 0 : index
    %29 = vector.load %arg3[%c2_19, %c0_20, %c0_21] : memref<8x128x128xbf16, #tpu.memory_space<vmem>>, vector<1x128x128xbf16>
    %30 = vector.shape_cast %29 : vector<1x128x128xbf16> to vector<128x128xbf16>
    %cst_22 = arith.constant dense<0.000000e+00> : vector<512x128xf32>
    %31 = tpu.matmul %28, %30, %cst_22 {dimension_numbers = #tpu.dot_dimension_numbers<[1], [0], [0], [1], [0, 0, 1, 1], [], []>} : vector<512x128xbf16>, vector<128x128xbf16>, vector<512x128xf32> -> vector<512x128xf32>
    %c3 = arith.constant 3 : index
    %c0_23 = arith.constant 0 : index
    %32 = vector.load %arg4[%c3, %c0_23] : memref<9x128xf32, #tpu.memory_space<vmem>>, vector<1x128xf32>
    %33 = vector.broadcast %32 : vector<1x128xf32> to vector<512x128xf32>
    %34 = arith.addf %31, %33 : vector<512x128xf32>
    %cst_24 = arith.constant 0.000000e+00 : f32
    %35 = vector.broadcast %cst_24 : f32 to vector<512x128xf32>
    %36 = arith.maximumf %34, %35 : vector<512x128xf32>
    %37 = arith.truncf %36 : vector<512x128xf32> to vector<512x128xbf16>
    %c3_25 = arith.constant 3 : index
    %c0_26 = arith.constant 0 : index
    %c0_27 = arith.constant 0 : index
    %38 = vector.load %arg3[%c3_25, %c0_26, %c0_27] : memref<8x128x128xbf16, #tpu.memory_space<vmem>>, vector<1x128x128xbf16>
    %39 = vector.shape_cast %38 : vector<1x128x128xbf16> to vector<128x128xbf16>
    %cst_28 = arith.constant dense<0.000000e+00> : vector<512x128xf32>
    %40 = tpu.matmul %37, %39, %cst_28 {dimension_numbers = #tpu.dot_dimension_numbers<[1], [0], [0], [1], [0, 0, 1, 1], [], []>} : vector<512x128xbf16>, vector<128x128xbf16>, vector<512x128xf32> -> vector<512x128xf32>
    %c4 = arith.constant 4 : index
    %c0_29 = arith.constant 0 : index
    %41 = vector.load %arg4[%c4, %c0_29] : memref<9x128xf32, #tpu.memory_space<vmem>>, vector<1x128xf32>
    %42 = vector.broadcast %41 : vector<1x128xf32> to vector<512x128xf32>
    %43 = arith.addf %40, %42 : vector<512x128xf32>
    %cst_30 = arith.constant 0.000000e+00 : f32
    %44 = vector.broadcast %cst_30 : f32 to vector<512x128xf32>
    %45 = arith.maximumf %43, %44 : vector<512x128xf32>
    %46 = arith.truncf %45 : vector<512x128xf32> to vector<512x128xbf16>
    %c4_31 = arith.constant 4 : index
    %c0_32 = arith.constant 0 : index
    %c0_33 = arith.constant 0 : index
    %47 = vector.load %arg3[%c4_31, %c0_32, %c0_33] : memref<8x128x128xbf16, #tpu.memory_space<vmem>>, vector<1x128x128xbf16>
    %48 = vector.shape_cast %47 : vector<1x128x128xbf16> to vector<128x128xbf16>
    %cst_34 = arith.constant dense<0.000000e+00> : vector<512x128xf32>
    %49 = tpu.matmul %46, %48, %cst_34 {dimension_numbers = #tpu.dot_dimension_numbers<[1], [0], [0], [1], [0, 0, 1, 1], [], []>} : vector<512x128xbf16>, vector<128x128xbf16>, vector<512x128xf32> -> vector<512x128xf32>
    %c1_35 = arith.constant 1 : index
    %c0_36 = arith.constant 0 : index
    %c0_37 = arith.constant 0 : index
    %50 = vector.load %arg2[%c1_35, %c0_36, %c0_37] : memref<2x16x128xbf16, #tpu.memory_space<vmem>>, vector<1x16x128xbf16>
    %51 = vector.shape_cast %50 : vector<1x16x128xbf16> to vector<16x128xbf16>
    %cst_38 = arith.constant dense<0.000000e+00> : vector<512x128xf32>
    %52 = tpu.matmul %1, %51, %cst_38 {dimension_numbers = #tpu.dot_dimension_numbers<[1], [0], [0], [1], [0, 0, 1, 1], [], []>} : vector<512x16xbf16>, vector<16x128xbf16>, vector<512x128xf32> -> vector<512x128xf32>
    %53 = arith.addf %49, %52 : vector<512x128xf32>
    %c5 = arith.constant 5 : index
    %c0_39 = arith.constant 0 : index
    %54 = vector.load %arg4[%c5, %c0_39] : memref<9x128xf32, #tpu.memory_space<vmem>>, vector<1x128xf32>
    %55 = vector.broadcast %54 : vector<1x128xf32> to vector<512x128xf32>
    %56 = arith.addf %53, %55 : vector<512x128xf32>
    %cst_40 = arith.constant 0.000000e+00 : f32
    %57 = vector.broadcast %cst_40 : f32 to vector<512x128xf32>
    %58 = arith.maximumf %56, %57 : vector<512x128xf32>
    %59 = arith.truncf %58 : vector<512x128xf32> to vector<512x128xbf16>
    %c5_41 = arith.constant 5 : index
    %c0_42 = arith.constant 0 : index
    %c0_43 = arith.constant 0 : index
    %60 = vector.load %arg3[%c5_41, %c0_42, %c0_43] : memref<8x128x128xbf16, #tpu.memory_space<vmem>>, vector<1x128x128xbf16>
    %61 = vector.shape_cast %60 : vector<1x128x128xbf16> to vector<128x128xbf16>
    %cst_44 = arith.constant dense<0.000000e+00> : vector<512x128xf32>
    %62 = tpu.matmul %59, %61, %cst_44 {dimension_numbers = #tpu.dot_dimension_numbers<[1], [0], [0], [1], [0, 0, 1, 1], [], []>} : vector<512x128xbf16>, vector<128x128xbf16>, vector<512x128xf32> -> vector<512x128xf32>
    %c6 = arith.constant 6 : index
    %c0_45 = arith.constant 0 : index
    %63 = vector.load %arg4[%c6, %c0_45] : memref<9x128xf32, #tpu.memory_space<vmem>>, vector<1x128xf32>
    %64 = vector.broadcast %63 : vector<1x128xf32> to vector<512x128xf32>
    %65 = arith.addf %62, %64 : vector<512x128xf32>
    %cst_46 = arith.constant 0.000000e+00 : f32
    %66 = vector.broadcast %cst_46 : f32 to vector<512x128xf32>
    %67 = arith.maximumf %65, %66 : vector<512x128xf32>
    %68 = arith.truncf %67 : vector<512x128xf32> to vector<512x128xbf16>
    %c6_47 = arith.constant 6 : index
    %c0_48 = arith.constant 0 : index
    %c0_49 = arith.constant 0 : index
    %69 = vector.load %arg3[%c6_47, %c0_48, %c0_49] : memref<8x128x128xbf16, #tpu.memory_space<vmem>>, vector<1x128x128xbf16>
    %70 = vector.shape_cast %69 : vector<1x128x128xbf16> to vector<128x128xbf16>
    %cst_50 = arith.constant dense<0.000000e+00> : vector<512x128xf32>
    %71 = tpu.matmul %68, %70, %cst_50 {dimension_numbers = #tpu.dot_dimension_numbers<[1], [0], [0], [1], [0, 0, 1, 1], [], []>} : vector<512x128xbf16>, vector<128x128xbf16>, vector<512x128xf32> -> vector<512x128xf32>
    %c7 = arith.constant 7 : index
    %c0_51 = arith.constant 0 : index
    %72 = vector.load %arg4[%c7, %c0_51] : memref<9x128xf32, #tpu.memory_space<vmem>>, vector<1x128xf32>
    %73 = vector.broadcast %72 : vector<1x128xf32> to vector<512x128xf32>
    %74 = arith.addf %71, %73 : vector<512x128xf32>
    %cst_52 = arith.constant 0.000000e+00 : f32
    %75 = vector.broadcast %cst_52 : f32 to vector<512x128xf32>
    %76 = arith.maximumf %74, %75 : vector<512x128xf32>
    %77 = arith.truncf %76 : vector<512x128xf32> to vector<512x128xbf16>
    %c7_53 = arith.constant 7 : index
    %c0_54 = arith.constant 0 : index
    %c0_55 = arith.constant 0 : index
    %78 = vector.load %arg3[%c7_53, %c0_54, %c0_55] : memref<8x128x128xbf16, #tpu.memory_space<vmem>>, vector<1x128x128xbf16>
    %79 = vector.shape_cast %78 : vector<1x128x128xbf16> to vector<128x128xbf16>
    %cst_56 = arith.constant dense<0.000000e+00> : vector<512x128xf32>
    %80 = tpu.matmul %77, %79, %cst_56 {dimension_numbers = #tpu.dot_dimension_numbers<[1], [0], [0], [1], [0, 0, 1, 1], [], []>} : vector<512x128xbf16>, vector<128x128xbf16>, vector<512x128xf32> -> vector<512x128xf32>
    %c8 = arith.constant 8 : index
    %c0_57 = arith.constant 0 : index
    %81 = vector.load %arg4[%c8, %c0_57] : memref<9x128xf32, #tpu.memory_space<vmem>>, vector<1x128xf32>
    %82 = vector.broadcast %81 : vector<1x128xf32> to vector<512x128xf32>
    %83 = arith.addf %80, %82 : vector<512x128xf32>
    %84 = arith.truncf %83 : vector<512x128xf32> to vector<512x128xbf16>
    %c0_58 = arith.constant 0 : index
    %c0_59 = arith.constant 0 : index
    %85 = vector.load %arg5[%c0_58, %c0_59] : memref<512x128xbf16, #tpu.memory_space<vmem>>, vector<512x128xbf16>
    tpu.vector_store %arg5[%c0_58, %c0_59], %84 {strides = array<i32>} : memref<512x128xbf16, #tpu.memory_space<vmem>>, vector<512x128xbf16>,
    return
  }
  func.func @transform_0(%arg0: i32) -> (i32, i32) {
    %c0_i32 = arith.constant 0 : i32
    %c0_i32_0 = arith.constant 0 : i32
    return %arg0, %c0_i32 : i32, i32
  }
  func.func @transform_1(%arg0: i32) -> (i32, i32, i32) {
    %c0_i32 = arith.constant 0 : i32
    %c0_i32_0 = arith.constant 0 : i32
    %c0_i32_1 = arith.constant 0 : i32
    %c0_i32_2 = arith.constant 0 : i32
    return %c0_i32, %c0_i32_0, %c0_i32_1 : i32, i32, i32
  }
  func.func @transform_2(%arg0: i32) -> (i32, i32, i32) {
    %c0_i32 = arith.constant 0 : i32
    %c0_i32_0 = arith.constant 0 : i32
    %c0_i32_1 = arith.constant 0 : i32
    %c0_i32_2 = arith.constant 0 : i32
    return %c0_i32, %c0_i32_0, %c0_i32_1 : i32, i32, i32
  }
  func.func @transform_3(%arg0: i32) -> (i32, i32) {
    %c0_i32 = arith.constant 0 : i32
    %c0_i32_0 = arith.constant 0 : i32
    %c0_i32_1 = arith.constant 0 : i32
    return %c0_i32, %c0_i32_0 : i32, i32
  }
  func.func @transform_4(%arg0: i32) -> (i32, i32) {
    %c0_i32 = arith.constant 0 : i32
    %c0_i32_0 = arith.constant 0 : i32
    return %arg0, %c0_i32 : i32, i32
  }
}

module attributes {stable_mosaic.version = 11 : i64} {
  func.func @mlp_kernel(%arg0: i32, %arg1: memref<512x16xf32, #tpu.memory_space<vmem>>, %arg2: memref<2x16x128xbf16, #tpu.memory_space<vmem>>, %arg3: memref<8x128x128xbf16, #tpu.memory_space<vmem>>, %arg4: memref<9x128xf32, #tpu.memory_space<vmem>>, %arg5: memref<512x128xbf16, #tpu.memory_space<vmem>>) attributes {dimension_semantics = [#tpu.dimension_semantics<parallel>], iteration_bounds = array<i64: 2>, scalar_prefetch = 0 : i64, scratch_operands = 0 : i64, tpu.core_type = #tpu.core_type<tc>, window_params = [{transform_indices = @transform_0, window_bounds = array<i64: 512, 16>}, {pipeline_mode = #tpu.pipeline_mode<synchronous>, transform_indices = @transform_1, window_bounds = array<i64: 2, 16, 128>}, {pipeline_mode = #tpu.pipeline_mode<synchronous>, transform_indices = @transform_2, window_bounds = array<i64: 8, 128, 128>}, {pipeline_mode = #tpu.pipeline_mode<synchronous>, transform_indices = @transform_3, window_bounds = array<i64: 9, 128>}, {transform_indices = @transform_4, window_bounds = array<i64: 512, 128>}]} {
    %c0 = arith.constant 0 : index
    %c0_0 = arith.constant 0 : index
    %0 = vector.load %arg1[%c0, %c0_0] : memref<512x16xf32, #tpu.memory_space<vmem>>, vector<512x16xf32>
    %1 = arith.truncf %0 : vector<512x16xf32> to vector<512x16xbf16>
    %c0_1 = arith.constant 0 : index
    %c0_2 = arith.constant 0 : index
    %c0_3 = arith.constant 0 : index
    %2 = vector.load %arg2[%c0_1, %c0_2, %c0_3] : memref<2x16x128xbf16, #tpu.memory_space<vmem>>, vector<1x16x128xbf16>
    %3 = vector.shape_cast %2 : vector<1x16x128xbf16> to vector<16x128xbf16>
    %cst = arith.constant dense<0.000000e+00> : vector<512x128xf32>
    %4 = tpu.matmul %1, %3, %cst {dimension_numbers = #tpu.dot_dimension_numbers<[1], [0], [0], [1], [0, 0, 1, 1], [], []>} : vector<512x16xbf16>, vector<16x128xbf16>, vector<512x128xf32> -> vector<512x128xf32>
    %c0_4 = arith.constant 0 : index
    %c0_5 = arith.constant 0 : index
    %5 = vector.load %arg4[%c0_4, %c0_5] : memref<9x128xf32, #tpu.memory_space<vmem>>, vector<1x128xf32>
    %6 = vector.broadcast %5 : vector<1x128xf32> to vector<512x128xf32>
    %7 = arith.addf %4, %6 : vector<512x128xf32>
    %cst_6 = arith.constant 0.000000e+00 : f32
    %8 = vector.broadcast %cst_6 : f32 to vector<512x128xf32>
    %9 = arith.maximumf %7, %8 : vector<512x128xf32>
    %10 = arith.truncf %9 : vector<512x128xf32> to vector<512x128xbf16>
    %c0_7 = arith.constant 0 : index
    %c0_8 = arith.constant 0 : index
    %c0_9 = arith.constant 0 : index
    %11 = vector.load %arg3[%c0_7, %c0_8, %c0_9] : memref<8x128x128xbf16, #tpu.memory_space<vmem>>, vector<1x128x128xbf16>
    %12 = vector.shape_cast %11 : vector<1x128x128xbf16> to vector<128x128xbf16>
    %cst_10 = arith.constant dense<0.000000e+00> : vector<512x128xf32>
    %13 = tpu.matmul %10, %12, %cst_10 {dimension_numbers = #tpu.dot_dimension_numbers<[1], [0], [0], [1], [0, 0, 1, 1], [], []>} : vector<512x128xbf16>, vector<128x128xbf16>, vector<512x128xf32> -> vector<512x128xf32>
    %c1 = arith.constant 1 : index
    %c0_11 = arith.constant 0 : index
    %14 = vector.load %arg4[%c1, %c0_11] : memref<9x128xf32, #tpu.memory_space<vmem>>, vector<1x128xf32>
    %15 = vector.broadcast %14 : vector<1x128xf32> to vector<512x128xf32>
    %16 = arith.addf %13, %15 : vector<512x128xf32>
    %cst_12 = arith.constant 0.000000e+00 : f32
    %17 = vector.broadcast %cst_12 : f32 to vector<512x128xf32>
    %18 = arith.maximumf %16, %17 : vector<512x128xf32>
    %19 = arith.truncf %18 : vector<512x128xf32> to vector<512x128xbf16>
    %c1_13 = arith.constant 1 : index
    %c0_14 = arith.constant 0 : index
    %c0_15 = arith.constant 0 : index
    %20 = vector.load %arg3[%c1_13, %c0_14, %c0_15] : memref<8x128x128xbf16, #tpu.memory_space<vmem>>, vector<1x128x128xbf16>
    %21 = vector.shape_cast %20 : vector<1x128x128xbf16> to vector<128x128xbf16>
    %cst_16 = arith.constant dense<0.000000e+00> : vector<512x128xf32>
    %22 = tpu.matmul %19, %21, %cst_16 {dimension_numbers = #tpu.dot_dimension_numbers<[1], [0], [0], [1], [0, 0, 1, 1], [], []>} : vector<512x128xbf16>, vector<128x128xbf16>, vector<512x128xf32> -> vector<512x128xf32>
    %c2 = arith.constant 2 : index
    %c0_17 = arith.constant 0 : index
    %23 = vector.load %arg4[%c2, %c0_17] : memref<9x128xf32, #tpu.memory_space<vmem>>, vector<1x128xf32>
    %24 = vector.broadcast %23 : vector<1x128xf32> to vector<512x128xf32>
    %25 = arith.addf %22, %24 : vector<512x128xf32>
    %cst_18 = arith.constant 0.000000e+00 : f32
    %26 = vector.broadcast %cst_18 : f32 to vector<512x128xf32>
    %27 = arith.maximumf %25, %26 : vector<512x128xf32>
    %28 = arith.truncf %27 : vector<512x128xf32> to vector<512x128xbf16>
    %c2_19 = arith.constant 2 : index
    %c0_20 = arith.constant 0 : index
    %c0_21 = arith.constant 0 : index
    %29 = vector.load %arg3[%c2_19, %c0_20, %c0_21] : memref<8x128x128xbf16, #tpu.memory_space<vmem>>, vector<1x128x128xbf16>
    %30 = vector.shape_cast %29 : vector<1x128x128xbf16> to vector<128x128xbf16>
    %cst_22 = arith.constant dense<0.000000e+00> : vector<512x128xf32>
    %31 = tpu.matmul %28, %30, %cst_22 {dimension_numbers = #tpu.dot_dimension_numbers<[1], [0], [0], [1], [0, 0, 1, 1], [], []>} : vector<512x128xbf16>, vector<128x128xbf16>, vector<512x128xf32> -> vector<512x128xf32>
    %c3 = arith.constant 3 : index
    %c0_23 = arith.constant 0 : index
    %32 = vector.load %arg4[%c3, %c0_23] : memref<9x128xf32, #tpu.memory_space<vmem>>, vector<1x128xf32>
    %33 = vector.broadcast %32 : vector<1x128xf32> to vector<512x128xf32>
    %34 = arith.addf %31, %33 : vector<512x128xf32>
    %cst_24 = arith.constant 0.000000e+00 : f32
    %35 = vector.broadcast %cst_24 : f32 to vector<512x128xf32>
    %36 = arith.maximumf %34, %35 : vector<512x128xf32>
    %37 = arith.truncf %36 : vector<512x128xf32> to vector<512x128xbf16>
    %c3_25 = arith.constant 3 : index
    %c0_26 = arith.constant 0 : index
    %c0_27 = arith.constant 0 : index
    %38 = vector.load %arg3[%c3_25, %c0_26, %c0_27] : memref<8x128x128xbf16, #tpu.memory_space<vmem>>, vector<1x128x128xbf16>
    %39 = vector.shape_cast %38 : vector<1x128x128xbf16> to vector<128x128xbf16>
    %cst_28 = arith.constant dense<0.000000e+00> : vector<512x128xf32>
    %40 = tpu.matmul %37, %39, %cst_28 {dimension_numbers = #tpu.dot_dimension_numbers<[1], [0], [0], [1], [0, 0, 1, 1], [], []>} : vector<512x128xbf16>, vector<128x128xbf16>, vector<512x128xf32> -> vector<512x128xf32>
    %c4 = arith.constant 4 : index
    %c0_29 = arith.constant 0 : index
    %41 = vector.load %arg4[%c4, %c0_29] : memref<9x128xf32, #tpu.memory_space<vmem>>, vector<1x128xf32>
    %42 = vector.broadcast %41 : vector<1x128xf32> to vector<512x128xf32>
    %43 = arith.addf %40, %42 : vector<512x128xf32>
    %cst_30 = arith.constant 0.000000e+00 : f32
    %44 = vector.broadcast %cst_30 : f32 to vector<512x128xf32>
    %45 = arith.maximumf %43, %44 : vector<512x128xf32>
    %46 = arith.truncf %45 : vector<512x128xf32> to vector<512x128xbf16>
    %c4_31 = arith.constant 4 : index
    %c0_32 = arith.constant 0 : index
    %c0_33 = arith.constant 0 : index
    %47 = vector.load %arg3[%c4_31, %c0_32, %c0_33] : memref<8x128x128xbf16, #tpu.memory_space<vmem>>, vector<1x128x128xbf16>
    %48 = vector.shape_cast %47 : vector<1x128x128xbf16> to vector<128x128xbf16>
    %cst_34 = arith.constant dense<0.000000e+00> : vector<512x128xf32>
    %49 = tpu.matmul %46, %48, %cst_34 {dimension_numbers = #tpu.dot_dimension_numbers<[1], [0], [0], [1], [0, 0, 1, 1], [], []>} : vector<512x128xbf16>, vector<128x128xbf16>, vector<512x128xf32> -> vector<512x128xf32>
    %c1_35 = arith.constant 1 : index
    %c0_36 = arith.constant 0 : index
    %c0_37 = arith.constant 0 : index
    %50 = vector.load %arg2[%c1_35, %c0_36, %c0_37] : memref<2x16x128xbf16, #tpu.memory_space<vmem>>, vector<1x16x128xbf16>
    %51 = vector.shape_cast %50 : vector<1x16x128xbf16> to vector<16x128xbf16>
    %cst_38 = arith.constant dense<0.000000e+00> : vector<512x128xf32>
    %52 = tpu.matmul %1, %51, %cst_38 {dimension_numbers = #tpu.dot_dimension_numbers<[1], [0], [0], [1], [0, 0, 1, 1], [], []>} : vector<512x16xbf16>, vector<16x128xbf16>, vector<512x128xf32> -> vector<512x128xf32>
    %53 = arith.addf %49, %52 : vector<512x128xf32>
    %c5 = arith.constant 5 : index
    %c0_39 = arith.constant 0 : index
    %54 = vector.load %arg4[%c5, %c0_39] : memref<9x128xf32, #tpu.memory_space<vmem>>, vector<1x128xf32>
    %55 = vector.broadcast %54 : vector<1x128xf32> to vector<512x128xf32>
    %56 = arith.addf %53, %55 : vector<512x128xf32>
    %cst_40 = arith.constant 0.000000e+00 : f32
    %57 = vector.broadcast %cst_40 : f32 to vector<512x128xf32>
    %58 = arith.maximumf %56, %57 : vector<512x128xf32>
    %59 = arith.truncf %58 : vector<512x128xf32> to vector<512x128xbf16>
    %c5_41 = arith.constant 5 : index
    %c0_42 = arith.constant 0 : index
    %c0_43 = arith.constant 0 : index
    %60 = vector.load %arg3[%c5_41, %c0_42, %c0_43] : memref<8x128x128xbf16, #tpu.memory_space<vmem>>, vector<1x128x128xbf16>
    %61 = vector.shape_cast %60 : vector<1x128x128xbf16> to vector<128x128xbf16>
    %cst_44 = arith.constant dense<0.000000e+00> : vector<512x128xf32>
    %62 = tpu.matmul %59, %61, %cst_44 {dimension_numbers = #tpu.dot_dimension_numbers<[1], [0], [0], [1], [0, 0, 1, 1], [], []>} : vector<512x128xbf16>, vector<128x128xbf16>, vector<512x128xf32> -> vector<512x128xf32>
    %c6 = arith.constant 6 : index
    %c0_45 = arith.constant 0 : index
    %63 = vector.load %arg4[%c6, %c0_45] : memref<9x128xf32, #tpu.memory_space<vmem>>, vector<1x128xf32>
    %64 = vector.broadcast %63 : vector<1x128xf32> to vector<512x128xf32>
    %65 = arith.addf %62, %64 : vector<512x128xf32>
    %cst_46 = arith.constant 0.000000e+00 : f32
    %66 = vector.broadcast %cst_46 : f32 to vector<512x128xf32>
    %67 = arith.maximumf %65, %66 : vector<512x128xf32>
    %68 = arith.truncf %67 : vector<512x128xf32> to vector<512x128xbf16>
    %c6_47 = arith.constant 6 : index
    %c0_48 = arith.constant 0 : index
    %c0_49 = arith.constant 0 : index
    %69 = vector.load %arg3[%c6_47, %c0_48, %c0_49] : memref<8x128x128xbf16, #tpu.memory_space<vmem>>, vector<1x128x128xbf16>
    %70 = vector.shape_cast %69 : vector<1x128x128xbf16> to vector<128x128xbf16>
    %cst_50 = arith.constant dense<0.000000e+00> : vector<512x128xf32>
    %71 = tpu.matmul %68, %70, %cst_50 {dimension_numbers = #tpu.dot_dimension_numbers<[1], [0], [0], [1], [0, 0, 1, 1], [], []>} : vector<512x128xbf16>, vector<128x128xbf16>, vector<512x128xf32> -> vector<512x128xf32>
    %c7 = arith.constant 7 : index
    %c0_51 = arith.constant 0 : index
    %72 = vector.load %arg4[%c7, %c0_51] : memref<9x128xf32, #tpu.memory_space<vmem>>, vector<1x128xf32>
    %73 = vector.broadcast %72 : vector<1x128xf32> to vector<512x128xf32>
    %74 = arith.addf %71, %73 : vector<512x128xf32>
    %cst_52 = arith.constant 0.000000e+00 : f32
    %75 = vector.broadcast %cst_52 : f32 to vector<512x128xf32>
    %76 = arith.maximumf %74, %75 : vector<512x128xf32>
    %77 = arith.truncf %76 : vector<512x128xf32> to vector<512x128xbf16>
    %c7_53 = arith.constant 7 : index
    %c0_54 = arith.constant 0 : index
    %c0_55 = arith.constant 0 : index
    %78 = vector.load %arg3[%c7_53, %c0_54, %c0_55] : memref<8x128x128xbf16, #tpu.memory_space<vmem>>, vector<1x128x128xbf16>
    %79 = vector.shape_cast %78 : vector<1x128x128xbf16> to vector<128x128xbf16>
    %cst_56 = arith.constant dense<0.000000e+00> : vector<512x128xf32>
    %80 = tpu.matmul %77, %79, %cst_56 {dimension_numbers = #tpu.dot_dimension_numbers<[1], [0], [0], [1], [0, 0, 1, 1], [], []>} : vector<512x128xbf16>, vector<128x128xbf16>, vector<512x128xf32> -> vector<512x128xf32>
    %c8 = arith.constant 8 : index
    %c0_57 = arith.constant 0 : index
    %81 = vector.load %arg4[%c8, %c0_57] : memref<9x128xf32, #tpu.memory_space<vmem>>, vector<1x128xf32>
    %82 = vector.broadcast %81 : vector<1x128xf32> to vector<512x128xf32>
    %83 = arith.addf %80, %82 : vector<512x128xf32>
    %84 = arith.truncf %83 : vector<512x128xf32> to vector<512x128xbf16>
    %c0_58 = arith.constant 0 : index
    %c0_59 = arith.constant 0 : index
    %85 = vector.load %arg5[%c0_58, %c0_59] : memref<512x128xbf16, #tpu.memory_space<vmem>>, vector<512x128xbf16>
    tpu.vector_store %arg5[%c0_58, %c0_59], %84 {strides = array<i32>} : memref<512x128xbf16, #tpu.memory_space<vmem>>, vector<512x128xbf16>,
    return
  }
  func.func @transform_0(%arg0: i32) -> (i32, i32) {
    %c0_i32 = arith.constant 0 : i32
    %c0_i32_0 = arith.constant 0 : i32
    return %arg0, %c0_i32 : i32, i32
  }
  func.func @transform_1(%arg0: i32) -> (i32, i32, i32) {
    %c0_i32 = arith.constant 0 : i32
    %c0_i32_0 = arith.constant 0 : i32
    %c0_i32_1 = arith.constant 0 : i32
    %c0_i32_2 = arith.constant 0 : i32
    return %c0_i32, %c0_i32_0, %c0_i32_1 : i32, i32, i32
  }
  func.func @transform_2(%arg0: i32) -> (i32, i32, i32) {
    %c0_i32 = arith.constant 0 : i32
    %c0_i32_0 = arith.constant 0 : i32
    %c0_i32_1 = arith.constant 0 : i32
    %c0_i32_2 = arith.constant 0 : i32
    return %c0_i32, %c0_i32_0, %c0_i32_1 : i32, i32, i32
  }
  func.func @transform_3(%arg0: i32) -> (i32, i32) {
    %c0_i32 = arith.constant 0 : i32
    %c0_i32_0 = arith.constant 0 : i32
    %c0_i32_1 = arith.constant 0 : i32
    return %c0_i32, %c0_i32_0 : i32, i32
  }
  func.func @transform_4(%arg0: i32) -> (i32, i32) {
    %c0_i32 = arith.constant 0 : i32
    %c0_i32_0 = arith.constant 0 : i32
    return %arg0, %c0_i32 : i32, i32
  }
}

</mosaic_0001>

<bundles_post_ra>
// kernel: mlp_forward.1
= control target key start
LH: loop header
LB: loop body
LE: loop exit
PB: predicated region body
PF: predicated region fallthrough
CT: control target
= control target key end

     0   :  { %s4432_s15 = smov 0   ;;  %s5940_s0 = inlined_call_operand.vmem [shape: f32[1024,16], index: 0, kind: input, shape index: {}]   ;;  %s5941_s1 = inlined_call_operand.vmem [shape: bf16[2,16,128], index: 1, kind: input, shape index: {}]   ;;  %s5942_s2 = inlined_call_operand.vmem [shape: bf16[8,128,128], index: 2, kind: input, shape index: {}]   ;;  %s5943_s3 = inlined_call_operand.vmem [shape: f32[9,128], index: 3, kind: input, shape index: {}]   ;;  %s5944_s4 = inlined_call_operand.vmem [shape: bf16[1024,128], index: 4, kind: output, shape index: {}]  }
   0x1 LB: > { %s3655_s16 = sadd.s32 4294967295, %s4405_s15   ;;  %p3659_p0 = scmp.ge.s32.totalorder %s4405_s15, 1  ;;  %s4405_s15 = sphi %s4432_s15, %s14_s15  }
   0x2   : > { %p163_p1 = scmp.lt.s32.totalorder %s4405_s15, 3 }
   0x4   : > { %p164_p2 = pnand %p3659_p0, %p163_p1 }
   0x6   : > { %167 = sbr.rel (%p164_p2) target bundleno = 2253 (0x8cd), region = 36 }
   0xb   : > { %v4108_v0 = vld [vmem:[%s5941_s1] sm:$0xff]  ;;  %s3660_s19 = sshll.u32 %s3655_s16, 6  ;;  %vm308_vm0 = vcmask 130048   ;;  %v4116_v16 = vld [vmem:[%s5942_s2 + $0x38] sm:$0xff]  ;;  %v4115_v20 = vld [vmem:[%s5942_s2 + $0x30] sm:$0xff] }
   0xc   : > { %p190_p3 = scmp.lt.s32.totalorder %s3660_s19, 127  ;;  %412 = vmatpush.bf16.msra.mxu0 %v4108_v0  ;;  %4365 = vmatpush.bf16.msra.mxu3 %v4108_v0  ;;  %v4114_v21 = vld [vmem:[%s5942_s2 + $0x28] sm:$0xff]  ;;  %v4113_v22 = vld [vmem:[%s5942_s2 + $0x20] sm:$0xff]  ;;  %v4112_v25 = vld [vmem:[%s5942_s2 + $0x18] sm:$0xff] }
   0xd   : > { %736 = vmatpush.bf16.msra.mxu1 %v4116_v16  ;;  %4366 = vmatpush.bf16.msra.mxu2 %v4116_v16  ;;  %v4111_v27 = vld [vmem:[%s5942_s2 + $0x10] sm:$0xff]  ;;  %v4110_v28 = vld [vmem:[%s5942_s2 + $0x8] sm:$0xff]  ;;  %v4109_v29 = vld [vmem:[%s5942_s2] sm:$0xff] }
   0xe   : > { %s5958_s19 = smov (!%p190_p3, %s3660_s19), 127  ;;  %v4530_v37 = vld [vmem:[%s5943_s3] ss:$0 sm:$0xff] }
   0xf   : > { %s3661_s20 = sshll.u32 %s5958_s19, 3  ;;  %s3663_s12 = sshll.u32 %s5958_s19, 2 }
  0x10   : > { %s4449_s23 = scalar_lea.vmem %s5940_s0, %s3661_s20  ;;  %s5745_s16 = scalar_lea.vmem %s5944_s4, %s3663_s12 }
  0x11   : > { %v202_v1 = vld [vmem:[%s4449_s23] sm:$0xff]  ;;  %v203_v2 = vld [vmem:[%s4449_s23 + $0x8] sm:$0xff]  ;;  %v204_v4 = vld [vmem:[%s4449_s23 + $0x10] sm:$0xff]  ;;  %737 = vmatpush.bf16.msra.mxu1 %v4115_v20  ;;  %4367 = vmatpush.bf16.msra.mxu2 %v4115_v20 }
  0x12   : > { %v4453_v3 = vpack.c.bf16 %v203_v2, %v202_v1  ;;  %v205_v5 = vld [vmem:[%s4449_s23 + $0x18] sm:$0xff]  ;;  %v206_v7 = vld [vmem:[%s4449_s23 + $0x20] sm:$0xff]  ;;  %v207_v8 = vld [vmem:[%s4449_s23 + $0x28] sm:$0xff] }
  0x13   : > { %v4459_v6 = vpack.c.bf16 %v205_v5, %v204_v4  ;;  %v4465_v9 = vpack.c.bf16 %v207_v8, %v206_v7  ;;  %v208_v10 = vld [vmem:[%s4449_s23 + $0x30] sm:$0xff]  ;;  %v209_v11 = vld [vmem:[%s4449_s23 + $0x38] sm:$0xff]  ;;  %v210_v13 = vld [vmem:[%s4449_s23 + $0x40] sm:$0xff] }
  0x14   : > { %3668 = vmatmul.msk.bf16.vlgmr.msra.gmra.mxu0 %vm308_vm0, %v4453_v3  ;;  %v4471_v12 = vpack.c.bf16 %v209_v11, %v208_v10  ;;  %v211_v14 = vld [vmem:[%s4449_s23 + $0x48] sm:$0xff]  ;;  %v212_v17 = vld [vmem:[%s4449_s23 + $0x50] sm:$0xff]  ;;  %v213_v18 = vld [vmem:[%s4449_s23 + $0x58] sm:$0xff] }
  0x15   : > { %v4477_v15 = vpack.c.bf16 %v211_v14, %v210_v13  ;;  %v4486_v19 = vpack.c.bf16 %v213_v18, %v212_v17  ;;  %738 = vmatpush.bf16.msra.mxu1 %v4114_v21  ;;  %4368 = vmatpush.bf16.msra.mxu2 %v4114_v21  ;;  %v214_v23 = vld [vmem:[%s4449_s23 + $0x60] sm:$0xff]  ;;  %v215_v24 = vld [vmem:[%s4449_s23 + $0x68] sm:$0xff]  ;;  %v216_v30 = vld [vmem:[%s4449_s23 + $0x70] sm:$0xff] }
  0x16   : > { %v4504_v26 = vpack.c.bf16 %v215_v24, %v214_v23  ;;  %v217_v31 = vld [vmem:[%s4449_s23 + $0x78] sm:$0xff]  ;;  %v218_v33 = vld [vmem:[%s4449_s23 + $0x80] sm:$0xff]  ;;  %v219_v34 = vld [vmem:[%s4449_s23 + $0x88] sm:$0xff] }
  0x17   : > { %v4519_v32 = vpack.c.bf16 %v217_v31, %v216_v30  ;;  %v4525_v35 = vpack.c.bf16 %v219_v34, %v218_v33  ;;  %v220_v43 = vld [vmem:[%s4449_s23 + $0x90] sm:$0xff]  ;;  %v221_v44 = vld [vmem:[%s4449_s23 + $0x98] sm:$0xff]  ;;  %v222_v53 = vld [vmem:[%s4449_s23 + $0xa0] sm:$0xff] }
  0x18   : > { %v4538_v46 = vpack.c.bf16 %v221_v44, %v220_v43  ;;  %v223_v54 = vld [vmem:[%s4449_s23 + $0xa8] sm:$0xff]  ;;  %v224_v63 = vld [vmem:[%s4449_s23 + $0xb0] sm:$0xff]  ;;  %v225_v0 = vld [vmem:[%s4449_s23 + $0xb8] sm:$0xff] }
  0x19   : > { %739 = vmatpush.bf16.msra.mxu1 %v4113_v22  ;;  %4369 = vmatpush.bf16.msra.mxu2 %v4113_v22  ;;  %v4546_v56 = vpack.c.bf16 %v223_v54, %v222_v53  ;;  %v4554_v2 = vpack.c.bf16 %v225_v0, %v224_v63  ;;  %v226_v13 = vld [vmem:[%s4449_s23 + $0xc0] sm:$0xff]  ;;  %v227_v14 = vld [vmem:[%s4449_s23 + $0xc8] sm:$0xff]  ;;  %v236_v44 = vld [vmem:[%s4449_s23 + $0x110] sm:$0xff] }
  0x1a   : > { %v4562_v17 = vpack.c.bf16 %v227_v14, %v226_v13  ;;  %v232_v53 = vld [vmem:[%s4449_s23 + $0xf0] sm:$0xff]  ;;  %v233_v54 = vld [vmem:[%s4449_s23 + $0xf8] sm:$0xff] }
  0x1b   : > { %v240_v13 = vld [vmem:[%s4449_s23 + $0x130] sm:$0xff]  ;;  %v241_v14 = vld [vmem:[%s4449_s23 + $0x138] sm:$0xff] }
  0x1d   : > { %740 = vmatpush.bf16.msra.mxu1 %v4112_v25  ;;  %4370 = vmatpush.bf16.msra.mxu2 %v4112_v25  ;;  %v228_v25 = vld [vmem:[%s4449_s23 + $0xd0] sm:$0xff] }
  0x21   : > { %741 = vmatpush.bf16.msra.mxu1 %v4111_v27  ;;  %4371 = vmatpush.bf16.msra.mxu2 %v4111_v27  ;;  %v229_v27 = vld [vmem:[%s4449_s23 + $0xd8] sm:$0xff] }
  0x24   : > { %3669 = vmatmul.msk.bf16.gmra.mxu0 %vm308_vm0, %v4459_v6 }
  0x25   : > { %742 = vmatpush.bf16.msra.mxu1 %v4110_v28  ;;  %4372 = vmatpush.bf16.msra.mxu2 %v4110_v28 }
  0x29   : > { %743 = vmatpush.bf16.msra.mxu1 %v4109_v29  ;;  %4373 = vmatpush.bf16.msra.mxu2 %v4109_v29  ;;  %v4570_v29 = vpack.c.bf16 %v229_v27, %v228_v25  ;;  %v4621_v27 = vld [vmem:[%s5943_s3 + $0x1] ss:$0 sm:$0xff] }
  0x34   : > { %3670 = vmatmul.msk.bf16.gmra.mxu0 %vm308_vm0, %v4465_v9 }
  0x44   : > { %3671 = vmatmul.msk.bf16.gmra.mxu0 %vm308_vm0, %v4471_v12 }
  0x54   : > { %3672 = vmatmul.msk.bf16.gmra.mxu0 %vm308_vm0, %v4477_v15 }
  0x64   : > { %3673 = vmatmul.msk.bf16.gmra.mxu0 %vm308_vm0, %v4486_v19 }
  0x74   : > { %3674 = vmatmul.msk.bf16.gmra.mxu0 %vm308_vm0, %v4504_v26 }
  0x84   : > { %3675 = vmatmul.msk.bf16.gmra.mxu0 %vm308_vm0, %v4519_v32 }
  0x91   : > { %v414_v36 = vpop.f32.mrf.mxu0 }
  0x92   : > { %v415_v38 = vadd.f32 %v4530_v37, %v414_v36 }
  0x94   : > { %3676 = vmatmul.msk.bf16.gmra.mxu0 %vm308_vm0, %v4525_v35  ;;  %v574_v41 = vmax.f32 %v415_v38, 0.0 }
  0x99   : > { %v416_v39 = vpop.f32.mrf.mxu0 }
  0x9a   : > { %v417_v40 = vadd.f32 %v4530_v37, %v416_v39  ;;  %v230_v39 = vld [vmem:[%s4449_s23 + $0xe0] sm:$0xff] }
  0x9c   : > { %v575_v42 = vmax.f32 %v417_v40, 0.0  ;;  %v231_v40 = vld [vmem:[%s4449_s23 + $0xe8] sm:$0xff] }
  0x9e   : > { %v638_v45 = vpack.c.bf16 %v575_v42, %v574_v41  ;;  %v4578_v42 = vpack.c.bf16 %v231_v40, %v230_v39 }
  0xa0   : > { %744 = vmatmul.bf16.vlgmr.msra.gmra.mxu1 %v638_v45  ;;  %v237_v45 = vld [vmem:[%s4449_s23 + $0x118] sm:$0xff] }
  0xa1   : > { %v419_v47 = vpop.f32.mrf.mxu0 }
  0xa2   : > { %v420_v48 = vadd.f32 %v4530_v37, %v419_v47  ;;  %v4584_v47 = vpack.c.bf16 %v237_v45, %v236_v44 }
  0xa4   : > { %3677 = vmatmul.msk.bf16.gmra.mxu0 %vm308_vm0, %v4538_v46  ;;  %v576_v51 = vmax.f32 %v420_v48, 0.0  ;;  %3685 = vmatmul.msk.bf16.vlgmr.msra.gmra.mxu3 %vm308_vm0, %v4584_v47 }
  0xa9   : > { %v421_v49 = vpop.f32.mrf.mxu0 }
  0xaa   : > { %v422_v50 = vadd.f32 %v4530_v37, %v421_v49 }
  0xac   : > { %v577_v52 = vmax.f32 %v422_v50, 0.0 }
  0xae   : > { %v639_v55 = vpack.c.bf16 %v577_v52, %v576_v51 }
  0xb0   : > { %749 = vmatmul.bf16.gmra.mxu1 %v639_v55 }
  0xb1   : > { %v424_v57 = vpop.f32.mrf.mxu0 }
  0xb2   : > { %v425_v58 = vadd.f32 %v4530_v37, %v424_v57  ;;  %v4592_v57 = vpack.c.bf16 %v233_v54, %v232_v53  ;;  %v244_v53 = vld [vmem:[%s4449_s23 + $0x150] sm:$0xff]  ;;  %v245_v54 = vld [vmem:[%s4449_s23 + $0x158] sm:$0xff] }
  0xb4   : > { %3678 = vmatmul.msk.bf16.gmra.mxu0 %vm308_vm0, %v4546_v56  ;;  %v578_v61 = vmax.f32 %v425_v58, 0.0 }
  0xb9   : > { %v426_v59 = vpop.f32.mrf.mxu0 }
  0xba   : > { %v427_v60 = vadd.f32 %v4530_v37, %v426_v59  ;;  %v238_v59 = vld [vmem:[%s4449_s23 + $0x120] sm:$0xff] }
  0xbc   : > { %v579_v62 = vmax.f32 %v427_v60, 0.0  ;;  %v239_v60 = vld [vmem:[%s4449_s23 + $0x128] sm:$0xff] }
  0xbe   : > { %v640_v1 = vpack.c.bf16 %v579_v62, %v578_v61  ;;  %v4598_v61 = vpack.c.bf16 %v239_v60, %v238_v59 }
  0xc0   : > { %754 = vmatmul.bf16.gmra.mxu1 %v640_v1  ;;  %3686 = vmatmul.msk.bf16.gmra.mxu3 %vm308_vm0, %v4598_v61 }
  0xc1   : > { %v429_v4 = vpop.f32.mrf.mxu0 }
  0xc2   : > { %v430_v5 = vadd.f32 %v4530_v37, %v429_v4 }
  0xc4   : > { %3679 = vmatmul.msk.bf16.gmra.mxu0 %vm308_vm0, %v4554_v2  ;;  %v580_v10 = vmax.f32 %v430_v5, 0.0  ;;  %v234_v5 = vld [vmem:[%s4449_s23 + $0x100] sm:$0xff] }
  0xc9   : > { %v431_v7 = vpop.f32.mrf.mxu0 }
  0xca   : > { %v432_v8 = vadd.f32 %v4530_v37, %v431_v7  ;;  %v235_v7 = vld [vmem:[%s4449_s23 + $0x108] sm:$0xff] }
  0xcc   : > { %v581_v11 = vmax.f32 %v432_v8, 0.0 }
  0xce   : > { %v641_v16 = vpack.c.bf16 %v581_v11, %v580_v10  ;;  %v4606_v10 = vpack.c.bf16 %v235_v7, %v234_v5 }
  0xd0   : > { %759 = vmatmul.bf16.gmra.mxu1 %v641_v16  ;;  %v4612_v16 = vpack.c.bf16 %v241_v14, %v240_v13 }
  0xd1   : > { %v434_v18 = vpop.f32.mrf.mxu0 }
  0xd2   : > { %v435_v20 = vadd.f32 %v4530_v37, %v434_v18  ;;  %3687 = vmatmul.msk.bf16.gmra.mxu3 %vm308_vm0, %v4612_v16 }
  0xd4   : > { %3680 = vmatmul.msk.bf16.gmra.mxu0 %vm308_vm0, %v4562_v17  ;;  %v582_v23 = vmax.f32 %v435_v20, 0.0 }
  0xd9   : > { %v436_v21 = vpop.f32.mrf.mxu0 }
  0xda   : > { %v437_v22 = vadd.f32 %v4530_v37, %v436_v21 }
  0xdc   : > { %v583_v24 = vmax.f32 %v437_v22, 0.0 }
  0xde   : > { %v642_v28 = vpack.c.bf16 %v583_v24, %v582_v23 }
  0xe0   : > { %764 = vmatmul.bf16.gmra.mxu1 %v642_v28 }
  0xe1   : > { %v439_v30 = vpop.f32.mrf.mxu0 }
  0xe2   : > { %v440_v31 = vadd.f32 %v4530_v37, %v439_v30  ;;  %v242_v30 = vld [vmem:[%s4449_s23 + $0x140] sm:$0xff] }
  0xe4   : > { %3681 = vmatmul.msk.bf16.gmra.mxu0 %vm308_vm0, %v4570_v29  ;;  %v584_v36 = vmax.f32 %v440_v31, 0.0  ;;  %v243_v31 = vld [vmem:[%s4449_s23 + $0x148] sm:$0xff] }
  0xe9   : > { %v441_v33 = vpop.f32.mrf.mxu0 }
  0xea   : > { %v442_v34 = vadd.f32 %v4530_v37, %v441_v33 }
  0xec   : > { %v585_v38 = vmax.f32 %v442_v34, 0.0  ;;  %v4626_v34 = vpack.c.bf16 %v243_v31, %v242_v30 }
  0xee   : > { %v643_v41 = vpack.c.bf16 %v585_v38, %v584_v36  ;;  %3688 = vmatmul.msk.bf16.gmra.mxu3 %vm308_vm0, %v4626_v34 }
  0xf0   : > { %769 = vmatmul.bf16.gmra.mxu1 %v643_v41 }
  0xf1   : > { %v444_v43 = vpop.f32.mrf.mxu0 }
  0xf2   : > { %v445_v48 = vadd.f32 %v4530_v37, %v444_v43 }
  0xf4   : > { %3682 = vmatmul.msk.bf16.gmra.mxu0 %vm308_vm0, %v4578_v42  ;;  %v586_v51 = vmax.f32 %v445_v48, 0.0 }
  0xf9   : > { %v446_v49 = vpop.f32.mrf.mxu0 }
  0xfa   : > { %v447_v50 = vadd.f32 %v4530_v37, %v446_v49 }
  0xfc   : > { %v587_v52 = vmax.f32 %v447_v50, 0.0 }
  0xfe   : > { %v644_v55 = vpack.c.bf16 %v587_v52, %v586_v51 }
 0x100   : > { %774 = vmatmul.bf16.gmra.mxu1 %v644_v55 }
 0x101   : > { %v449_v58 = vpop.f32.mrf.mxu0 }
 0x102   : > { %v450_v62 = vadd.f32 %v4530_v37, %v449_v58  ;;  %v4638_v58 = vpack.c.bf16 %v245_v54, %v244_v53 }
 0x104   : > { %3683 = vmatmul.msk.bf16.gmra.mxu0 %vm308_vm0, %v4592_v57  ;;  %v588_v1 = vmax.f32 %v450_v62, 0.0  ;;  %3689 = vmatmul.msk.bf16.gmra.mxu3 %vm308_vm0, %v4638_v58 }
 0x109   : > { %v451_v63 = vpop.f32.mrf.mxu0 }
 0x10a   : > { %v452_v0 = vadd.f32 %v4530_v37, %v451_v63 }
 0x10c   : > { %v589_v4 = vmax.f32 %v452_v0, 0.0 }
 0x10e   : > { %v645_v8 = vpack.c.bf16 %v589_v4, %v588_v1 }
 0x110   : > { %779 = vmatmul.bf16.gmra.mxu1 %v645_v8 }
 0x111   : > { %v454_v11 = vpop.f32.mrf.mxu0 }
 0x112   : > { %v455_v18 = vadd.f32 %v4530_v37, %v454_v11 }
 0x114   : > { %3684 = vmatmul.msk.bf16.gmra.mxu0 %vm308_vm0, %v4606_v10  ;;  %v590_v22 = vmax.f32 %v455_v18, 0.0  ;;  %v246_v18 = vld [vmem:[%s4449_s23 + $0x160] sm:$0xff] }
 0x119   : > { %v456_v20 = vpop.f32.mrf.mxu0 }
 0x11a   : > { %v457_v21 = vadd.f32 %v4530_v37, %v456_v20  ;;  %v247_v20 = vld [vmem:[%s4449_s23 + $0x168] sm:$0xff] }
 0x11c   : > { %v591_v23 = vmax.f32 %v457_v21, 0.0 }
 0x11d   : > { %v745_v24 = vpop.f32.mrf.mxu1 }
 0x11e   : > { %v646_v25 = vpack.c.bf16 %v591_v23, %v590_v22  ;;  %v746_v33 = vadd.f32 %v4621_v27, %v745_v24  ;;  %v4650_v22 = vpack.c.bf16 %v247_v20, %v246_v18 }
 0x120   : > { %784 = vmatmul.bf16.gmra.mxu1 %v646_v25  ;;  %v905_v39 = vmax.f32 %v746_v33, 0.0  ;;  %3690 = vmatmul.msk.bf16.gmra.mxu3 %vm308_vm0, %v4650_v22 }
 0x121   : > { %v459_v28 = vpop.f32.mrf.mxu0 }
 0x122   : > { %v460_v40 = vadd.f32 %v4530_v37, %v459_v28 }
 0x124   : > { %v592_v48 = vmax.f32 %v460_v40, 0.0 }
 0x125   : > { %v747_v36 = vpop.f32.mrf.mxu1 }
 0x126   : > { %v748_v38 = vadd.f32 %v4621_v27, %v747_v36 }
 0x128   : > { %v906_v41 = vmax.f32 %v748_v38, 0.0 }
 0x129   : > { %v461_v43 = vpop.f32.mrf.mxu0 }
 0x12a   : > { %v4632_v44 = vpack.c.bf16 %v906_v41, %v905_v39  ;;  %v462_v45 = vadd.f32 %v4530_v37, %v461_v43 }
 0x12c   : > { %v593_v49 = vmax.f32 %v462_v45, 0.0  ;;  %v248_v45 = vld [vmem:[%s4449_s23 + $0x170] sm:$0xff] }
 0x12d   : > { %v750_v50 = vpop.f32.mrf.mxu1 }
 0x12e   : > { %v647_v51 = vpack.c.bf16 %v593_v49, %v592_v48  ;;  %v751_v55 = vadd.f32 %v4621_v27, %v750_v50  ;;  %v249_v48 = vld [vmem:[%s4449_s23 + $0x178] sm:$0xff] }
 0x12f   : > { %v4662_v50 = vpack.c.bf16 %v249_v48, %v248_v45  ;;  %v4124_v45 = vld [vmem:[%s5942_s2 + $0x78] sm:$0xff] }
 0x130   : > { %789 = vmatmul.bf16.gmra.mxu1 %v647_v51  ;;  %v907_v62 = vmax.f32 %v751_v55, 0.0  ;;  %1068 = vmatpush.bf16.msrb.mxu2 %v4124_v45 }
 0x131   : > { %v464_v52 = vpop.f32.mrf.mxu0  ;;  %3691 = vmatmul.msk.bf16.gmra.mxu3 %vm308_vm0, %v4662_v50 }
 0x132   : > { %v465_v63 = vadd.f32 %v4530_v37, %v464_v52 }
 0x134   : > { %v594_v7 = vmax.f32 %v465_v63, 0.0 }
 0x135   : > { %v752_v59 = vpop.f32.mrf.mxu1 }
 0x136   : > { %v753_v60 = vadd.f32 %v4621_v27, %v752_v59 }
 0x138   : > { %v908_v0 = vmax.f32 %v753_v60, 0.0 }
 0x139   : > { %v466_v1 = vpop.f32.mrf.mxu0 }
 0x13a   : > { %v467_v4 = vadd.f32 %v4530_v37, %v466_v1  ;;  %v4645_v5 = vpack.c.bf16 %v908_v0, %v907_v62 }
 0x13c   : > { %v595_v8 = vmax.f32 %v467_v4, 0.0 }
 0x13d   : > { %v755_v11 = vpop.f32.mrf.mxu1 }
 0x13e   : > { %v648_v13 = vpack.c.bf16 %v595_v8, %v594_v7  ;;  %v756_v21 = vadd.f32 %v4621_v27, %v755_v11  ;;  %v250_v7 = vld [vmem:[%s4449_s23 + $0x180] sm:$0xff]  ;;  %v251_v8 = vld [vmem:[%s4449_s23 + $0x188] sm:$0xff] }
 0x13f   : > { %v4673_v11 = vpack.c.bf16 %v251_v8, %v250_v7  ;;  %v256_v8 = vld [vmem:[%s4449_s23 + $0x1b0] sm:$0xff] }
 0x140   : > { %794 = vmatmul.bf16.gmra.mxu1 %v648_v13  ;;  %v909_v25 = vmax.f32 %v756_v21, 0.0 }
 0x141   : > { %v469_v14 = vpop.f32.mrf.mxu0  ;;  %3692 = vmatmul.msk.bf16.gmra.mxu3 %vm308_vm0, %v4673_v11 }
 0x142   : > { %v470_v28 = vadd.f32 %v4530_v37, %v469_v14 }
 0x144   : > { %v596_v38 = vmax.f32 %v470_v28, 0.0  ;;  %v253_v28 = vld [vmem:[%s4449_s23 + $0x198] sm:$0xff] }
 0x145   : > { %v757_v23 = vpop.f32.mrf.mxu1 }
 0x146   : > { %v758_v24 = vadd.f32 %v4621_v27, %v757_v23 }
 0x148   : > { %v910_v30 = vmax.f32 %v758_v24, 0.0 }
 0x149   : > { %v471_v31 = vpop.f32.mrf.mxu0 }
 0x14a   : > { %v472_v33 = vadd.f32 %v4530_v37, %v471_v31  ;;  %v4657_v36 = vpack.c.bf16 %v910_v30, %v909_v25  ;;  %v252_v25 = vld [vmem:[%s4449_s23 + $0x190] sm:$0xff] }
 0x14b   : > { %v4681_v30 = vpack.c.bf16 %v253_v28, %v252_v25 }
 0x14c   : > { %v597_v39 = vmax.f32 %v472_v33, 0.0 }
 0x14d   : > { %v760_v40 = vpop.f32.mrf.mxu1 }
 0x14e   : > { %v649_v41 = vpack.c.bf16 %v597_v39, %v596_v38  ;;  %v761_v49 = vadd.f32 %v4621_v27, %v760_v40  ;;  %v499_v38 = vpop.f32.mrf.mxu3 }
 0x150   : > { %799 = vmatmul.bf16.gmra.mxu1 %v649_v41  ;;  %v911_v53 = vmax.f32 %v761_v49, 0.0 }
 0x151   : > { %v474_v43 = vpop.f32.mrf.mxu0  ;;  %3693 = vmatmul.msk.bf16.gmra.mxu3 %vm308_vm0, %v4681_v30 }
 0x152   : > { %v475_v54 = vadd.f32 %v4530_v37, %v474_v43 }
 0x154   : > { %v598_v63 = vmax.f32 %v475_v54, 0.0 }
 0x155   : > { %v762_v51 = vpop.f32.mrf.mxu1 }
 0x156   : > { %v763_v52 = vadd.f32 %v4621_v27, %v762_v51  ;;  %v501_v49 = vpop.f32.mrf.mxu3  ;;  %v254_v51 = vld [vmem:[%s4449_s23 + $0x1a0] sm:$0xff] }
 0x157   : > { %v502_v45 = vadd.f32 %v4530_v37, %v501_v49 }
 0x158   : > { %v912_v55 = vmax.f32 %v763_v52, 0.0  ;;  %v255_v52 = vld [vmem:[%s4449_s23 + $0x1a8] sm:$0xff] }
 0x159   : > { %v476_v59 = vpop.f32.mrf.mxu0 }
 0x15a   : > { %v477_v60 = vadd.f32 %v4530_v37, %v476_v59  ;;  %v4669_v62 = vpack.c.bf16 %v912_v55, %v911_v53  ;;  %v4692_v53 = vpack.c.bf16 %v255_v52, %v254_v51  ;;  %v609_v52 = vmax.f32 %v502_v45, 0.0  ;;  %v264_v45 = vld [vmem:[%s4449_s23 + $0x1f0] sm:$0xff] }
 0x15c   : > { %v599_v0 = vmax.f32 %v477_v60, 0.0 }
 0x15e   : > { %v650_v1 = vpack.c.bf16 %v599_v0, %v598_v63  ;;  %v504_v59 = vpop.f32.mrf.mxu3 }
 0x160   : > { %804 = vmatmul.bf16.gmra.mxu1 %v650_v1 }
 0x161   : > { %v479_v4 = vpop.f32.mrf.mxu0  ;;  %3694 = vmatmul.msk.bf16.gmra.mxu3 %vm308_vm0, %v4692_v53 }
 0x162   : > { %v480_v13 = vadd.f32 %v4530_v37, %v479_v4 }
 0x164   : > { %v600_v20 = vmax.f32 %v480_v13, 0.0  ;;  %v257_v13 = vld [vmem:[%s4449_s23 + $0x1b8] sm:$0xff] }
 0x166   : > { %v506_v7 = vpop.f32.mrf.mxu3 }
 0x169   : > { %v481_v14 = vpop.f32.mrf.mxu0 }
 0x16a   : > { %v482_v18 = vadd.f32 %v4530_v37, %v481_v14  ;;  %v4700_v14 = vpack.c.bf16 %v257_v13, %v256_v8 }
 0x16c   : > { %v601_v21 = vmax.f32 %v482_v18, 0.0 }
 0x16e   : > { %v651_v23 = vpack.c.bf16 %v601_v21, %v600_v20  ;;  %v509_v21 = vpop.f32.mrf.mxu3 }
 0x170   : > { %809 = vmatmul.bf16.gmra.mxu1 %v651_v23 }
 0x171   : > { %v484_v24 = vpop.f32.mrf.mxu0  ;;  %3695 = vmatmul.msk.bf16.gmra.mxu3 %vm308_vm0, %v4700_v14 }
 0x172   : > { %v485_v31 = vadd.f32 %v4530_v37, %v484_v24 }
 0x174   : > { %v602_v40 = vmax.f32 %v485_v31, 0.0  ;;  %v4123_v31 = vld [vmem:[%s5942_s2 + $0x70] sm:$0xff] }
 0x175   : > { %1069 = vmatpush.bf16.msrb.mxu2 %v4123_v31 }
 0x179   : > { %v486_v33 = vpop.f32.mrf.mxu0 }
 0x17a   : > { %v487_v39 = vadd.f32 %v4530_v37, %v486_v33  ;;  %v511_v33 = vpop.f32.mrf.mxu3 }
 0x17c   : > { %v603_v41 = vmax.f32 %v487_v39, 0.0  ;;  %v258_v39 = vld [vmem:[%s4449_s23 + $0x1c0] sm:$0xff] }
 0x17e   : > { %v652_v43 = vpack.c.bf16 %v603_v41, %v602_v40  ;;  %v259_v40 = vld [vmem:[%s4449_s23 + $0x1c8] sm:$0xff] }
 0x17f   : > { %v4711_v41 = vpack.c.bf16 %v259_v40, %v258_v39 }
 0x180   : > { %814 = vmatmul.bf16.gmra.mxu1 %v652_v43  ;;  %v500_v43 = vadd.f32 %v4530_v37, %v499_v38  ;;  %v507_v38 = vadd.f32 %v4530_v37, %v506_v7  ;;  %v510_v7 = vadd.f32 %v4530_v37, %v509_v21 }
 0x181   : > { %v489_v48 = vpop.f32.mrf.mxu0  ;;  %5949 = vst [vmem:[#allocation2_spill] sm:$0xff] %v4711_v41  ;;  %3696 = vmatmul.msk.bf16.gmra.mxu3 %vm308_vm0, %v4711_v41 }
 0x182   : > { %v490_v54 = vadd.f32 %v4530_v37, %v489_v48  ;;  %v514_v48 = vpop.f32.mrf.mxu3  ;;  %v608_v51 = vmax.f32 %v500_v43, 0.0  ;;  %v611_v8 = vmax.f32 %v507_v38, 0.0  ;;  %v612_v31 = vmax.f32 %v510_v7, 0.0  ;;  %v4121_v38 = vld [vmem:[%s5942_s2 + $0x60] sm:$0xff] }
 0x184   : > { %v604_v63 = vmax.f32 %v490_v54, 0.0  ;;  %v655_v54 = vpack.c.bf16 %v609_v52, %v608_v51  ;;  %v265_v51 = vld [vmem:[%s4449_s23 + $0x1f8] sm:$0xff] }
 0x185   : > { %v4738_v52 = vpack.c.bf16 %v265_v51, %v264_v45 }
 0x187   : > { %5952 = vst [vmem:[#allocation5_spill] sm:$0xff] %v4738_v52 }
 0x189   : > { %v491_v55 = vpop.f32.mrf.mxu0 }
 0x18a   : > { %v492_v60 = vadd.f32 %v4530_v37, %v491_v55  ;;  %v516_v55 = vpop.f32.mrf.mxu3 }
 0x18c   : > { %v605_v0 = vmax.f32 %v492_v60, 0.0  ;;  %v260_v60 = vld [vmem:[%s4449_s23 + $0x1d0] sm:$0xff] }
 0x18e   : > { %v653_v1 = vpack.c.bf16 %v605_v0, %v604_v63  ;;  %v261_v63 = vld [vmem:[%s4449_s23 + $0x1d8] sm:$0xff] }
 0x18f   : > { %v4719_v0 = vpack.c.bf16 %v261_v63, %v260_v60  ;;  %v517_v60 = vadd.f32 %v4530_v37, %v516_v55 }
 0x190   : > { %819 = vmatmul.bf16.gmra.mxu1 %v653_v1  ;;  %v505_v1 = vadd.f32 %v4530_v37, %v504_v59  ;;  %v263_v59 = vld [vmem:[%s4449_s23 + $0x1e8] sm:$0xff] }
 0x191   : > { %v494_v4 = vpop.f32.mrf.mxu0  ;;  %5950 = vst [vmem:[#allocation3_spill] sm:$0xff] %v4719_v0  ;;  %3697 = vmatmul.msk.bf16.gmra.mxu3 %vm308_vm0, %v4719_v0  ;;  %v615_v63 = vmax.f32 %v517_v60, 0.0 }
 0x192   : > { %v495_v18 = vadd.f32 %v4530_v37, %v494_v4  ;;  %v519_v49 = vpop.f32.mrf.mxu3  ;;  %v610_v4 = vmax.f32 %v505_v1, 0.0 }
 0x194   : > { %v606_v24 = vmax.f32 %v495_v18, 0.0  ;;  %v656_v13 = vpack.c.bf16 %v611_v8, %v610_v4  ;;  %v4122_v18 = vld [vmem:[%s5942_s2 + $0x68] sm:$0xff]  ;;  %v520_v8 = vadd.f32 %v4530_v37, %v519_v49  ;;  %v4120_v49 = vld [vmem:[%s5942_s2 + $0x58] sm:$0xff] }
 0x195   : > { %1070 = vmatpush.bf16.msrb.mxu2 %v4122_v18 }
 0x199   : > { %v496_v20 = vpop.f32.mrf.mxu0  ;;  %1071 = vmatpush.bf16.msrb.mxu2 %v4121_v38 }
 0x19a   : > { %v497_v23 = vadd.f32 %v4530_v37, %v496_v20  ;;  %v521_v20 = vpop.f32.mrf.mxu3 }
 0x19c   : > { %v607_v25 = vmax.f32 %v497_v23, 0.0  ;;  %v262_v23 = vld [vmem:[%s4449_s23 + $0x1e0] sm:$0xff] }
 0x19d   : > { %1072 = vmatpush.bf16.msrb.mxu2 %v4120_v49 }
 0x19e   : > { %v654_v28 = vpack.c.bf16 %v607_v25, %v606_v24  ;;  %v4730_v24 = vpack.c.bf16 %v263_v59, %v262_v23  ;;  %v512_v25 = vadd.f32 %v4530_v37, %v511_v33 }
 0x1a0   : > { %824 = vmatmul.bf16.vlgmr.msra.gmra.mxu2 %v654_v28  ;;  %5951 = vst [vmem:[#allocation4_spill] sm:$0xff] %v4730_v24  ;;  %v613_v39 = vmax.f32 %v512_v25, 0.0 }
 0x1a1   : > { %3698 = vmatmul.msk.bf16.gmra.mxu3 %vm308_vm0, %v4730_v24 }
 0x1a2   : > { %v657_v40 = vpack.c.bf16 %v613_v39, %v612_v31 }
 0x1a3   : > { %v524_v28 = vpop.f32.mrf.mxu3 }
 0x1a4   : > { %v525_v59 = vadd.f32 %v4530_v37, %v524_v28 }
 0x1a6   : > { %v618_v31 = vmax.f32 %v525_v59, 0.0 }
 0x1ab   : > { %v526_v43 = vpop.f32.mrf.mxu3 }
 0x1ac   : > { %v527_v7 = vadd.f32 %v4530_v37, %v526_v43 }
 0x1ae   : > { %v619_v39 = vmax.f32 %v527_v7, 0.0 }
 0x1b0   : > { %829 = vmatmul.bf16.gmra.mxu2 %v655_v54  ;;  %v515_v54 = vadd.f32 %v4530_v37, %v514_v48  ;;  %v522_v48 = vadd.f32 %v4530_v37, %v521_v20 }
 0x1b1   : > { %3699 = vmatmul.msk.bf16.gmra.mxu3 %vm308_vm0, %v4738_v52 }
 0x1b2   : > { %v614_v33 = vmax.f32 %v515_v54, 0.0  ;;  %v617_v55 = vmax.f32 %v522_v48, 0.0 }
 0x1b4   : > { %v529_v21 = vpop.f32.mrf.mxu3  ;;  %v658_v1 = vpack.c.bf16 %v615_v63, %v614_v33 }
 0x1b5   : > { %v530_v20 = vadd.f32 %v4530_v37, %v529_v21  ;;  %v4119_v21 = vld [vmem:[%s5942_s2 + $0x50] sm:$0xff] }
 0x1b6   : > { %1073 = vmatpush.bf16.msrb.mxu2 %v4119_v21 }
 0x1b7   : > { %v620_v54 = vmax.f32 %v530_v20, 0.0 }
 0x1bc   : > { %v531_v4 = vpop.f32.mrf.mxu3 }
 0x1bd   : > { %v532_v51 = vadd.f32 %v4530_v37, %v531_v4 }
 0x1bf   : > { %v621_v60 = vmax.f32 %v532_v51, 0.0 }
 0x1c0   : > { %834 = vmatmul.bf16.gmra.mxu2 %v656_v13  ;;  %v616_v13 = vmax.f32 %v520_v8, 0.0 }
 0x1c1   : > { %v661_v33 = vpack.c.bf16 %v621_v60, %v620_v54 }
 0x1c2   : > { %v659_v23 = vpack.c.bf16 %v617_v55, %v616_v13 }
 0x1c4   : > { %v534_v18 = vpop.f32.mrf.mxu3 }
 0x1c5   : > { %v535_v63 = vadd.f32 %v4530_v37, %v534_v18  ;;  %v4132_v18 = vld [vmem:[%s5942_s2 + $0xb8] sm:$0xff] }
 0x1c6   : > { %1400 = vmatpush.bf16.msrb.mxu3 %v4132_v18  ;;  %v4118_v18 = vld [vmem:[%s5942_s2 + $0x48] sm:$0xff] }
 0x1c7   : > { %v622_v38 = vmax.f32 %v535_v63, 0.0  ;;  %1074 = vmatpush.bf16.msrb.mxu2 %v4118_v18 }
 0x1cc   : > { %v536_v25 = vpop.f32.mrf.mxu3 }
 0x1d0   : > { %839 = vmatmul.bf16.gmra.mxu2 %v657_v40  ;;  %v660_v40 = vpack.c.bf16 %v619_v39, %v618_v31 }
 0x1d4   : > { %v539_v45 = vpop.f32.mrf.mxu3 }
 0x1d5   : > { %v540_v55 = vadd.f32 %v4530_v37, %v539_v45 }
 0x1d7   : > { %v624_v7 = vmax.f32 %v540_v55, 0.0 }
 0x1dc   : > { %v541_v28 = vpop.f32.mrf.mxu3 }
 0x1e0   : > { %844 = vmatmul.bf16.gmra.mxu2 %v658_v1  ;;  %v537_v1 = vadd.f32 %v4530_v37, %v536_v25 }
 0x1e2   : > { %v623_v8 = vmax.f32 %v537_v1, 0.0 }
 0x1e4   : > { %v544_v43 = vpop.f32.mrf.mxu3  ;;  %v662_v48 = vpack.c.bf16 %v623_v8, %v622_v38 }
 0x1ec   : > { %v546_v13 = vpop.f32.mrf.mxu3 }
 0x1f0   : > { %849 = vmatmul.bf16.gmra.mxu2 %v659_v23  ;;  %v542_v23 = vadd.f32 %v4530_v37, %v541_v28  ;;  %v545_v28 = vadd.f32 %v4530_v37, %v544_v43  ;;  %v4131_v43 = vld [vmem:[%s5942_s2 + $0xb0] sm:$0xff] }
 0x1f1   : > { %1401 = vmatpush.bf16.msrb.mxu3 %v4131_v43 }
 0x1f2   : > { %v625_v25 = vmax.f32 %v542_v23, 0.0  ;;  %v626_v63 = vmax.f32 %v545_v28, 0.0 }
 0x1f4   : > { %v549_v59 = vpop.f32.mrf.mxu3  ;;  %v663_v51 = vpack.c.bf16 %v625_v25, %v624_v7 }
 0x1f5   : > { %v550_v25 = vadd.f32 %v4530_v37, %v549_v59 }
 0x1fc   : > { %v551_v60 = vpop.f32.mrf.mxu3 }
 0x200   : > { %854 = vmatmul.bf16.gmra.mxu2 %v660_v40 }
 0x204   : > { %v554_v21 = vpop.f32.mrf.mxu3 }
 0x205   : > { %v555_v59 = vadd.f32 %v4530_v37, %v554_v21  ;;  %v4130_v21 = vld [vmem:[%s5942_s2 + $0xa8] sm:$0xff] }
 0x206   : > { %1402 = vmatpush.bf16.msrb.mxu3 %v4130_v21 }
 0x210   : > { %859 = vmatmul.bf16.gmra.mxu2 %v661_v33  ;;  %v547_v33 = vadd.f32 %v4530_v37, %v546_v13 }
 0x212   : > { %v627_v1 = vmax.f32 %v547_v33, 0.0 }
 0x214   : > { %v664_v23 = vpack.c.bf16 %v627_v1, %v626_v63 }
 0x220   : > { %864 = vmatmul.bf16.gmra.mxu2 %v662_v48 }
 0x223   : > { %v825_v4 = vpop.f32.mrf.mxu2 }
 0x224   : > { %v826_v31 = vadd.f32 %v4621_v27, %v825_v4 }
 0x226   : > { %v937_v49 = vmax.f32 %v826_v31, 0.0  ;;  %v552_v31 = vadd.f32 %v4530_v37, %v551_v60 }
 0x22b   : > { %v827_v39 = vpop.f32.mrf.mxu2 }
 0x22c   : > { %v828_v40 = vadd.f32 %v4621_v27, %v827_v39  ;;  %v556_v39 = vpop.f32.mrf.mxu3 }
 0x22d   : > { %v557_v60 = vadd.f32 %v4530_v37, %v556_v39 }
 0x22e   : > { %v938_v20 = vmax.f32 %v828_v40, 0.0  ;;  %v628_v40 = vmax.f32 %v550_v25, 0.0 }
 0x230   : > { %869 = vmatmul.bf16.gmra.mxu2 %v663_v51  ;;  %v4768_v45 = vpack.c.bf16 %v938_v20, %v937_v49  ;;  %v629_v49 = vmax.f32 %v552_v31, 0.0 }
 0x232   : > { %v665_v63 = vpack.c.bf16 %v629_v49, %v628_v40  ;;  %v4117_v40 = vld [vmem:[%s5942_s2 + $0x40] sm:$0xff] }
 0x233   : > { %v830_v54 = vpop.f32.mrf.mxu2  ;;  %1075 = vmatpush.bf16.msrb.mxu2 %v4117_v40 }
 0x234   : > { %v831_v38 = vadd.f32 %v4621_v27, %v830_v54 }
 0x236   : > { %v939_v4 = vmax.f32 %v831_v38, 0.0  ;;  %v559_v38 = vpop.f32.mrf.mxu3 }
 0x23b   : > { %v832_v8 = vpop.f32.mrf.mxu2 }
 0x23c   : > { %v833_v48 = vadd.f32 %v4621_v27, %v832_v8 }
 0x23e   : > { %v940_v55 = vmax.f32 %v833_v48, 0.0  ;;  %v630_v48 = vmax.f32 %v555_v59, 0.0  ;;  %v561_v18 = vpop.f32.mrf.mxu3 }
 0x240   : > { %874 = vmatmul.bf16.gmra.mxu2 %v664_v23  ;;  %v4780_v13 = vpack.c.bf16 %v940_v55, %v939_v4  ;;  %v631_v4 = vmax.f32 %v557_v60, 0.0 }
 0x242   : > { %v666_v31 = vpack.c.bf16 %v631_v4, %v630_v48 }
 0x243   : > { %v835_v7 = vpop.f32.mrf.mxu2 }
 0x244   : > { %v836_v20 = vadd.f32 %v4621_v27, %v835_v7 }
 0x246   : > { %v941_v28 = vmax.f32 %v836_v20, 0.0  ;;  %v564_v20 = vpop.f32.mrf.mxu3 }
 0x24b   : > { %v837_v51 = vpop.f32.mrf.mxu2 }
 0x24c   : > { %v838_v54 = vadd.f32 %v4621_v27, %v837_v51  ;;  %v560_v51 = vadd.f32 %v4530_v37, %v559_v38 }
 0x24e   : > { %v942_v33 = vmax.f32 %v838_v54, 0.0  ;;  %v562_v54 = vadd.f32 %v4530_v37, %v561_v18 }
 0x250   : > { %879 = vmatmul.bf16.gmra.mxu2 %v665_v63  ;;  %v4786_v1 = vpack.c.bf16 %v942_v33, %v941_v28  ;;  %v632_v28 = vmax.f32 %v560_v51, 0.0  ;;  %v633_v33 = vmax.f32 %v562_v54, 0.0 }
 0x252   : > { %v667_v4 = vpack.c.bf16 %v633_v33, %v632_v28  ;;  %v4129_v33 = vld [vmem:[%s5942_s2 + $0xa0] sm:$0xff] }
 0x253   : > { %v840_v8 = vpop.f32.mrf.mxu2  ;;  %1403 = vmatpush.bf16.msrb.mxu3 %v4129_v33 }
 0x254   : > { %v841_v55 = vadd.f32 %v4621_v27, %v840_v8 }
 0x256   : > { %v943_v7 = vmax.f32 %v841_v55, 0.0  ;;  %v566_v55 = vpop.f32.mrf.mxu3 }
 0x257   : > { %v567_v38 = vadd.f32 %v4530_v37, %v566_v55 }
 0x25b   : > { %v842_v23 = vpop.f32.mrf.mxu2 }
 0x25c   : > { %v843_v43 = vadd.f32 %v4621_v27, %v842_v23 }
 0x25e   : > { %v944_v25 = vmax.f32 %v843_v43, 0.0  ;;  %v569_v18 = vpop.f32.mrf.mxu3 }
 0x260   : > { %884 = vmatmul.bf16.gmra.mxu2 %v666_v31  ;;  %v4798_v39 = vpack.c.bf16 %v944_v25, %v943_v7  ;;  %v565_v7 = vadd.f32 %v4530_v37, %v564_v20  ;;  %v635_v31 = vmax.f32 %v567_v38, 0.0  ;;  %v4148_v20 = vld [vmem:[%s5942_s2 + $0x138] sm:$0xff] }
 0x261   : > { %2240 = vmatpush.bf16.msra.mxu2 %v4148_v20 }
 0x262   : > { %v634_v25 = vmax.f32 %v565_v7, 0.0 }
 0x263   : > { %v845_v49 = vpop.f32.mrf.mxu2 }
 0x264   : > { %v846_v63 = vadd.f32 %v4621_v27, %v845_v49  ;;  %v668_v28 = vpack.c.bf16 %v635_v31, %v634_v25 }
 0x266   : > { %v945_v60 = vmax.f32 %v846_v63, 0.0 }
 0x26b   : > { %v847_v8 = vpop.f32.mrf.mxu2 }
 0x26c   : > { %v848_v59 = vadd.f32 %v4621_v27, %v847_v8  ;;  %v571_v8 = vpop.f32.mrf.mxu3 }
 0x26e   : > { %v946_v48 = vmax.f32 %v848_v59, 0.0 }
 0x270   : > { %889 = vmatmul.bf16.gmra.mxu2 %v667_v4  ;;  %v4804_v23 = vpack.c.bf16 %v946_v48, %v945_v60  ;;  %v570_v60 = vadd.f32 %v4530_v37, %v569_v18  ;;  %v572_v48 = vadd.f32 %v4530_v37, %v571_v8  ;;  %v4140_v18 = vld [vmem:[%s5942_s2 + $0xf8] sm:$0xff] }
 0x271   : > { %1732 = vmatpush.bf16.msrb.mxu0 %v4140_v18  ;;  %v4128_v8 = vld [vmem:[%s5942_s2 + $0x98] sm:$0xff] }
 0x272   : > { %v636_v4 = vmax.f32 %v570_v60, 0.0  ;;  %v637_v55 = vmax.f32 %v572_v48, 0.0  ;;  %1404 = vmatpush.bf16.msrb.mxu3 %v4128_v8 }
 0x273   : > { %v850_v43 = vpop.f32.mrf.mxu2 }
 0x274   : > { %v851_v40 = vadd.f32 %v4621_v27, %v850_v43 }
 0x276   : > { %v947_v51 = vmax.f32 %v851_v40, 0.0  ;;  %v669_v40 = vpack.c.bf16 %v637_v55, %v636_v4 }
 0x27b   : > { %v852_v21 = vpop.f32.mrf.mxu2 }
 0x27c   : > { %v853_v49 = vadd.f32 %v4621_v27, %v852_v21 }
 0x27e   : > { %v948_v54 = vmax.f32 %v853_v49, 0.0 }
 0x280   : > { %894 = vmatmul.bf16.gmra.mxu2 %v668_v28  ;;  %v4816_v63 = vpack.c.bf16 %v948_v54, %v947_v51  ;;  %v765_v28 = vpop.f32.mrf.mxu1 }
 0x283   : > { %v855_v59 = vpop.f32.mrf.mxu2 }
 0x284   : > { %v856_v43 = vadd.f32 %v4621_v27, %v855_v59 }
 0x286   : > { %v949_v25 = vmax.f32 %v856_v43, 0.0 }
 0x288   : > { %v767_v48 = vpop.f32.mrf.mxu1 }
 0x28b   : > { %v857_v7 = vpop.f32.mrf.mxu2 }
 0x28c   : > { %v858_v38 = vadd.f32 %v4621_v27, %v857_v7 }
 0x28e   : > { %v950_v31 = vmax.f32 %v858_v38, 0.0 }
 0x290   : > { %899 = vmatmul.bf16.gmra.mxu2 %v669_v40  ;;  %v4822_v21 = vpack.c.bf16 %v950_v31, %v949_v25  ;;  %v770_v31 = vpop.f32.mrf.mxu1 }
 0x293   : > { %v860_v49 = vpop.f32.mrf.mxu2 }
 0x294   : > { %v861_v37 = vadd.f32 %v4621_v27, %v860_v49  ;;  %v4127_v49 = vld [vmem:[%s5942_s2 + $0x90] sm:$0xff] }
 0x295   : > { %1405 = vmatpush.bf16.msrb.mxu3 %v4127_v49 }
 0x296   : > { %v951_v33 = vmax.f32 %v861_v37, 0.0 }
 0x298   : > { %v772_v37 = vpop.f32.mrf.mxu1 }
 0x29b   : > { %v862_v51 = vpop.f32.mrf.mxu2 }
 0x29c   : > { %v863_v54 = vadd.f32 %v4621_v27, %v862_v51 }
 0x29e   : > { %v952_v20 = vmax.f32 %v863_v54, 0.0 }
 0x2a0   : > { %1076 = vmatmul.bf16.vlgmr.msrb.gmra.mxu2 %v4632_v44  ;;  %v4833_v59 = vpack.c.bf16 %v952_v20, %v951_v33  ;;  %v4139_v44 = vld [vmem:[%s5942_s2 + $0xf0] sm:$0xff] }
 0x2a1   : > { %1733 = vmatpush.bf16.msrb.mxu0 %v4139_v44  ;;  %v4147_v20 = vld [vmem:[%s5942_s2 + $0x130] sm:$0xff] }
 0x2a2   : > { %2241 = vmatpush.bf16.msra.mxu2 %v4147_v20 }
 0x2a3   : > { %v865_v60 = vpop.f32.mrf.mxu2 }
 0x2a4   : > { %v866_v4 = vadd.f32 %v4621_v27, %v865_v60 }
 0x2a6   : > { %v953_v7 = vmax.f32 %v866_v4, 0.0  ;;  %v775_v4 = vpop.f32.mrf.mxu1 }
 0x2ab   : > { %v867_v55 = vpop.f32.mrf.mxu2 }
 0x2ac   : > { %v868_v43 = vadd.f32 %v4621_v27, %v867_v55 }
 0x2ae   : > { %v954_v38 = vmax.f32 %v868_v43, 0.0  ;;  %v777_v44 = vpop.f32.mrf.mxu1 }
 0x2b0   : > { %1081 = vmatmul.bf16.gmra.mxu2 %v4645_v5  ;;  %v4838_v25 = vpack.c.bf16 %v954_v38, %v953_v7 }
 0x2b3   : > { %v870_v40 = vpop.f32.mrf.mxu2 }
 0x2b4   : > { %v871_v18 = vadd.f32 %v4621_v27, %v870_v40 }
 0x2b6   : > { %v955_v54 = vmax.f32 %v871_v18, 0.0  ;;  %v768_v18 = vadd.f32 %v4621_v27, %v767_v48 }
 0x2b8   : > { %v914_v20 = vmax.f32 %v768_v18, 0.0 }
 0x2bb   : > { %v872_v51 = vpop.f32.mrf.mxu2 }
 0x2bc   : > { %v873_v5 = vadd.f32 %v4621_v27, %v872_v51  ;;  %v4126_v51 = vld [vmem:[%s5942_s2 + $0x88] sm:$0xff] }
 0x2bd   : > { %1406 = vmatpush.bf16.msrb.mxu3 %v4126_v51  ;;  %v771_v51 = vadd.f32 %v4621_v27, %v770_v31  ;;  %v4125_v31 = vld [vmem:[%s5942_s2 + $0x80] sm:$0xff] }
 0x2be   : > { %v956_v33 = vmax.f32 %v873_v5, 0.0  ;;  %v4138_v5 = vld [vmem:[%s5942_s2 + $0xe8] sm:$0xff] }
 0x2bf   : > { %1734 = vmatpush.bf16.msrb.mxu0 %v4138_v5  ;;  %v915_v0 = vmax.f32 %v771_v51, 0.0 }
 0x2c0   : > { %1086 = vmatmul.bf16.gmra.mxu2 %v4657_v36  ;;  %v4852_v8 = vpack.c.bf16 %v956_v33, %v955_v54  ;;  %v766_v54 = vadd.f32 %v4621_v27, %v765_v28  ;;  %v780_v33 = vpop.f32.mrf.mxu1  ;;  %v773_v28 = vadd.f32 %v4621_v27, %v772_v37 }
 0x2c1   : > { %1407 = vmatpush.bf16.msrb.mxu3 %v4125_v31 }
 0x2c2   : > { %v916_v5 = vmax.f32 %v773_v28, 0.0 }
 0x2c3   : > { %v875_v60 = vpop.f32.mrf.mxu2 }
 0x2c4   : > { %v876_v55 = vadd.f32 %v4621_v27, %v875_v60 }
 0x2c6   : > { %v957_v38 = vmax.f32 %v876_v55, 0.0  ;;  %v913_v55 = vmax.f32 %v766_v54, 0.0 }
 0x2c8   : > { %v782_v52 = vpop.f32.mrf.mxu1 }
 0x2cb   : > { %v877_v43 = vpop.f32.mrf.mxu2 }
 0x2cc   : > { %v878_v7 = vadd.f32 %v4621_v27, %v877_v43 }
 0x2ce   : > { %v958_v40 = vmax.f32 %v878_v7, 0.0 }
 0x2d0   : > { %1091 = vmatmul.bf16.gmra.mxu2 %v4669_v62  ;;  %v4857_v36 = vpack.c.bf16 %v958_v40, %v957_v38  ;;  %v973_v38 = vpack.c.bf16 %v914_v20, %v913_v55  ;;  %v974_v20 = vpack.c.bf16 %v916_v5, %v915_v0 }
 0x2d3   : > { %v880_v49 = vpop.f32.mrf.mxu2 }
 0x2d4   : > { %v881_v62 = vadd.f32 %v4621_v27, %v880_v49 }
 0x2d6   : > { %v959_v43 = vmax.f32 %v881_v62, 0.0 }
 0x2db   : > { %v882_v60 = vpop.f32.mrf.mxu2 }
 0x2dc   : > { %v883_v48 = vadd.f32 %v4621_v27, %v882_v60  ;;  %v785_v60 = vpop.f32.mrf.mxu1 }
 0x2de   : > { %v960_v7 = vmax.f32 %v883_v48, 0.0 }
 0x2e0   : > { %1096 = vmatmul.bf16.gmra.mxu2 %v973_v38  ;;  %v4869_v40 = vpack.c.bf16 %v960_v7, %v959_v43  ;;  %v778_v7 = vadd.f32 %v4621_v27, %v777_v44  ;;  %v4137_v44 = vld [vmem:[%s5942_s2 + $0xe0] sm:$0xff] }
 0x2e1   : > { %1735 = vmatpush.bf16.msrb.mxu0 %v4137_v44 }
 0x2e2   : > { %v918_v38 = vmax.f32 %v778_v7, 0.0  ;;  %v781_v7 = vadd.f32 %v4621_v27, %v780_v33  ;;  %v4157_v33 = vld [vmem:[%s5942_s2 + $0x178] sm:$0xff] }
 0x2e3   : > { %v885_v24 = vpop.f32.mrf.mxu2  ;;  %2638 = vmatpush.bf16.msra.mxu3 %v4157_v33 }
 0x2e4   : > { %v886_v18 = vadd.f32 %v4621_v27, %v885_v24  ;;  %v787_v37 = vpop.f32.mrf.mxu1  ;;  %v776_v24 = vadd.f32 %v4621_v27, %v775_v4  ;;  %v4146_v4 = vld [vmem:[%s5942_s2 + $0x128] sm:$0xff] }
 0x2e5   : > { %2242 = vmatpush.bf16.msra.mxu2 %v4146_v4 }
 0x2e6   : > { %v961_v62 = vmax.f32 %v886_v18, 0.0  ;;  %v917_v18 = vmax.f32 %v776_v24, 0.0 }
 0x2eb   : > { %v887_v49 = vpop.f32.mrf.mxu2 }
 0x2ec   : > { %v888_v54 = vadd.f32 %v4621_v27, %v887_v49 }
 0x2ee   : > { %v962_v48 = vmax.f32 %v888_v54, 0.0  ;;  %v975_v54 = vpack.c.bf16 %v918_v38, %v917_v18 }
 0x2f0   : > { %1101 = vmatmul.bf16.gmra.mxu2 %v974_v20  ;;  %v4875_v55 = vpack.c.bf16 %v962_v48, %v961_v62  ;;  %v790_v48 = vpop.f32.mrf.mxu1 }
 0x2f1   : > { %v791_v33 = vadd.f32 %v4621_v27, %v790_v48 }
 0x2f3   : > { %v890_v43 = vpop.f32.mrf.mxu2 }
 0x2f4   : > { %v891_v28 = vadd.f32 %v4621_v27, %v890_v43  ;;  %v783_v43 = vadd.f32 %v4621_v27, %v782_v52  ;;  %v788_v52 = vadd.f32 %v4621_v27, %v787_v37  ;;  %v4136_v37 = vld [vmem:[%s5942_s2 + $0xd8] sm:$0xff] }
 0x2f5   : > { %1736 = vmatpush.bf16.msrb.mxu0 %v4136_v37 }
 0x2f6   : > { %v963_v5 = vmax.f32 %v891_v28, 0.0  ;;  %v920_v31 = vmax.f32 %v783_v43, 0.0  ;;  %v922_v43 = vmax.f32 %v788_v52, 0.0 }
 0x2f8   : > { %v792_v38 = vpop.f32.mrf.mxu1 }
 0x2f9   : > { %v793_v52 = vadd.f32 %v4621_v27, %v792_v38  ;;  %v4149_v38 = vld [vmem:[%s5941_s1 + $0x8] sm:$0xff] }
 0x2fa   : > { %2030 = vmatpush.bf16.msrb.mxu1 %v4149_v38 }
 0x2fb   : > { %v892_v51 = vpop.f32.mrf.mxu2 }
 0x2fc   : > { %v893_v0 = vadd.f32 %v4621_v27, %v892_v51  ;;  %v919_v51 = vmax.f32 %v781_v7, 0.0 }
 0x2fd   : > { %3898 = vmatmul.msk.bf16.vlgmr.msrb.gmra.mxu1 %vm308_vm0, %v4453_v3  ;;  %v4145_v3 = vld [vmem:[%s5942_s2 + $0x120] sm:$0xff] }
 0x2fe   : > { %v964_v49 = vmax.f32 %v893_v0, 0.0  ;;  %v976_v44 = vpack.c.bf16 %v920_v31, %v919_v51  ;;  %2243 = vmatpush.bf16.msra.mxu2 %v4145_v3 }
 0x300   : > { %1106 = vmatmul.bf16.gmra.mxu2 %v975_v54  ;;  %v4890_v62 = vpack.c.bf16 %v964_v49, %v963_v5  ;;  %v795_v4 = vpop.f32.mrf.mxu1 }
 0x303   : > { %v895_v20 = vpop.f32.mrf.mxu2 }
 0x304   : > { %v896_v24 = vadd.f32 %v4621_v27, %v895_v20  ;;  %v786_v20 = vadd.f32 %v4621_v27, %v785_v60 }
 0x306   : > { %v965_v0 = vmax.f32 %v896_v24, 0.0 }
 0x30b   : > { %v897_v28 = vpop.f32.mrf.mxu2 }
 0x30c   : > { %v898_v18 = vadd.f32 %v4621_v27, %v897_v28  ;;  %v921_v28 = vmax.f32 %v786_v20, 0.0 }
 0x30d   : > { %3899 = vmatmul.msk.bf16.gmra.mxu1 %vm308_vm0, %v4459_v6 }
 0x30e   : > { %v966_v54 = vmax.f32 %v898_v18, 0.0 }
 0x310   : > { %1111 = vmatmul.bf16.gmra.mxu2 %v976_v44  ;;  %v4896_v5 = vpack.c.bf16 %v966_v54, %v965_v0  ;;  %v977_v0 = vpack.c.bf16 %v922_v43, %v921_v28  ;;  %v797_v54 = vpop.f32.mrf.mxu1  ;;  %v924_v43 = vmax.f32 %v793_v52, 0.0  ;;  %v923_v28 = vmax.f32 %v791_v33, 0.0 }
 0x311   : > { %v798_v52 = vadd.f32 %v4621_v27, %v797_v54  ;;  %v4135_v54 = vld [vmem:[%s5942_s2 + $0xd0] sm:$0xff] }
 0x312   : > { %1737 = vmatpush.bf16.msrb.mxu0 %v4135_v54 }
 0x313   : > { %v900_v49 = vpop.f32.mrf.mxu2  ;;  %v926_v33 = vmax.f32 %v798_v52, 0.0  ;;  %v4940_v52 = vld [vmem:[%s5943_s3 + $0x1] ss:$0 sm:$0xff] }
 0x314   : > { %v901_v7 = vadd.f32 %v4621_v27, %v900_v49  ;;  %v4914_v49 = vld [vmem:[%s5943_s3 + $0x2] ss:$0 sm:$0xff] }
 0x316   : > { %v967_v51 = vmax.f32 %v901_v7, 0.0 }
 0x318   : > { %v800_v20 = vpop.f32.mrf.mxu1 }
 0x31b   : > { %v902_v24 = vpop.f32.mrf.mxu2 }
 0x31c   : > { %v903_v31 = vadd.f32 %v4621_v27, %v902_v24 }
 0x31d   : > { %3900 = vmatmul.msk.bf16.gmra.mxu1 %vm308_vm0, %v4465_v9  ;;  %v4134_v9 = vld [vmem:[%s5942_s2 + $0xc8] sm:$0xff] }
 0x31e   : > { %v968_v18 = vmax.f32 %v903_v31, 0.0  ;;  %1738 = vmatpush.bf16.msrb.mxu0 %v4134_v9 }
 0x320   : > { %1116 = vmatmul.bf16.gmra.mxu2 %v977_v0  ;;  %v4908_v44 = vpack.c.bf16 %v968_v18, %v967_v51  ;;  %v978_v0 = vpack.c.bf16 %v924_v43, %v923_v28  ;;  %v802_v41 = vpop.f32.mrf.mxu1 }
 0x321   : > { %v803_v38 = vadd.f32 %v4621_v27, %v802_v41 }
 0x323   : > { %v1077_v60 = vpop.f32.mrf.mxu2 }
 0x324   : > { %v1078_v7 = vadd.f32 %v4914_v49, %v1077_v60  ;;  %v796_v60 = vadd.f32 %v4621_v27, %v795_v4 }
 0x326   : > { %v1237_v51 = vmax.f32 %v1078_v7, 0.0 }
 0x32b   : > { %v1079_v24 = vpop.f32.mrf.mxu2 }
 0x32c   : > { %v1080_v31 = vadd.f32 %v4914_v49, %v1079_v24  ;;  %v925_v24 = vmax.f32 %v796_v60, 0.0  ;;  %v801_v60 = vadd.f32 %v4940_v52, %v800_v20  ;;  %v4156_v20 = vld [vmem:[%s5942_s2 + $0x170] sm:$0xff] }
 0x32d   : > { %2639 = vmatpush.bf16.msra.mxu3 %v4156_v20  ;;  %3901 = vmatmul.msk.bf16.gmra.mxu1 %vm308_vm0, %v4471_v12 }
 0x32e   : > { %v1238_v18 = vmax.f32 %v1080_v31, 0.0  ;;  %v805_v31 = vpop.f32.mrf.mxu1 }
 0x32f   : > { %v806_v54 = vadd.f32 %v4940_v52, %v805_v31 }
 0x330   : > { %v1301_v37 = vpack.c.bf16 %v1238_v18, %v1237_v51  ;;  %1121 = vmatmul.bf16.gmra.mxu2 %v978_v0  ;;  %v979_v0 = vpack.c.bf16 %v926_v33, %v925_v24  ;;  %v928_v33 = vmax.f32 %v803_v38, 0.0  ;;  %v927_v24 = vmax.f32 %v801_v60, 0.0 }
 0x332   : > { %1408 = vmatmul.bf16.vlgmr.msrb.gmra.mxu3 %v1301_v37  ;;  %v980_v41 = vpack.c.bf16 %v928_v33, %v927_v24  ;;  %v929_v33 = vmax.f32 %v806_v54, 0.0 }
 0x333   : > { %v1082_v48 = vpop.f32.mrf.mxu2 }
 0x334   : > { %v1083_v43 = vadd.f32 %v4914_v49, %v1082_v48 }
 0x336   : > { %v1239_v51 = vmax.f32 %v1083_v43, 0.0  ;;  %v807_v48 = vpop.f32.mrf.mxu1 }
 0x33b   : > { %v1084_v7 = vpop.f32.mrf.mxu2 }
 0x33c   : > { %v1085_v28 = vadd.f32 %v4914_v49, %v1084_v7 }
 0x33d   : > { %3902 = vmatmul.msk.bf16.gmra.mxu1 %vm308_vm0, %v4477_v15 }
 0x33e   : > { %v1240_v18 = vmax.f32 %v1085_v28, 0.0  ;;  %v810_v6 = vpop.f32.mrf.mxu1 }
 0x340   : > { %1126 = vmatmul.bf16.gmra.mxu2 %v979_v0  ;;  %v1302_v37 = vpack.c.bf16 %v1240_v18, %v1239_v51 }
 0x342   : > { %1413 = vmatmul.bf16.gmra.mxu3 %v1302_v37  ;;  %v808_v37 = vadd.f32 %v4940_v52, %v807_v48 }
 0x343   : > { %v1087_v4 = vpop.f32.mrf.mxu2 }
 0x344   : > { %v1088_v43 = vadd.f32 %v4914_v49, %v1087_v4  ;;  %v930_v3 = vmax.f32 %v808_v37, 0.0 }
 0x346   : > { %v1241_v51 = vmax.f32 %v1088_v43, 0.0  ;;  %v812_v38 = vpop.f32.mrf.mxu1  ;;  %v981_v24 = vpack.c.bf16 %v930_v3, %v929_v33 }
 0x34b   : > { %v1089_v7 = vpop.f32.mrf.mxu2 }
 0x34c   : > { %v1090_v28 = vadd.f32 %v4914_v49, %v1089_v7 }
 0x34d   : > { %3903 = vmatmul.msk.bf16.gmra.mxu1 %vm308_vm0, %v4486_v19  ;;  %v4155_v19 = vld [vmem:[%s5942_s2 + $0x168] sm:$0xff] }
 0x34e   : > { %v1242_v27 = vmax.f32 %v1090_v28, 0.0  ;;  %2640 = vmatpush.bf16.msra.mxu3 %v4155_v19 }
 0x350   : > { %1131 = vmatmul.bf16.gmra.mxu2 %v980_v41  ;;  %v1303_v18 = vpack.c.bf16 %v1242_v27, %v1241_v51  ;;  %v815_v51 = vpop.f32.mrf.mxu1  ;;  %v813_v27 = vadd.f32 %v4940_v52, %v812_v38  ;;  %v811_v41 = vadd.f32 %v4940_v52, %v810_v6 }
 0x351   : > { %v816_v12 = vadd.f32 %v4940_v52, %v815_v51 }
 0x352   : > { %1418 = vmatmul.bf16.gmra.mxu3 %v1303_v18  ;;  %v932_v18 = vmax.f32 %v813_v27, 0.0  ;;  %v931_v20 = vmax.f32 %v811_v41, 0.0 }
 0x353   : > { %v1092_v0 = vpop.f32.mrf.mxu2  ;;  %v933_v9 = vmax.f32 %v816_v12, 0.0 }
 0x354   : > { %v1093_v4 = vadd.f32 %v4914_v49, %v1092_v0 }
 0x356   : > { %v1243_v7 = vmax.f32 %v1093_v4, 0.0 }
 0x358   : > { %v817_v33 = vpop.f32.mrf.mxu1 }
 0x35b   : > { %v1094_v60 = vpop.f32.mrf.mxu2 }
 0x35c   : > { %v1095_v43 = vadd.f32 %v4914_v49, %v1094_v60  ;;  %v982_v60 = vpack.c.bf16 %v932_v18, %v931_v20 }
 0x35d   : > { %3904 = vmatmul.msk.bf16.gmra.mxu1 %vm308_vm0, %v4504_v26  ;;  %v4165_v26 = vld [vmem:[%s5942_s2 + $0x1b8] sm:$0xff] }
 0x35e   : > { %v1244_v48 = vmax.f32 %v1095_v43, 0.0 }
 0x360   : > { %1136 = vmatmul.bf16.gmra.mxu2 %v981_v24  ;;  %v1304_v28 = vpack.c.bf16 %v1244_v48, %v1243_v7  ;;  %v818_v7 = vadd.f32 %v4940_v52, %v817_v33  ;;  %v820_v6 = vpop.f32.mrf.mxu1 }
 0x362   : > { %1423 = vmatmul.bf16.gmra.mxu3 %v1304_v28  ;;  %v934_v48 = vmax.f32 %v818_v7, 0.0 }
 0x363   : > { %v1097_v31 = vpop.f32.mrf.mxu2 }
 0x364   : > { %v1098_v0 = vadd.f32 %v4914_v49, %v1097_v31  ;;  %v983_v18 = vpack.c.bf16 %v934_v48, %v933_v9 }
 0x366   : > { %v1245_v3 = vmax.f32 %v1098_v0, 0.0 }
 0x368   : > { %v822_v15 = vpop.f32.mrf.mxu1 }
 0x369   : > { %v823_v20 = vadd.f32 %v4940_v52, %v822_v15 }
 0x36b   : > { %v1099_v37 = vpop.f32.mrf.mxu2 }
 0x36c   : > { %v1100_v54 = vadd.f32 %v4914_v49, %v1099_v37  ;;  %v4144_v37 = vld [vmem:[%s5942_s2 + $0x118] sm:$0xff] }
 0x36d   : > { %2244 = vmatpush.bf16.msra.mxu2 %v4144_v37  ;;  %3905 = vmatmul.msk.bf16.gmra.mxu1 %vm308_vm0, %v4519_v32  ;;  %v5002_v32 = vld [vmem:[%s5943_s3 + $0x3] ss:$0 sm:$0xff] }
 0x36e   : > { %v1246_v4 = vmax.f32 %v1100_v54, 0.0  ;;  %v4133_v54 = vld [vmem:[%s5942_s2 + $0xc0] sm:$0xff] }
 0x36f   : > { %1739 = vmatpush.bf16.msrb.mxu0 %v4133_v54 }
 0x370   : > { %1141 = vmatmul.bf16.gmra.mxu2 %v982_v60  ;;  %v1305_v43 = vpack.c.bf16 %v1246_v4, %v1245_v3  ;;  %v821_v3 = vadd.f32 %v4940_v52, %v820_v6  ;;  %v936_v4 = vmax.f32 %v823_v20, 0.0 }
 0x372   : > { %1428 = vmatmul.bf16.gmra.mxu3 %v1305_v43  ;;  %v935_v43 = vmax.f32 %v821_v3, 0.0 }
 0x373   : > { %v1102_v38 = vpop.f32.mrf.mxu2  ;;  %2970 = vmatpush.bf16.msra.mxu0 %v4165_v26 }
 0x374   : > { %v1103_v24 = vadd.f32 %v4914_v49, %v1102_v38  ;;  %v984_v48 = vpack.c.bf16 %v936_v4, %v935_v43 }
 0x376   : > { %v1247_v27 = vmax.f32 %v1103_v24, 0.0 }
 0x37b   : > { %v1104_v28 = vpop.f32.mrf.mxu2 }
 0x37c   : > { %v1105_v31 = vadd.f32 %v4914_v49, %v1104_v28 }
 0x37d   : > { %3906 = vmatmul.msk.bf16.gmra.mxu1 %vm308_vm0, %v4525_v35 }
 0x37e   : > { %v1248_v41 = vmax.f32 %v1105_v31, 0.0 }
 0x380   : > { %1146 = vmatmul.bf16.gmra.mxu2 %v983_v18  ;;  %v1306_v0 = vpack.c.bf16 %v1248_v41, %v1247_v27 }
 0x382   : > { %1433 = vmatmul.bf16.gmra.mxu3 %v1306_v0 }
 0x383   : > { %v1107_v51 = vpop.f32.mrf.mxu2 }
 0x384   : > { %v1108_v60 = vadd.f32 %v4914_v49, %v1107_v51 }
 0x386   : > { %v1249_v7 = vmax.f32 %v1108_v60, 0.0 }
 0x38b   : > { %v1109_v33 = vpop.f32.mrf.mxu2 }
 0x38c   : > { %v1110_v38 = vadd.f32 %v4914_v49, %v1109_v33 }
 0x38d   : > { %3907 = vmatmul.msk.bf16.gmra.mxu1 %vm308_vm0, %v4538_v46 }
 0x38e   : > { %v1250_v12 = vmax.f32 %v1110_v38, 0.0 }
 0x390   : > { %1151 = vmatmul.bf16.gmra.mxu2 %v984_v48  ;;  %v1307_v24 = vpack.c.bf16 %v1250_v12, %v1249_v7 }
 0x392   : > { %1438 = vmatmul.bf16.gmra.mxu3 %v1307_v24 }
 0x393   : > { %v1112_v28 = vpop.f32.mrf.mxu2 }
 0x394   : > { %v1113_v52 = vadd.f32 %v4914_v49, %v1112_v28  ;;  %v4143_v28 = vld [vmem:[%s5942_s2 + $0x110] sm:$0xff] }
 0x395   : > { %2245 = vmatpush.bf16.msra.mxu2 %v4143_v28  ;;  %v4164_v28 = vld [vmem:[%s5942_s2 + $0x1b0] sm:$0xff] }
 0x396   : > { %v1251_v31 = vmax.f32 %v1113_v52, 0.0  ;;  %2971 = vmatpush.bf16.msra.mxu0 %v4164_v28 }
 0x39b   : > { %v1114_v6 = vpop.f32.mrf.mxu2 }
 0x39c   : > { %v1115_v9 = vadd.f32 %v4914_v49, %v1114_v6 }
 0x39d   : > { %3908 = vmatmul.msk.bf16.gmra.mxu1 %vm308_vm0, %v4546_v56 }
 0x39e   : > { %v1252_v27 = vmax.f32 %v1115_v9, 0.0 }
 0x3a0   : > { %1156 = vmatmul.bf16.gmra.mxu2 %v4768_v45  ;;  %v1308_v41 = vpack.c.bf16 %v1252_v27, %v1251_v31 }
 0x3a2   : > { %1443 = vmatmul.bf16.gmra.mxu3 %v1308_v41 }
 0x3a3   : > { %v1117_v18 = vpop.f32.mrf.mxu2 }
 0x3a4   : > { %v1118_v0 = vadd.f32 %v4914_v49, %v1117_v18 }
 0x3a6   : > { %v1253_v51 = vmax.f32 %v1118_v0, 0.0 }
 0x3ab   : > { %v1119_v37 = vpop.f32.mrf.mxu2 }
 0x3ac   : > { %v1120_v15 = vadd.f32 %v4914_v49, %v1119_v37 }
 0x3ad   : > { %3909 = vmatmul.msk.bf16.gmra.mxu1 %vm308_vm0, %v4554_v2 }
 0x3ae   : > { %v1254_v20 = vmax.f32 %v1120_v15, 0.0 }
 0x3b0   : > { %1161 = vmatmul.bf16.gmra.mxu2 %v4780_v13  ;;  %v1309_v45 = vpack.c.bf16 %v1254_v20, %v1253_v51 }
 0x3b2   : > { %1448 = vmatmul.bf16.gmra.mxu3 %v1309_v45 }
 0x3b3   : > { %v1122_v54 = vpop.f32.mrf.mxu2 }
 0x3b4   : > { %v1123_v4 = vadd.f32 %v4914_v49, %v1122_v54  ;;  %v4154_v54 = vld [vmem:[%s5942_s2 + $0x160] sm:$0xff] }
 0x3b5   : > { %v1409_v3 = vpop.f32.mrf.mxu3  ;;  %2641 = vmatpush.bf16.msra.mxu3 %v4154_v54 }
 0x3b6   : > { %v1410_v33 = vadd.f32 %v5002_v32, %v1409_v3  ;;  %v1255_v38 = vmax.f32 %v1123_v4, 0.0 }
 0x3b8   : > { %v1569_v48 = vmax.f32 %v1410_v33, 0.0 }
 0x3bb   : > { %v1124_v60 = vpop.f32.mrf.mxu2 }
 0x3bc   : > { %v1125_v43 = vadd.f32 %v4914_v49, %v1124_v60 }
 0x3bd   : > { %v1411_v13 = vpop.f32.mrf.mxu3 }
 0x3be   : > { %v1256_v7 = vmax.f32 %v1125_v43, 0.0  ;;  %v1412_v12 = vadd.f32 %v5002_v32, %v1411_v13 }
 0x3c0   : > { %v1570_v24 = vmax.f32 %v1412_v12, 0.0  ;;  %1166 = vmatmul.bf16.gmra.mxu2 %v4786_v1  ;;  %v1310_v35 = vpack.c.bf16 %v1256_v7, %v1255_v38 }
 0x3c2   : > { %v1633_v19 = vpack.c.bf16 %v1570_v24, %v1569_v48  ;;  %1453 = vmatmul.bf16.gmra.mxu3 %v1310_v35 }
 0x3c3   : > { %v1127_v52 = vpop.f32.mrf.mxu2 }
 0x3c4   : > { %1740 = vmatmul.bf16.vlgmr.msrb.gmra.mxu0 %v1633_v19  ;;  %v1128_v9 = vadd.f32 %v4914_v49, %v1127_v52 }
 0x3c5   : > { %v1414_v6 = vpop.f32.mrf.mxu3 }
 0x3c6   : > { %v1415_v27 = vadd.f32 %v5002_v32, %v1414_v6  ;;  %v1257_v18 = vmax.f32 %v1128_v9, 0.0 }
 0x3c8   : > { %v1571_v37 = vmax.f32 %v1415_v27, 0.0 }
 0x3cb   : > { %v1129_v31 = vpop.f32.mrf.mxu2 }
 0x3cc   : > { %v1130_v1 = vadd.f32 %v4914_v49, %v1129_v31 }
 0x3cd   : > { %v1416_v41 = vpop.f32.mrf.mxu3 }
 0x3ce   : > { %v1258_v26 = vmax.f32 %v1130_v1, 0.0  ;;  %v1417_v0 = vadd.f32 %v5002_v32, %v1416_v41 }
 0x3d0   : > { %v1572_v15 = vmax.f32 %v1417_v0, 0.0  ;;  %1171 = vmatmul.bf16.gmra.mxu2 %v4798_v39  ;;  %v1311_v51 = vpack.c.bf16 %v1258_v26, %v1257_v18 }
 0x3d2   : > { %1458 = vmatmul.bf16.gmra.mxu3 %v1311_v51  ;;  %v1634_v20 = vpack.c.bf16 %v1572_v15, %v1571_v37 }
 0x3d3   : > { %v1132_v46 = vpop.f32.mrf.mxu2 }
 0x3d4   : > { %1745 = vmatmul.bf16.gmra.mxu0 %v1634_v20  ;;  %v1133_v3 = vadd.f32 %v4914_v49, %v1132_v46 }
 0x3d5   : > { %v1419_v45 = vpop.f32.mrf.mxu3 }
 0x3d6   : > { %v1420_v60 = vadd.f32 %v5002_v32, %v1419_v45  ;;  %v1259_v43 = vmax.f32 %v1133_v3, 0.0 }
 0x3d8   : > { %v1573_v7 = vmax.f32 %v1420_v60, 0.0 }
 0x3db   : > { %v1134_v4 = vpop.f32.mrf.mxu2 }
 0x3dc   : > { %v1135_v39 = vadd.f32 %v4914_v49, %v1134_v4 }
 0x3dd   : > { %v1421_v33 = vpop.f32.mrf.mxu3 }
 0x3de   : > { %v1260_v13 = vmax.f32 %v1135_v39, 0.0  ;;  %v1422_v38 = vadd.f32 %v5002_v32, %v1421_v33  ;;  %v4142_v33 = vld [vmem:[%s5942_s2 + $0x108] sm:$0xff] }
 0x3df   : > { %2246 = vmatpush.bf16.msra.mxu2 %v4142_v33 }
 0x3e0   : > { %v1574_v12 = vmax.f32 %v1422_v38, 0.0  ;;  %1176 = vmatmul.bf16.gmra.mxu2 %v4804_v23  ;;  %v1312_v48 = vpack.c.bf16 %v1260_v13, %v1259_v43 }
 0x3e2   : > { %1463 = vmatmul.bf16.gmra.mxu3 %v1312_v48  ;;  %v1635_v56 = vpack.c.bf16 %v1574_v12, %v1573_v7 }
 0x3e3   : > { %v1137_v24 = vpop.f32.mrf.mxu2 }
 0x3e4   : > { %1750 = vmatmul.bf16.gmra.mxu0 %v1635_v56  ;;  %v1138_v19 = vadd.f32 %v4914_v49, %v1137_v24 }
 0x3e5   : > { %v1424_v35 = vpop.f32.mrf.mxu3 }
 0x3e6   : > { %v1425_v6 = vadd.f32 %v5002_v32, %v1424_v35  ;;  %v1261_v31 = vmax.f32 %v1138_v19, 0.0 }
 0x3e8   : > { %v1575_v41 = vmax.f32 %v1425_v6, 0.0 }
 0x3eb   : > { %v1139_v52 = vpop.f32.mrf.mxu2 }
 0x3ec   : > { %v1140_v23 = vadd.f32 %v4914_v49, %v1139_v52 }
 0x3ed   : > { %v1426_v9 = vpop.f32.mrf.mxu3 }
 0x3ee   : > { %v1262_v27 = vmax.f32 %v1140_v23, 0.0  ;;  %v1427_v1 = vadd.f32 %v5002_v32, %v1426_v9 }
 0x3f0   : > { %v1576_v18 = vmax.f32 %v1427_v1, 0.0  ;;  %1181 = vmatmul.bf16.gmra.mxu2 %v4816_v63  ;;  %v1313_v2 = vpack.c.bf16 %v1262_v27, %v1261_v31  ;;  %v4153_v27 = vld [vmem:[%s5942_s2 + $0x158] sm:$0xff] }
 0x3f1   : > { %2642 = vmatpush.bf16.msra.mxu3 %v4153_v27 }
 0x3f2   : > { %1468 = vmatmul.bf16.gmra.mxu3 %v1313_v2  ;;  %v1636_v26 = vpack.c.bf16 %v1576_v18, %v1575_v41 }
 0x3f3   : > { %v1142_v0 = vpop.f32.mrf.mxu2 }
 0x3f4   : > { %1755 = vmatmul.bf16.gmra.mxu0 %v1636_v26  ;;  %v1143_v15 = vadd.f32 %v4914_v49, %v1142_v0 }
 0x3f5   : > { %v1429_v37 = vpop.f32.mrf.mxu3 }
 0x3f6   : > { %v1430_v20 = vadd.f32 %v5002_v32, %v1429_v37  ;;  %v1263_v54 = vmax.f32 %v1143_v15, 0.0 }
 0x3f8   : > { %v1577_v60 = vmax.f32 %v1430_v20, 0.0 }
 0x3fb   : > { %v1144_v51 = vpop.f32.mrf.mxu2 }
 0x3fc   : > { %v1145_v46 = vadd.f32 %v4914_v49, %v1144_v51 }
 0x3fd   : > { %v1431_v45 = vpop.f32.mrf.mxu3 }
 0x3fe   : > { %v1264_v3 = vmax.f32 %v1145_v46, 0.0  ;;  %v1432_v4 = vadd.f32 %v5002_v32, %v1431_v45 }
 0x400   : > { %v1578_v63 = vmax.f32 %v1432_v4, 0.0  ;;  %1186 = vmatmul.bf16.gmra.mxu2 %v4822_v21  ;;  %v1314_v39 = vpack.c.bf16 %v1264_v3, %v1263_v54  ;;  %v4163_v3 = vld [vmem:[%s5942_s2 + $0x1a8] sm:$0xff] }
 0x401   : > { %2972 = vmatpush.bf16.msra.mxu0 %v4163_v3 }
 0x402   : > { %1473 = vmatmul.bf16.gmra.mxu3 %v1314_v39  ;;  %v1637_v43 = vpack.c.bf16 %v1578_v63, %v1577_v60 }
 0x403   : > { %v1147_v13 = vpop.f32.mrf.mxu2 }
 0x404   : > { %1760 = vmatmul.bf16.gmra.mxu0 %v1637_v43  ;;  %v1148_v7 = vadd.f32 %v4914_v49, %v1147_v13 }
 0x405   : > { %v1434_v38 = vpop.f32.mrf.mxu3 }
 0x406   : > { %v1435_v48 = vadd.f32 %v5002_v32, %v1434_v38  ;;  %v1265_v21 = vmax.f32 %v1148_v7, 0.0 }
 0x408   : > { %v1579_v19 = vmax.f32 %v1435_v48, 0.0 }
 0x40b   : > { %v1149_v12 = vpop.f32.mrf.mxu2 }
 0x40c   : > { %v1150_v56 = vadd.f32 %v4914_v49, %v1149_v12 }
 0x40d   : > { %v1436_v24 = vpop.f32.mrf.mxu3 }
 0x40e   : > { %v1266_v35 = vmax.f32 %v1150_v56, 0.0  ;;  %v1437_v28 = vadd.f32 %v5002_v32, %v1436_v24  ;;  %v4173_v24 = vld [vmem:[%s5942_s2 + $0x1f8] sm:$0xff] }
 0x40f   : > { %3302 = vmatpush.bf16.msra.mxu1 %v4173_v24 }
 0x410   : > { %v1580_v52 = vmax.f32 %v1437_v28, 0.0  ;;  %1191 = vmatmul.bf16.gmra.mxu2 %v4833_v59  ;;  %v1315_v6 = vpack.c.bf16 %v1266_v35, %v1265_v21 }
 0x412   : > { %1478 = vmatmul.bf16.gmra.mxu3 %v1315_v6  ;;  %v1638_v23 = vpack.c.bf16 %v1580_v52, %v1579_v19 }
 0x413   : > { %v1152_v9 = vpop.f32.mrf.mxu2 }
 0x414   : > { %1765 = vmatmul.bf16.gmra.mxu0 %v1638_v23  ;;  %v1153_v1 = vadd.f32 %v4914_v49, %v1152_v9 }
 0x415   : > { %v1439_v31 = vpop.f32.mrf.mxu3 }
 0x416   : > { %v1440_v18 = vadd.f32 %v5002_v32, %v1439_v31  ;;  %v1267_v59 = vmax.f32 %v1153_v1, 0.0 }
 0x418   : > { %v1581_v15 = vmax.f32 %v1440_v18, 0.0 }
 0x41b   : > { %v1154_v41 = vpop.f32.mrf.mxu2 }
 0x41c   : > { %v1155_v2 = vadd.f32 %v4914_v49, %v1154_v41  ;;  %v4141_v41 = vld [vmem:[%s5942_s2 + $0x100] sm:$0xff] }
 0x41d   : > { %v1441_v26 = vpop.f32.mrf.mxu3  ;;  %2247 = vmatpush.bf16.msra.mxu2 %v4141_v41 }
 0x41e   : > { %v1268_v0 = vmax.f32 %v1155_v2, 0.0  ;;  %v1442_v37 = vadd.f32 %v5002_v32, %v1441_v26 }
 0x420   : > { %v1582_v51 = vmax.f32 %v1442_v37, 0.0  ;;  %1196 = vmatmul.bf16.gmra.mxu2 %v4838_v25  ;;  %v1316_v20 = vpack.c.bf16 %v1268_v0, %v1267_v59  ;;  %v5082_v59 = vld [vmem:[%s5943_s3 + $0x4] ss:$0 sm:$0xff] }
 0x422   : > { %1483 = vmatmul.bf16.gmra.mxu3 %v1316_v20  ;;  %v1639_v46 = vpack.c.bf16 %v1582_v51, %v1581_v15 }
 0x423   : > { %v1157_v45 = vpop.f32.mrf.mxu2 }
 0x424   : > { %1770 = vmatmul.bf16.gmra.mxu0 %v1639_v46  ;;  %v1158_v4 = vadd.f32 %v4914_v49, %v1157_v45 }
 0x425   : > { %v1444_v54 = vpop.f32.mrf.mxu3 }
 0x426   : > { %v1445_v63 = vadd.f32 %v5002_v32, %v1444_v54  ;;  %v1269_v25 = vmax.f32 %v1158_v4, 0.0 }
 0x428   : > { %v1583_v38 = vmax.f32 %v1445_v63, 0.0 }
 0x42b   : > { %v1159_v60 = vpop.f32.mrf.mxu2 }
 0x42c   : > { %v1160_v39 = vadd.f32 %v4914_v49, %v1159_v60 }
 0x42d   : > { %v1446_v33 = vpop.f32.mrf.mxu3 }
 0x42e   : > { %v1270_v43 = vmax.f32 %v1160_v39, 0.0  ;;  %v1447_v13 = vadd.f32 %v5002_v32, %v1446_v33 }
 0x430   : > { %v1584_v7 = vmax.f32 %v1447_v13, 0.0  ;;  %1201 = vmatmul.bf16.gmra.mxu2 %v4852_v8  ;;  %v1317_v12 = vpack.c.bf16 %v1270_v43, %v1269_v25 }
 0x432   : > { %1488 = vmatmul.bf16.gmra.mxu3 %v1317_v12  ;;  %v1640_v48 = vpack.c.bf16 %v1584_v7, %v1583_v38 }
 0x433   : > { %v1162_v56 = vpop.f32.mrf.mxu2 }
 0x434   : > { %1775 = vmatmul.bf16.gmra.mxu0 %v1640_v48  ;;  %v1163_v35 = vadd.f32 %v4914_v49, %v1162_v56  ;;  %v4152_v56 = vld [vmem:[%s5942_s2 + $0x150] sm:$0xff] }
 0x435   : > { %v1449_v21 = vpop.f32.mrf.mxu3  ;;  %2643 = vmatpush.bf16.msra.mxu3 %v4152_v56 }
 0x436   : > { %v1450_v19 = vadd.f32 %v5002_v32, %v1449_v21  ;;  %v1271_v8 = vmax.f32 %v1163_v35, 0.0 }
 0x438   : > { %v1585_v31 = vmax.f32 %v1450_v19, 0.0 }
 0x43b   : > { %v1164_v28 = vpop.f32.mrf.mxu2 }
 0x43c   : > { %v1165_v52 = vadd.f32 %v4914_v49, %v1164_v28 }
 0x43d   : > { %v1451_v6 = vpop.f32.mrf.mxu3 }
 0x43e   : > { %v1272_v23 = vmax.f32 %v1165_v52, 0.0  ;;  %v1452_v9 = vadd.f32 %v5002_v32, %v1451_v6 }
 0x440   : > { %v1586_v27 = vmax.f32 %v1452_v9, 0.0  ;;  %1206 = vmatmul.bf16.gmra.mxu2 %v4857_v36  ;;  %v1318_v1 = vpack.c.bf16 %v1272_v23, %v1271_v8 }
 0x441   : > { %v1741_v18 = vpop.f32.mrf.mxu0 }
 0x442   : > { %1493 = vmatmul.bf16.gmra.mxu3 %v1318_v1  ;;  %v1641_v2 = vpack.c.bf16 %v1586_v27, %v1585_v31  ;;  %v1742_v37 = vadd.f32 %v5082_v59, %v1741_v18 }
 0x443   : > { %v1167_v26 = vpop.f32.mrf.mxu2 }
 0x444   : > { %1780 = vmatmul.bf16.gmra.mxu0 %v1641_v2  ;;  %v1168_v15 = vadd.f32 %v4914_v49, %v1167_v26  ;;  %v1901_v46 = vmax.f32 %v1742_v37, 0.0 }
 0x445   : > { %v1454_v0 = vpop.f32.mrf.mxu3 }
 0x446   : > { %v1455_v45 = vadd.f32 %v5002_v32, %v1454_v0  ;;  %v1273_v60 = vmax.f32 %v1168_v15, 0.0 }
 0x448   : > { %v1587_v25 = vmax.f32 %v1455_v45, 0.0 }
 0x449   : > { %v1743_v36 = vpop.f32.mrf.mxu0 }
 0x44a   : > { %v1744_v51 = vadd.f32 %v5082_v59, %v1743_v36 }
 0x44b   : > { %v1169_v20 = vpop.f32.mrf.mxu2 }
 0x44c   : > { %v1902_v54 = vmax.f32 %v1744_v51, 0.0  ;;  %v1170_v3 = vadd.f32 %v4914_v49, %v1169_v20  ;;  %v4162_v51 = vld [vmem:[%s5942_s2 + $0x1a0] sm:$0xff] }
 0x44d   : > { %v1456_v4 = vpop.f32.mrf.mxu3  ;;  %2973 = vmatpush.bf16.msra.mxu0 %v4162_v51 }
 0x44e   : > { %v5089_v63 = vpack.c.bf16 %v1902_v54, %v1901_v46  ;;  %v1274_v39 = vmax.f32 %v1170_v3, 0.0  ;;  %v1457_v33 = vadd.f32 %v5002_v32, %v1456_v4 }
 0x450   : > { %v1588_v43 = vmax.f32 %v1457_v33, 0.0  ;;  %1211 = vmatmul.bf16.gmra.mxu2 %v4869_v40  ;;  %v1319_v13 = vpack.c.bf16 %v1274_v39, %v1273_v60 }
 0x451   : > { %v1746_v38 = vpop.f32.mrf.mxu0 }
 0x452   : > { %1498 = vmatmul.bf16.gmra.mxu3 %v1319_v13  ;;  %v1642_v7 = vpack.c.bf16 %v1588_v43, %v1587_v25  ;;  %v1747_v24 = vadd.f32 %v5082_v59, %v1746_v38 }
 0x453   : > { %v1172_v12 = vpop.f32.mrf.mxu2 }
 0x454   : > { %1785 = vmatmul.bf16.gmra.mxu0 %v1642_v7  ;;  %v1173_v35 = vadd.f32 %v4914_v49, %v1172_v12  ;;  %v1903_v19 = vmax.f32 %v1747_v24, 0.0 }
 0x455   : > { %v1459_v48 = vpop.f32.mrf.mxu3 }
 0x456   : > { %v1460_v52 = vadd.f32 %v5002_v32, %v1459_v48  ;;  %v1275_v9 = vmax.f32 %v1173_v35, 0.0 }
 0x458   : > { %v1589_v41 = vmax.f32 %v1460_v52, 0.0 }
 0x459   : > { %v1748_v21 = vpop.f32.mrf.mxu0 }
 0x45a   : > { %v1749_v28 = vadd.f32 %v5082_v59, %v1748_v21  ;;  %v4172_v21 = vld [vmem:[%s5942_s2 + $0x1f0] sm:$0xff] }
 0x45b   : > { %v1174_v40 = vpop.f32.mrf.mxu2  ;;  %3303 = vmatpush.bf16.msra.mxu1 %v4172_v21 }
 0x45c   : > { %v1904_v6 = vmax.f32 %v1749_v28, 0.0  ;;  %v1175_v8 = vadd.f32 %v4914_v49, %v1174_v40 }
 0x45d   : > { %v1461_v23 = vpop.f32.mrf.mxu3 }
 0x45e   : > { %v1276_v31 = vmax.f32 %v1175_v8, 0.0  ;;  %v1462_v27 = vadd.f32 %v5002_v32, %v1461_v23  ;;  %v5102_v1 = vpack.c.bf16 %v1904_v6, %v1903_v19 }
 0x460   : > { %v1590_v18 = vmax.f32 %v1462_v27, 0.0  ;;  %1216 = vmatmul.bf16.gmra.mxu2 %v4875_v55  ;;  %v1320_v2 = vpack.c.bf16 %v1276_v31, %v1275_v9 }
 0x461   : > { %v1751_v26 = vpop.f32.mrf.mxu0 }
 0x462   : > { %1503 = vmatmul.bf16.gmra.mxu3 %v1320_v2  ;;  %v1643_v0 = vpack.c.bf16 %v1590_v18, %v1589_v41  ;;  %v1752_v15 = vadd.f32 %v5082_v59, %v1751_v26 }
 0x463   : > { %v1177_v37 = vpop.f32.mrf.mxu2 }
 0x464   : > { %1790 = vmatmul.bf16.gmra.mxu0 %v1643_v0  ;;  %v1178_v46 = vadd.f32 %v4914_v49, %v1177_v37  ;;  %v1905_v54 = vmax.f32 %v1752_v15, 0.0 }
 0x465   : > { %v1464_v36 = vpop.f32.mrf.mxu3 }
 0x466   : > { %v1465_v3 = vadd.f32 %v5002_v32, %v1464_v36  ;;  %v1277_v33 = vmax.f32 %v1178_v46, 0.0 }
 0x468   : > { %v1591_v38 = vmax.f32 %v1465_v3, 0.0 }
 0x469   : > { %v1753_v20 = vpop.f32.mrf.mxu0 }
 0x46a   : > { %v1754_v45 = vadd.f32 %v5082_v59, %v1753_v20 }
 0x46b   : > { %v1179_v55 = vpop.f32.mrf.mxu2 }
 0x46c   : > { %v1906_v4 = vmax.f32 %v1754_v45, 0.0  ;;  %v1180_v60 = vadd.f32 %v4914_v49, %v1179_v55 }
 0x46d   : > { %v1466_v39 = vpop.f32.mrf.mxu3 }
 0x46e   : > { %v1278_v25 = vmax.f32 %v1180_v60, 0.0  ;;  %v1467_v43 = vadd.f32 %v5002_v32, %v1466_v39  ;;  %v5114_v13 = vpack.c.bf16 %v1906_v4, %v1905_v54 }
 0x470   : > { %v1592_v7 = vmax.f32 %v1467_v43, 0.0  ;;  %1221 = vmatmul.bf16.gmra.mxu2 %v4890_v62  ;;  %v1321_v12 = vpack.c.bf16 %v1278_v25, %v1277_v33 }
 0x471   : > { %v1756_v48 = vpop.f32.mrf.mxu0 }
 0x472   : > { %1508 = vmatmul.bf16.gmra.mxu3 %v1321_v12  ;;  %v1644_v56 = vpack.c.bf16 %v1592_v7, %v1591_v38  ;;  %v1757_v28 = vadd.f32 %v5082_v59, %v1756_v48 }
 0x473   : > { %v1182_v24 = vpop.f32.mrf.mxu2 }
 0x474   : > { %1795 = vmatmul.bf16.gmra.mxu0 %v1644_v56  ;;  %v1183_v19 = vadd.f32 %v4914_v49, %v1182_v24  ;;  %v1907_v6 = vmax.f32 %v1757_v28, 0.0 }
 0x475   : > { %v1469_v35 = vpop.f32.mrf.mxu3 }
 0x476   : > { %v1470_v8 = vadd.f32 %v5002_v32, %v1469_v35  ;;  %v1279_v27 = vmax.f32 %v1183_v19, 0.0 }
 0x478   : > { %v1593_v26 = vmax.f32 %v1470_v8, 0.0 }
 0x479   : > { %v1758_v40 = vpop.f32.mrf.mxu0 }
 0x47a   : > { %v1759_v52 = vadd.f32 %v5082_v59, %v1758_v40  ;;  %v4151_v40 = vld [vmem:[%s5942_s2 + $0x148] sm:$0xff] }
 0x47b   : > { %v1184_v62 = vpop.f32.mrf.mxu2  ;;  %2644 = vmatpush.bf16.msra.mxu3 %v4151_v40 }
 0x47c   : > { %v1908_v23 = vmax.f32 %v1759_v52, 0.0  ;;  %v1185_v9 = vadd.f32 %v4914_v49, %v1184_v62 }
 0x47d   : > { %v1471_v31 = vpop.f32.mrf.mxu3 }
 0x47e   : > { %v1280_v41 = vmax.f32 %v1185_v9, 0.0  ;;  %v1472_v18 = vadd.f32 %v5002_v32, %v1471_v31  ;;  %v5126_v2 = vpack.c.bf16 %v1908_v23, %v1907_v6 }
 0x480   : > { %v1594_v0 = vmax.f32 %v1472_v18, 0.0  ;;  %1226 = vmatmul.bf16.gmra.mxu2 %v4896_v5  ;;  %v1322_v37 = vpack.c.bf16 %v1280_v41, %v1279_v27 }
 0x481   : > { %v1761_v36 = vpop.f32.mrf.mxu0 }
 0x482   : > { %1513 = vmatmul.bf16.gmra.mxu3 %v1322_v37  ;;  %v1645_v15 = vpack.c.bf16 %v1594_v0, %v1593_v26  ;;  %v1762_v46 = vadd.f32 %v5082_v59, %v1761_v36 }
 0x483   : > { %v1187_v51 = vpop.f32.mrf.mxu2 }
 0x484   : > { %1800 = vmatmul.bf16.gmra.mxu0 %v1645_v15  ;;  %v1188_v55 = vadd.f32 %v4914_v49, %v1187_v51  ;;  %v1909_v4 = vmax.f32 %v1762_v46, 0.0 }
 0x485   : > { %v1474_v20 = vpop.f32.mrf.mxu3 }
 0x486   : > { %v1475_v60 = vadd.f32 %v5002_v32, %v1474_v20  ;;  %v1281_v25 = vmax.f32 %v1188_v55, 0.0  ;;  %v5150_v55 = vpop.f32.mrf.mxu1 }
 0x488   : > { %v1595_v12 = vmax.f32 %v1475_v60, 0.0 }
 0x489   : > { %v1763_v45 = vpop.f32.mrf.mxu0 }
 0x48a   : > { %v1764_v54 = vadd.f32 %v5082_v59, %v1763_v45 }
 0x48b   : > { %v1189_v3 = vpop.f32.mrf.mxu2 }
 0x48c   : > { %v1910_v39 = vmax.f32 %v1764_v54, 0.0  ;;  %v1190_v5 = vadd.f32 %v4914_v49, %v1189_v3  ;;  %v4161_v3 = vld [vmem:[%s5942_s2 + $0x198] sm:$0xff] }
 0x48d   : > { %v1476_v33 = vpop.f32.mrf.mxu3  ;;  %2974 = vmatpush.bf16.msra.mxu0 %v4161_v3 }
 0x48e   : > { %v1282_v43 = vmax.f32 %v1190_v5, 0.0  ;;  %v1477_v38 = vadd.f32 %v5002_v32, %v1476_v33  ;;  %v5135_v7 = vpack.c.bf16 %v1910_v39, %v1909_v4 }
 0x490   : > { %v1596_v48 = vmax.f32 %v1477_v38, 0.0  ;;  %1231 = vmatmul.bf16.gmra.mxu2 %v4908_v44  ;;  %v1323_v56 = vpack.c.bf16 %v1282_v43, %v1281_v25 }
 0x491   : > { %v1766_v24 = vpop.f32.mrf.mxu0 }
 0x492   : > { %1518 = vmatmul.bf16.gmra.mxu3 %v1323_v56  ;;  %v1646_v21 = vpack.c.bf16 %v1596_v48, %v1595_v12  ;;  %v1767_v19 = vadd.f32 %v5082_v59, %v1766_v24 }
 0x493   : > { %v1192_v35 = vpop.f32.mrf.mxu2 }
 0x494   : > { %1805 = vmatmul.bf16.gmra.mxu0 %v1646_v21  ;;  %v1193_v62 = vadd.f32 %v4914_v49, %v1192_v35  ;;  %v1911_v8 = vmax.f32 %v1767_v19, 0.0  ;;  %v5163_v21 = vpop.f32.mrf.mxu1  ;;  %3910 = vmatmul.msk.bf16.gmra.mxu1 %vm308_vm0, %v4562_v17 }
 0x495   : > { %v1479_v28 = vpop.f32.mrf.mxu3 }
 0x496   : > { %v1480_v23 = vadd.f32 %v5002_v32, %v1479_v28  ;;  %v1283_v41 = vmax.f32 %v1193_v62, 0.0  ;;  %v4171_v62 = vld [vmem:[%s5942_s2 + $0x1e8] sm:$0xff] }
 0x497   : > { %3304 = vmatpush.bf16.msra.mxu1 %v4171_v62 }
 0x498   : > { %v1597_v37 = vmax.f32 %v1480_v23, 0.0 }
 0x499   : > { %v1768_v52 = vpop.f32.mrf.mxu0 }
 0x49a   : > { %v1769_v6 = vadd.f32 %v5082_v59, %v1768_v52 }
 0x49b   : > { %v1194_v44 = vpop.f32.mrf.mxu2 }
 0x49c   : > { %v1912_v9 = vmax.f32 %v1769_v6, 0.0  ;;  %v1195_v31 = vadd.f32 %v4914_v49, %v1194_v44  ;;  %v5171_v44 = vpop.f32.mrf.mxu1 }
 0x49d   : > { %v1481_v27 = vpop.f32.mrf.mxu3 }
 0x49e   : > { %v1284_v18 = vmax.f32 %v1195_v31, 0.0  ;;  %v1482_v26 = vadd.f32 %v5002_v32, %v1481_v27  ;;  %v5147_v0 = vpack.c.bf16 %v1912_v9, %v1911_v8 }
 0x4a0   : > { %v1598_v36 = vmax.f32 %v1482_v26, 0.0  ;;  %2248 = vmatmul.bf16.vlgmr.msra.gmra.mxu2 %v5089_v63  ;;  %v1324_v15 = vpack.c.bf16 %v1284_v18, %v1283_v41 }
 0x4a1   : > { %v1771_v51 = vpop.f32.mrf.mxu0 }
 0x4a2   : > { %1523 = vmatmul.bf16.gmra.mxu3 %v1324_v15  ;;  %v1647_v20 = vpack.c.bf16 %v1598_v36, %v1597_v37  ;;  %v1772_v54 = vadd.f32 %v5082_v59, %v1771_v51 }
 0x4a3   : > { %v1197_v46 = vpop.f32.mrf.mxu2 }
 0x4a4   : > { %1810 = vmatmul.bf16.gmra.mxu0 %v1647_v20  ;;  %v1198_v60 = vadd.f32 %v4914_v49, %v1197_v46  ;;  %v1913_v5 = vmax.f32 %v1772_v54, 0.0  ;;  %v5186_v46 = vpop.f32.mrf.mxu1  ;;  %3911 = vmatmul.msk.bf16.gmra.mxu1 %vm308_vm0, %v4570_v29 }
 0x4a5   : > { %v1484_v45 = vpop.f32.mrf.mxu3 }
 0x4a6   : > { %v1485_v33 = vadd.f32 %v5002_v32, %v1484_v45  ;;  %v1285_v12 = vmax.f32 %v1198_v60, 0.0 }
 0x4a8   : > { %v1599_v35 = vmax.f32 %v1485_v33, 0.0 }
 0x4a9   : > { %v1773_v4 = vpop.f32.mrf.mxu0 }
 0x4aa   : > { %v1774_v63 = vadd.f32 %v5082_v59, %v1773_v4 }
 0x4ab   : > { %v1199_v39 = vpop.f32.mrf.mxu2 }
 0x4ac   : > { %v1914_v25 = vmax.f32 %v1774_v63, 0.0  ;;  %v1200_v43 = vadd.f32 %v4914_v49, %v1199_v39 }
 0x4ad   : > { %v1486_v38 = vpop.f32.mrf.mxu3 }
 0x4ae   : > { %v1286_v48 = vmax.f32 %v1200_v43, 0.0  ;;  %v1487_v56 = vadd.f32 %v5002_v32, %v1486_v38  ;;  %v5161_v24 = vpack.c.bf16 %v1914_v25, %v1913_v5  ;;  %v5191_v5 = vpop.f32.mrf.mxu1 }
 0x4b0   : > { %v1600_v28 = vmax.f32 %v1487_v56, 0.0  ;;  %2253 = vmatmul.bf16.gmra.mxu2 %v5102_v1  ;;  %v1325_v40 = vpack.c.bf16 %v1286_v48, %v1285_v12  ;;  %v5177_v1 = vld [vmem:[%s5943_s3 + $0x2] ss:$0 sm:$0xff] }
 0x4b1   : > { %v1776_v19 = vpop.f32.mrf.mxu0 }
 0x4b2   : > { %1528 = vmatmul.bf16.gmra.mxu3 %v1325_v40  ;;  %v1648_v49 = vpack.c.bf16 %v1600_v28, %v1599_v35  ;;  %v1777_v17 = vadd.f32 %v5082_v59, %v1776_v19 }
 0x4b3   : > { %v1202_v52 = vpop.f32.mrf.mxu2 }
 0x4b4   : > { %1815 = vmatmul.bf16.gmra.mxu0 %v1648_v49  ;;  %v1203_v23 = vadd.f32 %v5177_v1, %v1202_v52  ;;  %v1915_v27 = vmax.f32 %v1777_v17, 0.0 }
 0x4b5   : > { %v1489_v6 = vpop.f32.mrf.mxu3 }
 0x4b6   : > { %v1490_v41 = vadd.f32 %v5002_v32, %v1489_v6  ;;  %v1287_v36 = vmax.f32 %v1203_v23, 0.0  ;;  %v5201_v52 = vpop.f32.mrf.mxu1  ;;  %3912 = vmatmul.msk.bf16.gmra.mxu1 %vm308_vm0, %v4578_v42 }
 0x4b8   : > { %v1601_v45 = vmax.f32 %v1490_v41, 0.0 }
 0x4b9   : > { %v1778_v8 = vpop.f32.mrf.mxu0 }
 0x4ba   : > { %v1779_v9 = vadd.f32 %v5082_v59, %v1778_v8 }
 0x4bb   : > { %v1204_v31 = vpop.f32.mrf.mxu2 }
 0x4bc   : > { %v1916_v18 = vmax.f32 %v1779_v9, 0.0  ;;  %v1205_v26 = vadd.f32 %v5177_v1, %v1204_v31 }
 0x4bd   : > { %v1491_v37 = vpop.f32.mrf.mxu3 }
 0x4be   : > { %v1288_v15 = vmax.f32 %v1205_v26, 0.0  ;;  %v1492_v51 = vadd.f32 %v5002_v32, %v1491_v37  ;;  %v5184_v20 = vpack.c.bf16 %v1916_v18, %v1915_v27  ;;  %v4150_v27 = vld [vmem:[%s5942_s2 + $0x140] sm:$0xff]  ;;  %v5209_v41 = vpop.f32.mrf.mxu1 }
 0x4bf   : > { %2645 = vmatpush.bf16.msra.mxu3 %v4150_v27 }
 0x4c0   : > { %v1602_v54 = vmax.f32 %v1492_v51, 0.0  ;;  %2258 = vmatmul.bf16.gmra.mxu2 %v5114_v13  ;;  %v1326_v3 = vpack.c.bf16 %v1288_v15, %v1287_v36 }
 0x4c1   : > { %v1781_v4 = vpop.f32.mrf.mxu0 }
 0x4c2   : > { %1533 = vmatmul.bf16.gmra.mxu3 %v1326_v3  ;;  %v1649_v60 = vpack.c.bf16 %v1602_v54, %v1601_v45  ;;  %v1782_v33 = vadd.f32 %v5082_v59, %v1781_v4 }
 0x4c3   : > { %v1207_v63 = vpop.f32.mrf.mxu2 }
 0x4c4   : > { %1820 = vmatmul.bf16.gmra.mxu0 %v1649_v60  ;;  %v1208_v43 = vadd.f32 %v5177_v1, %v1207_v63  ;;  %v1917_v12 = vmax.f32 %v1782_v33, 0.0 }
 0x4c5   : > { %v1494_v39 = vpop.f32.mrf.mxu3 }
 0x4c6   : > { %v1495_v13 = vadd.f32 %v5002_v32, %v1494_v39  ;;  %v1289_v28 = vmax.f32 %v1208_v43, 0.0  ;;  %v5219_v39 = vpop.f32.mrf.mxu1  ;;  %3913 = vmatmul.msk.bf16.gmra.mxu1 %vm308_vm0, %v4592_v57 }
 0x4c8   : > { %v1603_v62 = vmax.f32 %v1495_v13, 0.0 }
 0x4c9   : > { %v1783_v25 = vpop.f32.mrf.mxu0 }
 0x4ca   : > { %v1784_v29 = vadd.f32 %v5082_v59, %v1783_v25 }
 0x4cb   : > { %v1209_v38 = vpop.f32.mrf.mxu2 }
 0x4cc   : > { %v1918_v48 = vmax.f32 %v1784_v29, 0.0  ;;  %v1210_v56 = vadd.f32 %v5177_v1, %v1209_v38 }
 0x4cd   : > { %v1496_v35 = vpop.f32.mrf.mxu3 }
 0x4ce   : > { %v1290_v40 = vmax.f32 %v1210_v56, 0.0  ;;  %v1497_v19 = vadd.f32 %v5002_v32, %v1496_v35  ;;  %v5199_v49 = vpack.c.bf16 %v1918_v48, %v1917_v12  ;;  %v5224_v48 = vpop.f32.mrf.mxu1  ;;  %v4160_v35 = vld [vmem:[%s5942_s2 + $0x190] sm:$0xff] }
 0x4cf   : > { %2975 = vmatpush.bf16.msra.mxu0 %v4160_v35 }
 0x4d0   : > { %v1604_v6 = vmax.f32 %v1497_v19, 0.0  ;;  %2263 = vmatmul.bf16.gmra.mxu2 %v5126_v2  ;;  %v1327_v17 = vpack.c.bf16 %v1290_v40, %v1289_v28 }
 0x4d1   : > { %v1786_v8 = vpop.f32.mrf.mxu0 }
 0x4d2   : > { %1538 = vmatmul.bf16.gmra.mxu3 %v1327_v17  ;;  %v1650_v23 = vpack.c.bf16 %v1604_v6, %v1603_v62  ;;  %v1787_v18 = vadd.f32 %v5082_v59, %v1786_v8 }
 0x4d3   : > { %v1212_v9 = vpop.f32.mrf.mxu2 }
 0x4d4   : > { %1825 = vmatmul.bf16.gmra.mxu0 %v1650_v23  ;;  %v1213_v26 = vadd.f32 %v5177_v1, %v1212_v9  ;;  %v1919_v36 = vmax.f32 %v1787_v18, 0.0 }
 0x4d5   : > { %v1499_v31 = vpop.f32.mrf.mxu3 }
 0x4d6   : > { %v1500_v15 = vadd.f32 %v5002_v32, %v1499_v31  ;;  %v1291_v3 = vmax.f32 %v1213_v26, 0.0  ;;  %v5237_v18 = vpop.f32.mrf.mxu1  ;;  %3914 = vmatmul.msk.bf16.gmra.mxu1 %vm308_vm0, %v4606_v10 }
 0x4d8   : > { %v1605_v33 = vmax.f32 %v1500_v15, 0.0 }
 0x4d9   : > { %v1788_v42 = vpop.f32.mrf.mxu0 }
 0x4da   : > { %v1789_v2 = vadd.f32 %v5082_v59, %v1788_v42 }
 0x4db   : > { %v1214_v37 = vpop.f32.mrf.mxu2 }
 0x4dc   : > { %v1920_v51 = vmax.f32 %v1789_v2, 0.0  ;;  %v1215_v45 = vadd.f32 %v5177_v1, %v1214_v37 }
 0x4dd   : > { %v1501_v54 = vpop.f32.mrf.mxu3 }
 0x4de   : > { %v1292_v4 = vmax.f32 %v1215_v45, 0.0  ;;  %v1502_v60 = vadd.f32 %v5002_v32, %v1501_v54  ;;  %v5217_v63 = vpack.c.bf16 %v1920_v51, %v1919_v36  ;;  %v4170_v51 = vld [vmem:[%s5942_s2 + $0x1e0] sm:$0xff]  ;;  %v5245_v54 = vpop.f32.mrf.mxu1 }
 0x4df   : > { %3305 = vmatpush.bf16.msra.mxu1 %v4170_v51 }
 0x4e0   : > { %v1606_v25 = vmax.f32 %v1502_v60, 0.0  ;;  %2268 = vmatmul.bf16.gmra.mxu2 %v5135_v7  ;;  %v1328_v43 = vpack.c.bf16 %v1292_v4, %v1291_v3 }
 0x4e1   : > { %v1791_v29 = vpop.f32.mrf.mxu0 }
 0x4e2   : > { %1543 = vmatmul.bf16.gmra.mxu3 %v1328_v43  ;;  %v1651_v38 = vpack.c.bf16 %v1606_v25, %v1605_v33  ;;  %v1792_v56 = vadd.f32 %v5082_v59, %v1791_v29 }
 0x4e3   : > { %v1217_v12 = vpop.f32.mrf.mxu2 }
 0x4e4   : > { %1830 = vmatmul.bf16.gmra.mxu0 %v1651_v38  ;;  %v1218_v28 = vadd.f32 %v5177_v1, %v1217_v12  ;;  %v1921_v19 = vmax.f32 %v1792_v56, 0.0 }
 0x4e5   : > { %v1504_v13 = vpop.f32.mrf.mxu3 }
 0x4e6   : > { %v1505_v62 = vadd.f32 %v5002_v32, %v1504_v13  ;;  %v1293_v23 = vmax.f32 %v1218_v28, 0.0 }
 0x4e8   : > { %v1607_v42 = vmax.f32 %v1505_v62, 0.0 }
 0x4e9   : > { %v1793_v57 = vpop.f32.mrf.mxu0 }
 0x4ea   : > { %v1794_v7 = vadd.f32 %v5082_v59, %v1793_v57  ;;  %v5255_v57 = vpop.f32.mrf.mxu1  ;;  %3915 = vmatmul.msk.bf16.gmra.mxu1 %vm308_vm0, %v4584_v47 }
 0x4eb   : > { %v1219_v40 = vpop.f32.mrf.mxu2 }
 0x4ec   : > { %v1922_v6 = vmax.f32 %v1794_v7, 0.0  ;;  %v1220_v17 = vadd.f32 %v5177_v1, %v1219_v40 }
 0x4ed   : > { %v1506_v8 = vpop.f32.mrf.mxu3 }
 0x4ee   : > { %v1294_v9 = vmax.f32 %v1220_v17, 0.0  ;;  %v1507_v31 = vadd.f32 %v5002_v32, %v1506_v8  ;;  %v5235_v27 = vpack.c.bf16 %v1922_v6, %v1921_v19 }
 0x4f0   : > { %v1608_v26 = vmax.f32 %v1507_v31, 0.0  ;;  %2273 = vmatmul.bf16.gmra.mxu2 %v5147_v0  ;;  %v1329_v2 = vpack.c.bf16 %v1294_v9, %v1293_v23 }
 0x4f1   : > { %v1796_v37 = vpop.f32.mrf.mxu0 }
 0x4f2   : > { %1548 = vmatmul.bf16.gmra.mxu3 %v1329_v2  ;;  %v1652_v36 = vpack.c.bf16 %v1608_v26, %v1607_v42  ;;  %v1797_v10 = vadd.f32 %v5082_v59, %v1796_v37  ;;  %v5260_v8 = vpop.f32.mrf.mxu1 }
 0x4f3   : > { %v1222_v15 = vpop.f32.mrf.mxu2 }
 0x4f4   : > { %1835 = vmatmul.bf16.gmra.mxu0 %v1652_v36  ;;  %v1223_v4 = vadd.f32 %v5177_v1, %v1222_v15  ;;  %v1923_v33 = vmax.f32 %v1797_v10, 0.0 }
 0x4f5   : > { %v1509_v45 = vpop.f32.mrf.mxu3 }
 0x4f6   : > { %v1510_v25 = vadd.f32 %v5002_v32, %v1509_v45  ;;  %v1295_v12 = vmax.f32 %v1223_v4, 0.0  ;;  %v5270_v45 = vld [vmem:[%s5943_s3 + $0x3] ss:$0 sm:$0xff] }
 0x4f8   : > { %v1609_v28 = vmax.f32 %v1510_v25, 0.0 }
 0x4f9   : > { %v1798_v3 = vpop.f32.mrf.mxu0 }
 0x4fa   : > { %v1799_v0 = vadd.f32 %v5082_v59, %v1798_v3  ;;  %v5275_v4 = vpop.f32.mrf.mxu1  ;;  %3916 = vmatmul.msk.bf16.gmra.mxu1 %vm308_vm0, %v4598_v61 }
 0x4fb   : > { %v1224_v60 = vpop.f32.mrf.mxu2 }
 0x4fc   : > { %v1924_v43 = vmax.f32 %v1799_v0, 0.0  ;;  %v1225_v29 = vadd.f32 %v5177_v1, %v1224_v60 }
 0x4fd   : > { %v1511_v38 = vpop.f32.mrf.mxu3 }
 0x4fe   : > { %v1296_v13 = vmax.f32 %v1225_v29, 0.0  ;;  %v1512_v56 = vadd.f32 %v5002_v32, %v1511_v38  ;;  %v5253_v35 = vpack.c.bf16 %v1924_v43, %v1923_v33 }
 0x500   : > { %v1610_v7 = vmax.f32 %v1512_v56, 0.0  ;;  %2278 = vmatmul.bf16.gmra.mxu2 %v5161_v24  ;;  %v1330_v40 = vpack.c.bf16 %v1296_v13, %v1295_v12 }
 0x501   : > { %v1801_v19 = vpop.f32.mrf.mxu0 }
 0x502   : > { %1553 = vmatmul.bf16.gmra.mxu3 %v1330_v40  ;;  %v1653_v62 = vpack.c.bf16 %v1610_v7, %v1609_v28  ;;  %v1802_v23 = vadd.f32 %v5082_v59, %v1801_v19  ;;  %v5280_v38 = vpop.f32.mrf.mxu1 }
 0x503   : > { %v1227_v6 = vpop.f32.mrf.mxu2 }
 0x504   : > { %1840 = vmatmul.bf16.gmra.mxu0 %v1653_v62  ;;  %v1228_v31 = vadd.f32 %v5177_v1, %v1227_v6  ;;  %v1925_v26 = vmax.f32 %v1802_v23, 0.0 }
 0x505   : > { %v1514_v17 = vpop.f32.mrf.mxu3 }
 0x506   : > { %v1515_v24 = vadd.f32 %v5002_v32, %v1514_v17  ;;  %v1297_v15 = vmax.f32 %v1228_v31, 0.0 }
 0x508   : > { %v1611_v32 = vmax.f32 %v1515_v24, 0.0 }
 0x509   : > { %v1803_v9 = vpop.f32.mrf.mxu0 }
 0x50a   : > { %v1804_v47 = vadd.f32 %v5082_v59, %v1803_v9  ;;  %v5290_v31 = vpop.f32.mrf.mxu1  ;;  %3917 = vmatmul.msk.bf16.gmra.mxu1 %vm308_vm0, %v4612_v16  ;;  %v5302_v16 = vld [vmem:[%s5943_s3 + $0x5] ss:$0 sm:$0xff] }
 0x50b   : > { %v1229_v42 = vpop.f32.mrf.mxu2 }
 0x50c   : > { %v1926_v2 = vmax.f32 %v1804_v47, 0.0  ;;  %v1230_v37 = vadd.f32 %v5177_v1, %v1229_v42 }
 0x50d   : > { %v1516_v36 = vpop.f32.mrf.mxu3 }
 0x50e   : > { %v1298_v51 = vmax.f32 %v1230_v37, 0.0  ;;  %v1517_v10 = vadd.f32 %v5270_v45, %v1516_v36  ;;  %v5273_v3 = vpack.c.bf16 %v1926_v2, %v1925_v26 }
 0x510   : > { %v1612_v0 = vmax.f32 %v1517_v10, 0.0  ;;  %2283 = vmatmul.bf16.gmra.mxu2 %v5184_v20  ;;  %v1331_v60 = vpack.c.bf16 %v1298_v51, %v1297_v15 }
 0x511   : > { %v1806_v33 = vpop.f32.mrf.mxu0 }
 0x512   : > { %1558 = vmatmul.bf16.gmra.mxu3 %v1331_v60  ;;  %v1654_v25 = vpack.c.bf16 %v1612_v0, %v1611_v32  ;;  %v1807_v12 = vadd.f32 %v5082_v59, %v1806_v33  ;;  %v5296_v15 = vpop.f32.mrf.mxu1 }
 0x513   : > { %v1232_v43 = vpop.f32.mrf.mxu2 }
 0x514   : > { %1845 = vmatmul.bf16.gmra.mxu0 %v1654_v25  ;;  %v1233_v56 = vadd.f32 %v5177_v1, %v1232_v43  ;;  %v1927_v7 = vmax.f32 %v1807_v12, 0.0 }
 0x515   : > { %v1519_v29 = vpop.f32.mrf.mxu3 }
 0x516   : > { %v1520_v20 = vadd.f32 %v5270_v45, %v1519_v29  ;;  %v1299_v6 = vmax.f32 %v1233_v56, 0.0 }
 0x518   : > { %v1613_v47 = vmax.f32 %v1520_v20, 0.0 }
 0x519   : > { %v1808_v13 = vpop.f32.mrf.mxu0 }
 0x51a   : > { %v1809_v61 = vadd.f32 %v5082_v59, %v1808_v13 }
 0x51b   : > { %v1234_v28 = vpop.f32.mrf.mxu2 }
 0x51c   : > { %v1928_v40 = vmax.f32 %v1809_v61, 0.0  ;;  %v1235_v19 = vadd.f32 %v5177_v1, %v1234_v28  ;;  %v5315_v61 = vpop.f32.mrf.mxu1  ;;  %3918 = vmatmul.msk.bf16.gmra.mxu1 %vm308_vm0, %v4626_v34 }
 0x51d   : > { %v1521_v62 = vpop.f32.mrf.mxu3 }
 0x51e   : > { %v1300_v17 = vmax.f32 %v1235_v19, 0.0  ;;  %v1522_v23 = vadd.f32 %v5270_v45, %v1521_v62  ;;  %v5288_v9 = vpack.c.bf16 %v1928_v40, %v1927_v7 }
 0x520   : > { %v1614_v42 = vmax.f32 %v1522_v23, 0.0  ;;  %2288 = vmatmul.bf16.gmra.mxu2 %v5199_v49  ;;  %v1332_v26 = vpack.c.bf16 %v1300_v17, %v1299_v6  ;;  %v4159_v49 = vld [vmem:[%s5942_s2 + $0x188] sm:$0xff]  ;;  %v4169_v17 = vld [vmem:[%s5942_s2 + $0x1d8] sm:$0xff] }
 0x521   : > { %v1811_v24 = vpop.f32.mrf.mxu0  ;;  %2976 = vmatpush.bf16.msra.mxu0 %v4159_v49  ;;  %3306 = vmatpush.bf16.msra.mxu1 %v4169_v17 }
 0x522   : > { %1563 = vmatmul.bf16.gmra.mxu3 %v1332_v26  ;;  %v1655_v1 = vpack.c.bf16 %v1614_v42, %v1613_v47  ;;  %v1812_v36 = vadd.f32 %v5082_v59, %v1811_v24 }
 0x523   : > { %v2249_v2 = vpop.f32.mrf.mxu2 }
 0x524   : > { %1850 = vmatmul.bf16.gmra.mxu0 %v1655_v1  ;;  %v2250_v51 = vadd.f32 %v2249_v2, %v5150_v55  ;;  %v1929_v0 = vmax.f32 %v1812_v36, 0.0  ;;  %v5324_v47 = vpop.f32.mrf.mxu1 }
 0x525   : > { %v1524_v37 = vpop.f32.mrf.mxu3 }
 0x526   : > { %v2411_v33 = vadd.f32 %v5302_v16, %v2250_v51  ;;  %v1525_v25 = vadd.f32 %v5270_v45, %v1524_v37 }
 0x528   : > { %v2475_v28 = vmax.f32 %v2411_v33, 0.0  ;;  %v1615_v7 = vmax.f32 %v1525_v25, 0.0 }
 0x529   : > { %v1813_v10 = vpop.f32.mrf.mxu0 }
 0x52a   : > { %v1814_v32 = vadd.f32 %v5082_v59, %v1813_v10 }
 0x52b   : > { %v2251_v60 = vpop.f32.mrf.mxu2 }
 0x52c   : > { %v1930_v55 = vmax.f32 %v1814_v32, 0.0  ;;  %v2252_v43 = vadd.f32 %v2251_v60, %v5163_v21 }
 0x52d   : > { %v1526_v29 = vpop.f32.mrf.mxu3 }
 0x52e   : > { %v2412_v12 = vadd.f32 %v5302_v16, %v2252_v43  ;;  %v1527_v13 = vadd.f32 %v5270_v45, %v1526_v29  ;;  %v5313_v56 = vpack.c.bf16 %v1930_v55, %v1929_v0 }
 0x530   : > { %v2476_v20 = vmax.f32 %v2412_v12, 0.0  ;;  %v1616_v40 = vmax.f32 %v1527_v13, 0.0  ;;  %2293 = vmatmul.bf16.gmra.mxu2 %v5217_v63 }
 0x531   : > { %v1816_v19 = vpop.f32.mrf.mxu0 }
 0x532   : > { %v2539_v21 = vpack.c.bf16 %v2476_v20, %v2475_v28  ;;  %v1656_v62 = vpack.c.bf16 %v1616_v40, %v1615_v7  ;;  %v1817_v34 = vadd.f32 %v5082_v59, %v1816_v19 }
 0x533   : > { %v2254_v6 = vpop.f32.mrf.mxu2 }
 0x534   : > { %1855 = vmatmul.bf16.gmra.mxu0 %v1656_v62  ;;  %2646 = vmatmul.bf16.vlgmr.msra.gmra.mxu3 %v2539_v21  ;;  %v2255_v42 = vadd.f32 %v2254_v6, %v5171_v44  ;;  %v1931_v24 = vmax.f32 %v1817_v34, 0.0  ;;  %v5335_v44 = vpop.f32.mrf.mxu1 }
 0x535   : > { %v1529_v23 = vpop.f32.mrf.mxu3  ;;  %3919 = vmatmul.msk.bf16.gmra.mxu1 %vm308_vm0, %v4638_v58 }
 0x536   : > { %v2413_v2 = vadd.f32 %v5302_v16, %v2255_v42  ;;  %v1530_v37 = vadd.f32 %v5270_v45, %v1529_v23 }
 0x538   : > { %v2477_v60 = vmax.f32 %v2413_v2, 0.0  ;;  %v1617_v33 = vmax.f32 %v1530_v37, 0.0 }
 0x539   : > { %v1818_v26 = vpop.f32.mrf.mxu0 }
 0x53a   : > { %v1819_v63 = vadd.f32 %v5082_v59, %v1818_v26 }
 0x53b   : > { %v2256_v1 = vpop.f32.mrf.mxu2 }
 0x53c   : > { %v1932_v36 = vmax.f32 %v1819_v63, 0.0  ;;  %v2257_v51 = vadd.f32 %v2256_v1, %v5186_v46  ;;  %v5341_v7 = vpop.f32.mrf.mxu1 }
 0x53d   : > { %v1531_v49 = vpop.f32.mrf.mxu3 }
 0x53e   : > { %v2414_v10 = vadd.f32 %v5302_v16, %v2257_v51  ;;  %v1532_v32 = vadd.f32 %v5270_v45, %v1531_v49  ;;  %v5333_v0 = vpack.c.bf16 %v1932_v36, %v1931_v24 }
 0x540   : > { %v2478_v25 = vmax.f32 %v2414_v10, 0.0  ;;  %v1618_v55 = vmax.f32 %v1532_v32, 0.0  ;;  %2298 = vmatmul.bf16.gmra.mxu2 %v5235_v27 }
 0x541   : > { %v1821_v43 = vpop.f32.mrf.mxu0 }
 0x542   : > { %v1657_v46 = vpack.c.bf16 %v1618_v55, %v1617_v33  ;;  %v2540_v29 = vpack.c.bf16 %v2478_v25, %v2477_v60  ;;  %v1822_v28 = vadd.f32 %v5082_v59, %v1821_v43 }
 0x543   : > { %v2259_v12 = vpop.f32.mrf.mxu2 }
 0x544   : > { %1860 = vmatmul.bf16.gmra.mxu0 %v1657_v46  ;;  %2651 = vmatmul.bf16.gmra.mxu3 %v2540_v29  ;;  %v2260_v20 = vadd.f32 %v2259_v12, %v5191_v5  ;;  %v1933_v19 = vmax.f32 %v1822_v28, 0.0  ;;  %v5352_v5 = vpop.f32.mrf.mxu1 }
 0x545   : > { %v1534_v13 = vpop.f32.mrf.mxu3  ;;  %3920 = vmatmul.msk.bf16.gmra.mxu1 %vm308_vm0, %v4650_v22 }
 0x546   : > { %v2415_v27 = vadd.f32 %v5302_v16, %v2260_v20  ;;  %v1535_v62 = vadd.f32 %v5270_v45, %v1534_v13 }
 0x548   : > { %v2479_v63 = vmax.f32 %v2415_v27, 0.0  ;;  %v1619_v24 = vmax.f32 %v1535_v62, 0.0 }
 0x549   : > { %v1823_v58 = vpop.f32.mrf.mxu0 }
 0x54a   : > { %v1824_v40 = vadd.f32 %v5082_v59, %v1823_v58 }
 0x54b   : > { %v2261_v21 = vpop.f32.mrf.mxu2 }
 0x54c   : > { %v1934_v6 = vmax.f32 %v1824_v40, 0.0  ;;  %v2262_v17 = vadd.f32 %v2261_v21, %v5201_v52  ;;  %v5358_v32 = vpop.f32.mrf.mxu1 }
 0x54d   : > { %v1536_v23 = vpop.f32.mrf.mxu3 }
 0x54e   : > { %v2416_v34 = vadd.f32 %v5302_v16, %v2262_v17  ;;  %v1537_v42 = vadd.f32 %v5270_v45, %v1536_v23  ;;  %v5350_v26 = vpack.c.bf16 %v1934_v6, %v1933_v19 }
 0x550   : > { %v2480_v1 = vmax.f32 %v2416_v34, 0.0  ;;  %v1620_v2 = vmax.f32 %v1537_v42, 0.0  ;;  %2303 = vmatmul.bf16.gmra.mxu2 %v5253_v35 }
 0x551   : > { %v1826_v37 = vpop.f32.mrf.mxu0 }
 0x552   : > { %v1658_v52 = vpack.c.bf16 %v1620_v2, %v1619_v24  ;;  %v2541_v36 = vpack.c.bf16 %v2480_v1, %v2479_v63  ;;  %v1827_v10 = vadd.f32 %v5082_v59, %v1826_v37 }
 0x553   : > { %v2264_v51 = vpop.f32.mrf.mxu2 }
 0x554   : > { %1865 = vmatmul.bf16.gmra.mxu0 %v1658_v52  ;;  %2656 = vmatmul.bf16.gmra.mxu3 %v2541_v36  ;;  %v2265_v60 = vadd.f32 %v2264_v51, %v5209_v41  ;;  %v1935_v25 = vmax.f32 %v1827_v10, 0.0  ;;  %v5369_v41 = vpop.f32.mrf.mxu1 }
 0x555   : > { %v1539_v49 = vpop.f32.mrf.mxu3  ;;  %3921 = vmatmul.msk.bf16.gmra.mxu1 %vm308_vm0, %v4662_v50  ;;  %v4158_v50 = vld [vmem:[%s5942_s2 + $0x180] sm:$0xff] }
 0x556   : > { %v2417_v35 = vadd.f32 %v5302_v16, %v2265_v60  ;;  %v1540_v43 = vadd.f32 %v5270_v45, %v1539_v49  ;;  %2977 = vmatpush.bf16.msra.mxu0 %v4158_v50 }
 0x558   : > { %v2481_v58 = vmax.f32 %v2417_v35, 0.0  ;;  %v1621_v40 = vmax.f32 %v1540_v43, 0.0 }
 0x559   : > { %v1828_v22 = vpop.f32.mrf.mxu0 }
 0x55a   : > { %v1829_v33 = vadd.f32 %v5082_v59, %v1828_v22 }
 0x55b   : > { %v2266_v55 = vpop.f32.mrf.mxu2 }
 0x55c   : > { %v1936_v46 = vmax.f32 %v1829_v33, 0.0  ;;  %v2267_v29 = vadd.f32 %v2266_v55, %v5219_v39  ;;  %v5375_v34 = vpop.f32.mrf.mxu1 }
 0x55d   : > { %v1541_v12 = vpop.f32.mrf.mxu3 }
 0x55e   : > { %v2418_v13 = vadd.f32 %v5302_v16, %v2267_v29  ;;  %v1542_v28 = vadd.f32 %v5270_v45, %v1541_v12  ;;  %v5367_v20 = vpack.c.bf16 %v1936_v46, %v1935_v25  ;;  %v4168_v46 = vld [vmem:[%s5942_s2 + $0x1d0] sm:$0xff] }
 0x55f   : > { %3307 = vmatpush.bf16.msra.mxu1 %v4168_v46 }
 0x560   : > { %v2482_v19 = vmax.f32 %v2418_v13, 0.0  ;;  %v1622_v21 = vmax.f32 %v1542_v28, 0.0  ;;  %2308 = vmatmul.bf16.gmra.mxu2 %v5273_v3 }
 0x561   : > { %v1831_v27 = vpop.f32.mrf.mxu0 }
 0x562   : > { %v1659_v39 = vpack.c.bf16 %v1622_v21, %v1621_v40  ;;  %v2542_v62 = vpack.c.bf16 %v2482_v19, %v2481_v58  ;;  %v1832_v23 = vadd.f32 %v5082_v59, %v1831_v27 }
 0x563   : > { %v2269_v6 = vpop.f32.mrf.mxu2 }
 0x564   : > { %1870 = vmatmul.bf16.gmra.mxu0 %v1659_v39  ;;  %2661 = vmatmul.bf16.gmra.mxu3 %v2542_v62  ;;  %v2270_v42 = vadd.f32 %v2269_v6, %v5224_v48  ;;  %v1937_v24 = vmax.f32 %v1832_v23, 0.0  ;;  %v5389_v60 = vpop.f32.mrf.mxu1 }
 0x565   : > { %v1544_v17 = vpop.f32.mrf.mxu3  ;;  %3922 = vmatmul.msk.bf16.gmra.mxu1 %vm308_vm0, %v4673_v11  ;;  %v5400_v11 = vld [vmem:[%s5943_s3 + $0x4] ss:$0 sm:$0xff] }
 0x566   : > { %v2419_v2 = vadd.f32 %v5302_v16, %v2270_v42  ;;  %v1545_v37 = vadd.f32 %v5270_v45, %v1544_v17 }
 0x568   : > { %v1623_v22 = vmax.f32 %v1545_v37, 0.0 }
 0x569   : > { %v1833_v63 = vpop.f32.mrf.mxu0 }
 0x56a   : > { %v1834_v3 = vadd.f32 %v5082_v59, %v1833_v63  ;;  %v2483_v59 = vmax.f32 %v2419_v2, 0.0 }
 0x56b   : > { %v2271_v1 = vpop.f32.mrf.mxu2 }
 0x56c   : > { %v1938_v52 = vmax.f32 %v1834_v3, 0.0  ;;  %v2272_v36 = vadd.f32 %v2271_v1, %v5237_v18 }
 0x56d   : > { %v1546_v51 = vpop.f32.mrf.mxu3 }
 0x56e   : > { %v2420_v48 = vadd.f32 %v5302_v16, %v2272_v36  ;;  %v1547_v49 = vadd.f32 %v5270_v45, %v1546_v51  ;;  %v5387_v10 = vpack.c.bf16 %v1938_v52, %v1937_v24 }
 0x570   : > { %v2484_v33 = vmax.f32 %v2420_v48, 0.0  ;;  %v1624_v25 = vmax.f32 %v1547_v49, 0.0  ;;  %2313 = vmatmul.bf16.gmra.mxu2 %v5288_v9  ;;  %v5403_v9 = vpop.f32.mrf.mxu1 }
 0x571   : > { %v1836_v55 = vpop.f32.mrf.mxu0 }
 0x572   : > { %v1660_v18 = vpack.c.bf16 %v1624_v25, %v1623_v22  ;;  %v2543_v35 = vpack.c.bf16 %v2484_v33, %v2483_v59  ;;  %v1837_v12 = vadd.f32 %v5400_v11, %v1836_v55 }
 0x573   : > { %v2274_v43 = vpop.f32.mrf.mxu2 }
 0x574   : > { %1875 = vmatmul.bf16.gmra.mxu0 %v1660_v18  ;;  %2666 = vmatmul.bf16.gmra.mxu3 %v2543_v35  ;;  %v2275_v13 = vadd.f32 %v2274_v43, %v5245_v54  ;;  %v1939_v40 = vmax.f32 %v1837_v12, 0.0 }
 0x575   : > { %v1549_v29 = vpop.f32.mrf.mxu3 }
 0x576   : > { %v2421_v21 = vadd.f32 %v5302_v16, %v2275_v13  ;;  %v1550_v27 = vadd.f32 %v5270_v45, %v1549_v29 }
 0x578   : > { %v5414_v54 = vpop.f32.mrf.mxu1  ;;  %3923 = vmatmul.msk.bf16.gmra.mxu1 %vm308_vm0, %v4681_v30  ;;  %v2485_v50 = vmax.f32 %v2421_v21, 0.0  ;;  %v1625_v63 = vmax.f32 %v1550_v27, 0.0 }
 0x579   : > { %v1838_v28 = vpop.f32.mrf.mxu0 }
 0x57a   : > { %v1839_v58 = vadd.f32 %v5400_v11, %v1838_v28 }
 0x57b   : > { %v2276_v19 = vpop.f32.mrf.mxu2 }
 0x57c   : > { %v1940_v39 = vmax.f32 %v1839_v58, 0.0  ;;  %v2277_v62 = vadd.f32 %v2276_v19, %v5255_v57 }
 0x57d   : > { %v1551_v6 = vpop.f32.mrf.mxu3 }
 0x57e   : > { %v2422_v17 = vadd.f32 %v5302_v16, %v2277_v62  ;;  %v1552_v23 = vadd.f32 %v5270_v45, %v1551_v6  ;;  %v5412_v42 = vpack.c.bf16 %v1940_v39, %v1939_v40 }
 0x580   : > { %v2486_v3 = vmax.f32 %v2422_v17, 0.0  ;;  %v1626_v24 = vmax.f32 %v1552_v23, 0.0  ;;  %2318 = vmatmul.bf16.gmra.mxu2 %v5313_v56  ;;  %v5420_v51 = vpop.f32.mrf.mxu1 }
 0x581   : > { %v1841_v1 = vpop.f32.mrf.mxu0 }
 0x582   : > { %v1661_v57 = vpack.c.bf16 %v1626_v24, %v1625_v63  ;;  %v2544_v2 = vpack.c.bf16 %v2486_v3, %v2485_v50  ;;  %v1842_v36 = vadd.f32 %v5400_v11, %v1841_v1 }
 0x583   : > { %v2279_v37 = vpop.f32.mrf.mxu2 }
 0x584   : > { %1880 = vmatmul.bf16.gmra.mxu0 %v1661_v57  ;;  %2671 = vmatmul.bf16.gmra.mxu3 %v2544_v2  ;;  %v2280_v48 = vadd.f32 %v2279_v37, %v5260_v8  ;;  %v1941_v59 = vmax.f32 %v1842_v36, 0.0 }
 0x585   : > { %v1554_v52 = vpop.f32.mrf.mxu3 }
 0x586   : > { %v2423_v56 = vadd.f32 %v5302_v16, %v2280_v48  ;;  %v1555_v33 = vadd.f32 %v5270_v45, %v1554_v52 }
 0x588   : > { %v5431_v8 = vpop.f32.mrf.mxu1  ;;  %3924 = vmatmul.msk.bf16.gmra.mxu1 %vm308_vm0, %v4692_v53  ;;  %v2487_v29 = vmax.f32 %v2423_v56, 0.0  ;;  %v1627_v12 = vmax.f32 %v1555_v33, 0.0 }
 0x589   : > { %v1843_v30 = vpop.f32.mrf.mxu0 }
 0x58a   : > { %v1844_v49 = vadd.f32 %v5400_v11, %v1843_v30 }
 0x58b   : > { %v2281_v22 = vpop.f32.mrf.mxu2 }
 0x58c   : > { %v1942_v25 = vmax.f32 %v1844_v49, 0.0  ;;  %v2282_v55 = vadd.f32 %v2281_v22, %v5275_v4 }
 0x58d   : > { %v1556_v18 = vpop.f32.mrf.mxu3 }
 0x58e   : > { %v2424_v35 = vadd.f32 %v5302_v16, %v2282_v55  ;;  %v1557_v43 = vadd.f32 %v5270_v45, %v1556_v18  ;;  %v5429_v46 = vpack.c.bf16 %v1942_v25, %v1941_v59 }
 0x590   : > { %v2488_v13 = vmax.f32 %v2424_v35, 0.0  ;;  %v1628_v28 = vmax.f32 %v1557_v43, 0.0  ;;  %2323 = vmatmul.bf16.gmra.mxu2 %v5333_v0  ;;  %v5437_v39 = vpop.f32.mrf.mxu1 }
 0x591   : > { %v1846_v58 = vpop.f32.mrf.mxu0 }
 0x592   : > { %v1662_v4 = vpack.c.bf16 %v1628_v28, %v1627_v12  ;;  %v2545_v40 = vpack.c.bf16 %v2488_v13, %v2487_v29  ;;  %v1847_v27 = vadd.f32 %v5400_v11, %v1846_v58 }
 0x593   : > { %v2284_v19 = vpop.f32.mrf.mxu2 }
 0x594   : > { %1885 = vmatmul.bf16.gmra.mxu0 %v1662_v4  ;;  %2676 = vmatmul.bf16.gmra.mxu3 %v2545_v40  ;;  %v2285_v62 = vadd.f32 %v2284_v19, %v5280_v38  ;;  %v1943_v17 = vmax.f32 %v1847_v27, 0.0  ;;  %v5953_v40 = vld [vmem:[#allocation2_spill] sm:$0xff] }
 0x595   : > { %v1559_v21 = vpop.f32.mrf.mxu3 }
 0x596   : > { %v2425_v0 = vadd.f32 %v5302_v16, %v2285_v62  ;;  %v1560_v50 = vadd.f32 %v5270_v45, %v1559_v21 }
 0x598   : > { %v5448_v38 = vpop.f32.mrf.mxu1  ;;  %3925 = vmatmul.msk.bf16.gmra.mxu1 %vm308_vm0, %v4700_v14  ;;  %v2489_v37 = vmax.f32 %v2425_v0, 0.0  ;;  %v1629_v52 = vmax.f32 %v1560_v50, 0.0 }
 0x599   : > { %v1848_v53 = vpop.f32.mrf.mxu0 }
 0x59a   : > { %v1849_v6 = vadd.f32 %v5400_v11, %v1848_v53 }
 0x59b   : > { %v2286_v23 = vpop.f32.mrf.mxu2 }
 0x59c   : > { %v1944_v63 = vmax.f32 %v1849_v6, 0.0  ;;  %v2287_v3 = vadd.f32 %v2286_v23, %v5290_v31 }
 0x59d   : > { %v1561_v24 = vpop.f32.mrf.mxu3 }
 0x59e   : > { %v2426_v1 = vadd.f32 %v5302_v16, %v2287_v3  ;;  %v1562_v57 = vadd.f32 %v5270_v45, %v1561_v24  ;;  %v5446_v2 = vpack.c.bf16 %v1944_v63, %v1943_v17 }
 0x5a0   : > { %v2490_v36 = vmax.f32 %v2426_v1, 0.0  ;;  %v1630_v48 = vmax.f32 %v1562_v57, 0.0  ;;  %2328 = vmatmul.bf16.gmra.mxu2 %v5350_v26  ;;  %v5454_v33 = vpop.f32.mrf.mxu1 }
 0x5a1   : > { %v1851_v30 = vpop.f32.mrf.mxu0 }
 0x5a2   : > { %v1663_v31 = vpack.c.bf16 %v1630_v48, %v1629_v52  ;;  %v2546_v49 = vpack.c.bf16 %v2490_v36, %v2489_v37  ;;  %v1852_v56 = vadd.f32 %v5400_v11, %v1851_v30 }
 0x5a3   : > { %v2289_v59 = vpop.f32.mrf.mxu2 }
 0x5a4   : > { %1890 = vmatmul.bf16.gmra.mxu0 %v1663_v31  ;;  %2681 = vmatmul.bf16.gmra.mxu3 %v2546_v49  ;;  %v2290_v25 = vadd.f32 %v2289_v59, %v5296_v15  ;;  %v1945_v18 = vmax.f32 %v1852_v56, 0.0  ;;  %v5954_v59 = vld [vmem:[#allocation3_spill] sm:$0xff] }
 0x5a5   : > { %v1564_v22 = vpop.f32.mrf.mxu3 }
 0x5a6   : > { %v2427_v26 = vadd.f32 %v5302_v16, %v2290_v25  ;;  %v1565_v43 = vadd.f32 %v5270_v45, %v1564_v22 }
 0x5a8   : > { %v5465_v15 = vpop.f32.mrf.mxu1  ;;  %3926 = vmatmul.msk.bf16.gmra.mxu1 %vm308_vm0, %v5953_v40  ;;  %v2491_v19 = vmax.f32 %v2427_v26, 0.0  ;;  %v1631_v21 = vmax.f32 %v1565_v43, 0.0 }
 0x5a9   : > { %v1853_v14 = vpop.f32.mrf.mxu0 }
 0x5aa   : > { %v1854_v55 = vadd.f32 %v5400_v11, %v1853_v14 }
 0x5ab   : > { %v2291_v35 = vpop.f32.mrf.mxu2 }
 0x5ac   : > { %v1946_v29 = vmax.f32 %v1854_v55, 0.0  ;;  %v2292_v12 = vadd.f32 %v2291_v35, %v5315_v61 }
 0x5ad   : > { %v1566_v13 = vpop.f32.mrf.mxu3 }
 0x5ae   : > { %v2428_v28 = vadd.f32 %v5302_v16, %v2292_v12  ;;  %v1567_v58 = vadd.f32 %v5270_v45, %v1566_v13  ;;  %v5463_v4 = vpack.c.bf16 %v1946_v29, %v1945_v18  ;;  %v4167_v45 = vld [vmem:[%s5942_s2 + $0x1c8] sm:$0xff] }
 0x5af   : > { %3308 = vmatpush.bf16.msra.mxu1 %v4167_v45 }
 0x5b0   : > { %v2492_v27 = vmax.f32 %v2428_v28, 0.0  ;;  %v1632_v62 = vmax.f32 %v1567_v58, 0.0  ;;  %2333 = vmatmul.bf16.gmra.mxu2 %v5367_v20  ;;  %v5473_v0 = vpop.f32.mrf.mxu1  ;;  %v5480_v20 = vld [vmem:[%s5943_s3 + $0x6] ss:$0 sm:$0xff] }
 0x5b1   : > { %v1856_v53 = vpop.f32.mrf.mxu0 }
 0x5b2   : > { %v1664_v61 = vpack.c.bf16 %v1632_v62, %v1631_v21  ;;  %v2547_v6 = vpack.c.bf16 %v2492_v27, %v2491_v19  ;;  %v1857_v50 = vadd.f32 %v5400_v11, %v1856_v53 }
 0x5b3   : > { %v2294_v17 = vpop.f32.mrf.mxu2 }
 0x5b4   : > { %1895 = vmatmul.bf16.gmra.mxu0 %v1664_v61  ;;  %2686 = vmatmul.bf16.gmra.mxu3 %v2547_v6  ;;  %v2295_v63 = vadd.f32 %v2294_v17, %v5324_v47  ;;  %v1947_v57 = vmax.f32 %v1857_v50, 0.0 }
 0x5b6   : > { %v2429_v37 = vadd.f32 %v5302_v16, %v2295_v63 }
 0x5b7   : > { %v2647_v23 = vpop.f32.mrf.mxu3 }
 0x5b8   : > { %v2648_v48 = vadd.f32 %v5480_v20, %v2647_v23  ;;  %v5489_v49 = vpop.f32.mrf.mxu1  ;;  %3927 = vmatmul.msk.bf16.gmra.mxu1 %vm308_vm0, %v5954_v59  ;;  %v2493_v22 = vmax.f32 %v2429_v37, 0.0 }
 0x5b9   : > { %v1858_v3 = vpop.f32.mrf.mxu0 }
 0x5ba   : > { %v1859_v24 = vadd.f32 %v5400_v11, %v1858_v3 }
 0x5bb   : > { %v2296_v1 = vpop.f32.mrf.mxu2 }
 0x5bc   : > { %v1948_v52 = vmax.f32 %v1859_v24, 0.0  ;;  %v2297_v36 = vadd.f32 %v2296_v1, %v5335_v44  ;;  %v2807_v44 = vmax.f32 %v2648_v48, 0.0 }
 0x5be   : > { %v2430_v30 = vadd.f32 %v5302_v16, %v2297_v36  ;;  %v5487_v47 = vpack.c.bf16 %v1948_v52, %v1947_v57 }
 0x5bf   : > { %v2649_v31 = vpop.f32.mrf.mxu3 }
 0x5c0   : > { %v2494_v56 = vmax.f32 %v2430_v30, 0.0  ;;  %v2650_v25 = vadd.f32 %v5480_v20, %v2649_v31  ;;  %2338 = vmatmul.bf16.gmra.mxu2 %v5387_v10  ;;  %v5495_v29 = vpop.f32.mrf.mxu1 }
 0x5c1   : > { %v1861_v14 = vpop.f32.mrf.mxu0 }
 0x5c2   : > { %v2808_v55 = vmax.f32 %v2650_v25, 0.0  ;;  %v2548_v18 = vpack.c.bf16 %v2494_v56, %v2493_v22  ;;  %v1862_v12 = vadd.f32 %v5400_v11, %v1861_v14 }
 0x5c3   : > { %v2299_v35 = vpop.f32.mrf.mxu2 }
 0x5c4   : > { %v2871_v26 = vpack.c.bf16 %v2808_v55, %v2807_v44  ;;  %2691 = vmatmul.bf16.gmra.mxu3 %v2548_v18  ;;  %v2300_v13 = vadd.f32 %v2299_v35, %v5341_v7  ;;  %v1949_v10 = vmax.f32 %v1862_v12, 0.0  ;;  %v5955_v7 = vld [vmem:[#allocation4_spill] sm:$0xff] }
 0x5c6   : > { %2978 = vmatmul.bf16.vlgmr.msra.gmra.mxu0 %v2871_v26  ;;  %v2431_v19 = vadd.f32 %v5302_v16, %v2300_v13 }
 0x5c7   : > { %v2652_v43 = vpop.f32.mrf.mxu3 }
 0x5c8   : > { %v2653_v62 = vadd.f32 %v5480_v20, %v2652_v43  ;;  %v5506_v17 = vpop.f32.mrf.mxu1  ;;  %3928 = vmatmul.msk.bf16.gmra.mxu1 %vm308_vm0, %v5955_v7  ;;  %v2495_v45 = vmax.f32 %v2431_v19, 0.0 }
 0x5c9   : > { %v1863_v28 = vpop.f32.mrf.mxu0 }
 0x5ca   : > { %v1864_v58 = vadd.f32 %v5400_v11, %v1863_v28 }
 0x5cb   : > { %v2301_v40 = vpop.f32.mrf.mxu2 }
 0x5cc   : > { %v1950_v21 = vmax.f32 %v1864_v58, 0.0  ;;  %v2302_v27 = vadd.f32 %v2301_v40, %v5352_v5  ;;  %v2809_v5 = vmax.f32 %v2653_v62, 0.0 }
 0x5ce   : > { %v2432_v53 = vadd.f32 %v5302_v16, %v2302_v27  ;;  %v5504_v61 = vpack.c.bf16 %v1950_v21, %v1949_v10 }
 0x5cf   : > { %v2654_v6 = vpop.f32.mrf.mxu3 }
 0x5d0   : > { %v2496_v23 = vmax.f32 %v2432_v53, 0.0  ;;  %v2655_v50 = vadd.f32 %v5480_v20, %v2654_v6  ;;  %2343 = vmatmul.bf16.gmra.mxu2 %v5412_v42  ;;  %v5512_v52 = vpop.f32.mrf.mxu1 }
 0x5d1   : > { %v1866_v63 = vpop.f32.mrf.mxu0 }
 0x5d2   : > { %v2810_v3 = vmax.f32 %v2655_v50, 0.0  ;;  %v2549_v24 = vpack.c.bf16 %v2496_v23, %v2495_v45  ;;  %v1867_v36 = vadd.f32 %v5400_v11, %v1866_v63 }
 0x5d3   : > { %v2304_v1 = vpop.f32.mrf.mxu2 }
 0x5d4   : > { %2696 = vmatmul.bf16.gmra.mxu3 %v2549_v24  ;;  %v2872_v57 = vpack.c.bf16 %v2810_v3, %v2809_v5  ;;  %v2305_v48 = vadd.f32 %v2304_v1, %v5358_v32  ;;  %v1951_v42 = vmax.f32 %v1867_v36, 0.0  ;;  %v5956_v32 = vld [vmem:[#allocation5_spill] sm:$0xff] }
 0x5d6   : > { %2983 = vmatmul.bf16.gmra.mxu0 %v2872_v57  ;;  %v2433_v22 = vadd.f32 %v5302_v16, %v2305_v48 }
 0x5d7   : > { %v2657_v37 = vpop.f32.mrf.mxu3 }
 0x5d8   : > { %v2658_v14 = vadd.f32 %v5480_v20, %v2657_v37  ;;  %v5523_v35 = vpop.f32.mrf.mxu1  ;;  %3929 = vmatmul.msk.bf16.gmra.mxu1 %vm308_vm0, %v5956_v32  ;;  %v2497_v26 = vmax.f32 %v2433_v22, 0.0 }
 0x5d9   : > { %v1868_v30 = vpop.f32.mrf.mxu0 }
 0x5da   : > { %v1869_v31 = vadd.f32 %v5400_v11, %v1868_v30 }
 0x5db   : > { %v2306_v59 = vpop.f32.mrf.mxu2 }
 0x5dc   : > { %v1952_v56 = vmax.f32 %v1869_v31, 0.0  ;;  %v2307_v25 = vadd.f32 %v2306_v59, %v5369_v41  ;;  %v2811_v41 = vmax.f32 %v2658_v14, 0.0 }
 0x5de   : > { %v2434_v44 = vadd.f32 %v5302_v16, %v2307_v25  ;;  %v5521_v55 = vpack.c.bf16 %v1952_v56, %v1951_v42  ;;  %v4166_v42 = vld [vmem:[%s5942_s2 + $0x1c0] sm:$0xff] }
 0x5df   : > { %v2659_v18 = vpop.f32.mrf.mxu3  ;;  %3309 = vmatpush.bf16.msra.mxu1 %v4166_v42 }
 0x5e0   : > { %v2498_v43 = vmax.f32 %v2434_v44, 0.0  ;;  %v2660_v12 = vadd.f32 %v5480_v20, %v2659_v18  ;;  %2348 = vmatmul.bf16.gmra.mxu2 %v5429_v46  ;;  %v5529_v21 = vpop.f32.mrf.mxu1 }
 0x5e1   : > { %v1871_v13 = vpop.f32.mrf.mxu0 }
 0x5e2   : > { %v2812_v28 = vmax.f32 %v2660_v12, 0.0  ;;  %v2550_v58 = vpack.c.bf16 %v2498_v43, %v2497_v26  ;;  %v1872_v27 = vadd.f32 %v5400_v11, %v1871_v13 }
 0x5e3   : > { %v2309_v40 = vpop.f32.mrf.mxu2 }
 0x5e4   : > { %2701 = vmatmul.bf16.gmra.mxu3 %v2550_v58  ;;  %v2873_v10 = vpack.c.bf16 %v2812_v28, %v2811_v41  ;;  %v2310_v62 = vadd.f32 %v2309_v40, %v5375_v34  ;;  %v1953_v46 = vmax.f32 %v1872_v27, 0.0 }
 0x5e6   : > { %2988 = vmatmul.bf16.gmra.mxu0 %v2873_v10  ;;  %v2435_v45 = vadd.f32 %v5302_v16, %v2310_v62 }
 0x5e7   : > { %v2662_v19 = vpop.f32.mrf.mxu3 }
 0x5e8   : > { %v2663_v63 = vadd.f32 %v5480_v20, %v2662_v19  ;;  %v5540_v1 = vpop.f32.mrf.mxu1  ;;  %v2499_v34 = vmax.f32 %v2435_v45, 0.0 }
 0x5e9   : > { %v1873_v53 = vpop.f32.mrf.mxu0 }
 0x5ea   : > { %v1874_v6 = vadd.f32 %v5400_v11, %v1873_v53  ;;  %v2813_v48 = vmax.f32 %v2663_v63, 0.0 }
 0x5eb   : > { %v2311_v7 = vpop.f32.mrf.mxu2 }
 0x5ec   : > { %v1954_v23 = vmax.f32 %v1874_v6, 0.0  ;;  %v2312_v50 = vadd.f32 %v2311_v7, %v5389_v60 }
 0x5ee   : > { %v2436_v5 = vadd.f32 %v5302_v16, %v2312_v50  ;;  %v5538_v3 = vpack.c.bf16 %v1954_v23, %v1953_v46 }
 0x5ef   : > { %v2664_v24 = vpop.f32.mrf.mxu3 }
 0x5f0   : > { %v2500_v57 = vmax.f32 %v2436_v5, 0.0  ;;  %v2665_v37 = vadd.f32 %v5480_v20, %v2664_v24  ;;  %2353 = vmatmul.bf16.gmra.mxu2 %v5446_v2  ;;  %v5547_v56 = vpop.f32.mrf.mxu1 }
 0x5f1   : > { %v1876_v36 = vpop.f32.mrf.mxu0 }
 0x5f2   : > { %v2814_v30 = vmax.f32 %v2665_v37, 0.0  ;;  %v2551_v31 = vpack.c.bf16 %v2500_v57, %v2499_v34  ;;  %v1877_v25 = vadd.f32 %v5400_v11, %v1876_v36 }
 0x5f3   : > { %v2314_v60 = vpop.f32.mrf.mxu2 }
 0x5f4   : > { %2706 = vmatmul.bf16.gmra.mxu3 %v2551_v31  ;;  %v2874_v59 = vpack.c.bf16 %v2814_v30, %v2813_v48  ;;  %v2315_v2 = vadd.f32 %v2314_v60, %v5403_v9  ;;  %v1955_v32 = vmax.f32 %v1877_v25, 0.0 }
 0x5f6   : > { %2993 = vmatmul.bf16.gmra.mxu0 %v2874_v59  ;;  %v2437_v26 = vadd.f32 %v5302_v16, %v2315_v2 }
 0x5f7   : > { %v2667_v22 = vpop.f32.mrf.mxu3 }
 0x5f8   : > { %v2668_v13 = vadd.f32 %v5480_v20, %v2667_v22  ;;  %v5558_v40 = vpop.f32.mrf.mxu1  ;;  %v2501_v9 = vmax.f32 %v2437_v26, 0.0 }
 0x5f9   : > { %v1878_v14 = vpop.f32.mrf.mxu0 }
 0x5fa   : > { %v1879_v44 = vadd.f32 %v5400_v11, %v1878_v14  ;;  %v2815_v62 = vmax.f32 %v2668_v13, 0.0 }
 0x5fb   : > { %v2316_v18 = vpop.f32.mrf.mxu2 }
 0x5fc   : > { %v1956_v43 = vmax.f32 %v1879_v44, 0.0  ;;  %v2317_v12 = vadd.f32 %v2316_v18, %v5414_v54 }
 0x5fe   : > { %v2438_v41 = vadd.f32 %v5302_v16, %v2317_v12  ;;  %v5556_v28 = vpack.c.bf16 %v1956_v43, %v1955_v32 }
 0x5ff   : > { %v2669_v58 = vpop.f32.mrf.mxu3 }
 0x600   : > { %v2502_v10 = vmax.f32 %v2438_v41, 0.0  ;;  %v2670_v19 = vadd.f32 %v5480_v20, %v2669_v58  ;;  %2358 = vmatmul.bf16.gmra.mxu2 %v5463_v4  ;;  %v5564_v50 = vpop.f32.mrf.mxu1 }
 0x601   : > { %v1881_v27 = vpop.f32.mrf.mxu0 }
 0x602   : > { %v2816_v53 = vmax.f32 %v2670_v19, 0.0  ;;  %v2552_v6 = vpack.c.bf16 %v2502_v10, %v2501_v9  ;;  %v1882_v45 = vadd.f32 %v5400_v11, %v1881_v27 }
 0x603   : > { %v2319_v54 = vpop.f32.mrf.mxu2 }
 0x604   : > { %2711 = vmatmul.bf16.gmra.mxu3 %v2552_v6  ;;  %v2875_v7 = vpack.c.bf16 %v2816_v53, %v2815_v62  ;;  %v2320_v23 = vadd.f32 %v2319_v54, %v5420_v51  ;;  %v1957_v4 = vmax.f32 %v1882_v45, 0.0 }
 0x606   : > { %2998 = vmatmul.bf16.gmra.mxu0 %v2875_v7  ;;  %v2439_v34 = vadd.f32 %v5302_v16, %v2320_v23 }
 0x607   : > { %v2672_v46 = vpop.f32.mrf.mxu3 }
 0x608   : > { %v2673_v36 = vadd.f32 %v5480_v20, %v2672_v46  ;;  %v2503_v51 = vmax.f32 %v2439_v34, 0.0  ;;  %v5575_v14 = vpop.f32.mrf.mxu1 }
 0x609   : > { %v1883_v63 = vpop.f32.mrf.mxu0 }
 0x60a   : > { %v1884_v5 = vadd.f32 %v5400_v11, %v1883_v63  ;;  %v2817_v22 = vmax.f32 %v2673_v36, 0.0 }
 0x60b   : > { %v2321_v24 = vpop.f32.mrf.mxu2 }
 0x60c   : > { %v1958_v57 = vmax.f32 %v1884_v5, 0.0  ;;  %v2322_v37 = vadd.f32 %v2321_v24, %v5431_v8 }
 0x60e   : > { %v2440_v48 = vadd.f32 %v5302_v16, %v2322_v37  ;;  %v5571_v30 = vpack.c.bf16 %v1958_v57, %v1957_v4 }
 0x60f   : > { %v2674_v31 = vpop.f32.mrf.mxu3 }
 0x610   : > { %v2504_v60 = vmax.f32 %v2440_v48, 0.0  ;;  %v2675_v59 = vadd.f32 %v5480_v20, %v2674_v31  ;;  %2363 = vmatmul.bf16.gmra.mxu2 %v5487_v47  ;;  %v5582_v10 = vpop.f32.mrf.mxu1 }
 0x611   : > { %v1886_v42 = vpop.f32.mrf.mxu0 }
 0x612   : > { %v2818_v25 = vmax.f32 %v2675_v59, 0.0  ;;  %v2553_v2 = vpack.c.bf16 %v2504_v60, %v2503_v51  ;;  %v1887_v32 = vadd.f32 %v5400_v11, %v1886_v42 }
 0x613   : > { %v2324_v8 = vpop.f32.mrf.mxu2 }
 0x614   : > { %2716 = vmatmul.bf16.gmra.mxu3 %v2553_v2  ;;  %v2876_v44 = vpack.c.bf16 %v2818_v25, %v2817_v22  ;;  %v2325_v26 = vadd.f32 %v2324_v8, %v5437_v39  ;;  %v1959_v47 = vmax.f32 %v1887_v32, 0.0 }
 0x616   : > { %3003 = vmatmul.bf16.gmra.mxu0 %v2876_v44  ;;  %v2441_v41 = vadd.f32 %v5302_v16, %v2325_v26 }
 0x617   : > { %v2677_v18 = vpop.f32.mrf.mxu3 }
 0x618   : > { %v2678_v19 = vadd.f32 %v5480_v20, %v2677_v18  ;;  %v2505_v39 = vmax.f32 %v2441_v41, 0.0  ;;  %v5590_v5 = vpop.f32.mrf.mxu1 }
 0x619   : > { %v1888_v43 = vpop.f32.mrf.mxu0 }
 0x61a   : > { %v1889_v12 = vadd.f32 %v5400_v11, %v1888_v43  ;;  %v2819_v46 = vmax.f32 %v2678_v19, 0.0 }
 0x61b   : > { %v2326_v13 = vpop.f32.mrf.mxu2 }
 0x61c   : > { %v1960_v58 = vmax.f32 %v1889_v12, 0.0  ;;  %v2327_v9 = vadd.f32 %v2326_v13, %v5448_v38 }
 0x61e   : > { %v2442_v27 = vadd.f32 %v5302_v16, %v2327_v9  ;;  %v5586_v62 = vpack.c.bf16 %v1960_v58, %v1959_v47 }
 0x61f   : > { %v2679_v53 = vpop.f32.mrf.mxu3 }
 0x620   : > { %v2506_v6 = vmax.f32 %v2442_v27, 0.0  ;;  %v2680_v54 = vadd.f32 %v5480_v20, %v2679_v53  ;;  %2368 = vmatmul.bf16.gmra.mxu2 %v5504_v61  ;;  %v5603_v8 = vpop.f32.mrf.mxu1 }
 0x621   : > { %v1891_v7 = vpop.f32.mrf.mxu0 }
 0x622   : > { %v2820_v45 = vmax.f32 %v2680_v54, 0.0  ;;  %v2554_v23 = vpack.c.bf16 %v2506_v6, %v2505_v39  ;;  %v1892_v4 = vadd.f32 %v5400_v11, %v1891_v7 }
 0x623   : > { %v2329_v38 = vpop.f32.mrf.mxu2 }
 0x624   : > { %2721 = vmatmul.bf16.gmra.mxu3 %v2554_v23  ;;  %v2877_v63 = vpack.c.bf16 %v2820_v45, %v2819_v46  ;;  %v2330_v34 = vadd.f32 %v2329_v38, %v5454_v33  ;;  %v1961_v61 = vmax.f32 %v1892_v4, 0.0 }
 0x626   : > { %3008 = vmatmul.bf16.gmra.mxu0 %v2877_v63  ;;  %v2443_v48 = vadd.f32 %v5302_v16, %v2330_v34 }
 0x627   : > { %v2682_v24 = vpop.f32.mrf.mxu3 }
 0x628   : > { %v2683_v60 = vadd.f32 %v5480_v20, %v2682_v24  ;;  %v2507_v25 = vmax.f32 %v2443_v48, 0.0  ;;  %v5608_v9 = vpop.f32.mrf.mxu1  ;;  %v5630_v48 = vld [vmem:[%s5943_s3 + $0x5] ss:$0 sm:$0xff] }
 0x629   : > { %v1893_v57 = vpop.f32.mrf.mxu0 }
 0x62a   : > { %v1894_v37 = vadd.f32 %v5400_v11, %v1893_v57  ;;  %v2821_v18 = vmax.f32 %v2683_v60, 0.0 }
 0x62b   : > { %v2331_v36 = vpop.f32.mrf.mxu2 }
 0x62c   : > { %v1962_v31 = vmax.f32 %v1894_v37, 0.0  ;;  %v2332_v51 = vadd.f32 %v2331_v36, %v5465_v15 }
 0x62e   : > { %v2444_v59 = vadd.f32 %v5302_v16, %v2332_v51  ;;  %v5599_v42 = vpack.c.bf16 %v1962_v31, %v1961_v61 }
 0x62f   : > { %v2684_v22 = vpop.f32.mrf.mxu3 }
 0x630   : > { %v2508_v2 = vmax.f32 %v2444_v59, 0.0  ;;  %v2685_v33 = vadd.f32 %v5480_v20, %v2684_v22  ;;  %2373 = vmatmul.bf16.gmra.mxu2 %v5521_v55  ;;  %v5618_v34 = vpop.f32.mrf.mxu1 }
 0x631   : > { %v1896_v44 = vpop.f32.mrf.mxu0 }
 0x632   : > { %v2822_v32 = vmax.f32 %v2685_v33, 0.0  ;;  %v2555_v26 = vpack.c.bf16 %v2508_v2, %v2507_v25  ;;  %v1897_v13 = vadd.f32 %v5400_v11, %v1896_v44 }
 0x633   : > { %v2334_v15 = vpop.f32.mrf.mxu2 }
 0x634   : > { %2726 = vmatmul.bf16.gmra.mxu3 %v2555_v26  ;;  %v2878_v43 = vpack.c.bf16 %v2822_v32, %v2821_v18  ;;  %v2335_v47 = vadd.f32 %v2334_v15, %v5473_v0  ;;  %v1963_v19 = vmax.f32 %v1897_v13, 0.0 }
 0x636   : > { %3013 = vmatmul.bf16.gmra.mxu0 %v2878_v43  ;;  %v2445_v27 = vadd.f32 %v5302_v16, %v2335_v47 }
 0x637   : > { %v2687_v12 = vpop.f32.mrf.mxu3 }
 0x638   : > { %v2688_v6 = vadd.f32 %v5480_v20, %v2687_v12  ;;  %v2509_v0 = vmax.f32 %v2445_v27, 0.0  ;;  %v5637_v2 = vpop.f32.mrf.mxu1 }
 0x639   : > { %v1898_v41 = vpop.f32.mrf.mxu0 }
 0x63a   : > { %v1899_v58 = vadd.f32 %v5400_v11, %v1898_v41  ;;  %v2823_v23 = vmax.f32 %v2688_v6, 0.0 }
 0x63b   : > { %v2336_v55 = vpop.f32.mrf.mxu2 }
 0x63c   : > { %v1964_v53 = vmax.f32 %v1899_v58, 0.0  ;;  %v2337_v39 = vadd.f32 %v2336_v55, %v5489_v49 }
 0x63e   : > { %v2446_v54 = vadd.f32 %v5302_v16, %v2337_v39  ;;  %v5614_v7 = vpack.c.bf16 %v1964_v53, %v1963_v19  ;;  %v5623_v16 = vld [vmem:[%s5943_s3 + $0x7] ss:$0 sm:$0xff] }
 0x63f   : > { %v2689_v46 = vpop.f32.mrf.mxu3 }
 0x640   : > { %v2510_v45 = vmax.f32 %v2446_v54, 0.0  ;;  %v2690_v11 = vadd.f32 %v5480_v20, %v2689_v46  ;;  %2378 = vmatmul.bf16.gmra.mxu2 %v5538_v3  ;;  %v5642_v55 = vpop.f32.mrf.mxu1 }
 0x642   : > { %v2824_v38 = vmax.f32 %v2690_v11, 0.0  ;;  %v2556_v63 = vpack.c.bf16 %v2510_v45, %v2509_v0 }
 0x643   : > { %v2339_v24 = vpop.f32.mrf.mxu2  ;;  %v2979_v4 = vpop.f32.mrf.mxu0 }
 0x644   : > { %2731 = vmatmul.bf16.gmra.mxu3 %v2556_v63  ;;  %v2879_v49 = vpack.c.bf16 %v2824_v38, %v2823_v23  ;;  %v2340_v37 = vadd.f32 %v2339_v24, %v5495_v29  ;;  %v2980_v3 = vadd.f32 %v5623_v16, %v2979_v4 }
 0x646   : > { %3018 = vmatmul.bf16.gmra.mxu0 %v2879_v49  ;;  %v2447_v31 = vadd.f32 %v5630_v48, %v2340_v37  ;;  %v3139_v59 = vmax.f32 %v2980_v3, 0.0 }
 0x647   : > { %v2692_v57 = vpop.f32.mrf.mxu3 }
 0x648   : > { %v2693_v22 = vadd.f32 %v5480_v20, %v2692_v57  ;;  %v2511_v44 = vmax.f32 %v2447_v31, 0.0  ;;  %v5652_v49 = vpop.f32.mrf.mxu1 }
 0x64a   : > { %v2825_v15 = vmax.f32 %v2693_v22, 0.0 }
 0x64b   : > { %v2341_v36 = vpop.f32.mrf.mxu2  ;;  %v2981_v61 = vpop.f32.mrf.mxu0 }
 0x64c   : > { %v2342_v51 = vadd.f32 %v2341_v36, %v5506_v17  ;;  %v2982_v60 = vadd.f32 %v5623_v16, %v2981_v61 }
 0x64e   : > { %v2448_v29 = vadd.f32 %v5630_v48, %v2342_v51  ;;  %v3140_v25 = vmax.f32 %v2982_v60, 0.0 }
 0x64f   : > { %v2694_v33 = vpop.f32.mrf.mxu3 }
 0x650   : > { %v2512_v18 = vmax.f32 %v2448_v29, 0.0  ;;  %v3203_v32 = vpack.c.bf16 %v3140_v25, %v3139_v59  ;;  %v2695_v26 = vadd.f32 %v5480_v20, %v2694_v33  ;;  %2383 = vmatmul.bf16.gmra.mxu2 %v5556_v28  ;;  %v5659_v29 = vpop.f32.mrf.mxu1 }
 0x652   : > { %v2826_v17 = vmax.f32 %v2695_v26, 0.0  ;;  %3310 = vmatmul.bf16.vlgmr.msra.gmra.mxu1 %v3203_v32  ;;  %v2557_v43 = vpack.c.bf16 %v2512_v18, %v2511_v44 }
 0x653   : > { %v2344_v12 = vpop.f32.mrf.mxu2  ;;  %v2984_v13 = vpop.f32.mrf.mxu0 }
 0x654   : > { %2736 = vmatmul.bf16.gmra.mxu3 %v2557_v43  ;;  %v2880_v47 = vpack.c.bf16 %v2826_v17, %v2825_v15  ;;  %v2345_v58 = vadd.f32 %v2344_v12, %v5512_v52  ;;  %v2985_v19 = vadd.f32 %v5623_v16, %v2984_v13 }
 0x656   : > { %3023 = vmatmul.bf16.gmra.mxu0 %v2880_v47  ;;  %v2449_v28 = vadd.f32 %v5630_v48, %v2345_v58  ;;  %v3141_v54 = vmax.f32 %v2985_v19, 0.0 }
 0x657   : > { %v2697_v41 = vpop.f32.mrf.mxu3 }
 0x658   : > { %v2698_v46 = vadd.f32 %v5480_v20, %v2697_v41  ;;  %v2513_v52 = vmax.f32 %v2449_v28, 0.0  ;;  %v5665_v58 = vpop.f32.mrf.mxu1 }
 0x65a   : > { %v2827_v24 = vmax.f32 %v2698_v46, 0.0 }
 0x65b   : > { %v2346_v27 = vpop.f32.mrf.mxu2  ;;  %v2986_v53 = vpop.f32.mrf.mxu0 }
 0x65c   : > { %v2347_v39 = vadd.f32 %v2346_v27, %v5523_v35  ;;  %v2987_v6 = vadd.f32 %v5623_v16, %v2986_v53 }
 0x65e   : > { %v2450_v0 = vadd.f32 %v5630_v48, %v2347_v39  ;;  %v3142_v45 = vmax.f32 %v2987_v6, 0.0 }
 0x65f   : > { %v2699_v11 = vpop.f32.mrf.mxu3 }
 0x660   : > { %v2514_v23 = vmax.f32 %v2450_v0, 0.0  ;;  %v2700_v38 = vadd.f32 %v5480_v20, %v2699_v11  ;;  %2388 = vmatmul.bf16.gmra.mxu2 %v5571_v30  ;;  %v3204_v63 = vpack.c.bf16 %v3142_v45, %v3141_v54 }
 0x662   : > { %v2828_v4 = vmax.f32 %v2700_v38, 0.0  ;;  %3315 = vmatmul.bf16.gmra.mxu1 %v3204_v63  ;;  %v2558_v35 = vpack.c.bf16 %v2514_v23, %v2513_v52 }
 0x663   : > { %v2349_v57 = vpop.f32.mrf.mxu2  ;;  %v2989_v37 = vpop.f32.mrf.mxu0 }
 0x664   : > { %2741 = vmatmul.bf16.gmra.mxu3 %v2558_v35  ;;  %v2881_v3 = vpack.c.bf16 %v2828_v4, %v2827_v24  ;;  %v2350_v61 = vadd.f32 %v2349_v57, %v5529_v21  ;;  %v2990_v31 = vadd.f32 %v5623_v16, %v2989_v37  ;;  %v5676_v24 = vpop.f32.mrf.mxu1 }
 0x666   : > { %3028 = vmatmul.bf16.gmra.mxu0 %v2881_v3  ;;  %v2451_v30 = vadd.f32 %v5630_v48, %v2350_v61  ;;  %v3143_v25 = vmax.f32 %v2990_v31, 0.0 }
 0x667   : > { %v2702_v36 = vpop.f32.mrf.mxu3 }
 0x668   : > { %v2703_v33 = vadd.f32 %v5480_v20, %v2702_v36  ;;  %v2515_v21 = vmax.f32 %v2451_v30, 0.0 }
 0x66a   : > { %v2829_v43 = vmax.f32 %v2703_v33, 0.0 }
 0x66b   : > { %v2351_v51 = vpop.f32.mrf.mxu2  ;;  %v2991_v60 = vpop.f32.mrf.mxu0 }
 0x66c   : > { %v2352_v59 = vadd.f32 %v2351_v51, %v5540_v1  ;;  %v2992_v22 = vadd.f32 %v5623_v16, %v2991_v60  ;;  %v5680_v51 = vpop.f32.mrf.mxu1 }
 0x66e   : > { %v2452_v44 = vadd.f32 %v5630_v48, %v2352_v59  ;;  %v3144_v18 = vmax.f32 %v2992_v22, 0.0 }
 0x66f   : > { %v2704_v32 = vpop.f32.mrf.mxu3 }
 0x670   : > { %v2516_v26 = vmax.f32 %v2452_v44, 0.0  ;;  %v2705_v15 = vadd.f32 %v5480_v20, %v2704_v32  ;;  %2393 = vmatmul.bf16.gmra.mxu2 %v5586_v62  ;;  %v3205_v17 = vpack.c.bf16 %v3144_v18, %v3143_v25 }
 0x672   : > { %v2830_v1 = vmax.f32 %v2705_v15, 0.0  ;;  %3320 = vmatmul.bf16.gmra.mxu1 %v3205_v17  ;;  %v2559_v12 = vpack.c.bf16 %v2516_v26, %v2515_v21 }
 0x673   : > { %v2354_v13 = vpop.f32.mrf.mxu2  ;;  %v2994_v47 = vpop.f32.mrf.mxu0 }
 0x674   : > { %2746 = vmatmul.bf16.gmra.mxu3 %v2559_v12  ;;  %v2882_v41 = vpack.c.bf16 %v2830_v1, %v2829_v43  ;;  %v2355_v27 = vadd.f32 %v2354_v13, %v5547_v56  ;;  %v2995_v53 = vadd.f32 %v5623_v16, %v2994_v47  ;;  %v5689_v47 = vpop.f32.mrf.mxu1 }
 0x676   : > { %3033 = vmatmul.bf16.gmra.mxu0 %v2882_v41  ;;  %v2453_v62 = vadd.f32 %v5630_v48, %v2355_v27  ;;  %v3145_v46 = vmax.f32 %v2995_v53, 0.0 }
 0x677   : > { %v2707_v19 = vpop.f32.mrf.mxu3 }
 0x678   : > { %v2708_v0 = vadd.f32 %v5480_v20, %v2707_v19  ;;  %v2517_v23 = vmax.f32 %v2453_v62, 0.0 }
 0x67a   : > { %v2831_v4 = vmax.f32 %v2708_v0, 0.0 }
 0x67b   : > { %v2356_v28 = vpop.f32.mrf.mxu2  ;;  %v2996_v39 = vpop.f32.mrf.mxu0 }
 0x67c   : > { %v2357_v6 = vadd.f32 %v2356_v28, %v5558_v40  ;;  %v2997_v54 = vadd.f32 %v5623_v16, %v2996_v39 }
 0x67e   : > { %v2454_v45 = vadd.f32 %v5630_v48, %v2357_v6  ;;  %v3146_v11 = vmax.f32 %v2997_v54, 0.0 }
 0x67f   : > { %v2709_v52 = vpop.f32.mrf.mxu3 }
 0x680   : > { %v2518_v38 = vmax.f32 %v2454_v45, 0.0  ;;  %v2710_v56 = vadd.f32 %v5480_v20, %v2709_v52  ;;  %2398 = vmatmul.bf16.gmra.mxu2 %v5599_v42  ;;  %v3206_v63 = vpack.c.bf16 %v3146_v11, %v3145_v46  ;;  %v5698_v45 = vpop.f32.mrf.mxu1 }
 0x682   : > { %v2832_v40 = vmax.f32 %v2710_v56, 0.0  ;;  %3325 = vmatmul.bf16.gmra.mxu1 %v3206_v63  ;;  %v2560_v35 = vpack.c.bf16 %v2518_v38, %v2517_v23 }
 0x683   : > { %v2359_v57 = vpop.f32.mrf.mxu2  ;;  %v2999_v37 = vpop.f32.mrf.mxu0 }
 0x684   : > { %2751 = vmatmul.bf16.gmra.mxu3 %v2560_v35  ;;  %v2883_v3 = vpack.c.bf16 %v2832_v40, %v2831_v4  ;;  %v2360_v61 = vadd.f32 %v2359_v57, %v5564_v50  ;;  %v3000_v31 = vadd.f32 %v5623_v16, %v2999_v37 }
 0x686   : > { %3038 = vmatmul.bf16.gmra.mxu0 %v2883_v3  ;;  %v2455_v30 = vadd.f32 %v5630_v48, %v2360_v61  ;;  %v3147_v25 = vmax.f32 %v3000_v31, 0.0 }
 0x687   : > { %v2712_v36 = vpop.f32.mrf.mxu3 }
 0x688   : > { %v2713_v33 = vadd.f32 %v5480_v20, %v2712_v36  ;;  %v2519_v50 = vmax.f32 %v2455_v30, 0.0  ;;  %v5702_v3 = vpop.f32.mrf.mxu1 }
 0x68a   : > { %v2833_v17 = vmax.f32 %v2713_v33, 0.0 }
 0x68b   : > { %v2361_v42 = vpop.f32.mrf.mxu2  ;;  %v3001_v60 = vpop.f32.mrf.mxu0 }
 0x68c   : > { %v2362_v59 = vadd.f32 %v2361_v42, %v5575_v14  ;;  %v3002_v22 = vadd.f32 %v5623_v16, %v3001_v60 }
 0x68e   : > { %v2456_v44 = vadd.f32 %v5630_v48, %v2362_v59  ;;  %v3148_v18 = vmax.f32 %v3002_v22, 0.0 }
 0x68f   : > { %v2714_v32 = vpop.f32.mrf.mxu3 }
 0x690   : > { %v2520_v21 = vmax.f32 %v2456_v44, 0.0  ;;  %v2715_v26 = vadd.f32 %v5480_v20, %v2714_v32  ;;  %2403 = vmatmul.bf16.gmra.mxu2 %v5614_v7  ;;  %v3207_v15 = vpack.c.bf16 %v3148_v18, %v3147_v25 }
 0x692   : > { %v2834_v43 = vmax.f32 %v2715_v26, 0.0  ;;  %3330 = vmatmul.bf16.gmra.mxu1 %v3207_v15  ;;  %v2561_v14 = vpack.c.bf16 %v2520_v21, %v2519_v50  ;;  %v5711_v26 = vpop.f32.mrf.mxu1 }
 0x693   : > { %v2364_v1 = vpop.f32.mrf.mxu2  ;;  %v3004_v12 = vpop.f32.mrf.mxu0 }
 0x694   : > { %2756 = vmatmul.bf16.gmra.mxu3 %v2561_v14  ;;  %v2884_v13 = vpack.c.bf16 %v2834_v43, %v2833_v17  ;;  %v2365_v19 = vadd.f32 %v2364_v1, %v5582_v10  ;;  %v3005_v27 = vadd.f32 %v5623_v16, %v3004_v12 }
 0x696   : > { %3043 = vmatmul.bf16.gmra.mxu0 %v2884_v13  ;;  %v2457_v7 = vadd.f32 %v5630_v48, %v2365_v19  ;;  %v3149_v6 = vmax.f32 %v3005_v27, 0.0 }
 0x697   : > { %v2717_v41 = vpop.f32.mrf.mxu3 }
 0x698   : > { %v2718_v54 = vadd.f32 %v5480_v20, %v2717_v41  ;;  %v2521_v10 = vmax.f32 %v2457_v7, 0.0 }
 0x69a   : > { %v2835_v56 = vmax.f32 %v2718_v54, 0.0  ;;  %v5718_v7 = vpop.f32.mrf.mxu1 }
 0x69b   : > { %v2366_v53 = vpop.f32.mrf.mxu2  ;;  %v3006_v28 = vpop.f32.mrf.mxu0 }
 0x69c   : > { %v2367_v39 = vadd.f32 %v2366_v53, %v5590_v5  ;;  %v3007_v62 = vadd.f32 %v5623_v16, %v3006_v28 }
 0x69e   : > { %v2458_v46 = vadd.f32 %v5630_v48, %v2367_v39  ;;  %v3150_v0 = vmax.f32 %v3007_v62, 0.0 }
 0x69f   : > { %v2719_v11 = vpop.f32.mrf.mxu3 }
 0x6a0   : > { %v2522_v52 = vmax.f32 %v2458_v46, 0.0  ;;  %v2720_v23 = vadd.f32 %v5480_v20, %v2719_v11  ;;  %v3208_v38 = vpack.c.bf16 %v3150_v0, %v3149_v6 }
 0x6a2   : > { %v2836_v63 = vmax.f32 %v2720_v23, 0.0  ;;  %3335 = vmatmul.bf16.gmra.mxu1 %v3208_v38  ;;  %v2562_v5 = vpack.c.bf16 %v2522_v52, %v2521_v10 }
 0x6a3   : > { %v2369_v4 = vpop.f32.mrf.mxu2  ;;  %v3009_v40 = vpop.f32.mrf.mxu0 }
 0x6a4   : > { %2761 = vmatmul.bf16.gmra.mxu3 %v2562_v5  ;;  %v2885_v35 = vpack.c.bf16 %v2836_v63, %v2835_v56  ;;  %v2370_v37 = vadd.f32 %v2369_v4, %v5603_v8  ;;  %v3010_v36 = vadd.f32 %v5623_v16, %v3009_v40  ;;  %v5723_v5 = vpop.f32.mrf.mxu1 }
 0x6a6   : > { %3048 = vmatmul.bf16.gmra.mxu0 %v2885_v35  ;;  %v2459_v42 = vadd.f32 %v5630_v48, %v2370_v37  ;;  %v3151_v59 = vmax.f32 %v3010_v36, 0.0 }
 0x6a7   : > { %v2722_v57 = vpop.f32.mrf.mxu3 }
 0x6a8   : > { %v2723_v22 = vadd.f32 %v5480_v20, %v2722_v57  ;;  %v2523_v8 = vmax.f32 %v2459_v42, 0.0 }
 0x6aa   : > { %v2837_v21 = vmax.f32 %v2723_v22, 0.0 }
 0x6ab   : > { %v2371_v61 = vpop.f32.mrf.mxu2  ;;  %v3011_v31 = vpop.f32.mrf.mxu0 }
 0x6ac   : > { %v2372_v60 = vadd.f32 %v2371_v61, %v5608_v9  ;;  %v3012_v30 = vadd.f32 %v5623_v16, %v3011_v31 }
 0x6ae   : > { %v2460_v25 = vadd.f32 %v5630_v48, %v2372_v60  ;;  %v3152_v33 = vmax.f32 %v3012_v30, 0.0 }
 0x6af   : > { %v2724_v44 = vpop.f32.mrf.mxu3 }
 0x6b0   : > { %v2524_v18 = vmax.f32 %v2460_v25, 0.0  ;;  %v2725_v32 = vadd.f32 %v5480_v20, %v2724_v44  ;;  %v3209_v50 = vpack.c.bf16 %v3152_v33, %v3151_v59 }
 0x6b2   : > { %v2838_v15 = vmax.f32 %v2725_v32, 0.0  ;;  %3340 = vmatmul.bf16.gmra.mxu1 %v3209_v50  ;;  %v2563_v9 = vpack.c.bf16 %v2524_v18, %v2523_v8 }
 0x6b3   : > { %v2374_v17 = vpop.f32.mrf.mxu2  ;;  %v3014_v43 = vpop.f32.mrf.mxu0 }
 0x6b4   : > { %2766 = vmatmul.bf16.gmra.mxu3 %v2563_v9  ;;  %v2886_v14 = vpack.c.bf16 %v2838_v15, %v2837_v21  ;;  %v2375_v12 = vadd.f32 %v2374_v17, %v5618_v34  ;;  %v3015_v13 = vadd.f32 %v5623_v16, %v3014_v43  ;;  %v5736_v15 = vld [vmem:[%s5943_s3 + $0x8] ss:$0 sm:$0xff] }
 0x6b6   : > { %3053 = vmatmul.bf16.gmra.mxu0 %v2886_v14  ;;  %v2461_v27 = vadd.f32 %v5630_v48, %v2375_v12  ;;  %v3153_v39 = vmax.f32 %v3015_v13, 0.0 }
 0x6b7   : > { %v2727_v1 = vpop.f32.mrf.mxu3 }
 0x6b8   : > { %v2728_v62 = vadd.f32 %v5480_v20, %v2727_v1  ;;  %v2525_v34 = vmax.f32 %v2461_v27, 0.0 }
 0x6ba   : > { %v2839_v52 = vmax.f32 %v2728_v62, 0.0 }
 0x6bb   : > { %v2376_v41 = vpop.f32.mrf.mxu2  ;;  %v3016_v19 = vpop.f32.mrf.mxu0 }
 0x6bc   : > { %v2377_v53 = vadd.f32 %v2376_v41, %v5637_v2  ;;  %v3017_v28 = vadd.f32 %v5623_v16, %v3016_v19 }
 0x6be   : > { %v2462_v6 = vadd.f32 %v5630_v48, %v2377_v53  ;;  %v3154_v54 = vmax.f32 %v3017_v28, 0.0 }
 0x6bf   : > { %v2729_v46 = vpop.f32.mrf.mxu3 }
 0x6c0   : > { %v2526_v0 = vmax.f32 %v2462_v6, 0.0  ;;  %v2730_v11 = vadd.f32 %v5480_v20, %v2729_v46  ;;  %v3210_v10 = vpack.c.bf16 %v3154_v54, %v3153_v39  ;;  %v5755_v39 = vld [vmem:[%s5943_s3 + $0x6] ss:$0 sm:$0xff] }
 0x6c2   : > { %v2840_v23 = vmax.f32 %v2730_v11, 0.0  ;;  %3345 = vmatmul.bf16.gmra.mxu1 %v3210_v10  ;;  %v2564_v2 = vpack.c.bf16 %v2526_v0, %v2525_v34 }
 0x6c3   : > { %v2379_v38 = vpop.f32.mrf.mxu2  ;;  %v3019_v56 = vpop.f32.mrf.mxu0 }
 0x6c4   : > { %2771 = vmatmul.bf16.gmra.mxu3 %v2564_v2  ;;  %v2887_v63 = vpack.c.bf16 %v2840_v23, %v2839_v52  ;;  %v2380_v40 = vadd.f32 %v2379_v38, %v5642_v55  ;;  %v3020_v35 = vadd.f32 %v5623_v16, %v3019_v56 }
 0x6c6   : > { %3058 = vmatmul.bf16.gmra.mxu0 %v2887_v63  ;;  %v2463_v36 = vadd.f32 %v5630_v48, %v2380_v40  ;;  %v3155_v42 = vmax.f32 %v3020_v35, 0.0 }
 0x6c7   : > { %v2732_v4 = vpop.f32.mrf.mxu3 }
 0x6c8   : > { %v2733_v60 = vadd.f32 %v5480_v20, %v2732_v4  ;;  %v2527_v55 = vmax.f32 %v2463_v36, 0.0 }
 0x6ca   : > { %v2841_v18 = vmax.f32 %v2733_v60, 0.0 }
 0x6cb   : > { %v2381_v57 = vpop.f32.mrf.mxu2  ;;  %v3021_v37 = vpop.f32.mrf.mxu0 }
 0x6cc   : > { %v2382_v61 = vadd.f32 %v2381_v57, %v5652_v49  ;;  %v3022_v31 = vadd.f32 %v5623_v16, %v3021_v37 }
 0x6ce   : > { %v2464_v30 = vadd.f32 %v5630_v48, %v2382_v61  ;;  %v3156_v59 = vmax.f32 %v3022_v31, 0.0 }
 0x6cf   : > { %v2734_v22 = vpop.f32.mrf.mxu3  ;;  %v3311_v25 = vpop.f32.mrf.mxu1 }
 0x6d0   : > { %v2528_v33 = vmax.f32 %v2464_v30, 0.0  ;;  %v2735_v44 = vadd.f32 %v5480_v20, %v2734_v22  ;;  %v3211_v8 = vpack.c.bf16 %v3156_v59, %v3155_v42  ;;  %v3312_v20 = vadd.f32 %v5736_v15, %v3311_v25 }
 0x6d2   : > { %v2842_v32 = vmax.f32 %v2735_v44, 0.0  ;;  %3350 = vmatmul.bf16.gmra.mxu1 %v3211_v8  ;;  %v2565_v49 = vpack.c.bf16 %v2528_v33, %v2527_v55 }
 0x6d3   : > { %v2384_v50 = vpop.f32.mrf.mxu2  ;;  %v3024_v21 = vpop.f32.mrf.mxu0 }
 0x6d4   : > { %2776 = vmatmul.bf16.gmra.mxu3 %v2565_v49  ;;  %v2888_v9 = vpack.c.bf16 %v2842_v32, %v2841_v18  ;;  %v2385_v14 = vadd.f32 %v2384_v50, %v5659_v29  ;;  %v3025_v12 = vadd.f32 %v5623_v16, %v3024_v21 }
 0x6d6   : > { %3063 = vmatmul.bf16.gmra.mxu0 %v2888_v9  ;;  %v2465_v27 = vadd.f32 %v5630_v48, %v2385_v14  ;;  %v3157_v28 = vmax.f32 %v3025_v12, 0.0 }
 0x6d7   : > { %v2737_v17 = vpop.f32.mrf.mxu3  ;;  %v3313_v43 = vpop.f32.mrf.mxu1 }
 0x6d8   : > { %v3314_v1 = vadd.f32 %v5736_v15, %v3313_v43  ;;  %v2738_v62 = vadd.f32 %v5755_v39, %v2737_v17  ;;  %v2529_v0 = vmax.f32 %v2465_v27, 0.0 }
 0x6da   : > { %v4177_v13 = vpack.c.bf16 %v3314_v1, %v3312_v20  ;;  %v2843_v52 = vmax.f32 %v2738_v62, 0.0 }
 0x6db   : > { %v2386_v41 = vpop.f32.mrf.mxu2  ;;  %v3026_v19 = vpop.f32.mrf.mxu0 }
 0x6dc   : > { %4178 = vst [vmem:[%s5745_s16] sm:$0xff] %v4177_v13   ;;  %v2387_v53 = vadd.f32 %v2386_v41, %v5665_v58  ;;  %v3027_v29 = vadd.f32 %v5623_v16, %v3026_v19 }
 0x6de   : > { %v2466_v6 = vadd.f32 %v5630_v48, %v2387_v53  ;;  %v3158_v54 = vmax.f32 %v3027_v29, 0.0 }
 0x6df   : > { %v2739_v46 = vpop.f32.mrf.mxu3  ;;  %v3316_v34 = vpop.f32.mrf.mxu1 }
 0x6e0   : > { %v2530_v11 = vmax.f32 %v2466_v6, 0.0  ;;  %v2740_v10 = vadd.f32 %v5755_v39, %v2739_v46  ;;  %v3212_v58 = vpack.c.bf16 %v3158_v54, %v3157_v28  ;;  %v3317_v35 = vadd.f32 %v5736_v15, %v3316_v34 }
 0x6e2   : > { %v2844_v23 = vmax.f32 %v2740_v10, 0.0  ;;  %3355 = vmatmul.bf16.gmra.mxu1 %v3212_v58  ;;  %v2566_v2 = vpack.c.bf16 %v2530_v11, %v2529_v0 }
 0x6e3   : > { %v2389_v38 = vpop.f32.mrf.mxu2  ;;  %v3029_v56 = vpop.f32.mrf.mxu0 }
 0x6e4   : > { %2781 = vmatmul.bf16.gmra.mxu3 %v2566_v2  ;;  %v2889_v63 = vpack.c.bf16 %v2844_v23, %v2843_v52  ;;  %v2390_v57 = vadd.f32 %v2389_v38, %v5676_v24  ;;  %v3030_v36 = vadd.f32 %v5623_v16, %v3029_v56 }
 0x6e6   : > { %3068 = vmatmul.bf16.gmra.mxu0 %v2889_v63  ;;  %v2467_v60 = vadd.f32 %v5630_v48, %v2390_v57  ;;  %v3159_v22 = vmax.f32 %v3030_v36, 0.0 }
 0x6e7   : > { %v2742_v4 = vpop.f32.mrf.mxu3  ;;  %v3318_v40 = vpop.f32.mrf.mxu1 }
 0x6e8   : > { %v3319_v37 = vadd.f32 %v5736_v15, %v3318_v40  ;;  %v2743_v25 = vadd.f32 %v5755_v39, %v2742_v4  ;;  %v2531_v8 = vmax.f32 %v2467_v60, 0.0 }
 0x6ea   : > { %v4182_v61 = vpack.c.bf16 %v3319_v37, %v3317_v35  ;;  %v2845_v50 = vmax.f32 %v2743_v25, 0.0 }
 0x6eb   : > { %v2391_v31 = vpop.f32.mrf.mxu2  ;;  %v3031_v42 = vpop.f32.mrf.mxu0 }
 0x6ec   : > { %4334 = vst [vmem:[%s5745_s16 + $0x8] sm:$0xff] %v4182_v61   ;;  %v2392_v30 = vadd.f32 %v2391_v31, %v5680_v51  ;;  %v3032_v59 = vadd.f32 %v5623_v16, %v3031_v42 }
 0x6ee   : > { %v2468_v55 = vadd.f32 %v5630_v48, %v2392_v30  ;;  %v3160_v24 = vmax.f32 %v3032_v59, 0.0 }
 0x6ef   : > { %v2744_v33 = vpop.f32.mrf.mxu3  ;;  %v3321_v44 = vpop.f32.mrf.mxu1 }
 0x6f0   : > { %v2532_v18 = vmax.f32 %v2468_v55, 0.0  ;;  %v2745_v32 = vadd.f32 %v5755_v39, %v2744_v33  ;;  %v3213_v49 = vpack.c.bf16 %v3160_v24, %v3159_v22  ;;  %v3322_v1 = vadd.f32 %v5736_v15, %v3321_v44 }
 0x6f2   : > { %v2846_v21 = vmax.f32 %v2745_v32, 0.0  ;;  %3360 = vmatmul.bf16.gmra.mxu1 %v3213_v49  ;;  %v2567_v9 = vpack.c.bf16 %v2532_v18, %v2531_v8 }
 0x6f3   : > { %v2394_v51 = vpop.f32.mrf.mxu2  ;;  %v3034_v17 = vpop.f32.mrf.mxu0 }
 0x6f4   : > { %2786 = vmatmul.bf16.gmra.mxu3 %v2567_v9  ;;  %v2890_v43 = vpack.c.bf16 %v2846_v21, %v2845_v50  ;;  %v2395_v12 = vadd.f32 %v2394_v51, %v5689_v47  ;;  %v3035_v41 = vadd.f32 %v5623_v16, %v3034_v17 }
 0x6f6   : > { %3073 = vmatmul.bf16.gmra.mxu0 %v2890_v43  ;;  %v2469_v29 = vadd.f32 %v5630_v48, %v2395_v12  ;;  %v3161_v6 = vmax.f32 %v3035_v41, 0.0 }
 0x6f7   : > { %v2747_v20 = vpop.f32.mrf.mxu3  ;;  %v3323_v14 = vpop.f32.mrf.mxu1 }
 0x6f8   : > { %v3324_v13 = vadd.f32 %v5736_v15, %v3323_v14  ;;  %v2748_v54 = vadd.f32 %v5755_v39, %v2747_v20  ;;  %v2533_v11 = vmax.f32 %v2469_v29, 0.0 }
 0x6fa   : > { %v4187_v19 = vpack.c.bf16 %v3324_v13, %v3322_v1  ;;  %v2847_v23 = vmax.f32 %v2748_v54, 0.0 }
 0x6fb   : > { %v2396_v27 = vpop.f32.mrf.mxu2  ;;  %v3036_v53 = vpop.f32.mrf.mxu0 }
 0x6fc   : > { %4335 = vst [vmem:[%s5745_s16 + $0x10] sm:$0xff] %v4187_v19   ;;  %v2397_v28 = vadd.f32 %v2396_v27, %v5698_v45  ;;  %v3037_v62 = vadd.f32 %v5623_v16, %v3036_v53 }
 0x6fe   : > { %v2470_v46 = vadd.f32 %v5630_v48, %v2397_v28  ;;  %v3162_v47 = vmax.f32 %v3037_v62, 0.0 }
 0x6ff   : > { %v2749_v34 = vpop.f32.mrf.mxu3  ;;  %v3326_v0 = vpop.f32.mrf.mxu1 }
 0x700   : > { %v2534_v10 = vmax.f32 %v2470_v46, 0.0  ;;  %v2750_v58 = vadd.f32 %v5755_v39, %v2749_v34  ;;  %v3214_v52 = vpack.c.bf16 %v3162_v47, %v3161_v6  ;;  %v3327_v35 = vadd.f32 %v5736_v15, %v3326_v0 }
 0x702   : > { %v2848_v2 = vmax.f32 %v2750_v58, 0.0  ;;  %3365 = vmatmul.bf16.gmra.mxu1 %v3214_v52  ;;  %v2568_v38 = vpack.c.bf16 %v2534_v10, %v2533_v11 }
 0x703   : > { %v2399_v45 = vpop.f32.mrf.mxu2  ;;  %v3039_v56 = vpop.f32.mrf.mxu0 }
 0x704   : > { %v2891_v63 = vpack.c.bf16 %v2848_v2, %v2847_v23  ;;  %2791 = vmatmul.bf16.gmra.mxu3 %v2568_v38  ;;  %v2400_v57 = vadd.f32 %v2399_v45, %v5702_v3  ;;  %v3040_v36 = vadd.f32 %v5623_v16, %v3039_v56 }
 0x706   : > { %3078 = vmatmul.bf16.gmra.mxu0 %v2891_v63  ;;  %v2471_v60 = vadd.f32 %v5630_v48, %v2400_v57  ;;  %v3163_v22 = vmax.f32 %v3040_v36, 0.0 }
 0x707   : > { %v2752_v4 = vpop.f32.mrf.mxu3  ;;  %v3328_v40 = vpop.f32.mrf.mxu1 }
 0x708   : > { %v3329_v37 = vadd.f32 %v5736_v15, %v3328_v40  ;;  %v2753_v25 = vadd.f32 %v5755_v39, %v2752_v4  ;;  %v2535_v44 = vmax.f32 %v2471_v60, 0.0 }
 0x70a   : > { %v4192_v61 = vpack.c.bf16 %v3329_v37, %v3327_v35  ;;  %v2849_v49 = vmax.f32 %v2753_v25, 0.0 }
 0x70b   : > { %v2401_v31 = vpop.f32.mrf.mxu2  ;;  %v3041_v42 = vpop.f32.mrf.mxu0 }
 0x70c   : > { %4336 = vst [vmem:[%s5745_s16 + $0x18] sm:$0xff] %v4192_v61   ;;  %v2402_v30 = vadd.f32 %v2401_v31, %v5711_v26  ;;  %v3042_v59 = vadd.f32 %v5623_v16, %v3041_v42 }
 0x70e   : > { %v2472_v55 = vadd.f32 %v5630_v48, %v2402_v30  ;;  %v3164_v3 = vmax.f32 %v3042_v59, 0.0 }
 0x70f   : > { %v2754_v24 = vpop.f32.mrf.mxu3  ;;  %v3331_v33 = vpop.f32.mrf.mxu1 }
 0x710   : > { %v2536_v8 = vmax.f32 %v2472_v55, 0.0  ;;  %v2755_v18 = vadd.f32 %v5755_v39, %v2754_v24  ;;  %v3215_v32 = vpack.c.bf16 %v3164_v3, %v3163_v22  ;;  %v3332_v20 = vadd.f32 %v5736_v15, %v3331_v33 }
 0x712   : > { %v2850_v50 = vmax.f32 %v2755_v18, 0.0  ;;  %3370 = vmatmul.bf16.gmra.mxu1 %v3215_v32  ;;  %v2569_v21 = vpack.c.bf16 %v2536_v8, %v2535_v44 }
 0x713   : > { %v2404_v26 = vpop.f32.mrf.mxu2  ;;  %v3044_v9 = vpop.f32.mrf.mxu0 }
 0x714   : > { %v2892_v51 = vpack.c.bf16 %v2850_v50, %v2849_v49  ;;  %2796 = vmatmul.bf16.gmra.mxu3 %v2569_v21  ;;  %v2405_v14 = vadd.f32 %v2404_v26, %v5718_v7  ;;  %v3045_v12 = vadd.f32 %v5623_v16, %v3044_v9 }
 0x716   : > { %3083 = vmatmul.bf16.gmra.mxu0 %v2892_v51  ;;  %v2473_v27 = vadd.f32 %v5630_v48, %v2405_v14  ;;  %v3165_v28 = vmax.f32 %v3045_v12, 0.0 }
 0x717   : > { %v2757_v17 = vpop.f32.mrf.mxu3  ;;  %v3333_v43 = vpop.f32.mrf.mxu1 }
 0x718   : > { %v3334_v1 = vadd.f32 %v5736_v15, %v3333_v43  ;;  %v2758_v62 = vadd.f32 %v5755_v39, %v2757_v17  ;;  %v2537_v47 = vmax.f32 %v2473_v27, 0.0 }
 0x71a   : > { %v4197_v13 = vpack.c.bf16 %v3334_v1, %v3332_v20  ;;  %v2851_v10 = vmax.f32 %v2758_v62, 0.0 }
 0x71b   : > { %v2406_v41 = vpop.f32.mrf.mxu2  ;;  %v3046_v19 = vpop.f32.mrf.mxu0 }
 0x71c   : > { %4337 = vst [vmem:[%s5745_s16 + $0x20] sm:$0xff] %v4197_v13   ;;  %v2407_v53 = vadd.f32 %v2406_v41, %v5723_v5  ;;  %v3047_v29 = vadd.f32 %v5623_v16, %v3046_v19 }
 0x71e   : > { %v2474_v6 = vadd.f32 %v5630_v48, %v2407_v53  ;;  %v3166_v7 = vmax.f32 %v3047_v29, 0.0 }
 0x71f   : > { %v2759_v54 = vpop.f32.mrf.mxu3  ;;  %v3336_v46 = vpop.f32.mrf.mxu1 }
 0x720   : > { %v2538_v34 = vmax.f32 %v2474_v6, 0.0  ;;  %v2760_v0 = vadd.f32 %v5755_v39, %v2759_v54  ;;  %v3216_v11 = vpack.c.bf16 %v3166_v7, %v3165_v28  ;;  %v3337_v48 = vadd.f32 %v5736_v15, %v3336_v46 }
 0x722   : > { %v2852_v58 = vmax.f32 %v2760_v0, 0.0  ;;  %3375 = vmatmul.bf16.gmra.mxu1 %v3216_v11  ;;  %v2570_v5 = vpack.c.bf16 %v2538_v34, %v2537_v47 }
 0x723   : > { %v3049_v52 = vpop.f32.mrf.mxu0 }
 0x724   : > { %v2893_v23 = vpack.c.bf16 %v2852_v58, %v2851_v10  ;;  %2801 = vmatmul.bf16.gmra.mxu3 %v2570_v5  ;;  %v3050_v56 = vadd.f32 %v5623_v16, %v3049_v52 }
 0x726   : > { %3088 = vmatmul.bf16.gmra.mxu0 %v2893_v23  ;;  %v3167_v35 = vmax.f32 %v3050_v56, 0.0 }
 0x727   : > { %v2762_v2 = vpop.f32.mrf.mxu3  ;;  %v3338_v38 = vpop.f32.mrf.mxu1 }
 0x728   : > { %v3339_v45 = vadd.f32 %v5736_v15, %v3338_v38  ;;  %v2763_v57 = vadd.f32 %v5755_v39, %v2762_v2 }
 0x72a   : > { %v4202_v63 = vpack.c.bf16 %v3339_v45, %v3337_v48  ;;  %v2853_v60 = vmax.f32 %v2763_v57, 0.0 }
 0x72b   : > { %v3051_v4 = vpop.f32.mrf.mxu0 }
 0x72c   : > { %4338 = vst [vmem:[%s5745_s16 + $0x28] sm:$0xff] %v4202_v63   ;;  %v3052_v40 = vadd.f32 %v5623_v16, %v3051_v4 }
 0x72e   : > { %v3168_v37 = vmax.f32 %v3052_v40, 0.0 }
 0x72f   : > { %v2764_v36 = vpop.f32.mrf.mxu3  ;;  %v3341_v61 = vpop.f32.mrf.mxu1 }
 0x730   : > { %v2765_v31 = vadd.f32 %v5755_v39, %v2764_v36  ;;  %v3217_v42 = vpack.c.bf16 %v3168_v37, %v3167_v35  ;;  %v3342_v3 = vadd.f32 %v5736_v15, %v3341_v61 }
 0x732   : > { %v2854_v30 = vmax.f32 %v2765_v31, 0.0  ;;  %3380 = vmatmul.bf16.gmra.mxu1 %v3217_v42 }
 0x733   : > { %v3054_v59 = vpop.f32.mrf.mxu0 }
 0x734   : > { %v2894_v22 = vpack.c.bf16 %v2854_v30, %v2853_v60  ;;  %v3055_v33 = vadd.f32 %v5623_v16, %v3054_v59 }
 0x736   : > { %3093 = vmatmul.bf16.gmra.mxu0 %v2894_v22  ;;  %v3169_v32 = vmax.f32 %v3055_v33, 0.0 }
 0x737   : > { %v2767_v25 = vpop.f32.mrf.mxu3  ;;  %v3343_v55 = vpop.f32.mrf.mxu1 }
 0x738   : > { %v3344_v24 = vadd.f32 %v5736_v15, %v3343_v55  ;;  %v2768_v49 = vadd.f32 %v5755_v39, %v2767_v25 }
 0x73a   : > { %v4207_v44 = vpack.c.bf16 %v3344_v24, %v3342_v3  ;;  %v2855_v17 = vmax.f32 %v2768_v49, 0.0  ;;  %v5839_v24 = vld [vmem:[%s5943_s3 + $0x7] ss:$0 sm:$0xff] }
 0x73b   : > { %v3056_v8 = vpop.f32.mrf.mxu0 }
 0x73c   : > { %4339 = vst [vmem:[%s5745_s16 + $0x30] sm:$0xff] %v4207_v44   ;;  %v3057_v18 = vadd.f32 %v5623_v16, %v3056_v8 }
 0x73e   : > { %v3170_v50 = vmax.f32 %v3057_v18, 0.0 }
 0x73f   : > { %v2769_v21 = vpop.f32.mrf.mxu3  ;;  %v3346_v26 = vpop.f32.mrf.mxu1 }
 0x740   : > { %v2770_v9 = vadd.f32 %v5755_v39, %v2769_v21  ;;  %v3218_v51 = vpack.c.bf16 %v3170_v50, %v3169_v32  ;;  %v3347_v13 = vadd.f32 %v5736_v15, %v3346_v26 }
 0x742   : > { %v2856_v43 = vmax.f32 %v2770_v9, 0.0  ;;  %3385 = vmatmul.bf16.gmra.mxu1 %v3218_v51 }
 0x743   : > { %v3059_v20 = vpop.f32.mrf.mxu0 }
 0x744   : > { %v2895_v14 = vpack.c.bf16 %v2856_v43, %v2855_v17  ;;  %v3060_v19 = vadd.f32 %v5623_v16, %v3059_v20 }
 0x746   : > { %3098 = vmatmul.bf16.gmra.mxu0 %v2895_v14  ;;  %v3171_v28 = vmax.f32 %v3060_v19, 0.0 }
 0x747   : > { %v2772_v1 = vpop.f32.mrf.mxu3  ;;  %v3348_v12 = vpop.f32.mrf.mxu1 }
 0x748   : > { %v3349_v41 = vadd.f32 %v5736_v15, %v3348_v12  ;;  %v2773_v62 = vadd.f32 %v5755_v39, %v2772_v1 }
 0x74a   : > { %v4212_v27 = vpack.c.bf16 %v3349_v41, %v3347_v13  ;;  %v2857_v34 = vmax.f32 %v2773_v62, 0.0 }
 0x74b   : > { %v3061_v53 = vpop.f32.mrf.mxu0 }
 0x74c   : > { %4340 = vst [vmem:[%s5745_s16 + $0x38] sm:$0xff] %v4212_v27   ;;  %v3062_v29 = vadd.f32 %v5623_v16, %v3061_v53 }
 0x74e   : > { %v3172_v6 = vmax.f32 %v3062_v29, 0.0 }
 0x74f   : > { %v2774_v7 = vpop.f32.mrf.mxu3  ;;  %v3351_v54 = vpop.f32.mrf.mxu1 }
 0x750   : > { %v2775_v46 = vadd.f32 %v5755_v39, %v2774_v7  ;;  %v3219_v47 = vpack.c.bf16 %v3172_v6, %v3171_v28  ;;  %v3352_v52 = vadd.f32 %v5736_v15, %v3351_v54 }
 0x752   : > { %v2858_v0 = vmax.f32 %v2775_v46, 0.0  ;;  %3390 = vmatmul.bf16.gmra.mxu1 %v3219_v47 }
 0x753   : > { %v3064_v11 = vpop.f32.mrf.mxu0 }
 0x754   : > { %v2896_v10 = vpack.c.bf16 %v2858_v0, %v2857_v34  ;;  %v3065_v2 = vadd.f32 %v5623_v16, %v3064_v11 }
 0x756   : > { %3103 = vmatmul.bf16.gmra.mxu0 %v2896_v10  ;;  %v3173_v56 = vmax.f32 %v3065_v2, 0.0 }
 0x757   : > { %v2777_v58 = vpop.f32.mrf.mxu3  ;;  %v3353_v5 = vpop.f32.mrf.mxu1 }
 0x758   : > { %v3354_v23 = vadd.f32 %v5736_v15, %v3353_v5  ;;  %v2778_v63 = vadd.f32 %v5755_v39, %v2777_v58 }
 0x75a   : > { %v4217_v38 = vpack.c.bf16 %v3354_v23, %v3352_v52  ;;  %v2859_v36 = vmax.f32 %v2778_v63, 0.0 }
 0x75b   : > { %v3066_v48 = vpop.f32.mrf.mxu0 }
 0x75c   : > { %4341 = vst [vmem:[%s5745_s16 + $0x40] sm:$0xff] %v4217_v38   ;;  %v3067_v45 = vadd.f32 %v5623_v16, %v3066_v48 }
 0x75e   : > { %v3174_v4 = vmax.f32 %v3067_v45, 0.0 }
 0x75f   : > { %v2779_v40 = vpop.f32.mrf.mxu3  ;;  %v3356_v35 = vpop.f32.mrf.mxu1 }
 0x760   : > { %v2780_v57 = vadd.f32 %v5755_v39, %v2779_v40  ;;  %v3220_v37 = vpack.c.bf16 %v3174_v4, %v3173_v56  ;;  %v3357_v59 = vadd.f32 %v5736_v15, %v3356_v35 }
 0x762   : > { %v2860_v61 = vmax.f32 %v2780_v57, 0.0  ;;  %3395 = vmatmul.bf16.gmra.mxu1 %v3220_v37 }
 0x763   : > { %v3069_v31 = vpop.f32.mrf.mxu0 }
 0x764   : > { %v2897_v42 = vpack.c.bf16 %v2860_v61, %v2859_v36  ;;  %v3070_v25 = vadd.f32 %v5623_v16, %v3069_v31 }
 0x766   : > { %3108 = vmatmul.bf16.gmra.mxu0 %v2897_v42  ;;  %v3175_v44 = vmax.f32 %v3070_v25, 0.0 }
 0x767   : > { %v2782_v60 = vpop.f32.mrf.mxu3  ;;  %v3358_v30 = vpop.f32.mrf.mxu1 }
 0x768   : > { %v3359_v22 = vadd.f32 %v5736_v15, %v3358_v30  ;;  %v2783_v8 = vadd.f32 %v5755_v39, %v2782_v60 }
 0x76a   : > { %v4222_v55 = vpack.c.bf16 %v3359_v22, %v3357_v59  ;;  %v2861_v21 = vmax.f32 %v2783_v8, 0.0 }
 0x76b   : > { %v3071_v3 = vpop.f32.mrf.mxu0 }
 0x76c   : > { %4342 = vst [vmem:[%s5745_s16 + $0x48] sm:$0xff] %v4222_v55   ;;  %v3072_v33 = vadd.f32 %v5839_v24, %v3071_v3 }
 0x76e   : > { %v3176_v18 = vmax.f32 %v3072_v33, 0.0 }
 0x76f   : > { %v2784_v32 = vpop.f32.mrf.mxu3  ;;  %v3361_v49 = vpop.f32.mrf.mxu1 }
 0x770   : > { %v2785_v50 = vadd.f32 %v5755_v39, %v2784_v32  ;;  %v3221_v16 = vpack.c.bf16 %v3176_v18, %v3175_v44  ;;  %v3362_v20 = vadd.f32 %v5736_v15, %v3361_v49 }
 0x772   : > { %v2862_v26 = vmax.f32 %v2785_v50, 0.0  ;;  %3400 = vmatmul.bf16.gmra.mxu1 %v3221_v16 }
 0x773   : > { %v3074_v9 = vpop.f32.mrf.mxu0 }
 0x774   : > { %v2898_v51 = vpack.c.bf16 %v2862_v26, %v2861_v21  ;;  %v3075_v1 = vadd.f32 %v5839_v24, %v3074_v9 }
 0x776   : > { %3113 = vmatmul.bf16.gmra.mxu0 %v2898_v51  ;;  %v3177_v19 = vmax.f32 %v3075_v1, 0.0 }
 0x777   : > { %v2787_v17 = vpop.f32.mrf.mxu3  ;;  %v3363_v43 = vpop.f32.mrf.mxu1 }
 0x778   : > { %v3364_v14 = vadd.f32 %v5736_v15, %v3363_v43  ;;  %v2788_v27 = vadd.f32 %v5755_v39, %v2787_v17 }
 0x77a   : > { %v4227_v12 = vpack.c.bf16 %v3364_v14, %v3362_v20  ;;  %v2863_v7 = vmax.f32 %v2788_v27, 0.0 }
 0x77b   : > { %v3076_v13 = vpop.f32.mrf.mxu0 }
 0x77c   : > { %4343 = vst [vmem:[%s5745_s16 + $0x50] sm:$0xff] %v4227_v12   ;;  %v3077_v41 = vadd.f32 %v5839_v24, %v3076_v13 }
 0x77e   : > { %v3178_v53 = vmax.f32 %v3077_v41, 0.0 }
 0x77f   : > { %v2789_v29 = vpop.f32.mrf.mxu3  ;;  %v3366_v28 = vpop.f32.mrf.mxu1 }
 0x780   : > { %v2790_v62 = vadd.f32 %v5755_v39, %v2789_v29  ;;  %v3222_v6 = vpack.c.bf16 %v3178_v53, %v3177_v19  ;;  %v3367_v11 = vadd.f32 %v5736_v15, %v3366_v28 }
 0x782   : > { %v2864_v54 = vmax.f32 %v2790_v62, 0.0  ;;  %3405 = vmatmul.bf16.gmra.mxu1 %v3222_v6 }
 0x783   : > { %v3079_v46 = vpop.f32.mrf.mxu0 }
 0x784   : > { %v2899_v47 = vpack.c.bf16 %v2864_v54, %v2863_v7  ;;  %v3080_v58 = vadd.f32 %v5839_v24, %v3079_v46 }
 0x786   : > { %3118 = vmatmul.bf16.gmra.mxu0 %v2899_v47  ;;  %v3179_v2 = vmax.f32 %v3080_v58, 0.0 }
 0x787   : > { %v2792_v34 = vpop.f32.mrf.mxu3  ;;  %v3368_v0 = vpop.f32.mrf.mxu1 }
 0x788   : > { %v3369_v10 = vadd.f32 %v5736_v15, %v3368_v0  ;;  %v2793_v38 = vadd.f32 %v5755_v39, %v2792_v34 }
 0x78a   : > { %v4232_v5 = vpack.c.bf16 %v3369_v10, %v3367_v11  ;;  %v2865_v40 = vmax.f32 %v2793_v38, 0.0 }
 0x78b   : > { %v3081_v52 = vpop.f32.mrf.mxu0 }
 0x78c   : > { %4344 = vst [vmem:[%s5745_s16 + $0x58] sm:$0xff] %v4232_v5   ;;  %v3082_v23 = vadd.f32 %v5839_v24, %v3081_v52 }
 0x78e   : > { %v3180_v48 = vmax.f32 %v3082_v23, 0.0 }
 0x78f   : > { %v2794_v45 = vpop.f32.mrf.mxu3  ;;  %v3371_v56 = vpop.f32.mrf.mxu1 }
 0x790   : > { %v3223_v63 = vpack.c.bf16 %v3180_v48, %v3179_v2  ;;  %v2795_v4 = vadd.f32 %v5755_v39, %v2794_v45  ;;  %v3372_v31 = vadd.f32 %v5736_v15, %v3371_v56 }
 0x792   : > { %v2866_v35 = vmax.f32 %v2795_v4, 0.0  ;;  %3410 = vmatmul.bf16.gmra.mxu1 %v3223_v63 }
 0x793   : > { %v3084_v57 = vpop.f32.mrf.mxu0 }
 0x794   : > { %v2900_v37 = vpack.c.bf16 %v2866_v35, %v2865_v40  ;;  %v3085_v60 = vadd.f32 %v5839_v24, %v3084_v57 }
 0x796   : > { %3123 = vmatmul.bf16.gmra.mxu0 %v2900_v37  ;;  %v3181_v25 = vmax.f32 %v3085_v60, 0.0 }
 0x797   : > { %v2797_v36 = vpop.f32.mrf.mxu3  ;;  %v3373_v61 = vpop.f32.mrf.mxu1 }
 0x798   : > { %v3374_v42 = vadd.f32 %v5736_v15, %v3373_v61  ;;  %v2798_v55 = vadd.f32 %v5755_v39, %v2797_v36 }
 0x79a   : > { %v4237_v30 = vpack.c.bf16 %v3374_v42, %v3372_v31  ;;  %v2867_v32 = vmax.f32 %v2798_v55, 0.0 }
 0x79b   : > { %v3086_v59 = vpop.f32.mrf.mxu0 }
 0x79c   : > { %4345 = vst [vmem:[%s5745_s16 + $0x60] sm:$0xff] %v4237_v30   ;;  %v3087_v22 = vadd.f32 %v5839_v24, %v3086_v59 }
 0x79e   : > { %v3182_v3 = vmax.f32 %v3087_v22, 0.0 }
 0x79f   : > { %v2799_v33 = vpop.f32.mrf.mxu3  ;;  %v3376_v44 = vpop.f32.mrf.mxu1 }
 0x7a0   : > { %v3224_v8 = vpack.c.bf16 %v3182_v3, %v3181_v25  ;;  %v2800_v18 = vadd.f32 %v5755_v39, %v2799_v33  ;;  %v3377_v9 = vadd.f32 %v5736_v15, %v3376_v44 }
 0x7a2   : > { %v2868_v49 = vmax.f32 %v2800_v18, 0.0  ;;  %3415 = vmatmul.bf16.gmra.mxu1 %v3224_v8 }
 0x7a3   : > { %v3089_v50 = vpop.f32.mrf.mxu0 }
 0x7a4   : > { %v2901_v16 = vpack.c.bf16 %v2868_v49, %v2867_v32  ;;  %v3090_v17 = vadd.f32 %v5839_v24, %v3089_v50 }
 0x7a6   : > { %3128 = vmatmul.bf16.gmra.mxu0 %v2901_v16  ;;  %v3183_v1 = vmax.f32 %v3090_v17, 0.0 }
 0x7a7   : > { %v2802_v21 = vpop.f32.mrf.mxu3  ;;  %v3378_v26 = vpop.f32.mrf.mxu1 }
 0x7a8   : > { %v3379_v51 = vadd.f32 %v5736_v15, %v3378_v26  ;;  %v2803_v12 = vadd.f32 %v5755_v39, %v2802_v21 }
 0x7aa   : > { %v4242_v43 = vpack.c.bf16 %v3379_v51, %v3377_v9  ;;  %v2869_v29 = vmax.f32 %v2803_v12, 0.0 }
 0x7ab   : > { %v3091_v20 = vpop.f32.mrf.mxu0 }
 0x7ac   : > { %4346 = vst [vmem:[%s5745_s16 + $0x68] sm:$0xff] %v4242_v43   ;;  %v3092_v14 = vadd.f32 %v5839_v24, %v3091_v20 }
 0x7ae   : > { %v3184_v13 = vmax.f32 %v3092_v14, 0.0 }
 0x7af   : > { %v2804_v41 = vpop.f32.mrf.mxu3  ;;  %v3381_v19 = vpop.f32.mrf.mxu1 }
 0x7b0   : > { %v3225_v27 = vpack.c.bf16 %v3184_v13, %v3183_v1  ;;  %v2805_v53 = vadd.f32 %v5755_v39, %v2804_v41  ;;  %v3382_v54 = vadd.f32 %v5736_v15, %v3381_v19 }
 0x7b2   : > { %v2870_v28 = vmax.f32 %v2805_v53, 0.0  ;;  %3420 = vmatmul.bf16.gmra.mxu1 %v3225_v27 }
 0x7b3   : > { %v3094_v62 = vpop.f32.mrf.mxu0 }
 0x7b4   : > { %v2902_v6 = vpack.c.bf16 %v2870_v28, %v2869_v29  ;;  %v3095_v47 = vadd.f32 %v5839_v24, %v3094_v62 }
 0x7b6   : > { %3133 = vmatmul.bf16.gmra.mxu0 %v2902_v6  ;;  %v3185_v39 = vmax.f32 %v3095_v47, 0.0 }
 0x7b7   : > { %v3383_v7 = vpop.f32.mrf.mxu1 }
 0x7b8   : > { %v3384_v46 = vadd.f32 %v5736_v15, %v3383_v7 }
 0x7ba   : > { %v4247_v34 = vpack.c.bf16 %v3384_v46, %v3382_v54 }
 0x7bb   : > { %v3096_v0 = vpop.f32.mrf.mxu0 }
 0x7bc   : > { %4347 = vst [vmem:[%s5745_s16 + $0x70] sm:$0xff] %v4247_v34   ;;  %v3097_v11 = vadd.f32 %v5839_v24, %v3096_v0 }
 0x7be   : > { %v3186_v10 = vmax.f32 %v3097_v11, 0.0 }
 0x7bf   : > { %v3386_v58 = vpop.f32.mrf.mxu1 }
 0x7c0   : > { %v3226_v5 = vpack.c.bf16 %v3186_v10, %v3185_v39  ;;  %v3387_v2 = vadd.f32 %v5736_v15, %v3386_v58 }
 0x7c2   : > { %3425 = vmatmul.bf16.gmra.mxu1 %v3226_v5 }
 0x7c3   : > { %v3099_v52 = vpop.f32.mrf.mxu0 }
 0x7c4   : > { %v3100_v48 = vadd.f32 %v5839_v24, %v3099_v52 }
 0x7c6   : > { %v3187_v4 = vmax.f32 %v3100_v48, 0.0 }
 0x7c7   : > { %v3388_v23 = vpop.f32.mrf.mxu1 }
 0x7c8   : > { %v3389_v38 = vadd.f32 %v5736_v15, %v3388_v23 }
 0x7ca   : > { %v4252_v45 = vpack.c.bf16 %v3389_v38, %v3387_v2 }
 0x7cb   : > { %v3101_v56 = vpop.f32.mrf.mxu0 }
 0x7cc   : > { %4348 = vst [vmem:[%s5745_s16 + $0x78] sm:$0xff] %v4252_v45   ;;  %v3102_v63 = vadd.f32 %v5839_v24, %v3101_v56 }
 0x7ce   : > { %v3188_v40 = vmax.f32 %v3102_v63, 0.0 }
 0x7cf   : > { %v3391_v35 = vpop.f32.mrf.mxu1 }
 0x7d0   : > { %v3227_v57 = vpack.c.bf16 %v3188_v40, %v3187_v4  ;;  %v3392_v61 = vadd.f32 %v5736_v15, %v3391_v35 }
 0x7d2   : > { %3430 = vmatmul.bf16.gmra.mxu1 %v3227_v57 }
 0x7d3   : > { %v3104_v37 = vpop.f32.mrf.mxu0 }
 0x7d4   : > { %v3105_v42 = vadd.f32 %v5839_v24, %v3104_v37 }
 0x7d6   : > { %v3189_v22 = vmax.f32 %v3105_v42, 0.0 }
 0x7d7   : > { %v3393_v36 = vpop.f32.mrf.mxu1 }
 0x7d8   : > { %v3394_v31 = vadd.f32 %v5736_v15, %v3393_v36 }
 0x7da   : > { %v4257_v60 = vpack.c.bf16 %v3394_v31, %v3392_v61 }
 0x7db   : > { %v3106_v30 = vpop.f32.mrf.mxu0 }
 0x7dc   : > { %4349 = vst [vmem:[%s5745_s16 + $0x80] sm:$0xff] %v4257_v60   ;;  %v3107_v59 = vadd.f32 %v5839_v24, %v3106_v30 }
 0x7de   : > { %v3190_v25 = vmax.f32 %v3107_v59, 0.0 }
 0x7df   : > { %v3396_v55 = vpop.f32.mrf.mxu1 }
 0x7e0   : > { %v3228_v3 = vpack.c.bf16 %v3190_v25, %v3189_v22  ;;  %v3397_v8 = vadd.f32 %v5736_v15, %v3396_v55 }
 0x7e2   : > { %3435 = vmatmul.bf16.gmra.mxu1 %v3228_v3 }
 0x7e3   : > { %v3109_v33 = vpop.f32.mrf.mxu0 }
 0x7e4   : > { %v3110_v32 = vadd.f32 %v5839_v24, %v3109_v33 }
 0x7e6   : > { %v3191_v21 = vmax.f32 %v3110_v32, 0.0 }
 0x7e7   : > { %v3398_v44 = vpop.f32.mrf.mxu1 }
 0x7e8   : > { %v3399_v18 = vadd.f32 %v5736_v15, %v3398_v44 }
 0x7ea   : > { %v4262_v49 = vpack.c.bf16 %v3399_v18, %v3397_v8 }
 0x7eb   : > { %v3111_v50 = vpop.f32.mrf.mxu0 }
 0x7ec   : > { %4350 = vst [vmem:[%s5745_s16 + $0x88] sm:$0xff] %v4262_v49   ;;  %v3112_v16 = vadd.f32 %v5839_v24, %v3111_v50 }
 0x7ee   : > { %v3192_v26 = vmax.f32 %v3112_v16, 0.0 }
 0x7ef   : > { %v3401_v9 = vpop.f32.mrf.mxu1 }
 0x7f0   : > { %v3229_v51 = vpack.c.bf16 %v3192_v26, %v3191_v21  ;;  %v3402_v20 = vadd.f32 %v5736_v15, %v3401_v9 }
 0x7f2   : > { %3440 = vmatmul.bf16.gmra.mxu1 %v3229_v51 }
 0x7f3   : > { %v3114_v17 = vpop.f32.mrf.mxu0 }
 0x7f4   : > { %v3115_v1 = vadd.f32 %v5839_v24, %v3114_v17 }
 0x7f6   : > { %v3193_v19 = vmax.f32 %v3115_v1, 0.0 }
 0x7f7   : > { %v3403_v43 = vpop.f32.mrf.mxu1 }
 0x7f8   : > { %v3404_v14 = vadd.f32 %v5736_v15, %v3403_v43 }
 0x7fa   : > { %v4267_v12 = vpack.c.bf16 %v3404_v14, %v3402_v20 }
 0x7fb   : > { %v3116_v13 = vpop.f32.mrf.mxu0 }
 0x7fc   : > { %4351 = vst [vmem:[%s5745_s16 + $0x90] sm:$0xff] %v4267_v12   ;;  %v3117_v41 = vadd.f32 %v5839_v24, %v3116_v13 }
 0x7fe   : > { %v3194_v27 = vmax.f32 %v3117_v41, 0.0 }
 0x7ff   : > { %v3406_v53 = vpop.f32.mrf.mxu1 }
 0x800   : > { %v3230_v29 = vpack.c.bf16 %v3194_v27, %v3193_v19  ;;  %v3407_v6 = vadd.f32 %v5736_v15, %v3406_v53 }
 0x802   : > { %3445 = vmatmul.bf16.gmra.mxu1 %v3230_v29 }
 0x803   : > { %v3119_v28 = vpop.f32.mrf.mxu0 }
 0x804   : > { %v3120_v54 = vadd.f32 %v5839_v24, %v3119_v28 }
 0x806   : > { %v3195_v0 = vmax.f32 %v3120_v54, 0.0 }
 0x807   : > { %v3408_v62 = vpop.f32.mrf.mxu1 }
 0x808   : > { %v3409_v7 = vadd.f32 %v5736_v15, %v3408_v62 }
 0x80a   : > { %v4272_v46 = vpack.c.bf16 %v3409_v7, %v3407_v6 }
 0x80b   : > { %v3121_v47 = vpop.f32.mrf.mxu0 }
 0x80c   : > { %4352 = vst [vmem:[%s5745_s16 + $0x98] sm:$0xff] %v4272_v46   ;;  %v3122_v34 = vadd.f32 %v5839_v24, %v3121_v47  ;;  %v4398_v47 = vld [vmem:[%s5943_s3 + $0x8] ss:$0 sm:$0xff] }
 0x80e   : > { %v3196_v11 = vmax.f32 %v3122_v34, 0.0 }
 0x80f   : > { %v3411_v39 = vpop.f32.mrf.mxu1 }
 0x810   : > { %v3231_v10 = vpack.c.bf16 %v3196_v11, %v3195_v0  ;;  %v3412_v52 = vadd.f32 %v5736_v15, %v3411_v39 }
 0x812   : > { %3450 = vmatmul.bf16.gmra.mxu1 %v3231_v10 }
 0x813   : > { %v3124_v58 = vpop.f32.mrf.mxu0 }
 0x814   : > { %v3125_v2 = vadd.f32 %v5839_v24, %v3124_v58 }
 0x816   : > { %v3197_v56 = vmax.f32 %v3125_v2, 0.0 }
 0x817   : > { %v3413_v5 = vpop.f32.mrf.mxu1 }
 0x818   : > { %v3414_v23 = vadd.f32 %v5736_v15, %v3413_v5 }
 0x81a   : > { %v4277_v38 = vpack.c.bf16 %v3414_v23, %v3412_v52 }
 0x81b   : > { %v3126_v48 = vpop.f32.mrf.mxu0 }
 0x81c   : > { %4353 = vst [vmem:[%s5745_s16 + $0xa0] sm:$0xff] %v4277_v38   ;;  %v3127_v45 = vadd.f32 %v5839_v24, %v3126_v48 }
 0x81e   : > { %v3198_v63 = vmax.f32 %v3127_v45, 0.0 }
 0x81f   : > { %v3416_v4 = vpop.f32.mrf.mxu1 }
 0x820   : > { %v3232_v40 = vpack.c.bf16 %v3198_v63, %v3197_v56  ;;  %v3417_v37 = vadd.f32 %v5736_v15, %v3416_v4 }
 0x822   : > { %3455 = vmatmul.bf16.gmra.mxu1 %v3232_v40 }
 0x823   : > { %v3129_v35 = vpop.f32.mrf.mxu0 }
 0x824   : > { %v3130_v61 = vadd.f32 %v5839_v24, %v3129_v35 }
 0x826   : > { %v3199_v30 = vmax.f32 %v3130_v61, 0.0 }
 0x827   : > { %v3418_v57 = vpop.f32.mrf.mxu1 }
 0x828   : > { %v3419_v36 = vadd.f32 %v5736_v15, %v3418_v57 }
 0x82a   : > { %v4282_v31 = vpack.c.bf16 %v3419_v36, %v3417_v37 }
 0x82b   : > { %v3131_v42 = vpop.f32.mrf.mxu0 }
 0x82c   : > { %4354 = vst [vmem:[%s5745_s16 + $0xa8] sm:$0xff] %v4282_v31   ;;  %v3132_v60 = vadd.f32 %v5839_v24, %v3131_v42 }
 0x82e   : > { %v3200_v59 = vmax.f32 %v3132_v60, 0.0 }
 0x82f   : > { %v3421_v22 = vpop.f32.mrf.mxu1 }
 0x830   : > { %v3233_v25 = vpack.c.bf16 %v3200_v59, %v3199_v30  ;;  %v3422_v33 = vadd.f32 %v5736_v15, %v3421_v22 }
 0x832   : > { %3460 = vmatmul.bf16.gmra.mxu1 %v3233_v25 }
 0x833   : > { %v3134_v55 = vpop.f32.mrf.mxu0 }
 0x834   : > { %v3135_v8 = vadd.f32 %v5839_v24, %v3134_v55 }
 0x836   : > { %v3201_v50 = vmax.f32 %v3135_v8, 0.0 }
 0x837   : > { %v3423_v3 = vpop.f32.mrf.mxu1 }
 0x838   : > { %v3424_v44 = vadd.f32 %v5736_v15, %v3423_v3 }
 0x83a   : > { %v4287_v18 = vpack.c.bf16 %v3424_v44, %v3422_v33 }
 0x83b   : > { %v3136_v32 = vpop.f32.mrf.mxu0 }
 0x83c   : > { %4355 = vst [vmem:[%s5745_s16 + $0xb0] sm:$0xff] %v4287_v18   ;;  %v3137_v49 = vadd.f32 %v5839_v24, %v3136_v32 }
 0x83e   : > { %v3202_v16 = vmax.f32 %v3137_v49, 0.0 }
 0x83f   : > { %v3426_v21 = vpop.f32.mrf.mxu1 }
 0x840   : > { %v3234_v26 = vpack.c.bf16 %v3202_v16, %v3201_v50  ;;  %v3427_v51 = vadd.f32 %v5736_v15, %v3426_v21 }
 0x842   : > { %3465 = vmatmul.bf16.gmra.mxu1 %v3234_v26 }
 0x847   : > { %v3428_v9 = vpop.f32.mrf.mxu1 }
 0x848   : > { %v3429_v17 = vadd.f32 %v5736_v15, %v3428_v9 }
 0x84a   : > { %v4292_v43 = vpack.c.bf16 %v3429_v17, %v3427_v51 }
 0x84c   : > { %4356 = vst [vmem:[%s5745_s16 + $0xb8] sm:$0xff] %v4292_v43  }
 0x84f   : > { %v3431_v20 = vpop.f32.mrf.mxu1 }
 0x850   : > { %v3432_v1 = vadd.f32 %v5736_v15, %v3431_v20 }
 0x857   : > { %v3433_v14 = vpop.f32.mrf.mxu1 }
 0x858   : > { %v3434_v24 = vadd.f32 %v5736_v15, %v3433_v14 }
 0x85a   : > { %v4297_v12 = vpack.c.bf16 %v3434_v24, %v3432_v1 }
 0x85c   : > { %4357 = vst [vmem:[%s5745_s16 + $0xc0] sm:$0xff] %v4297_v12  }
 0x85f   : > { %v3436_v13 = vpop.f32.mrf.mxu1 }
 0x860   : > { %v3437_v19 = vadd.f32 %v5736_v15, %v3436_v13 }
 0x867   : > { %v3438_v41 = vpop.f32.mrf.mxu1 }
 0x868   : > { %v3439_v27 = vadd.f32 %v5736_v15, %v3438_v41 }
 0x86a   : > { %v4302_v53 = vpack.c.bf16 %v3439_v27, %v3437_v19 }
 0x86c   : > { %4358 = vst [vmem:[%s5745_s16 + $0xc8] sm:$0xff] %v4302_v53  }
 0x86f   : > { %v3441_v29 = vpop.f32.mrf.mxu1 }
 0x870   : > { %v3442_v62 = vadd.f32 %v5736_v15, %v3441_v29 }
 0x877   : > { %v3443_v28 = vpop.f32.mrf.mxu1 }
 0x878   : > { %v3444_v6 = vadd.f32 %v5736_v15, %v3443_v28 }
 0x87a   : > { %v4307_v7 = vpack.c.bf16 %v3444_v6, %v3442_v62 }
 0x87c   : > { %4359 = vst [vmem:[%s5745_s16 + $0xd0] sm:$0xff] %v4307_v7  }
 0x87f   : > { %v3446_v54 = vpop.f32.mrf.mxu1 }
 0x880   : > { %v3447_v34 = vadd.f32 %v4398_v47, %v3446_v54 }
 0x887   : > { %v3448_v46 = vpop.f32.mrf.mxu1 }
 0x888   : > { %v3449_v0 = vadd.f32 %v4398_v47, %v3448_v46 }
 0x88a   : > { %v4312_v11 = vpack.c.bf16 %v3449_v0, %v3447_v34 }
 0x88c   : > { %4360 = vst [vmem:[%s5745_s16 + $0xd8] sm:$0xff] %v4312_v11  }
 0x88f   : > { %v3451_v39 = vpop.f32.mrf.mxu1 }
 0x890   : > { %v3452_v58 = vadd.f32 %v4398_v47, %v3451_v39 }
 0x897   : > { %v3453_v10 = vpop.f32.mrf.mxu1 }
 0x898   : > { %v3454_v5 = vadd.f32 %v4398_v47, %v3453_v10 }
 0x89a   : > { %v4317_v52 = vpack.c.bf16 %v3454_v5, %v3452_v58 }
 0x89c   : > { %4361 = vst [vmem:[%s5745_s16 + $0xe0] sm:$0xff] %v4317_v52  }
 0x89f   : > { %v3456_v15 = vpop.f32.mrf.mxu1 }
 0x8a0   : > { %v3457_v2 = vadd.f32 %v4398_v47, %v3456_v15 }
 0x8a7   : > { %v3458_v23 = vpop.f32.mrf.mxu1 }
 0x8a8   : > { %v3459_v38 = vadd.f32 %v4398_v47, %v3458_v23 }
 0x8aa   : > { %v4322_v48 = vpack.c.bf16 %v3459_v38, %v3457_v2 }
 0x8ac   : > { %4362 = vst [vmem:[%s5745_s16 + $0xe8] sm:$0xff] %v4322_v48  }
 0x8af   : > { %v3461_v45 = vpop.f32.mrf.mxu1 }
 0x8b0   : > { %v3462_v63 = vadd.f32 %v4398_v47, %v3461_v45 }
 0x8b7   : > { %v3463_v56 = vpop.f32.mrf.mxu1 }
 0x8b8   : > { %v3464_v4 = vadd.f32 %v4398_v47, %v3463_v56 }
 0x8ba   : > { %v4327_v40 = vpack.c.bf16 %v3464_v4, %v3462_v63 }
 0x8bc   : > { %4363 = vst [vmem:[%s5745_s16 + $0xf0] sm:$0xff] %v4327_v40  }
 0x8bf   : > { %v3466_v35 = vpop.f32.mrf.mxu1 }
 0x8c0   : > { %v3467_v37 = vadd.f32 %v4398_v47, %v3466_v35 }
 0x8c7   : > { %v3468_v57 = vpop.f32.mrf.mxu1 }
 0x8c8   : > { %v3469_v36 = vadd.f32 %v4398_v47, %v3468_v57 }
 0x8ca   : > { %v4332_v61 = vpack.c.bf16 %v3469_v36, %v3467_v37 }
 0x8cc   : > { %4364 = vst [vmem:[%s5745_s16 + $0xf8] sm:$0xff] %v4332_v61  }
 0x8cd PF: > { %s14_s15 = sadd.s32 1, %s4405_s15  }
 0x8ce   : > { %p11_p4 = scmp.ge.s32.totalorder %s14_s15, 4  }
 0x8d0   :  { %13 = sbr.rel (!%p11_p4) target bundleno = 1 (0x1), region = 74 }

// kernel: mlp_forward.1
= control target key start
LH: loop header
LB: loop body
LE: loop exit
PB: predicated region body
PF: predicated region fallthrough
CT: control target
= control target key end

     0   :  { %s4432_s15 = smov 0   ;;  %s5940_s0 = inlined_call_operand.vmem [shape: f32[1024,16], index: 0, kind: input, shape index: {}]   ;;  %s5941_s1 = inlined_call_operand.vmem [shape: bf16[2,16,128], index: 1, kind: input, shape index: {}]   ;;  %s5942_s2 = inlined_call_operand.vmem [shape: bf16[8,128,128], index: 2, kind: input, shape index: {}]   ;;  %s5943_s3 = inlined_call_operand.vmem [shape: f32[9,128], index: 3, kind: input, shape index: {}]   ;;  %s5944_s4 = inlined_call_operand.vmem [shape: bf16[1024,128], index: 4, kind: output, shape index: {}]  }
   0x1 LB: > { %s3655_s16 = sadd.s32 4294967295, %s4405_s15   ;;  %p3659_p0 = scmp.ge.s32.totalorder %s4405_s15, 1  ;;  %s4405_s15 = sphi %s4432_s15, %s14_s15  }
   0x2   : > { %p163_p1 = scmp.lt.s32.totalorder %s4405_s15, 3 }
   0x4   : > { %p164_p2 = pnand %p3659_p0, %p163_p1 }
   0x6   : > { %167 = sbr.rel (%p164_p2) target bundleno = 2253 (0x8cd), region = 36 }
   0xb   : > { %v4108_v0 = vld [vmem:[%s5941_s1] sm:$0xff]  ;;  %s3660_s19 = sshll.u32 %s3655_s16, 6  ;;  %vm308_vm0 = vcmask 130048   ;;  %v4116_v16 = vld [vmem:[%s5942_s2 + $0x38] sm:$0xff]  ;;  %v4115_v20 = vld [vmem:[%s5942_s2 + $0x30] sm:$0xff] }
   0xc   : > { %p190_p3 = scmp.lt.s32.totalorder %s3660_s19, 127  ;;  %412 = vmatpush.bf16.msra.mxu0 %v4108_v0  ;;  %4365 = vmatpush.bf16.msra.mxu3 %v4108_v0  ;;  %v4114_v21 = vld [vmem:[%s5942_s2 + $0x28] sm:$0xff]  ;;  %v4113_v22 = vld [vmem:[%s5942_s2 + $0x20] sm:$0xff]  ;;  %v4112_v25 = vld [vmem:[%s5942_s2 + $0x18] sm:$0xff] }
   0xd   : > { %736 = vmatpush.bf16.msra.mxu1 %v4116_v16  ;;  %4366 = vmatpush.bf16.msra.mxu2 %v4116_v16  ;;  %v4111_v27 = vld [vmem:[%s5942_s2 + $0x10] sm:$0xff]  ;;  %v4110_v28 = vld [vmem:[%s5942_s2 + $0x8] sm:$0xff]  ;;  %v4109_v29 = vld [vmem:[%s5942_s2] sm:$0xff] }
   0xe   : > { %s5958_s19 = smov (!%p190_p3, %s3660_s19), 127  ;;  %v4530_v37 = vld [vmem:[%s5943_s3] ss:$0 sm:$0xff] }
   0xf   : > { %s3661_s20 = sshll.u32 %s5958_s19, 3  ;;  %s3663_s12 = sshll.u32 %s5958_s19, 2 }
  0x10   : > { %s4449_s23 = scalar_lea.vmem %s5940_s0, %s3661_s20  ;;  %s5745_s16 = scalar_lea.vmem %s5944_s4, %s3663_s12 }
  0x11   : > { %v202_v1 = vld [vmem:[%s4449_s23] sm:$0xff]  ;;  %v203_v2 = vld [vmem:[%s4449_s23 + $0x8] sm:$0xff]  ;;  %v204_v4 = vld [vmem:[%s4449_s23 + $0x10] sm:$0xff]  ;;  %737 = vmatpush.bf16.msra.mxu1 %v4115_v20  ;;  %4367 = vmatpush.bf16.msra.mxu2 %v4115_v20 }
  0x12   : > { %v4453_v3 = vpack.c.bf16 %v203_v2, %v202_v1  ;;  %v205_v5 = vld [vmem:[%s4449_s23 + $0x18] sm:$0xff]  ;;  %v206_v7 = vld [vmem:[%s4449_s23 + $0x20] sm:$0xff]  ;;  %v207_v8 = vld [vmem:[%s4449_s23 + $0x28] sm:$0xff] }
  0x13   : > { %v4459_v6 = vpack.c.bf16 %v205_v5, %v204_v4  ;;  %v4465_v9 = vpack.c.bf16 %v207_v8, %v206_v7  ;;  %v208_v10 = vld [vmem:[%s4449_s23 + $0x30] sm:$0xff]  ;;  %v209_v11 = vld [vmem:[%s4449_s23 + $0x38] sm:$0xff]  ;;  %v210_v13 = vld [vmem:[%s4449_s23 + $0x40] sm:$0xff] }
  0x14   : > { %3668 = vmatmul.msk.bf16.vlgmr.msra.gmra.mxu0 %vm308_vm0, %v4453_v3  ;;  %v4471_v12 = vpack.c.bf16 %v209_v11, %v208_v10  ;;  %v211_v14 = vld [vmem:[%s4449_s23 + $0x48] sm:$0xff]  ;;  %v212_v17 = vld [vmem:[%s4449_s23 + $0x50] sm:$0xff]  ;;  %v213_v18 = vld [vmem:[%s4449_s23 + $0x58] sm:$0xff] }
  0x15   : > { %v4477_v15 = vpack.c.bf16 %v211_v14, %v210_v13  ;;  %v4486_v19 = vpack.c.bf16 %v213_v18, %v212_v17  ;;  %738 = vmatpush.bf16.msra.mxu1 %v4114_v21  ;;  %4368 = vmatpush.bf16.msra.mxu2 %v4114_v21  ;;  %v214_v23 = vld [vmem:[%s4449_s23 + $0x60] sm:$0xff]  ;;  %v215_v24 = vld [vmem:[%s4449_s23 + $0x68] sm:$0xff]  ;;  %v216_v30 = vld [vmem:[%s4449_s23 + $0x70] sm:$0xff] }
  0x16   : > { %v4504_v26 = vpack.c.bf16 %v215_v24, %v214_v23  ;;  %v217_v31 = vld [vmem:[%s4449_s23 + $0x78] sm:$0xff]  ;;  %v218_v33 = vld [vmem:[%s4449_s23 + $0x80] sm:$0xff]  ;;  %v219_v34 = vld [vmem:[%s4449_s23 + $0x88] sm:$0xff] }
  0x17   : > { %v4519_v32 = vpack.c.bf16 %v217_v31, %v216_v30  ;;  %v4525_v35 = vpack.c.bf16 %v219_v34, %v218_v33  ;;  %v220_v43 = vld [vmem:[%s4449_s23 + $0x90] sm:$0xff]  ;;  %v221_v44 = vld [vmem:[%s4449_s23 + $0x98] sm:$0xff]  ;;  %v222_v53 = vld [vmem:[%s4449_s23 + $0xa0] sm:$0xff] }
  0x18   : > { %v4538_v46 = vpack.c.bf16 %v221_v44, %v220_v43  ;;  %v223_v54 = vld [vmem:[%s4449_s23 + $0xa8] sm:$0xff]  ;;  %v224_v63 = vld [vmem:[%s4449_s23 + $0xb0] sm:$0xff]  ;;  %v225_v0 = vld [vmem:[%s4449_s23 + $0xb8] sm:$0xff] }
  0x19   : > { %739 = vmatpush.bf16.msra.mxu1 %v4113_v22  ;;  %4369 = vmatpush.bf16.msra.mxu2 %v4113_v22  ;;  %v4546_v56 = vpack.c.bf16 %v223_v54, %v222_v53  ;;  %v4554_v2 = vpack.c.bf16 %v225_v0, %v224_v63  ;;  %v226_v13 = vld [vmem:[%s4449_s23 + $0xc0] sm:$0xff]  ;;  %v227_v14 = vld [vmem:[%s4449_s23 + $0xc8] sm:$0xff]  ;;  %v236_v44 = vld [vmem:[%s4449_s23 + $0x110] sm:$0xff] }
  0x1a   : > { %v4562_v17 = vpack.c.bf16 %v227_v14, %v226_v13  ;;  %v232_v53 = vld [vmem:[%s4449_s23 + $0xf0] sm:$0xff]  ;;  %v233_v54 = vld [vmem:[%s4449_s23 + $0xf8] sm:$0xff] }
  0x1b   : > { %v240_v13 = vld [vmem:[%s4449_s23 + $0x130] sm:$0xff]  ;;  %v241_v14 = vld [vmem:[%s4449_s23 + $0x138] sm:$0xff] }
  0x1d   : > { %740 = vmatpush.bf16.msra.mxu1 %v4112_v25  ;;  %4370 = vmatpush.bf16.msra.mxu2 %v4112_v25  ;;  %v228_v25 = vld [vmem:[%s4449_s23 + $0xd0] sm:$0xff] }
  0x21   : > { %741 = vmatpush.bf16.msra.mxu1 %v4111_v27  ;;  %4371 = vmatpush.bf16.msra.mxu2 %v4111_v27  ;;  %v229_v27 = vld [vmem:[%s4449_s23 + $0xd8] sm:$0xff] }
  0x24   : > { %3669 = vmatmul.msk.bf16.gmra.mxu0 %vm308_vm0, %v4459_v6 }
  0x25   : > { %742 = vmatpush.bf16.msra.mxu1 %v4110_v28  ;;  %4372 = vmatpush.bf16.msra.mxu2 %v4110_v28 }
  0x29   : > { %743 = vmatpush.bf16.msra.mxu1 %v4109_v29  ;;  %4373 = vmatpush.bf16.msra.mxu2 %v4109_v29  ;;  %v4570_v29 = vpack.c.bf16 %v229_v27, %v228_v25  ;;  %v4621_v27 = vld [vmem:[%s5943_s3 + $0x1] ss:$0 sm:$0xff] }
  0x34   : > { %3670 = vmatmul.msk.bf16.gmra.mxu0 %vm308_vm0, %v4465_v9 }
  0x44   : > { %3671 = vmatmul.msk.bf16.gmra.mxu0 %vm308_vm0, %v4471_v12 }
  0x54   : > { %3672 = vmatmul.msk.bf16.gmra.mxu0 %vm308_vm0, %v4477_v15 }
  0x64   : > { %3673 = vmatmul.msk.bf16.gmra.mxu0 %vm308_vm0, %v4486_v19 }
  0x74   : > { %3674 = vmatmul.msk.bf16.gmra.mxu0 %vm308_vm0, %v4504_v26 }
  0x84   : > { %3675 = vmatmul.msk.bf16.gmra.mxu0 %vm308_vm0, %v4519_v32 }
  0x91   : > { %v414_v36 = vpop.f32.mrf.mxu0 }
  0x92   : > { %v415_v38 = vadd.f32 %v4530_v37, %v414_v36 }
  0x94   : > { %3676 = vmatmul.msk.bf16.gmra.mxu0 %vm308_vm0, %v4525_v35  ;;  %v574_v41 = vmax.f32 %v415_v38, 0.0 }
  0x99   : > { %v416_v39 = vpop.f32.mrf.mxu0 }
  0x9a   : > { %v417_v40 = vadd.f32 %v4530_v37, %v416_v39  ;;  %v230_v39 = vld [vmem:[%s4449_s23 + $0xe0] sm:$0xff] }
  0x9c   : > { %v575_v42 = vmax.f32 %v417_v40, 0.0  ;;  %v231_v40 = vld [vmem:[%s4449_s23 + $0xe8] sm:$0xff] }
  0x9e   : > { %v638_v45 = vpack.c.bf16 %v575_v42, %v574_v41  ;;  %v4578_v42 = vpack.c.bf16 %v231_v40, %v230_v39 }
  0xa0   : > { %744 = vmatmul.bf16.vlgmr.msra.gmra.mxu1 %v638_v45  ;;  %v237_v45 = vld [vmem:[%s4449_s23 + $0x118] sm:$0xff] }
  0xa1   : > { %v419_v47 = vpop.f32.mrf.mxu0 }
  0xa2   : > { %v420_v48 = vadd.f32 %v4530_v37, %v419_v47  ;;  %v4584_v47 = vpack.c.bf16 %v237_v45, %v236_v44 }
  0xa4   : > { %3677 = vmatmul.msk.bf16.gmra.mxu0 %vm308_vm0, %v4538_v46  ;;  %v576_v51 = vmax.f32 %v420_v48, 0.0  ;;  %3685 = vmatmul.msk.bf16.vlgmr.msra.gmra.mxu3 %vm308_vm0, %v4584_v47 }
  0xa9   : > { %v421_v49 = vpop.f32.mrf.mxu0 }
  0xaa   : > { %v422_v50 = vadd.f32 %v4530_v37, %v421_v49 }
  0xac   : > { %v577_v52 = vmax.f32 %v422_v50, 0.0 }
  0xae   : > { %v639_v55 = vpack.c.bf16 %v577_v52, %v576_v51 }
  0xb0   : > { %749 = vmatmul.bf16.gmra.mxu1 %v639_v55 }
  0xb1   : > { %v424_v57 = vpop.f32.mrf.mxu0 }
  0xb2   : > { %v425_v58 = vadd.f32 %v4530_v37, %v424_v57  ;;  %v4592_v57 = vpack.c.bf16 %v233_v54, %v232_v53  ;;  %v244_v53 = vld [vmem:[%s4449_s23 + $0x150] sm:$0xff]  ;;  %v245_v54 = vld [vmem:[%s4449_s23 + $0x158] sm:$0xff] }
  0xb4   : > { %3678 = vmatmul.msk.bf16.gmra.mxu0 %vm308_vm0, %v4546_v56  ;;  %v578_v61 = vmax.f32 %v425_v58, 0.0 }
  0xb9   : > { %v426_v59 = vpop.f32.mrf.mxu0 }
  0xba   : > { %v427_v60 = vadd.f32 %v4530_v37, %v426_v59  ;;  %v238_v59 = vld [vmem:[%s4449_s23 + $0x120] sm:$0xff] }
  0xbc   : > { %v579_v62 = vmax.f32 %v427_v60, 0.0  ;;  %v239_v60 = vld [vmem:[%s4449_s23 + $0x128] sm:$0xff] }
  0xbe   : > { %v640_v1 = vpack.c.bf16 %v579_v62, %v578_v61  ;;  %v4598_v61 = vpack.c.bf16 %v239_v60, %v238_v59 }
  0xc0   : > { %754 = vmatmul.bf16.gmra.mxu1 %v640_v1  ;;  %3686 = vmatmul.msk.bf16.gmra.mxu3 %vm308_vm0, %v4598_v61 }
  0xc1   : > { %v429_v4 = vpop.f32.mrf.mxu0 }
  0xc2   : > { %v430_v5 = vadd.f32 %v4530_v37, %v429_v4 }
  0xc4   : > { %3679 = vmatmul.msk.bf16.gmra.mxu0 %vm308_vm0, %v4554_v2  ;;  %v580_v10 = vmax.f32 %v430_v5, 0.0  ;;  %v234_v5 = vld [vmem:[%s4449_s23 + $0x100] sm:$0xff] }
  0xc9   : > { %v431_v7 = vpop.f32.mrf.mxu0 }
  0xca   : > { %v432_v8 = vadd.f32 %v4530_v37, %v431_v7  ;;  %v235_v7 = vld [vmem:[%s4449_s23 + $0x108] sm:$0xff] }
  0xcc   : > { %v581_v11 = vmax.f32 %v432_v8, 0.0 }
  0xce   : > { %v641_v16 = vpack.c.bf16 %v581_v11, %v580_v10  ;;  %v4606_v10 = vpack.c.bf16 %v235_v7, %v234_v5 }
  0xd0   : > { %759 = vmatmul.bf16.gmra.mxu1 %v641_v16  ;;  %v4612_v16 = vpack.c.bf16 %v241_v14, %v240_v13 }
  0xd1   : > { %v434_v18 = vpop.f32.mrf.mxu0 }
  0xd2   : > { %v435_v20 = vadd.f32 %v4530_v37, %v434_v18  ;;  %3687 = vmatmul.msk.bf16.gmra.mxu3 %vm308_vm0, %v4612_v16 }
  0xd4   : > { %3680 = vmatmul.msk.bf16.gmra.mxu0 %vm308_vm0, %v4562_v17  ;;  %v582_v23 = vmax.f32 %v435_v20, 0.0 }
  0xd9   : > { %v436_v21 = vpop.f32.mrf.mxu0 }
  0xda   : > { %v437_v22 = vadd.f32 %v4530_v37, %v436_v21 }
  0xdc   : > { %v583_v24 = vmax.f32 %v437_v22, 0.0 }
  0xde   : > { %v642_v28 = vpack.c.bf16 %v583_v24, %v582_v23 }
  0xe0   : > { %764 = vmatmul.bf16.gmra.mxu1 %v642_v28 }
  0xe1   : > { %v439_v30 = vpop.f32.mrf.mxu0 }
  0xe2   : > { %v440_v31 = vadd.f32 %v4530_v37, %v439_v30  ;;  %v242_v30 = vld [vmem:[%s4449_s23 + $0x140] sm:$0xff] }
  0xe4   : > { %3681 = vmatmul.msk.bf16.gmra.mxu0 %vm308_vm0, %v4570_v29  ;;  %v584_v36 = vmax.f32 %v440_v31, 0.0  ;;  %v243_v31 = vld [vmem:[%s4449_s23 + $0x148] sm:$0xff] }
  0xe9   : > { %v441_v33 = vpop.f32.mrf.mxu0 }
  0xea   : > { %v442_v34 = vadd.f32 %v4530_v37, %v441_v33 }
  0xec   : > { %v585_v38 = vmax.f32 %v442_v34, 0.0  ;;  %v4626_v34 = vpack.c.bf16 %v243_v31, %v242_v30 }
  0xee   : > { %v643_v41 = vpack.c.bf16 %v585_v38, %v584_v36  ;;  %3688 = vmatmul.msk.bf16.gmra.mxu3 %vm308_vm0, %v4626_v34 }
  0xf0   : > { %769 = vmatmul.bf16.gmra.mxu1 %v643_v41 }
  0xf1   : > { %v444_v43 = vpop.f32.mrf.mxu0 }
  0xf2   : > { %v445_v48 = vadd.f32 %v4530_v37, %v444_v43 }
  0xf4   : > { %3682 = vmatmul.msk.bf16.gmra.mxu0 %vm308_vm0, %v4578_v42  ;;  %v586_v51 = vmax.f32 %v445_v48, 0.0 }
  0xf9   : > { %v446_v49 = vpop.f32.mrf.mxu0 }
  0xfa   : > { %v447_v50 = vadd.f32 %v4530_v37, %v446_v49 }
  0xfc   : > { %v587_v52 = vmax.f32 %v447_v50, 0.0 }
  0xfe   : > { %v644_v55 = vpack.c.bf16 %v587_v52, %v586_v51 }
 0x100   : > { %774 = vmatmul.bf16.gmra.mxu1 %v644_v55 }
 0x101   : > { %v449_v58 = vpop.f32.mrf.mxu0 }
 0x102   : > { %v450_v62 = vadd.f32 %v4530_v37, %v449_v58  ;;  %v4638_v58 = vpack.c.bf16 %v245_v54, %v244_v53 }
 0x104   : > { %3683 = vmatmul.msk.bf16.gmra.mxu0 %vm308_vm0, %v4592_v57  ;;  %v588_v1 = vmax.f32 %v450_v62, 0.0  ;;  %3689 = vmatmul.msk.bf16.gmra.mxu3 %vm308_vm0, %v4638_v58 }
 0x109   : > { %v451_v63 = vpop.f32.mrf.mxu0 }
 0x10a   : > { %v452_v0 = vadd.f32 %v4530_v37, %v451_v63 }
 0x10c   : > { %v589_v4 = vmax.f32 %v452_v0, 0.0 }
 0x10e   : > { %v645_v8 = vpack.c.bf16 %v589_v4, %v588_v1 }
 0x110   : > { %779 = vmatmul.bf16.gmra.mxu1 %v645_v8 }
 0x111   : > { %v454_v11 = vpop.f32.mrf.mxu0 }
 0x112   : > { %v455_v18 = vadd.f32 %v4530_v37, %v454_v11 }
 0x114   : > { %3684 = vmatmul.msk.bf16.gmra.mxu0 %vm308_vm0, %v4606_v10  ;;  %v590_v22 = vmax.f32 %v455_v18, 0.0  ;;  %v246_v18 = vld [vmem:[%s4449_s23 + $0x160] sm:$0xff] }
 0x119   : > { %v456_v20 = vpop.f32.mrf.mxu0 }
 0x11a   : > { %v457_v21 = vadd.f32 %v4530_v37, %v456_v20  ;;  %v247_v20 = vld [vmem:[%s4449_s23 + $0x168] sm:$0xff] }
 0x11c   : > { %v591_v23 = vmax.f32 %v457_v21, 0.0 }
 0x11d   : > { %v745_v24 = vpop.f32.mrf.mxu1 }
 0x11e   : > { %v646_v25 = vpack.c.bf16 %v591_v23, %v590_v22  ;;  %v746_v33 = vadd.f32 %v4621_v27, %v745_v24  ;;  %v4650_v22 = vpack.c.bf16 %v247_v20, %v246_v18 }
 0x120   : > { %784 = vmatmul.bf16.gmra.mxu1 %v646_v25  ;;  %v905_v39 = vmax.f32 %v746_v33, 0.0  ;;  %3690 = vmatmul.msk.bf16.gmra.mxu3 %vm308_vm0, %v4650_v22 }
 0x121   : > { %v459_v28 = vpop.f32.mrf.mxu0 }
 0x122   : > { %v460_v40 = vadd.f32 %v4530_v37, %v459_v28 }
 0x124   : > { %v592_v48 = vmax.f32 %v460_v40, 0.0 }
 0x125   : > { %v747_v36 = vpop.f32.mrf.mxu1 }
 0x126   : > { %v748_v38 = vadd.f32 %v4621_v27, %v747_v36 }
 0x128   : > { %v906_v41 = vmax.f32 %v748_v38, 0.0 }
 0x129   : > { %v461_v43 = vpop.f32.mrf.mxu0 }
 0x12a   : > { %v4632_v44 = vpack.c.bf16 %v906_v41, %v905_v39  ;;  %v462_v45 = vadd.f32 %v4530_v37, %v461_v43 }
 0x12c   : > { %v593_v49 = vmax.f32 %v462_v45, 0.0  ;;  %v248_v45 = vld [vmem:[%s4449_s23 + $0x170] sm:$0xff] }
 0x12d   : > { %v750_v50 = vpop.f32.mrf.mxu1 }
 0x12e   : > { %v647_v51 = vpack.c.bf16 %v593_v49, %v592_v48  ;;  %v751_v55 = vadd.f32 %v4621_v27, %v750_v50  ;;  %v249_v48 = vld [vmem:[%s4449_s23 + $0x178] sm:$0xff] }
 0x12f   : > { %v4662_v50 = vpack.c.bf16 %v249_v48, %v248_v45  ;;  %v4124_v45 = vld [vmem:[%s5942_s2 + $0x78] sm:$0xff] }
 0x130   : > { %789 = vmatmul.bf16.gmra.mxu1 %v647_v51  ;;  %v907_v62 = vmax.f32 %v751_v55, 0.0  ;;  %1068 = vmatpush.bf16.msrb.mxu2 %v4124_v45 }
 0x131   : > { %v464_v52 = vpop.f32.mrf.mxu0  ;;  %3691 = vmatmul.msk.bf16.gmra.mxu3 %vm308_vm0, %v4662_v50 }
 0x132   : > { %v465_v63 = vadd.f32 %v4530_v37, %v464_v52 }
 0x134   : > { %v594_v7 = vmax.f32 %v465_v63, 0.0 }
 0x135   : > { %v752_v59 = vpop.f32.mrf.mxu1 }
 0x136   : > { %v753_v60 = vadd.f32 %v4621_v27, %v752_v59 }
 0x138   : > { %v908_v0 = vmax.f32 %v753_v60, 0.0 }
 0x139   : > { %v466_v1 = vpop.f32.mrf.mxu0 }
 0x13a   : > { %v467_v4 = vadd.f32 %v4530_v37, %v466_v1  ;;  %v4645_v5 = vpack.c.bf16 %v908_v0, %v907_v62 }
 0x13c   : > { %v595_v8 = vmax.f32 %v467_v4, 0.0 }
 0x13d   : > { %v755_v11 = vpop.f32.mrf.mxu1 }
 0x13e   : > { %v648_v13 = vpack.c.bf16 %v595_v8, %v594_v7  ;;  %v756_v21 = vadd.f32 %v4621_v27, %v755_v11  ;;  %v250_v7 = vld [vmem:[%s4449_s23 + $0x180] sm:$0xff]  ;;  %v251_v8 = vld [vmem:[%s4449_s23 + $0x188] sm:$0xff] }
 0x13f   : > { %v4673_v11 = vpack.c.bf16 %v251_v8, %v250_v7  ;;  %v256_v8 = vld [vmem:[%s4449_s23 + $0x1b0] sm:$0xff] }
 0x140   : > { %794 = vmatmul.bf16.gmra.mxu1 %v648_v13  ;;  %v909_v25 = vmax.f32 %v756_v21, 0.0 }
 0x141   : > { %v469_v14 = vpop.f32.mrf.mxu0  ;;  %3692 = vmatmul.msk.bf16.gmra.mxu3 %vm308_vm0, %v4673_v11 }
 0x142   : > { %v470_v28 = vadd.f32 %v4530_v37, %v469_v14 }
 0x144   : > { %v596_v38 = vmax.f32 %v470_v28, 0.0  ;;  %v253_v28 = vld [vmem:[%s4449_s23 + $0x198] sm:$0xff] }
 0x145   : > { %v757_v23 = vpop.f32.mrf.mxu1 }
 0x146   : > { %v758_v24 = vadd.f32 %v4621_v27, %v757_v23 }
 0x148   : > { %v910_v30 = vmax.f32 %v758_v24, 0.0 }
 0x149   : > { %v471_v31 = vpop.f32.mrf.mxu0 }
 0x14a   : > { %v472_v33 = vadd.f32 %v4530_v37, %v471_v31  ;;  %v4657_v36 = vpack.c.bf16 %v910_v30, %v909_v25  ;;  %v252_v25 = vld [vmem:[%s4449_s23 + $0x190] sm:$0xff] }
 0x14b   : > { %v4681_v30 = vpack.c.bf16 %v253_v28, %v252_v25 }
 0x14c   : > { %v597_v39 = vmax.f32 %v472_v33, 0.0 }
 0x14d   : > { %v760_v40 = vpop.f32.mrf.mxu1 }
 0x14e   : > { %v649_v41 = vpack.c.bf16 %v597_v39, %v596_v38  ;;  %v761_v49 = vadd.f32 %v4621_v27, %v760_v40  ;;  %v499_v38 = vpop.f32.mrf.mxu3 }
 0x150   : > { %799 = vmatmul.bf16.gmra.mxu1 %v649_v41  ;;  %v911_v53 = vmax.f32 %v761_v49, 0.0 }
 0x151   : > { %v474_v43 = vpop.f32.mrf.mxu0  ;;  %3693 = vmatmul.msk.bf16.gmra.mxu3 %vm308_vm0, %v4681_v30 }
 0x152   : > { %v475_v54 = vadd.f32 %v4530_v37, %v474_v43 }
 0x154   : > { %v598_v63 = vmax.f32 %v475_v54, 0.0 }
 0x155   : > { %v762_v51 = vpop.f32.mrf.mxu1 }
 0x156   : > { %v763_v52 = vadd.f32 %v4621_v27, %v762_v51  ;;  %v501_v49 = vpop.f32.mrf.mxu3  ;;  %v254_v51 = vld [vmem:[%s4449_s23 + $0x1a0] sm:$0xff] }
 0x157   : > { %v502_v45 = vadd.f32 %v4530_v37, %v501_v49 }
 0x158   : > { %v912_v55 = vmax.f32 %v763_v52, 0.0  ;;  %v255_v52 = vld [vmem:[%s4449_s23 + $0x1a8] sm:$0xff] }
 0x159   : > { %v476_v59 = vpop.f32.mrf.mxu0 }
 0x15a   : > { %v477_v60 = vadd.f32 %v4530_v37, %v476_v59  ;;  %v4669_v62 = vpack.c.bf16 %v912_v55, %v911_v53  ;;  %v4692_v53 = vpack.c.bf16 %v255_v52, %v254_v51  ;;  %v609_v52 = vmax.f32 %v502_v45, 0.0  ;;  %v264_v45 = vld [vmem:[%s4449_s23 + $0x1f0] sm:$0xff] }
 0x15c   : > { %v599_v0 = vmax.f32 %v477_v60, 0.0 }
 0x15e   : > { %v650_v1 = vpack.c.bf16 %v599_v0, %v598_v63  ;;  %v504_v59 = vpop.f32.mrf.mxu3 }
 0x160   : > { %804 = vmatmul.bf16.gmra.mxu1 %v650_v1 }
 0x161   : > { %v479_v4 = vpop.f32.mrf.mxu0  ;;  %3694 = vmatmul.msk.bf16.gmra.mxu3 %vm308_vm0, %v4692_v53 }
 0x162   : > { %v480_v13 = vadd.f32 %v4530_v37, %v479_v4 }
 0x164   : > { %v600_v20 = vmax.f32 %v480_v13, 0.0  ;;  %v257_v13 = vld [vmem:[%s4449_s23 + $0x1b8] sm:$0xff] }
 0x166   : > { %v506_v7 = vpop.f32.mrf.mxu3 }
 0x169   : > { %v481_v14 = vpop.f32.mrf.mxu0 }
 0x16a   : > { %v482_v18 = vadd.f32 %v4530_v37, %v481_v14  ;;  %v4700_v14 = vpack.c.bf16 %v257_v13, %v256_v8 }
 0x16c   : > { %v601_v21 = vmax.f32 %v482_v18, 0.0 }
 0x16e   : > { %v651_v23 = vpack.c.bf16 %v601_v21, %v600_v20  ;;  %v509_v21 = vpop.f32.mrf.mxu3 }
 0x170   : > { %809 = vmatmul.bf16.gmra.mxu1 %v651_v23 }
 0x171   : > { %v484_v24 = vpop.f32.mrf.mxu0  ;;  %3695 = vmatmul.msk.bf16.gmra.mxu3 %vm308_vm0, %v4700_v14 }
 0x172   : > { %v485_v31 = vadd.f32 %v4530_v37, %v484_v24 }
 0x174   : > { %v602_v40 = vmax.f32 %v485_v31, 0.0  ;;  %v4123_v31 = vld [vmem:[%s5942_s2 + $0x70] sm:$0xff] }
 0x175   : > { %1069 = vmatpush.bf16.msrb.mxu2 %v4123_v31 }
 0x179   : > { %v486_v33 = vpop.f32.mrf.mxu0 }
 0x17a   : > { %v487_v39 = vadd.f32 %v4530_v37, %v486_v33  ;;  %v511_v33 = vpop.f32.mrf.mxu3 }
 0x17c   : > { %v603_v41 = vmax.f32 %v487_v39, 0.0  ;;  %v258_v39 = vld [vmem:[%s4449_s23 + $0x1c0] sm:$0xff] }
 0x17e   : > { %v652_v43 = vpack.c.bf16 %v603_v41, %v602_v40  ;;  %v259_v40 = vld [vmem:[%s4449_s23 + $0x1c8] sm:$0xff] }
 0x17f   : > { %v4711_v41 = vpack.c.bf16 %v259_v40, %v258_v39 }
 0x180   : > { %814 = vmatmul.bf16.gmra.mxu1 %v652_v43  ;;  %v500_v43 = vadd.f32 %v4530_v37, %v499_v38  ;;  %v507_v38 = vadd.f32 %v4530_v37, %v506_v7  ;;  %v510_v7 = vadd.f32 %v4530_v37, %v509_v21 }
 0x181   : > { %v489_v48 = vpop.f32.mrf.mxu0  ;;  %5949 = vst [vmem:[#allocation2_spill] sm:$0xff] %v4711_v41  ;;  %3696 = vmatmul.msk.bf16.gmra.mxu3 %vm308_vm0, %v4711_v41 }
 0x182   : > { %v490_v54 = vadd.f32 %v4530_v37, %v489_v48  ;;  %v514_v48 = vpop.f32.mrf.mxu3  ;;  %v608_v51 = vmax.f32 %v500_v43, 0.0  ;;  %v611_v8 = vmax.f32 %v507_v38, 0.0  ;;  %v612_v31 = vmax.f32 %v510_v7, 0.0  ;;  %v4121_v38 = vld [vmem:[%s5942_s2 + $0x60] sm:$0xff] }
 0x184   : > { %v604_v63 = vmax.f32 %v490_v54, 0.0  ;;  %v655_v54 = vpack.c.bf16 %v609_v52, %v608_v51  ;;  %v265_v51 = vld [vmem:[%s4449_s23 + $0x1f8] sm:$0xff] }
 0x185   : > { %v4738_v52 = vpack.c.bf16 %v265_v51, %v264_v45 }
 0x187   : > { %5952 = vst [vmem:[#allocation5_spill] sm:$0xff] %v4738_v52 }
 0x189   : > { %v491_v55 = vpop.f32.mrf.mxu0 }
 0x18a   : > { %v492_v60 = vadd.f32 %v4530_v37, %v491_v55  ;;  %v516_v55 = vpop.f32.mrf.mxu3 }
 0x18c   : > { %v605_v0 = vmax.f32 %v492_v60, 0.0  ;;  %v260_v60 = vld [vmem:[%s4449_s23 + $0x1d0] sm:$0xff] }
 0x18e   : > { %v653_v1 = vpack.c.bf16 %v605_v0, %v604_v63  ;;  %v261_v63 = vld [vmem:[%s4449_s23 + $0x1d8] sm:$0xff] }
 0x18f   : > { %v4719_v0 = vpack.c.bf16 %v261_v63, %v260_v60  ;;  %v517_v60 = vadd.f32 %v4530_v37, %v516_v55 }
 0x190   : > { %819 = vmatmul.bf16.gmra.mxu1 %v653_v1  ;;  %v505_v1 = vadd.f32 %v4530_v37, %v504_v59  ;;  %v263_v59 = vld [vmem:[%s4449_s23 + $0x1e8] sm:$0xff] }
 0x191   : > { %v494_v4 = vpop.f32.mrf.mxu0  ;;  %5950 = vst [vmem:[#allocation3_spill] sm:$0xff] %v4719_v0  ;;  %3697 = vmatmul.msk.bf16.gmra.mxu3 %vm308_vm0, %v4719_v0  ;;  %v615_v63 = vmax.f32 %v517_v60, 0.0 }
 0x192   : > { %v495_v18 = vadd.f32 %v4530_v37, %v494_v4  ;;  %v519_v49 = vpop.f32.mrf.mxu3  ;;  %v610_v4 = vmax.f32 %v505_v1, 0.0 }
 0x194   : > { %v606_v24 = vmax.f32 %v495_v18, 0.0  ;;  %v656_v13 = vpack.c.bf16 %v611_v8, %v610_v4  ;;  %v4122_v18 = vld [vmem:[%s5942_s2 + $0x68] sm:$0xff]  ;;  %v520_v8 = vadd.f32 %v4530_v37, %v519_v49  ;;  %v4120_v49 = vld [vmem:[%s5942_s2 + $0x58] sm:$0xff] }
 0x195   : > { %1070 = vmatpush.bf16.msrb.mxu2 %v4122_v18 }
 0x199   : > { %v496_v20 = vpop.f32.mrf.mxu0  ;;  %1071 = vmatpush.bf16.msrb.mxu2 %v4121_v38 }
 0x19a   : > { %v497_v23 = vadd.f32 %v4530_v37, %v496_v20  ;;  %v521_v20 = vpop.f32.mrf.mxu3 }
 0x19c   : > { %v607_v25 = vmax.f32 %v497_v23, 0.0  ;;  %v262_v23 = vld [vmem:[%s4449_s23 + $0x1e0] sm:$0xff] }
 0x19d   : > { %1072 = vmatpush.bf16.msrb.mxu2 %v4120_v49 }
 0x19e   : > { %v654_v28 = vpack.c.bf16 %v607_v25, %v606_v24  ;;  %v4730_v24 = vpack.c.bf16 %v263_v59, %v262_v23  ;;  %v512_v25 = vadd.f32 %v4530_v37, %v511_v33 }
 0x1a0   : > { %824 = vmatmul.bf16.vlgmr.msra.gmra.mxu2 %v654_v28  ;;  %5951 = vst [vmem:[#allocation4_spill] sm:$0xff] %v4730_v24  ;;  %v613_v39 = vmax.f32 %v512_v25, 0.0 }
 0x1a1   : > { %3698 = vmatmul.msk.bf16.gmra.mxu3 %vm308_vm0, %v4730_v24 }
 0x1a2   : > { %v657_v40 = vpack.c.bf16 %v613_v39, %v612_v31 }
 0x1a3   : > { %v524_v28 = vpop.f32.mrf.mxu3 }
 0x1a4   : > { %v525_v59 = vadd.f32 %v4530_v37, %v524_v28 }
 0x1a6   : > { %v618_v31 = vmax.f32 %v525_v59, 0.0 }
 0x1ab   : > { %v526_v43 = vpop.f32.mrf.mxu3 }
 0x1ac   : > { %v527_v7 = vadd.f32 %v4530_v37, %v526_v43 }
 0x1ae   : > { %v619_v39 = vmax.f32 %v527_v7, 0.0 }
 0x1b0   : > { %829 = vmatmul.bf16.gmra.mxu2 %v655_v54  ;;  %v515_v54 = vadd.f32 %v4530_v37, %v514_v48  ;;  %v522_v48 = vadd.f32 %v4530_v37, %v521_v20 }
 0x1b1   : > { %3699 = vmatmul.msk.bf16.gmra.mxu3 %vm308_vm0, %v4738_v52 }
 0x1b2   : > { %v614_v33 = vmax.f32 %v515_v54, 0.0  ;;  %v617_v55 = vmax.f32 %v522_v48, 0.0 }
 0x1b4   : > { %v529_v21 = vpop.f32.mrf.mxu3  ;;  %v658_v1 = vpack.c.bf16 %v615_v63, %v614_v33 }
 0x1b5   : > { %v530_v20 = vadd.f32 %v4530_v37, %v529_v21  ;;  %v4119_v21 = vld [vmem:[%s5942_s2 + $0x50] sm:$0xff] }
 0x1b6   : > { %1073 = vmatpush.bf16.msrb.mxu2 %v4119_v21 }
 0x1b7   : > { %v620_v54 = vmax.f32 %v530_v20, 0.0 }
 0x1bc   : > { %v531_v4 = vpop.f32.mrf.mxu3 }
 0x1bd   : > { %v532_v51 = vadd.f32 %v4530_v37, %v531_v4 }
 0x1bf   : > { %v621_v60 = vmax.f32 %v532_v51, 0.0 }
 0x1c0   : > { %834 = vmatmul.bf16.gmra.mxu2 %v656_v13  ;;  %v616_v13 = vmax.f32 %v520_v8, 0.0 }
 0x1c1   : > { %v661_v33 = vpack.c.bf16 %v621_v60, %v620_v54 }
 0x1c2   : > { %v659_v23 = vpack.c.bf16 %v617_v55, %v616_v13 }
 0x1c4   : > { %v534_v18 = vpop.f32.mrf.mxu3 }
 0x1c5   : > { %v535_v63 = vadd.f32 %v4530_v37, %v534_v18  ;;  %v4132_v18 = vld [vmem:[%s5942_s2 + $0xb8] sm:$0xff] }
 0x1c6   : > { %1400 = vmatpush.bf16.msrb.mxu3 %v4132_v18  ;;  %v4118_v18 = vld [vmem:[%s5942_s2 + $0x48] sm:$0xff] }
 0x1c7   : > { %v622_v38 = vmax.f32 %v535_v63, 0.0  ;;  %1074 = vmatpush.bf16.msrb.mxu2 %v4118_v18 }
 0x1cc   : > { %v536_v25 = vpop.f32.mrf.mxu3 }
 0x1d0   : > { %839 = vmatmul.bf16.gmra.mxu2 %v657_v40  ;;  %v660_v40 = vpack.c.bf16 %v619_v39, %v618_v31 }
 0x1d4   : > { %v539_v45 = vpop.f32.mrf.mxu3 }
 0x1d5   : > { %v540_v55 = vadd.f32 %v4530_v37, %v539_v45 }
 0x1d7   : > { %v624_v7 = vmax.f32 %v540_v55, 0.0 }
 0x1dc   : > { %v541_v28 = vpop.f32.mrf.mxu3 }
 0x1e0   : > { %844 = vmatmul.bf16.gmra.mxu2 %v658_v1  ;;  %v537_v1 = vadd.f32 %v4530_v37, %v536_v25 }
 0x1e2   : > { %v623_v8 = vmax.f32 %v537_v1, 0.0 }
 0x1e4   : > { %v544_v43 = vpop.f32.mrf.mxu3  ;;  %v662_v48 = vpack.c.bf16 %v623_v8, %v622_v38 }
 0x1ec   : > { %v546_v13 = vpop.f32.mrf.mxu3 }
 0x1f0   : > { %849 = vmatmul.bf16.gmra.mxu2 %v659_v23  ;;  %v542_v23 = vadd.f32 %v4530_v37, %v541_v28  ;;  %v545_v28 = vadd.f32 %v4530_v37, %v544_v43  ;;  %v4131_v43 = vld [vmem:[%s5942_s2 + $0xb0] sm:$0xff] }
 0x1f1   : > { %1401 = vmatpush.bf16.msrb.mxu3 %v4131_v43 }
 0x1f2   : > { %v625_v25 = vmax.f32 %v542_v23, 0.0  ;;  %v626_v63 = vmax.f32 %v545_v28, 0.0 }
 0x1f4   : > { %v549_v59 = vpop.f32.mrf.mxu3  ;;  %v663_v51 = vpack.c.bf16 %v625_v25, %v624_v7 }
 0x1f5   : > { %v550_v25 = vadd.f32 %v4530_v37, %v549_v59 }
 0x1fc   : > { %v551_v60 = vpop.f32.mrf.mxu3 }
 0x200   : > { %854 = vmatmul.bf16.gmra.mxu2 %v660_v40 }
 0x204   : > { %v554_v21 = vpop.f32.mrf.mxu3 }
 0x205   : > { %v555_v59 = vadd.f32 %v4530_v37, %v554_v21  ;;  %v4130_v21 = vld [vmem:[%s5942_s2 + $0xa8] sm:$0xff] }
 0x206   : > { %1402 = vmatpush.bf16.msrb.mxu3 %v4130_v21 }
 0x210   : > { %859 = vmatmul.bf16.gmra.mxu2 %v661_v33  ;;  %v547_v33 = vadd.f32 %v4530_v37, %v546_v13 }
 0x212   : > { %v627_v1 = vmax.f32 %v547_v33, 0.0 }
 0x214   : > { %v664_v23 = vpack.c.bf16 %v627_v1, %v626_v63 }
 0x220   : > { %864 = vmatmul.bf16.gmra.mxu2 %v662_v48 }
 0x223   : > { %v825_v4 = vpop.f32.mrf.mxu2 }
 0x224   : > { %v826_v31 = vadd.f32 %v4621_v27, %v825_v4 }
 0x226   : > { %v937_v49 = vmax.f32 %v826_v31, 0.0  ;;  %v552_v31 = vadd.f32 %v4530_v37, %v551_v60 }
 0x22b   : > { %v827_v39 = vpop.f32.mrf.mxu2 }
 0x22c   : > { %v828_v40 = vadd.f32 %v4621_v27, %v827_v39  ;;  %v556_v39 = vpop.f32.mrf.mxu3 }
 0x22d   : > { %v557_v60 = vadd.f32 %v4530_v37, %v556_v39 }
 0x22e   : > { %v938_v20 = vmax.f32 %v828_v40, 0.0  ;;  %v628_v40 = vmax.f32 %v550_v25, 0.0 }
 0x230   : > { %869 = vmatmul.bf16.gmra.mxu2 %v663_v51  ;;  %v4768_v45 = vpack.c.bf16 %v938_v20, %v937_v49  ;;  %v629_v49 = vmax.f32 %v552_v31, 0.0 }
 0x232   : > { %v665_v63 = vpack.c.bf16 %v629_v49, %v628_v40  ;;  %v4117_v40 = vld [vmem:[%s5942_s2 + $0x40] sm:$0xff] }
 0x233   : > { %v830_v54 = vpop.f32.mrf.mxu2  ;;  %1075 = vmatpush.bf16.msrb.mxu2 %v4117_v40 }
 0x234   : > { %v831_v38 = vadd.f32 %v4621_v27, %v830_v54 }
 0x236   : > { %v939_v4 = vmax.f32 %v831_v38, 0.0  ;;  %v559_v38 = vpop.f32.mrf.mxu3 }
 0x23b   : > { %v832_v8 = vpop.f32.mrf.mxu2 }
 0x23c   : > { %v833_v48 = vadd.f32 %v4621_v27, %v832_v8 }
 0x23e   : > { %v940_v55 = vmax.f32 %v833_v48, 0.0  ;;  %v630_v48 = vmax.f32 %v555_v59, 0.0  ;;  %v561_v18 = vpop.f32.mrf.mxu3 }
 0x240   : > { %874 = vmatmul.bf16.gmra.mxu2 %v664_v23  ;;  %v4780_v13 = vpack.c.bf16 %v940_v55, %v939_v4  ;;  %v631_v4 = vmax.f32 %v557_v60, 0.0 }
 0x242   : > { %v666_v31 = vpack.c.bf16 %v631_v4, %v630_v48 }
 0x243   : > { %v835_v7 = vpop.f32.mrf.mxu2 }
 0x244   : > { %v836_v20 = vadd.f32 %v4621_v27, %v835_v7 }
 0x246   : > { %v941_v28 = vmax.f32 %v836_v20, 0.0  ;;  %v564_v20 = vpop.f32.mrf.mxu3 }
 0x24b   : > { %v837_v51 = vpop.f32.mrf.mxu2 }
 0x24c   : > { %v838_v54 = vadd.f32 %v4621_v27, %v837_v51  ;;  %v560_v51 = vadd.f32 %v4530_v37, %v559_v38 }
 0x24e   : > { %v942_v33 = vmax.f32 %v838_v54, 0.0  ;;  %v562_v54 = vadd.f32 %v4530_v37, %v561_v18 }
 0x250   : > { %879 = vmatmul.bf16.gmra.mxu2 %v665_v63  ;;  %v4786_v1 = vpack.c.bf16 %v942_v33, %v941_v28  ;;  %v632_v28 = vmax.f32 %v560_v51, 0.0  ;;  %v633_v33 = vmax.f32 %v562_v54, 0.0 }
 0x252   : > { %v667_v4 = vpack.c.bf16 %v633_v33, %v632_v28  ;;  %v4129_v33 = vld [vmem:[%s5942_s2 + $0xa0] sm:$0xff] }
 0x253   : > { %v840_v8 = vpop.f32.mrf.mxu2  ;;  %1403 = vmatpush.bf16.msrb.mxu3 %v4129_v33 }
 0x254   : > { %v841_v55 = vadd.f32 %v4621_v27, %v840_v8 }
 0x256   : > { %v943_v7 = vmax.f32 %v841_v55, 0.0  ;;  %v566_v55 = vpop.f32.mrf.mxu3 }
 0x257   : > { %v567_v38 = vadd.f32 %v4530_v37, %v566_v55 }
 0x25b   : > { %v842_v23 = vpop.f32.mrf.mxu2 }
 0x25c   : > { %v843_v43 = vadd.f32 %v4621_v27, %v842_v23 }
 0x25e   : > { %v944_v25 = vmax.f32 %v843_v43, 0.0  ;;  %v569_v18 = vpop.f32.mrf.mxu3 }
 0x260   : > { %884 = vmatmul.bf16.gmra.mxu2 %v666_v31  ;;  %v4798_v39 = vpack.c.bf16 %v944_v25, %v943_v7  ;;  %v565_v7 = vadd.f32 %v4530_v37, %v564_v20  ;;  %v635_v31 = vmax.f32 %v567_v38, 0.0  ;;  %v4148_v20 = vld [vmem:[%s5942_s2 + $0x138] sm:$0xff] }
 0x261   : > { %2240 = vmatpush.bf16.msra.mxu2 %v4148_v20 }
 0x262   : > { %v634_v25 = vmax.f32 %v565_v7, 0.0 }
 0x263   : > { %v845_v49 = vpop.f32.mrf.mxu2 }
 0x264   : > { %v846_v63 = vadd.f32 %v4621_v27, %v845_v49  ;;  %v668_v28 = vpack.c.bf16 %v635_v31, %v634_v25 }
 0x266   : > { %v945_v60 = vmax.f32 %v846_v63, 0.0 }
 0x26b   : > { %v847_v8 = vpop.f32.mrf.mxu2 }
 0x26c   : > { %v848_v59 = vadd.f32 %v4621_v27, %v847_v8  ;;  %v571_v8 = vpop.f32.mrf.mxu3 }
 0x26e   : > { %v946_v48 = vmax.f32 %v848_v59, 0.0 }
 0x270   : > { %889 = vmatmul.bf16.gmra.mxu2 %v667_v4  ;;  %v4804_v23 = vpack.c.bf16 %v946_v48, %v945_v60  ;;  %v570_v60 = vadd.f32 %v4530_v37, %v569_v18  ;;  %v572_v48 = vadd.f32 %v4530_v37, %v571_v8  ;;  %v4140_v18 = vld [vmem:[%s5942_s2 + $0xf8] sm:$0xff] }
 0x271   : > { %1732 = vmatpush.bf16.msrb.mxu0 %v4140_v18  ;;  %v4128_v8 = vld [vmem:[%s5942_s2 + $0x98] sm:$0xff] }
 0x272   : > { %v636_v4 = vmax.f32 %v570_v60, 0.0  ;;  %v637_v55 = vmax.f32 %v572_v48, 0.0  ;;  %1404 = vmatpush.bf16.msrb.mxu3 %v4128_v8 }
 0x273   : > { %v850_v43 = vpop.f32.mrf.mxu2 }
 0x274   : > { %v851_v40 = vadd.f32 %v4621_v27, %v850_v43 }
 0x276   : > { %v947_v51 = vmax.f32 %v851_v40, 0.0  ;;  %v669_v40 = vpack.c.bf16 %v637_v55, %v636_v4 }
 0x27b   : > { %v852_v21 = vpop.f32.mrf.mxu2 }
 0x27c   : > { %v853_v49 = vadd.f32 %v4621_v27, %v852_v21 }
 0x27e   : > { %v948_v54 = vmax.f32 %v853_v49, 0.0 }
 0x280   : > { %894 = vmatmul.bf16.gmra.mxu2 %v668_v28  ;;  %v4816_v63 = vpack.c.bf16 %v948_v54, %v947_v51  ;;  %v765_v28 = vpop.f32.mrf.mxu1 }
 0x283   : > { %v855_v59 = vpop.f32.mrf.mxu2 }
 0x284   : > { %v856_v43 = vadd.f32 %v4621_v27, %v855_v59 }
 0x286   : > { %v949_v25 = vmax.f32 %v856_v43, 0.0 }
 0x288   : > { %v767_v48 = vpop.f32.mrf.mxu1 }
 0x28b   : > { %v857_v7 = vpop.f32.mrf.mxu2 }
 0x28c   : > { %v858_v38 = vadd.f32 %v4621_v27, %v857_v7 }
 0x28e   : > { %v950_v31 = vmax.f32 %v858_v38, 0.0 }
 0x290   : > { %899 = vmatmul.bf16.gmra.mxu2 %v669_v40  ;;  %v4822_v21 = vpack.c.bf16 %v950_v31, %v949_v25  ;;  %v770_v31 = vpop.f32.mrf.mxu1 }
 0x293   : > { %v860_v49 = vpop.f32.mrf.mxu2 }
 0x294   : > { %v861_v37 = vadd.f32 %v4621_v27, %v860_v49  ;;  %v4127_v49 = vld [vmem:[%s5942_s2 + $0x90] sm:$0xff] }
 0x295   : > { %1405 = vmatpush.bf16.msrb.mxu3 %v4127_v49 }
 0x296   : > { %v951_v33 = vmax.f32 %v861_v37, 0.0 }
 0x298   : > { %v772_v37 = vpop.f32.mrf.mxu1 }
 0x29b   : > { %v862_v51 = vpop.f32.mrf.mxu2 }
 0x29c   : > { %v863_v54 = vadd.f32 %v4621_v27, %v862_v51 }
 0x29e   : > { %v952_v20 = vmax.f32 %v863_v54, 0.0 }
 0x2a0   : > { %1076 = vmatmul.bf16.vlgmr.msrb.gmra.mxu2 %v4632_v44  ;;  %v4833_v59 = vpack.c.bf16 %v952_v20, %v951_v33  ;;  %v4139_v44 = vld [vmem:[%s5942_s2 + $0xf0] sm:$0xff] }
 0x2a1   : > { %1733 = vmatpush.bf16.msrb.mxu0 %v4139_v44  ;;  %v4147_v20 = vld [vmem:[%s5942_s2 + $0x130] sm:$0xff] }
 0x2a2   : > { %2241 = vmatpush.bf16.msra.mxu2 %v4147_v20 }
 0x2a3   : > { %v865_v60 = vpop.f32.mrf.mxu2 }
 0x2a4   : > { %v866_v4 = vadd.f32 %v4621_v27, %v865_v60 }
 0x2a6   : > { %v953_v7 = vmax.f32 %v866_v4, 0.0  ;;  %v775_v4 = vpop.f32.mrf.mxu1 }
 0x2ab   : > { %v867_v55 = vpop.f32.mrf.mxu2 }
 0x2ac   : > { %v868_v43 = vadd.f32 %v4621_v27, %v867_v55 }
 0x2ae   : > { %v954_v38 = vmax.f32 %v868_v43, 0.0  ;;  %v777_v44 = vpop.f32.mrf.mxu1 }
 0x2b0   : > { %1081 = vmatmul.bf16.gmra.mxu2 %v4645_v5  ;;  %v4838_v25 = vpack.c.bf16 %v954_v38, %v953_v7 }
 0x2b3   : > { %v870_v40 = vpop.f32.mrf.mxu2 }
 0x2b4   : > { %v871_v18 = vadd.f32 %v4621_v27, %v870_v40 }
 0x2b6   : > { %v955_v54 = vmax.f32 %v871_v18, 0.0  ;;  %v768_v18 = vadd.f32 %v4621_v27, %v767_v48 }
 0x2b8   : > { %v914_v20 = vmax.f32 %v768_v18, 0.0 }
 0x2bb   : > { %v872_v51 = vpop.f32.mrf.mxu2 }
 0x2bc   : > { %v873_v5 = vadd.f32 %v4621_v27, %v872_v51  ;;  %v4126_v51 = vld [vmem:[%s5942_s2 + $0x88] sm:$0xff] }
 0x2bd   : > { %1406 = vmatpush.bf16.msrb.mxu3 %v4126_v51  ;;  %v771_v51 = vadd.f32 %v4621_v27, %v770_v31  ;;  %v4125_v31 = vld [vmem:[%s5942_s2 + $0x80] sm:$0xff] }
 0x2be   : > { %v956_v33 = vmax.f32 %v873_v5, 0.0  ;;  %v4138_v5 = vld [vmem:[%s5942_s2 + $0xe8] sm:$0xff] }
 0x2bf   : > { %1734 = vmatpush.bf16.msrb.mxu0 %v4138_v5  ;;  %v915_v0 = vmax.f32 %v771_v51, 0.0 }
 0x2c0   : > { %1086 = vmatmul.bf16.gmra.mxu2 %v4657_v36  ;;  %v4852_v8 = vpack.c.bf16 %v956_v33, %v955_v54  ;;  %v766_v54 = vadd.f32 %v4621_v27, %v765_v28  ;;  %v780_v33 = vpop.f32.mrf.mxu1  ;;  %v773_v28 = vadd.f32 %v4621_v27, %v772_v37 }
 0x2c1   : > { %1407 = vmatpush.bf16.msrb.mxu3 %v4125_v31 }
 0x2c2   : > { %v916_v5 = vmax.f32 %v773_v28, 0.0 }
 0x2c3   : > { %v875_v60 = vpop.f32.mrf.mxu2 }
 0x2c4   : > { %v876_v55 = vadd.f32 %v4621_v27, %v875_v60 }
 0x2c6   : > { %v957_v38 = vmax.f32 %v876_v55, 0.0  ;;  %v913_v55 = vmax.f32 %v766_v54, 0.0 }
 0x2c8   : > { %v782_v52 = vpop.f32.mrf.mxu1 }
 0x2cb   : > { %v877_v43 = vpop.f32.mrf.mxu2 }
 0x2cc   : > { %v878_v7 = vadd.f32 %v4621_v27, %v877_v43 }
 0x2ce   : > { %v958_v40 = vmax.f32 %v878_v7, 0.0 }
 0x2d0   : > { %1091 = vmatmul.bf16.gmra.mxu2 %v4669_v62  ;;  %v4857_v36 = vpack.c.bf16 %v958_v40, %v957_v38  ;;  %v973_v38 = vpack.c.bf16 %v914_v20, %v913_v55  ;;  %v974_v20 = vpack.c.bf16 %v916_v5, %v915_v0 }
 0x2d3   : > { %v880_v49 = vpop.f32.mrf.mxu2 }
 0x2d4   : > { %v881_v62 = vadd.f32 %v4621_v27, %v880_v49 }
 0x2d6   : > { %v959_v43 = vmax.f32 %v881_v62, 0.0 }
 0x2db   : > { %v882_v60 = vpop.f32.mrf.mxu2 }
 0x2dc   : > { %v883_v48 = vadd.f32 %v4621_v27, %v882_v60  ;;  %v785_v60 = vpop.f32.mrf.mxu1 }
 0x2de   : > { %v960_v7 = vmax.f32 %v883_v48, 0.0 }
 0x2e0   : > { %1096 = vmatmul.bf16.gmra.mxu2 %v973_v38  ;;  %v4869_v40 = vpack.c.bf16 %v960_v7, %v959_v43  ;;  %v778_v7 = vadd.f32 %v4621_v27, %v777_v44  ;;  %v4137_v44 = vld [vmem:[%s5942_s2 + $0xe0] sm:$0xff] }
 0x2e1   : > { %1735 = vmatpush.bf16.msrb.mxu0 %v4137_v44 }
 0x2e2   : > { %v918_v38 = vmax.f32 %v778_v7, 0.0  ;;  %v781_v7 = vadd.f32 %v4621_v27, %v780_v33  ;;  %v4157_v33 = vld [vmem:[%s5942_s2 + $0x178] sm:$0xff] }
 0x2e3   : > { %v885_v24 = vpop.f32.mrf.mxu2  ;;  %2638 = vmatpush.bf16.msra.mxu3 %v4157_v33 }
 0x2e4   : > { %v886_v18 = vadd.f32 %v4621_v27, %v885_v24  ;;  %v787_v37 = vpop.f32.mrf.mxu1  ;;  %v776_v24 = vadd.f32 %v4621_v27, %v775_v4  ;;  %v4146_v4 = vld [vmem:[%s5942_s2 + $0x128] sm:$0xff] }
 0x2e5   : > { %2242 = vmatpush.bf16.msra.mxu2 %v4146_v4 }
 0x2e6   : > { %v961_v62 = vmax.f32 %v886_v18, 0.0  ;;  %v917_v18 = vmax.f32 %v776_v24, 0.0 }
 0x2eb   : > { %v887_v49 = vpop.f32.mrf.mxu2 }
 0x2ec   : > { %v888_v54 = vadd.f32 %v4621_v27, %v887_v49 }
 0x2ee   : > { %v962_v48 = vmax.f32 %v888_v54, 0.0  ;;  %v975_v54 = vpack.c.bf16 %v918_v38, %v917_v18 }
 0x2f0   : > { %1101 = vmatmul.bf16.gmra.mxu2 %v974_v20  ;;  %v4875_v55 = vpack.c.bf16 %v962_v48, %v961_v62  ;;  %v790_v48 = vpop.f32.mrf.mxu1 }
 0x2f1   : > { %v791_v33 = vadd.f32 %v4621_v27, %v790_v48 }
 0x2f3   : > { %v890_v43 = vpop.f32.mrf.mxu2 }
 0x2f4   : > { %v891_v28 = vadd.f32 %v4621_v27, %v890_v43  ;;  %v783_v43 = vadd.f32 %v4621_v27, %v782_v52  ;;  %v788_v52 = vadd.f32 %v4621_v27, %v787_v37  ;;  %v4136_v37 = vld [vmem:[%s5942_s2 + $0xd8] sm:$0xff] }
 0x2f5   : > { %1736 = vmatpush.bf16.msrb.mxu0 %v4136_v37 }
 0x2f6   : > { %v963_v5 = vmax.f32 %v891_v28, 0.0  ;;  %v920_v31 = vmax.f32 %v783_v43, 0.0  ;;  %v922_v43 = vmax.f32 %v788_v52, 0.0 }
 0x2f8   : > { %v792_v38 = vpop.f32.mrf.mxu1 }
 0x2f9   : > { %v793_v52 = vadd.f32 %v4621_v27, %v792_v38  ;;  %v4149_v38 = vld [vmem:[%s5941_s1 + $0x8] sm:$0xff] }
 0x2fa   : > { %2030 = vmatpush.bf16.msrb.mxu1 %v4149_v38 }
 0x2fb   : > { %v892_v51 = vpop.f32.mrf.mxu2 }
 0x2fc   : > { %v893_v0 = vadd.f32 %v4621_v27, %v892_v51  ;;  %v919_v51 = vmax.f32 %v781_v7, 0.0 }
 0x2fd   : > { %3898 = vmatmul.msk.bf16.vlgmr.msrb.gmra.mxu1 %vm308_vm0, %v4453_v3  ;;  %v4145_v3 = vld [vmem:[%s5942_s2 + $0x120] sm:$0xff] }
 0x2fe   : > { %v964_v49 = vmax.f32 %v893_v0, 0.0  ;;  %v976_v44 = vpack.c.bf16 %v920_v31, %v919_v51  ;;  %2243 = vmatpush.bf16.msra.mxu2 %v4145_v3 }
 0x300   : > { %1106 = vmatmul.bf16.gmra.mxu2 %v975_v54  ;;  %v4890_v62 = vpack.c.bf16 %v964_v49, %v963_v5  ;;  %v795_v4 = vpop.f32.mrf.mxu1 }
 0x303   : > { %v895_v20 = vpop.f32.mrf.mxu2 }
 0x304   : > { %v896_v24 = vadd.f32 %v4621_v27, %v895_v20  ;;  %v786_v20 = vadd.f32 %v4621_v27, %v785_v60 }
 0x306   : > { %v965_v0 = vmax.f32 %v896_v24, 0.0 }
 0x30b   : > { %v897_v28 = vpop.f32.mrf.mxu2 }
 0x30c   : > { %v898_v18 = vadd.f32 %v4621_v27, %v897_v28  ;;  %v921_v28 = vmax.f32 %v786_v20, 0.0 }
 0x30d   : > { %3899 = vmatmul.msk.bf16.gmra.mxu1 %vm308_vm0, %v4459_v6 }
 0x30e   : > { %v966_v54 = vmax.f32 %v898_v18, 0.0 }
 0x310   : > { %1111 = vmatmul.bf16.gmra.mxu2 %v976_v44  ;;  %v4896_v5 = vpack.c.bf16 %v966_v54, %v965_v0  ;;  %v977_v0 = vpack.c.bf16 %v922_v43, %v921_v28  ;;  %v797_v54 = vpop.f32.mrf.mxu1  ;;  %v924_v43 = vmax.f32 %v793_v52, 0.0  ;;  %v923_v28 = vmax.f32 %v791_v33, 0.0 }
 0x311   : > { %v798_v52 = vadd.f32 %v4621_v27, %v797_v54  ;;  %v4135_v54 = vld [vmem:[%s5942_s2 + $0xd0] sm:$0xff] }
 0x312   : > { %1737 = vmatpush.bf16.msrb.mxu0 %v4135_v54 }
 0x313   : > { %v900_v49 = vpop.f32.mrf.mxu2  ;;  %v926_v33 = vmax.f32 %v798_v52, 0.0  ;;  %v4940_v52 = vld [vmem:[%s5943_s3 + $0x1] ss:$0 sm:$0xff] }
 0x314   : > { %v901_v7 = vadd.f32 %v4621_v27, %v900_v49  ;;  %v4914_v49 = vld [vmem:[%s5943_s3 + $0x2] ss:$0 sm:$0xff] }
 0x316   : > { %v967_v51 = vmax.f32 %v901_v7, 0.0 }
 0x318   : > { %v800_v20 = vpop.f32.mrf.mxu1 }
 0x31b   : > { %v902_v24 = vpop.f32.mrf.mxu2 }
 0x31c   : > { %v903_v31 = vadd.f32 %v4621_v27, %v902_v24 }
 0x31d   : > { %3900 = vmatmul.msk.bf16.gmra.mxu1 %vm308_vm0, %v4465_v9  ;;  %v4134_v9 = vld [vmem:[%s5942_s2 + $0xc8] sm:$0xff] }
 0x31e   : > { %v968_v18 = vmax.f32 %v903_v31, 0.0  ;;  %1738 = vmatpush.bf16.msrb.mxu0 %v4134_v9 }
 0x320   : > { %1116 = vmatmul.bf16.gmra.mxu2 %v977_v0  ;;  %v4908_v44 = vpack.c.bf16 %v968_v18, %v967_v51  ;;  %v978_v0 = vpack.c.bf16 %v924_v43, %v923_v28  ;;  %v802_v41 = vpop.f32.mrf.mxu1 }
 0x321   : > { %v803_v38 = vadd.f32 %v4621_v27, %v802_v41 }
 0x323   : > { %v1077_v60 = vpop.f32.mrf.mxu2 }
 0x324   : > { %v1078_v7 = vadd.f32 %v4914_v49, %v1077_v60  ;;  %v796_v60 = vadd.f32 %v4621_v27, %v795_v4 }
 0x326   : > { %v1237_v51 = vmax.f32 %v1078_v7, 0.0 }
 0x32b   : > { %v1079_v24 = vpop.f32.mrf.mxu2 }
 0x32c   : > { %v1080_v31 = vadd.f32 %v4914_v49, %v1079_v24  ;;  %v925_v24 = vmax.f32 %v796_v60, 0.0  ;;  %v801_v60 = vadd.f32 %v4940_v52, %v800_v20  ;;  %v4156_v20 = vld [vmem:[%s5942_s2 + $0x170] sm:$0xff] }
 0x32d   : > { %2639 = vmatpush.bf16.msra.mxu3 %v4156_v20  ;;  %3901 = vmatmul.msk.bf16.gmra.mxu1 %vm308_vm0, %v4471_v12 }
 0x32e   : > { %v1238_v18 = vmax.f32 %v1080_v31, 0.0  ;;  %v805_v31 = vpop.f32.mrf.mxu1 }
 0x32f   : > { %v806_v54 = vadd.f32 %v4940_v52, %v805_v31 }
 0x330   : > { %v1301_v37 = vpack.c.bf16 %v1238_v18, %v1237_v51  ;;  %1121 = vmatmul.bf16.gmra.mxu2 %v978_v0  ;;  %v979_v0 = vpack.c.bf16 %v926_v33, %v925_v24  ;;  %v928_v33 = vmax.f32 %v803_v38, 0.0  ;;  %v927_v24 = vmax.f32 %v801_v60, 0.0 }
 0x332   : > { %1408 = vmatmul.bf16.vlgmr.msrb.gmra.mxu3 %v1301_v37  ;;  %v980_v41 = vpack.c.bf16 %v928_v33, %v927_v24  ;;  %v929_v33 = vmax.f32 %v806_v54, 0.0 }
 0x333   : > { %v1082_v48 = vpop.f32.mrf.mxu2 }
 0x334   : > { %v1083_v43 = vadd.f32 %v4914_v49, %v1082_v48 }
 0x336   : > { %v1239_v51 = vmax.f32 %v1083_v43, 0.0  ;;  %v807_v48 = vpop.f32.mrf.mxu1 }
 0x33b   : > { %v1084_v7 = vpop.f32.mrf.mxu2 }
 0x33c   : > { %v1085_v28 = vadd.f32 %v4914_v49, %v1084_v7 }
 0x33d   : > { %3902 = vmatmul.msk.bf16.gmra.mxu1 %vm308_vm0, %v4477_v15 }
 0x33e   : > { %v1240_v18 = vmax.f32 %v1085_v28, 0.0  ;;  %v810_v6 = vpop.f32.mrf.mxu1 }
 0x340   : > { %1126 = vmatmul.bf16.gmra.mxu2 %v979_v0  ;;  %v1302_v37 = vpack.c.bf16 %v1240_v18, %v1239_v51 }
 0x342   : > { %1413 = vmatmul.bf16.gmra.mxu3 %v1302_v37  ;;  %v808_v37 = vadd.f32 %v4940_v52, %v807_v48 }
 0x343   : > { %v1087_v4 = vpop.f32.mrf.mxu2 }
 0x344   : > { %v1088_v43 = vadd.f32 %v4914_v49, %v1087_v4  ;;  %v930_v3 = vmax.f32 %v808_v37, 0.0 }
 0x346   : > { %v1241_v51 = vmax.f32 %v1088_v43, 0.0  ;;  %v812_v38 = vpop.f32.mrf.mxu1  ;;  %v981_v24 = vpack.c.bf16 %v930_v3, %v929_v33 }
 0x34b   : > { %v1089_v7 = vpop.f32.mrf.mxu2 }
 0x34c   : > { %v1090_v28 = vadd.f32 %v4914_v49, %v1089_v7 }
 0x34d   : > { %3903 = vmatmul.msk.bf16.gmra.mxu1 %vm308_vm0, %v4486_v19  ;;  %v4155_v19 = vld [vmem:[%s5942_s2 + $0x168] sm:$0xff] }
 0x34e   : > { %v1242_v27 = vmax.f32 %v1090_v28, 0.0  ;;  %2640 = vmatpush.bf16.msra.mxu3 %v4155_v19 }
 0x350   : > { %1131 = vmatmul.bf16.gmra.mxu2 %v980_v41  ;;  %v1303_v18 = vpack.c.bf16 %v1242_v27, %v1241_v51  ;;  %v815_v51 = vpop.f32.mrf.mxu1  ;;  %v813_v27 = vadd.f32 %v4940_v52, %v812_v38  ;;  %v811_v41 = vadd.f32 %v4940_v52, %v810_v6 }
 0x351   : > { %v816_v12 = vadd.f32 %v4940_v52, %v815_v51 }
 0x352   : > { %1418 = vmatmul.bf16.gmra.mxu3 %v1303_v18  ;;  %v932_v18 = vmax.f32 %v813_v27, 0.0  ;;  %v931_v20 = vmax.f32 %v811_v41, 0.0 }
 0x353   : > { %v1092_v0 = vpop.f32.mrf.mxu2  ;;  %v933_v9 = vmax.f32 %v816_v12, 0.0 }
 0x354   : > { %v1093_v4 = vadd.f32 %v4914_v49, %v1092_v0 }
 0x356   : > { %v1243_v7 = vmax.f32 %v1093_v4, 0.0 }
 0x358   : > { %v817_v33 = vpop.f32.mrf.mxu1 }
 0x35b   : > { %v1094_v60 = vpop.f32.mrf.mxu2 }
 0x35c   : > { %v1095_v43 = vadd.f32 %v4914_v49, %v1094_v60  ;;  %v982_v60 = vpack.c.bf16 %v932_v18, %v931_v20 }
 0x35d   : > { %3904 = vmatmul.msk.bf16.gmra.mxu1 %vm308_vm0, %v4504_v26  ;;  %v4165_v26 = vld [vmem:[%s5942_s2 + $0x1b8] sm:$0xff] }
 0x35e   : > { %v1244_v48 = vmax.f32 %v1095_v43, 0.0 }
 0x360   : > { %1136 = vmatmul.bf16.gmra.mxu2 %v981_v24  ;;  %v1304_v28 = vpack.c.bf16 %v1244_v48, %v1243_v7  ;;  %v818_v7 = vadd.f32 %v4940_v52, %v817_v33  ;;  %v820_v6 = vpop.f32.mrf.mxu1 }
 0x362   : > { %1423 = vmatmul.bf16.gmra.mxu3 %v1304_v28  ;;  %v934_v48 = vmax.f32 %v818_v7, 0.0 }
 0x363   : > { %v1097_v31 = vpop.f32.mrf.mxu2 }
 0x364   : > { %v1098_v0 = vadd.f32 %v4914_v49, %v1097_v31  ;;  %v983_v18 = vpack.c.bf16 %v934_v48, %v933_v9 }
 0x366   : > { %v1245_v3 = vmax.f32 %v1098_v0, 0.0 }
 0x368   : > { %v822_v15 = vpop.f32.mrf.mxu1 }
 0x369   : > { %v823_v20 = vadd.f32 %v4940_v52, %v822_v15 }
 0x36b   : > { %v1099_v37 = vpop.f32.mrf.mxu2 }
 0x36c   : > { %v1100_v54 = vadd.f32 %v4914_v49, %v1099_v37  ;;  %v4144_v37 = vld [vmem:[%s5942_s2 + $0x118] sm:$0xff] }
 0x36d   : > { %2244 = vmatpush.bf16.msra.mxu2 %v4144_v37  ;;  %3905 = vmatmul.msk.bf16.gmra.mxu1 %vm308_vm0, %v4519_v32  ;;  %v5002_v32 = vld [vmem:[%s5943_s3 + $0x3] ss:$0 sm:$0xff] }
 0x36e   : > { %v1246_v4 = vmax.f32 %v1100_v54, 0.0  ;;  %v4133_v54 = vld [vmem:[%s5942_s2 + $0xc0] sm:$0xff] }
 0x36f   : > { %1739 = vmatpush.bf16.msrb.mxu0 %v4133_v54 }
 0x370   : > { %1141 = vmatmul.bf16.gmra.mxu2 %v982_v60  ;;  %v1305_v43 = vpack.c.bf16 %v1246_v4, %v1245_v3  ;;  %v821_v3 = vadd.f32 %v4940_v52, %v820_v6  ;;  %v936_v4 = vmax.f32 %v823_v20, 0.0 }
 0x372   : > { %1428 = vmatmul.bf16.gmra.mxu3 %v1305_v43  ;;  %v935_v43 = vmax.f32 %v821_v3, 0.0 }
 0x373   : > { %v1102_v38 = vpop.f32.mrf.mxu2  ;;  %2970 = vmatpush.bf16.msra.mxu0 %v4165_v26 }
 0x374   : > { %v1103_v24 = vadd.f32 %v4914_v49, %v1102_v38  ;;  %v984_v48 = vpack.c.bf16 %v936_v4, %v935_v43 }
 0x376   : > { %v1247_v27 = vmax.f32 %v1103_v24, 0.0 }
 0x37b   : > { %v1104_v28 = vpop.f32.mrf.mxu2 }
 0x37c   : > { %v1105_v31 = vadd.f32 %v4914_v49, %v1104_v28 }
 0x37d   : > { %3906 = vmatmul.msk.bf16.gmra.mxu1 %vm308_vm0, %v4525_v35 }
 0x37e   : > { %v1248_v41 = vmax.f32 %v1105_v31, 0.0 }
 0x380   : > { %1146 = vmatmul.bf16.gmra.mxu2 %v983_v18  ;;  %v1306_v0 = vpack.c.bf16 %v1248_v41, %v1247_v27 }
 0x382   : > { %1433 = vmatmul.bf16.gmra.mxu3 %v1306_v0 }
 0x383   : > { %v1107_v51 = vpop.f32.mrf.mxu2 }
 0x384   : > { %v1108_v60 = vadd.f32 %v4914_v49, %v1107_v51 }
 0x386   : > { %v1249_v7 = vmax.f32 %v1108_v60, 0.0 }
 0x38b   : > { %v1109_v33 = vpop.f32.mrf.mxu2 }
 0x38c   : > { %v1110_v38 = vadd.f32 %v4914_v49, %v1109_v33 }
 0x38d   : > { %3907 = vmatmul.msk.bf16.gmra.mxu1 %vm308_vm0, %v4538_v46 }
 0x38e   : > { %v1250_v12 = vmax.f32 %v1110_v38, 0.0 }
 0x390   : > { %1151 = vmatmul.bf16.gmra.mxu2 %v984_v48  ;;  %v1307_v24 = vpack.c.bf16 %v1250_v12, %v1249_v7 }
 0x392   : > { %1438 = vmatmul.bf16.gmra.mxu3 %v1307_v24 }
 0x393   : > { %v1112_v28 = vpop.f32.mrf.mxu2 }
 0x394   : > { %v1113_v52 = vadd.f32 %v4914_v49, %v1112_v28  ;;  %v4143_v28 = vld [vmem:[%s5942_s2 + $0x110] sm:$0xff] }
 0x395   : > { %2245 = vmatpush.bf16.msra.mxu2 %v4143_v28  ;;  %v4164_v28 = vld [vmem:[%s5942_s2 + $0x1b0] sm:$0xff] }
 0x396   : > { %v1251_v31 = vmax.f32 %v1113_v52, 0.0  ;;  %2971 = vmatpush.bf16.msra.mxu0 %v4164_v28 }
 0x39b   : > { %v1114_v6 = vpop.f32.mrf.mxu2 }
 0x39c   : > { %v1115_v9 = vadd.f32 %v4914_v49, %v1114_v6 }
 0x39d   : > { %3908 = vmatmul.msk.bf16.gmra.mxu1 %vm308_vm0, %v4546_v56 }
 0x39e   : > { %v1252_v27 = vmax.f32 %v1115_v9, 0.0 }
 0x3a0   : > { %1156 = vmatmul.bf16.gmra.mxu2 %v4768_v45  ;;  %v1308_v41 = vpack.c.bf16 %v1252_v27, %v1251_v31 }
 0x3a2   : > { %1443 = vmatmul.bf16.gmra.mxu3 %v1308_v41 }
 0x3a3   : > { %v1117_v18 = vpop.f32.mrf.mxu2 }
 0x3a4   : > { %v1118_v0 = vadd.f32 %v4914_v49, %v1117_v18 }
 0x3a6   : > { %v1253_v51 = vmax.f32 %v1118_v0, 0.0 }
 0x3ab   : > { %v1119_v37 = vpop.f32.mrf.mxu2 }
 0x3ac   : > { %v1120_v15 = vadd.f32 %v4914_v49, %v1119_v37 }
 0x3ad   : > { %3909 = vmatmul.msk.bf16.gmra.mxu1 %vm308_vm0, %v4554_v2 }
 0x3ae   : > { %v1254_v20 = vmax.f32 %v1120_v15, 0.0 }
 0x3b0   : > { %1161 = vmatmul.bf16.gmra.mxu2 %v4780_v13  ;;  %v1309_v45 = vpack.c.bf16 %v1254_v20, %v1253_v51 }
 0x3b2   : > { %1448 = vmatmul.bf16.gmra.mxu3 %v1309_v45 }
 0x3b3   : > { %v1122_v54 = vpop.f32.mrf.mxu2 }
 0x3b4   : > { %v1123_v4 = vadd.f32 %v4914_v49, %v1122_v54  ;;  %v4154_v54 = vld [vmem:[%s5942_s2 + $0x160] sm:$0xff] }
 0x3b5   : > { %v1409_v3 = vpop.f32.mrf.mxu3  ;;  %2641 = vmatpush.bf16.msra.mxu3 %v4154_v54 }
 0x3b6   : > { %v1410_v33 = vadd.f32 %v5002_v32, %v1409_v3  ;;  %v1255_v38 = vmax.f32 %v1123_v4, 0.0 }
 0x3b8   : > { %v1569_v48 = vmax.f32 %v1410_v33, 0.0 }
 0x3bb   : > { %v1124_v60 = vpop.f32.mrf.mxu2 }
 0x3bc   : > { %v1125_v43 = vadd.f32 %v4914_v49, %v1124_v60 }
 0x3bd   : > { %v1411_v13 = vpop.f32.mrf.mxu3 }
 0x3be   : > { %v1256_v7 = vmax.f32 %v1125_v43, 0.0  ;;  %v1412_v12 = vadd.f32 %v5002_v32, %v1411_v13 }
 0x3c0   : > { %v1570_v24 = vmax.f32 %v1412_v12, 0.0  ;;  %1166 = vmatmul.bf16.gmra.mxu2 %v4786_v1  ;;  %v1310_v35 = vpack.c.bf16 %v1256_v7, %v1255_v38 }
 0x3c2   : > { %v1633_v19 = vpack.c.bf16 %v1570_v24, %v1569_v48  ;;  %1453 = vmatmul.bf16.gmra.mxu3 %v1310_v35 }
 0x3c3   : > { %v1127_v52 = vpop.f32.mrf.mxu2 }
 0x3c4   : > { %1740 = vmatmul.bf16.vlgmr.msrb.gmra.mxu0 %v1633_v19  ;;  %v1128_v9 = vadd.f32 %v4914_v49, %v1127_v52 }
 0x3c5   : > { %v1414_v6 = vpop.f32.mrf.mxu3 }
 0x3c6   : > { %v1415_v27 = vadd.f32 %v5002_v32, %v1414_v6  ;;  %v1257_v18 = vmax.f32 %v1128_v9, 0.0 }
 0x3c8   : > { %v1571_v37 = vmax.f32 %v1415_v27, 0.0 }
 0x3cb   : > { %v1129_v31 = vpop.f32.mrf.mxu2 }
 0x3cc   : > { %v1130_v1 = vadd.f32 %v4914_v49, %v1129_v31 }
 0x3cd   : > { %v1416_v41 = vpop.f32.mrf.mxu3 }
 0x3ce   : > { %v1258_v26 = vmax.f32 %v1130_v1, 0.0  ;;  %v1417_v0 = vadd.f32 %v5002_v32, %v1416_v41 }
 0x3d0   : > { %v1572_v15 = vmax.f32 %v1417_v0, 0.0  ;;  %1171 = vmatmul.bf16.gmra.mxu2 %v4798_v39  ;;  %v1311_v51 = vpack.c.bf16 %v1258_v26, %v1257_v18 }
 0x3d2   : > { %1458 = vmatmul.bf16.gmra.mxu3 %v1311_v51  ;;  %v1634_v20 = vpack.c.bf16 %v1572_v15, %v1571_v37 }
 0x3d3   : > { %v1132_v46 = vpop.f32.mrf.mxu2 }
 0x3d4   : > { %1745 = vmatmul.bf16.gmra.mxu0 %v1634_v20  ;;  %v1133_v3 = vadd.f32 %v4914_v49, %v1132_v46 }
 0x3d5   : > { %v1419_v45 = vpop.f32.mrf.mxu3 }
 0x3d6   : > { %v1420_v60 = vadd.f32 %v5002_v32, %v1419_v45  ;;  %v1259_v43 = vmax.f32 %v1133_v3, 0.0 }
 0x3d8   : > { %v1573_v7 = vmax.f32 %v1420_v60, 0.0 }
 0x3db   : > { %v1134_v4 = vpop.f32.mrf.mxu2 }
 0x3dc   : > { %v1135_v39 = vadd.f32 %v4914_v49, %v1134_v4 }
 0x3dd   : > { %v1421_v33 = vpop.f32.mrf.mxu3 }
 0x3de   : > { %v1260_v13 = vmax.f32 %v1135_v39, 0.0  ;;  %v1422_v38 = vadd.f32 %v5002_v32, %v1421_v33  ;;  %v4142_v33 = vld [vmem:[%s5942_s2 + $0x108] sm:$0xff] }
 0x3df   : > { %2246 = vmatpush.bf16.msra.mxu2 %v4142_v33 }
 0x3e0   : > { %v1574_v12 = vmax.f32 %v1422_v38, 0.0  ;;  %1176 = vmatmul.bf16.gmra.mxu2 %v4804_v23  ;;  %v1312_v48 = vpack.c.bf16 %v1260_v13, %v1259_v43 }
 0x3e2   : > { %1463 = vmatmul.bf16.gmra.mxu3 %v1312_v48  ;;  %v1635_v56 = vpack.c.bf16 %v1574_v12, %v1573_v7 }
 0x3e3   : > { %v1137_v24 = vpop.f32.mrf.mxu2 }
 0x3e4   : > { %1750 = vmatmul.bf16.gmra.mxu0 %v1635_v56  ;;  %v1138_v19 = vadd.f32 %v4914_v49, %v1137_v24 }
 0x3e5   : > { %v1424_v35 = vpop.f32.mrf.mxu3 }
 0x3e6   : > { %v1425_v6 = vadd.f32 %v5002_v32, %v1424_v35  ;;  %v1261_v31 = vmax.f32 %v1138_v19, 0.0 }
 0x3e8   : > { %v1575_v41 = vmax.f32 %v1425_v6, 0.0 }
 0x3eb   : > { %v1139_v52 = vpop.f32.mrf.mxu2 }
 0x3ec   : > { %v1140_v23 = vadd.f32 %v4914_v49, %v1139_v52 }
 0x3ed   : > { %v1426_v9 = vpop.f32.mrf.mxu3 }
 0x3ee   : > { %v1262_v27 = vmax.f32 %v1140_v23, 0.0  ;;  %v1427_v1 = vadd.f32 %v5002_v32, %v1426_v9 }
 0x3f0   : > { %v1576_v18 = vmax.f32 %v1427_v1, 0.0  ;;  %1181 = vmatmul.bf16.gmra.mxu2 %v4816_v63  ;;  %v1313_v2 = vpack.c.bf16 %v1262_v27, %v1261_v31  ;;  %v4153_v27 = vld [vmem:[%s5942_s2 + $0x158] sm:$0xff] }
 0x3f1   : > { %2642 = vmatpush.bf16.msra.mxu3 %v4153_v27 }
 0x3f2   : > { %1468 = vmatmul.bf16.gmra.mxu3 %v1313_v2  ;;  %v1636_v26 = vpack.c.bf16 %v1576_v18, %v1575_v41 }
 0x3f3   : > { %v1142_v0 = vpop.f32.mrf.mxu2 }
 0x3f4   : > { %1755 = vmatmul.bf16.gmra.mxu0 %v1636_v26  ;;  %v1143_v15 = vadd.f32 %v4914_v49, %v1142_v0 }
 0x3f5   : > { %v1429_v37 = vpop.f32.mrf.mxu3 }
 0x3f6   : > { %v1430_v20 = vadd.f32 %v5002_v32, %v1429_v37  ;;  %v1263_v54 = vmax.f32 %v1143_v15, 0.0 }
 0x3f8   : > { %v1577_v60 = vmax.f32 %v1430_v20, 0.0 }
 0x3fb   : > { %v1144_v51 = vpop.f32.mrf.mxu2 }
 0x3fc   : > { %v1145_v46 = vadd.f32 %v4914_v49, %v1144_v51 }
 0x3fd   : > { %v1431_v45 = vpop.f32.mrf.mxu3 }
 0x3fe   : > { %v1264_v3 = vmax.f32 %v1145_v46, 0.0  ;;  %v1432_v4 = vadd.f32 %v5002_v32, %v1431_v45 }
 0x400   : > { %v1578_v63 = vmax.f32 %v1432_v4, 0.0  ;;  %1186 = vmatmul.bf16.gmra.mxu2 %v4822_v21  ;;  %v1314_v39 = vpack.c.bf16 %v1264_v3, %v1263_v54  ;;  %v4163_v3 = vld [vmem:[%s5942_s2 + $0x1a8] sm:$0xff] }
 0x401   : > { %2972 = vmatpush.bf16.msra.mxu0 %v4163_v3 }
 0x402   : > { %1473 = vmatmul.bf16.gmra.mxu3 %v1314_v39  ;;  %v1637_v43 = vpack.c.bf16 %v1578_v63, %v1577_v60 }
 0x403   : > { %v1147_v13 = vpop.f32.mrf.mxu2 }
 0x404   : > { %1760 = vmatmul.bf16.gmra.mxu0 %v1637_v43  ;;  %v1148_v7 = vadd.f32 %v4914_v49, %v1147_v13 }
 0x405   : > { %v1434_v38 = vpop.f32.mrf.mxu3 }
 0x406   : > { %v1435_v48 = vadd.f32 %v5002_v32, %v1434_v38  ;;  %v1265_v21 = vmax.f32 %v1148_v7, 0.0 }
 0x408   : > { %v1579_v19 = vmax.f32 %v1435_v48, 0.0 }
 0x40b   : > { %v1149_v12 = vpop.f32.mrf.mxu2 }
 0x40c   : > { %v1150_v56 = vadd.f32 %v4914_v49, %v1149_v12 }
 0x40d   : > { %v1436_v24 = vpop.f32.mrf.mxu3 }
 0x40e   : > { %v1266_v35 = vmax.f32 %v1150_v56, 0.0  ;;  %v1437_v28 = vadd.f32 %v5002_v32, %v1436_v24  ;;  %v4173_v24 = vld [vmem:[%s5942_s2 + $0x1f8] sm:$0xff] }
 0x40f   : > { %3302 = vmatpush.bf16.msra.mxu1 %v4173_v24 }
 0x410   : > { %v1580_v52 = vmax.f32 %v1437_v28, 0.0  ;;  %1191 = vmatmul.bf16.gmra.mxu2 %v4833_v59  ;;  %v1315_v6 = vpack.c.bf16 %v1266_v35, %v1265_v21 }
 0x412   : > { %1478 = vmatmul.bf16.gmra.mxu3 %v1315_v6  ;;  %v1638_v23 = vpack.c.bf16 %v1580_v52, %v1579_v19 }
 0x413   : > { %v1152_v9 = vpop.f32.mrf.mxu2 }
 0x414   : > { %1765 = vmatmul.bf16.gmra.mxu0 %v1638_v23  ;;  %v1153_v1 = vadd.f32 %v4914_v49, %v1152_v9 }
 0x415   : > { %v1439_v31 = vpop.f32.mrf.mxu3 }
 0x416   : > { %v1440_v18 = vadd.f32 %v5002_v32, %v1439_v31  ;;  %v1267_v59 = vmax.f32 %v1153_v1, 0.0 }
 0x418   : > { %v1581_v15 = vmax.f32 %v1440_v18, 0.0 }
 0x41b   : > { %v1154_v41 = vpop.f32.mrf.mxu2 }
 0x41c   : > { %v1155_v2 = vadd.f32 %v4914_v49, %v1154_v41  ;;  %v4141_v41 = vld [vmem:[%s5942_s2 + $0x100] sm:$0xff] }
 0x41d   : > { %v1441_v26 = vpop.f32.mrf.mxu3  ;;  %2247 = vmatpush.bf16.msra.mxu2 %v4141_v41 }
 0x41e   : > { %v1268_v0 = vmax.f32 %v1155_v2, 0.0  ;;  %v1442_v37 = vadd.f32 %v5002_v32, %v1441_v26 }
 0x420   : > { %v1582_v51 = vmax.f32 %v1442_v37, 0.0  ;;  %1196 = vmatmul.bf16.gmra.mxu2 %v4838_v25  ;;  %v1316_v20 = vpack.c.bf16 %v1268_v0, %v1267_v59  ;;  %v5082_v59 = vld [vmem:[%s5943_s3 + $0x4] ss:$0 sm:$0xff] }
 0x422   : > { %1483 = vmatmul.bf16.gmra.mxu3 %v1316_v20  ;;  %v1639_v46 = vpack.c.bf16 %v1582_v51, %v1581_v15 }
 0x423   : > { %v1157_v45 = vpop.f32.mrf.mxu2 }
 0x424   : > { %1770 = vmatmul.bf16.gmra.mxu0 %v1639_v46  ;;  %v1158_v4 = vadd.f32 %v4914_v49, %v1157_v45 }
 0x425   : > { %v1444_v54 = vpop.f32.mrf.mxu3 }
 0x426   : > { %v1445_v63 = vadd.f32 %v5002_v32, %v1444_v54  ;;  %v1269_v25 = vmax.f32 %v1158_v4, 0.0 }
 0x428   : > { %v1583_v38 = vmax.f32 %v1445_v63, 0.0 }
 0x42b   : > { %v1159_v60 = vpop.f32.mrf.mxu2 }
 0x42c   : > { %v1160_v39 = vadd.f32 %v4914_v49, %v1159_v60 }
 0x42d   : > { %v1446_v33 = vpop.f32.mrf.mxu3 }
 0x42e   : > { %v1270_v43 = vmax.f32 %v1160_v39, 0.0  ;;  %v1447_v13 = vadd.f32 %v5002_v32, %v1446_v33 }
 0x430   : > { %v1584_v7 = vmax.f32 %v1447_v13, 0.0  ;;  %1201 = vmatmul.bf16.gmra.mxu2 %v4852_v8  ;;  %v1317_v12 = vpack.c.bf16 %v1270_v43, %v1269_v25 }
 0x432   : > { %1488 = vmatmul.bf16.gmra.mxu3 %v1317_v12  ;;  %v1640_v48 = vpack.c.bf16 %v1584_v7, %v1583_v38 }
 0x433   : > { %v1162_v56 = vpop.f32.mrf.mxu2 }
 0x434   : > { %1775 = vmatmul.bf16.gmra.mxu0 %v1640_v48  ;;  %v1163_v35 = vadd.f32 %v4914_v49, %v1162_v56  ;;  %v4152_v56 = vld [vmem:[%s5942_s2 + $0x150] sm:$0xff] }
 0x435   : > { %v1449_v21 = vpop.f32.mrf.mxu3  ;;  %2643 = vmatpush.bf16.msra.mxu3 %v4152_v56 }
 0x436   : > { %v1450_v19 = vadd.f32 %v5002_v32, %v1449_v21  ;;  %v1271_v8 = vmax.f32 %v1163_v35, 0.0 }
 0x438   : > { %v1585_v31 = vmax.f32 %v1450_v19, 0.0 }
 0x43b   : > { %v1164_v28 = vpop.f32.mrf.mxu2 }
 0x43c   : > { %v1165_v52 = vadd.f32 %v4914_v49, %v1164_v28 }
 0x43d   : > { %v1451_v6 = vpop.f32.mrf.mxu3 }
 0x43e   : > { %v1272_v23 = vmax.f32 %v1165_v52, 0.0  ;;  %v1452_v9 = vadd.f32 %v5002_v32, %v1451_v6 }
 0x440   : > { %v1586_v27 = vmax.f32 %v1452_v9, 0.0  ;;  %1206 = vmatmul.bf16.gmra.mxu2 %v4857_v36  ;;  %v1318_v1 = vpack.c.bf16 %v1272_v23, %v1271_v8 }
 0x441   : > { %v1741_v18 = vpop.f32.mrf.mxu0 }
 0x442   : > { %1493 = vmatmul.bf16.gmra.mxu3 %v1318_v1  ;;  %v1641_v2 = vpack.c.bf16 %v1586_v27, %v1585_v31  ;;  %v1742_v37 = vadd.f32 %v5082_v59, %v1741_v18 }
 0x443   : > { %v1167_v26 = vpop.f32.mrf.mxu2 }
 0x444   : > { %1780 = vmatmul.bf16.gmra.mxu0 %v1641_v2  ;;  %v1168_v15 = vadd.f32 %v4914_v49, %v1167_v26  ;;  %v1901_v46 = vmax.f32 %v1742_v37, 0.0 }
 0x445   : > { %v1454_v0 = vpop.f32.mrf.mxu3 }
 0x446   : > { %v1455_v45 = vadd.f32 %v5002_v32, %v1454_v0  ;;  %v1273_v60 = vmax.f32 %v1168_v15, 0.0 }
 0x448   : > { %v1587_v25 = vmax.f32 %v1455_v45, 0.0 }
 0x449   : > { %v1743_v36 = vpop.f32.mrf.mxu0 }
 0x44a   : > { %v1744_v51 = vadd.f32 %v5082_v59, %v1743_v36 }
 0x44b   : > { %v1169_v20 = vpop.f32.mrf.mxu2 }
 0x44c   : > { %v1902_v54 = vmax.f32 %v1744_v51, 0.0  ;;  %v1170_v3 = vadd.f32 %v4914_v49, %v1169_v20  ;;  %v4162_v51 = vld [vmem:[%s5942_s2 + $0x1a0] sm:$0xff] }
 0x44d   : > { %v1456_v4 = vpop.f32.mrf.mxu3  ;;  %2973 = vmatpush.bf16.msra.mxu0 %v4162_v51 }
 0x44e   : > { %v5089_v63 = vpack.c.bf16 %v1902_v54, %v1901_v46  ;;  %v1274_v39 = vmax.f32 %v1170_v3, 0.0  ;;  %v1457_v33 = vadd.f32 %v5002_v32, %v1456_v4 }
 0x450   : > { %v1588_v43 = vmax.f32 %v1457_v33, 0.0  ;;  %1211 = vmatmul.bf16.gmra.mxu2 %v4869_v40  ;;  %v1319_v13 = vpack.c.bf16 %v1274_v39, %v1273_v60 }
 0x451   : > { %v1746_v38 = vpop.f32.mrf.mxu0 }
 0x452   : > { %1498 = vmatmul.bf16.gmra.mxu3 %v1319_v13  ;;  %v1642_v7 = vpack.c.bf16 %v1588_v43, %v1587_v25  ;;  %v1747_v24 = vadd.f32 %v5082_v59, %v1746_v38 }
 0x453   : > { %v1172_v12 = vpop.f32.mrf.mxu2 }
 0x454   : > { %1785 = vmatmul.bf16.gmra.mxu0 %v1642_v7  ;;  %v1173_v35 = vadd.f32 %v4914_v49, %v1172_v12  ;;  %v1903_v19 = vmax.f32 %v1747_v24, 0.0 }
 0x455   : > { %v1459_v48 = vpop.f32.mrf.mxu3 }
 0x456   : > { %v1460_v52 = vadd.f32 %v5002_v32, %v1459_v48  ;;  %v1275_v9 = vmax.f32 %v1173_v35, 0.0 }
 0x458   : > { %v1589_v41 = vmax.f32 %v1460_v52, 0.0 }
 0x459   : > { %v1748_v21 = vpop.f32.mrf.mxu0 }
 0x45a   : > { %v1749_v28 = vadd.f32 %v5082_v59, %v1748_v21  ;;  %v4172_v21 = vld [vmem:[%s5942_s2 + $0x1f0] sm:$0xff] }
 0x45b   : > { %v1174_v40 = vpop.f32.mrf.mxu2  ;;  %3303 = vmatpush.bf16.msra.mxu1 %v4172_v21 }
 0x45c   : > { %v1904_v6 = vmax.f32 %v1749_v28, 0.0  ;;  %v1175_v8 = vadd.f32 %v4914_v49, %v1174_v40 }
 0x45d   : > { %v1461_v23 = vpop.f32.mrf.mxu3 }
 0x45e   : > { %v1276_v31 = vmax.f32 %v1175_v8, 0.0  ;;  %v1462_v27 = vadd.f32 %v5002_v32, %v1461_v23  ;;  %v5102_v1 = vpack.c.bf16 %v1904_v6, %v1903_v19 }
 0x460   : > { %v1590_v18 = vmax.f32 %v1462_v27, 0.0  ;;  %1216 = vmatmul.bf16.gmra.mxu2 %v4875_v55  ;;  %v1320_v2 = vpack.c.bf16 %v1276_v31, %v1275_v9 }
 0x461   : > { %v1751_v26 = vpop.f32.mrf.mxu0 }
 0x462   : > { %1503 = vmatmul.bf16.gmra.mxu3 %v1320_v2  ;;  %v1643_v0 = vpack.c.bf16 %v1590_v18, %v1589_v41  ;;  %v1752_v15 = vadd.f32 %v5082_v59, %v1751_v26 }
 0x463   : > { %v1177_v37 = vpop.f32.mrf.mxu2 }
 0x464   : > { %1790 = vmatmul.bf16.gmra.mxu0 %v1643_v0  ;;  %v1178_v46 = vadd.f32 %v4914_v49, %v1177_v37  ;;  %v1905_v54 = vmax.f32 %v1752_v15, 0.0 }
 0x465   : > { %v1464_v36 = vpop.f32.mrf.mxu3 }
 0x466   : > { %v1465_v3 = vadd.f32 %v5002_v32, %v1464_v36  ;;  %v1277_v33 = vmax.f32 %v1178_v46, 0.0 }
 0x468   : > { %v1591_v38 = vmax.f32 %v1465_v3, 0.0 }
 0x469   : > { %v1753_v20 = vpop.f32.mrf.mxu0 }
 0x46a   : > { %v1754_v45 = vadd.f32 %v5082_v59, %v1753_v20 }
 0x46b   : > { %v1179_v55 = vpop.f32.mrf.mxu2 }
 0x46c   : > { %v1906_v4 = vmax.f32 %v1754_v45, 0.0  ;;  %v1180_v60 = vadd.f32 %v4914_v49, %v1179_v55 }
 0x46d   : > { %v1466_v39 = vpop.f32.mrf.mxu3 }
 0x46e   : > { %v1278_v25 = vmax.f32 %v1180_v60, 0.0  ;;  %v1467_v43 = vadd.f32 %v5002_v32, %v1466_v39  ;;  %v5114_v13 = vpack.c.bf16 %v1906_v4, %v1905_v54 }
 0x470   : > { %v1592_v7 = vmax.f32 %v1467_v43, 0.0  ;;  %1221 = vmatmul.bf16.gmra.mxu2 %v4890_v62  ;;  %v1321_v12 = vpack.c.bf16 %v1278_v25, %v1277_v33 }
 0x471   : > { %v1756_v48 = vpop.f32.mrf.mxu0 }
 0x472   : > { %1508 = vmatmul.bf16.gmra.mxu3 %v1321_v12  ;;  %v1644_v56 = vpack.c.bf16 %v1592_v7, %v1591_v38  ;;  %v1757_v28 = vadd.f32 %v5082_v59, %v1756_v48 }
 0x473   : > { %v1182_v24 = vpop.f32.mrf.mxu2 }
 0x474   : > { %1795 = vmatmul.bf16.gmra.mxu0 %v1644_v56  ;;  %v1183_v19 = vadd.f32 %v4914_v49, %v1182_v24  ;;  %v1907_v6 = vmax.f32 %v1757_v28, 0.0 }
 0x475   : > { %v1469_v35 = vpop.f32.mrf.mxu3 }
 0x476   : > { %v1470_v8 = vadd.f32 %v5002_v32, %v1469_v35  ;;  %v1279_v27 = vmax.f32 %v1183_v19, 0.0 }
 0x478   : > { %v1593_v26 = vmax.f32 %v1470_v8, 0.0 }
 0x479   : > { %v1758_v40 = vpop.f32.mrf.mxu0 }
 0x47a   : > { %v1759_v52 = vadd.f32 %v5082_v59, %v1758_v40  ;;  %v4151_v40 = vld [vmem:[%s5942_s2 + $0x148] sm:$0xff] }
 0x47b   : > { %v1184_v62 = vpop.f32.mrf.mxu2  ;;  %2644 = vmatpush.bf16.msra.mxu3 %v4151_v40 }
 0x47c   : > { %v1908_v23 = vmax.f32 %v1759_v52, 0.0  ;;  %v1185_v9 = vadd.f32 %v4914_v49, %v1184_v62 }
 0x47d   : > { %v1471_v31 = vpop.f32.mrf.mxu3 }
 0x47e   : > { %v1280_v41 = vmax.f32 %v1185_v9, 0.0  ;;  %v1472_v18 = vadd.f32 %v5002_v32, %v1471_v31  ;;  %v5126_v2 = vpack.c.bf16 %v1908_v23, %v1907_v6 }
 0x480   : > { %v1594_v0 = vmax.f32 %v1472_v18, 0.0  ;;  %1226 = vmatmul.bf16.gmra.mxu2 %v4896_v5  ;;  %v1322_v37 = vpack.c.bf16 %v1280_v41, %v1279_v27 }
 0x481   : > { %v1761_v36 = vpop.f32.mrf.mxu0 }
 0x482   : > { %1513 = vmatmul.bf16.gmra.mxu3 %v1322_v37  ;;  %v1645_v15 = vpack.c.bf16 %v1594_v0, %v1593_v26  ;;  %v1762_v46 = vadd.f32 %v5082_v59, %v1761_v36 }
 0x483   : > { %v1187_v51 = vpop.f32.mrf.mxu2 }
 0x484   : > { %1800 = vmatmul.bf16.gmra.mxu0 %v1645_v15  ;;  %v1188_v55 = vadd.f32 %v4914_v49, %v1187_v51  ;;  %v1909_v4 = vmax.f32 %v1762_v46, 0.0 }
 0x485   : > { %v1474_v20 = vpop.f32.mrf.mxu3 }
 0x486   : > { %v1475_v60 = vadd.f32 %v5002_v32, %v1474_v20  ;;  %v1281_v25 = vmax.f32 %v1188_v55, 0.0  ;;  %v5150_v55 = vpop.f32.mrf.mxu1 }
 0x488   : > { %v1595_v12 = vmax.f32 %v1475_v60, 0.0 }
 0x489   : > { %v1763_v45 = vpop.f32.mrf.mxu0 }
 0x48a   : > { %v1764_v54 = vadd.f32 %v5082_v59, %v1763_v45 }
 0x48b   : > { %v1189_v3 = vpop.f32.mrf.mxu2 }
 0x48c   : > { %v1910_v39 = vmax.f32 %v1764_v54, 0.0  ;;  %v1190_v5 = vadd.f32 %v4914_v49, %v1189_v3  ;;  %v4161_v3 = vld [vmem:[%s5942_s2 + $0x198] sm:$0xff] }
 0x48d   : > { %v1476_v33 = vpop.f32.mrf.mxu3  ;;  %2974 = vmatpush.bf16.msra.mxu0 %v4161_v3 }
 0x48e   : > { %v1282_v43 = vmax.f32 %v1190_v5, 0.0  ;;  %v1477_v38 = vadd.f32 %v5002_v32, %v1476_v33  ;;  %v5135_v7 = vpack.c.bf16 %v1910_v39, %v1909_v4 }
 0x490   : > { %v1596_v48 = vmax.f32 %v1477_v38, 0.0  ;;  %1231 = vmatmul.bf16.gmra.mxu2 %v4908_v44  ;;  %v1323_v56 = vpack.c.bf16 %v1282_v43, %v1281_v25 }
 0x491   : > { %v1766_v24 = vpop.f32.mrf.mxu0 }
 0x492   : > { %1518 = vmatmul.bf16.gmra.mxu3 %v1323_v56  ;;  %v1646_v21 = vpack.c.bf16 %v1596_v48, %v1595_v12  ;;  %v1767_v19 = vadd.f32 %v5082_v59, %v1766_v24 }
 0x493   : > { %v1192_v35 = vpop.f32.mrf.mxu2 }
 0x494   : > { %1805 = vmatmul.bf16.gmra.mxu0 %v1646_v21  ;;  %v1193_v62 = vadd.f32 %v4914_v49, %v1192_v35  ;;  %v1911_v8 = vmax.f32 %v1767_v19, 0.0  ;;  %v5163_v21 = vpop.f32.mrf.mxu1  ;;  %3910 = vmatmul.msk.bf16.gmra.mxu1 %vm308_vm0, %v4562_v17 }
 0x495   : > { %v1479_v28 = vpop.f32.mrf.mxu3 }
 0x496   : > { %v1480_v23 = vadd.f32 %v5002_v32, %v1479_v28  ;;  %v1283_v41 = vmax.f32 %v1193_v62, 0.0  ;;  %v4171_v62 = vld [vmem:[%s5942_s2 + $0x1e8] sm:$0xff] }
 0x497   : > { %3304 = vmatpush.bf16.msra.mxu1 %v4171_v62 }
 0x498   : > { %v1597_v37 = vmax.f32 %v1480_v23, 0.0 }
 0x499   : > { %v1768_v52 = vpop.f32.mrf.mxu0 }
 0x49a   : > { %v1769_v6 = vadd.f32 %v5082_v59, %v1768_v52 }
 0x49b   : > { %v1194_v44 = vpop.f32.mrf.mxu2 }
 0x49c   : > { %v1912_v9 = vmax.f32 %v1769_v6, 0.0  ;;  %v1195_v31 = vadd.f32 %v4914_v49, %v1194_v44  ;;  %v5171_v44 = vpop.f32.mrf.mxu1 }
 0x49d   : > { %v1481_v27 = vpop.f32.mrf.mxu3 }
 0x49e   : > { %v1284_v18 = vmax.f32 %v1195_v31, 0.0  ;;  %v1482_v26 = vadd.f32 %v5002_v32, %v1481_v27  ;;  %v5147_v0 = vpack.c.bf16 %v1912_v9, %v1911_v8 }
 0x4a0   : > { %v1598_v36 = vmax.f32 %v1482_v26, 0.0  ;;  %2248 = vmatmul.bf16.vlgmr.msra.gmra.mxu2 %v5089_v63  ;;  %v1324_v15 = vpack.c.bf16 %v1284_v18, %v1283_v41 }
 0x4a1   : > { %v1771_v51 = vpop.f32.mrf.mxu0 }
 0x4a2   : > { %1523 = vmatmul.bf16.gmra.mxu3 %v1324_v15  ;;  %v1647_v20 = vpack.c.bf16 %v1598_v36, %v1597_v37  ;;  %v1772_v54 = vadd.f32 %v5082_v59, %v1771_v51 }
 0x4a3   : > { %v1197_v46 = vpop.f32.mrf.mxu2 }
 0x4a4   : > { %1810 = vmatmul.bf16.gmra.mxu0 %v1647_v20  ;;  %v1198_v60 = vadd.f32 %v4914_v49, %v1197_v46  ;;  %v1913_v5 = vmax.f32 %v1772_v54, 0.0  ;;  %v5186_v46 = vpop.f32.mrf.mxu1  ;;  %3911 = vmatmul.msk.bf16.gmra.mxu1 %vm308_vm0, %v4570_v29 }
 0x4a5   : > { %v1484_v45 = vpop.f32.mrf.mxu3 }
 0x4a6   : > { %v1485_v33 = vadd.f32 %v5002_v32, %v1484_v45  ;;  %v1285_v12 = vmax.f32 %v1198_v60, 0.0 }
 0x4a8   : > { %v1599_v35 = vmax.f32 %v1485_v33, 0.0 }
 0x4a9   : > { %v1773_v4 = vpop.f32.mrf.mxu0 }
 0x4aa   : > { %v1774_v63 = vadd.f32 %v5082_v59, %v1773_v4 }
 0x4ab   : > { %v1199_v39 = vpop.f32.mrf.mxu2 }
 0x4ac   : > { %v1914_v25 = vmax.f32 %v1774_v63, 0.0  ;;  %v1200_v43 = vadd.f32 %v4914_v49, %v1199_v39 }
 0x4ad   : > { %v1486_v38 = vpop.f32.mrf.mxu3 }
 0x4ae   : > { %v1286_v48 = vmax.f32 %v1200_v43, 0.0  ;;  %v1487_v56 = vadd.f32 %v5002_v32, %v1486_v38  ;;  %v5161_v24 = vpack.c.bf16 %v1914_v25, %v1913_v5  ;;  %v5191_v5 = vpop.f32.mrf.mxu1 }
 0x4b0   : > { %v1600_v28 = vmax.f32 %v1487_v56, 0.0  ;;  %2253 = vmatmul.bf16.gmra.mxu2 %v5102_v1  ;;  %v1325_v40 = vpack.c.bf16 %v1286_v48, %v1285_v12  ;;  %v5177_v1 = vld [vmem:[%s5943_s3 + $0x2] ss:$0 sm:$0xff] }
 0x4b1   : > { %v1776_v19 = vpop.f32.mrf.mxu0 }
 0x4b2   : > { %1528 = vmatmul.bf16.gmra.mxu3 %v1325_v40  ;;  %v1648_v49 = vpack.c.bf16 %v1600_v28, %v1599_v35  ;;  %v1777_v17 = vadd.f32 %v5082_v59, %v1776_v19 }
 0x4b3   : > { %v1202_v52 = vpop.f32.mrf.mxu2 }
 0x4b4   : > { %1815 = vmatmul.bf16.gmra.mxu0 %v1648_v49  ;;  %v1203_v23 = vadd.f32 %v5177_v1, %v1202_v52  ;;  %v1915_v27 = vmax.f32 %v1777_v17, 0.0 }
 0x4b5   : > { %v1489_v6 = vpop.f32.mrf.mxu3 }
 0x4b6   : > { %v1490_v41 = vadd.f32 %v5002_v32, %v1489_v6  ;;  %v1287_v36 = vmax.f32 %v1203_v23, 0.0  ;;  %v5201_v52 = vpop.f32.mrf.mxu1  ;;  %3912 = vmatmul.msk.bf16.gmra.mxu1 %vm308_vm0, %v4578_v42 }
 0x4b8   : > { %v1601_v45 = vmax.f32 %v1490_v41, 0.0 }
 0x4b9   : > { %v1778_v8 = vpop.f32.mrf.mxu0 }
 0x4ba   : > { %v1779_v9 = vadd.f32 %v5082_v59, %v1778_v8 }
 0x4bb   : > { %v1204_v31 = vpop.f32.mrf.mxu2 }
 0x4bc   : > { %v1916_v18 = vmax.f32 %v1779_v9, 0.0  ;;  %v1205_v26 = vadd.f32 %v5177_v1, %v1204_v31 }
 0x4bd   : > { %v1491_v37 = vpop.f32.mrf.mxu3 }
 0x4be   : > { %v1288_v15 = vmax.f32 %v1205_v26, 0.0  ;;  %v1492_v51 = vadd.f32 %v5002_v32, %v1491_v37  ;;  %v5184_v20 = vpack.c.bf16 %v1916_v18, %v1915_v27  ;;  %v4150_v27 = vld [vmem:[%s5942_s2 + $0x140] sm:$0xff]  ;;  %v5209_v41 = vpop.f32.mrf.mxu1 }
 0x4bf   : > { %2645 = vmatpush.bf16.msra.mxu3 %v4150_v27 }
 0x4c0   : > { %v1602_v54 = vmax.f32 %v1492_v51, 0.0  ;;  %2258 = vmatmul.bf16.gmra.mxu2 %v5114_v13  ;;  %v1326_v3 = vpack.c.bf16 %v1288_v15, %v1287_v36 }
 0x4c1   : > { %v1781_v4 = vpop.f32.mrf.mxu0 }
 0x4c2   : > { %1533 = vmatmul.bf16.gmra.mxu3 %v1326_v3  ;;  %v1649_v60 = vpack.c.bf16 %v1602_v54, %v1601_v45  ;;  %v1782_v33 = vadd.f32 %v5082_v59, %v1781_v4 }
 0x4c3   : > { %v1207_v63 = vpop.f32.mrf.mxu2 }
 0x4c4   : > { %1820 = vmatmul.bf16.gmra.mxu0 %v1649_v60  ;;  %v1208_v43 = vadd.f32 %v5177_v1, %v1207_v63  ;;  %v1917_v12 = vmax.f32 %v1782_v33, 0.0 }
 0x4c5   : > { %v1494_v39 = vpop.f32.mrf.mxu3 }
 0x4c6   : > { %v1495_v13 = vadd.f32 %v5002_v32, %v1494_v39  ;;  %v1289_v28 = vmax.f32 %v1208_v43, 0.0  ;;  %v5219_v39 = vpop.f32.mrf.mxu1  ;;  %3913 = vmatmul.msk.bf16.gmra.mxu1 %vm308_vm0, %v4592_v57 }
 0x4c8   : > { %v1603_v62 = vmax.f32 %v1495_v13, 0.0 }
 0x4c9   : > { %v1783_v25 = vpop.f32.mrf.mxu0 }
 0x4ca   : > { %v1784_v29 = vadd.f32 %v5082_v59, %v1783_v25 }
 0x4cb   : > { %v1209_v38 = vpop.f32.mrf.mxu2 }
 0x4cc   : > { %v1918_v48 = vmax.f32 %v1784_v29, 0.0  ;;  %v1210_v56 = vadd.f32 %v5177_v1, %v1209_v38 }
 0x4cd   : > { %v1496_v35 = vpop.f32.mrf.mxu3 }
 0x4ce   : > { %v1290_v40 = vmax.f32 %v1210_v56, 0.0  ;;  %v1497_v19 = vadd.f32 %v5002_v32, %v1496_v35  ;;  %v5199_v49 = vpack.c.bf16 %v1918_v48, %v1917_v12  ;;  %v5224_v48 = vpop.f32.mrf.mxu1  ;;  %v4160_v35 = vld [vmem:[%s5942_s2 + $0x190] sm:$0xff] }
 0x4cf   : > { %2975 = vmatpush.bf16.msra.mxu0 %v4160_v35 }
 0x4d0   : > { %v1604_v6 = vmax.f32 %v1497_v19, 0.0  ;;  %2263 = vmatmul.bf16.gmra.mxu2 %v5126_v2  ;;  %v1327_v17 = vpack.c.bf16 %v1290_v40, %v1289_v28 }
 0x4d1   : > { %v1786_v8 = vpop.f32.mrf.mxu0 }
 0x4d2   : > { %1538 = vmatmul.bf16.gmra.mxu3 %v1327_v17  ;;  %v1650_v23 = vpack.c.bf16 %v1604_v6, %v1603_v62  ;;  %v1787_v18 = vadd.f32 %v5082_v59, %v1786_v8 }
 0x4d3   : > { %v1212_v9 = vpop.f32.mrf.mxu2 }
 0x4d4   : > { %1825 = vmatmul.bf16.gmra.mxu0 %v1650_v23  ;;  %v1213_v26 = vadd.f32 %v5177_v1, %v1212_v9  ;;  %v1919_v36 = vmax.f32 %v1787_v18, 0.0 }
 0x4d5   : > { %v1499_v31 = vpop.f32.mrf.mxu3 }
 0x4d6   : > { %v1500_v15 = vadd.f32 %v5002_v32, %v1499_v31  ;;  %v1291_v3 = vmax.f32 %v1213_v26, 0.0  ;;  %v5237_v18 = vpop.f32.mrf.mxu1  ;;  %3914 = vmatmul.msk.bf16.gmra.mxu1 %vm308_vm0, %v4606_v10 }
 0x4d8   : > { %v1605_v33 = vmax.f32 %v1500_v15, 0.0 }
 0x4d9   : > { %v1788_v42 = vpop.f32.mrf.mxu0 }
 0x4da   : > { %v1789_v2 = vadd.f32 %v5082_v59, %v1788_v42 }
 0x4db   : > { %v1214_v37 = vpop.f32.mrf.mxu2 }
 0x4dc   : > { %v1920_v51 = vmax.f32 %v1789_v2, 0.0  ;;  %v1215_v45 = vadd.f32 %v5177_v1, %v1214_v37 }
 0x4dd   : > { %v1501_v54 = vpop.f32.mrf.mxu3 }
 0x4de   : > { %v1292_v4 = vmax.f32 %v1215_v45, 0.0  ;;  %v1502_v60 = vadd.f32 %v5002_v32, %v1501_v54  ;;  %v5217_v63 = vpack.c.bf16 %v1920_v51, %v1919_v36  ;;  %v4170_v51 = vld [vmem:[%s5942_s2 + $0x1e0] sm:$0xff]  ;;  %v5245_v54 = vpop.f32.mrf.mxu1 }
 0x4df   : > { %3305 = vmatpush.bf16.msra.mxu1 %v4170_v51 }
 0x4e0   : > { %v1606_v25 = vmax.f32 %v1502_v60, 0.0  ;;  %2268 = vmatmul.bf16.gmra.mxu2 %v5135_v7  ;;  %v1328_v43 = vpack.c.bf16 %v1292_v4, %v1291_v3 }
 0x4e1   : > { %v1791_v29 = vpop.f32.mrf.mxu0 }
 0x4e2   : > { %1543 = vmatmul.bf16.gmra.mxu3 %v1328_v43  ;;  %v1651_v38 = vpack.c.bf16 %v1606_v25, %v1605_v33  ;;  %v1792_v56 = vadd.f32 %v5082_v59, %v1791_v29 }
 0x4e3   : > { %v1217_v12 = vpop.f32.mrf.mxu2 }
 0x4e4   : > { %1830 = vmatmul.bf16.gmra.mxu0 %v1651_v38  ;;  %v1218_v28 = vadd.f32 %v5177_v1, %v1217_v12  ;;  %v1921_v19 = vmax.f32 %v1792_v56, 0.0 }
 0x4e5   : > { %v1504_v13 = vpop.f32.mrf.mxu3 }
 0x4e6   : > { %v1505_v62 = vadd.f32 %v5002_v32, %v1504_v13  ;;  %v1293_v23 = vmax.f32 %v1218_v28, 0.0 }
 0x4e8   : > { %v1607_v42 = vmax.f32 %v1505_v62, 0.0 }
 0x4e9   : > { %v1793_v57 = vpop.f32.mrf.mxu0 }
 0x4ea   : > { %v1794_v7 = vadd.f32 %v5082_v59, %v1793_v57  ;;  %v5255_v57 = vpop.f32.mrf.mxu1  ;;  %3915 = vmatmul.msk.bf16.gmra.mxu1 %vm308_vm0, %v4584_v47 }
 0x4eb   : > { %v1219_v40 = vpop.f32.mrf.mxu2 }
 0x4ec   : > { %v1922_v6 = vmax.f32 %v1794_v7, 0.0  ;;  %v1220_v17 = vadd.f32 %v5177_v1, %v1219_v40 }
 0x4ed   : > { %v1506_v8 = vpop.f32.mrf.mxu3 }
 0x4ee   : > { %v1294_v9 = vmax.f32 %v1220_v17, 0.0  ;;  %v1507_v31 = vadd.f32 %v5002_v32, %v1506_v8  ;;  %v5235_v27 = vpack.c.bf16 %v1922_v6, %v1921_v19 }
 0x4f0   : > { %v1608_v26 = vmax.f32 %v1507_v31, 0.0  ;;  %2273 = vmatmul.bf16.gmra.mxu2 %v5147_v0  ;;  %v1329_v2 = vpack.c.bf16 %v1294_v9, %v1293_v23 }
 0x4f1   : > { %v1796_v37 = vpop.f32.mrf.mxu0 }
 0x4f2   : > { %1548 = vmatmul.bf16.gmra.mxu3 %v1329_v2  ;;  %v1652_v36 = vpack.c.bf16 %v1608_v26, %v1607_v42  ;;  %v1797_v10 = vadd.f32 %v5082_v59, %v1796_v37  ;;  %v5260_v8 = vpop.f32.mrf.mxu1 }
 0x4f3   : > { %v1222_v15 = vpop.f32.mrf.mxu2 }
 0x4f4   : > { %1835 = vmatmul.bf16.gmra.mxu0 %v1652_v36  ;;  %v1223_v4 = vadd.f32 %v5177_v1, %v1222_v15  ;;  %v1923_v33 = vmax.f32 %v1797_v10, 0.0 }
 0x4f5   : > { %v1509_v45 = vpop.f32.mrf.mxu3 }
 0x4f6   : > { %v1510_v25 = vadd.f32 %v5002_v32, %v1509_v45  ;;  %v1295_v12 = vmax.f32 %v1223_v4, 0.0  ;;  %v5270_v45 = vld [vmem:[%s5943_s3 + $0x3] ss:$0 sm:$0xff] }
 0x4f8   : > { %v1609_v28 = vmax.f32 %v1510_v25, 0.0 }
 0x4f9   : > { %v1798_v3 = vpop.f32.mrf.mxu0 }
 0x4fa   : > { %v1799_v0 = vadd.f32 %v5082_v59, %v1798_v3  ;;  %v5275_v4 = vpop.f32.mrf.mxu1  ;;  %3916 = vmatmul.msk.bf16.gmra.mxu1 %vm308_vm0, %v4598_v61 }
 0x4fb   : > { %v1224_v60 = vpop.f32.mrf.mxu2 }
 0x4fc   : > { %v1924_v43 = vmax.f32 %v1799_v0, 0.0  ;;  %v1225_v29 = vadd.f32 %v5177_v1, %v1224_v60 }
 0x4fd   : > { %v1511_v38 = vpop.f32.mrf.mxu3 }
 0x4fe   : > { %v1296_v13 = vmax.f32 %v1225_v29, 0.0  ;;  %v1512_v56 = vadd.f32 %v5002_v32, %v1511_v38  ;;  %v5253_v35 = vpack.c.bf16 %v1924_v43, %v1923_v33 }
 0x500   : > { %v1610_v7 = vmax.f32 %v1512_v56, 0.0  ;;  %2278 = vmatmul.bf16.gmra.mxu2 %v5161_v24  ;;  %v1330_v40 = vpack.c.bf16 %v1296_v13, %v1295_v12 }
 0x501   : > { %v1801_v19 = vpop.f32.mrf.mxu0 }
 0x502   : > { %1553 = vmatmul.bf16.gmra.mxu3 %v1330_v40  ;;  %v1653_v62 = vpack.c.bf16 %v1610_v7, %v1609_v28  ;;  %v1802_v23 = vadd.f32 %v5082_v59, %v1801_v19  ;;  %v5280_v38 = vpop.f32.mrf.mxu1 }
 0x503   : > { %v1227_v6 = vpop.f32.mrf.mxu2 }
 0x504   : > { %1840 = vmatmul.bf16.gmra.mxu0 %v1653_v62  ;;  %v1228_v31 = vadd.f32 %v5177_v1, %v1227_v6  ;;  %v1925_v26 = vmax.f32 %v1802_v23, 0.0 }
 0x505   : > { %v1514_v17 = vpop.f32.mrf.mxu3 }
 0x506   : > { %v1515_v24 = vadd.f32 %v5002_v32, %v1514_v17  ;;  %v1297_v15 = vmax.f32 %v1228_v31, 0.0 }
 0x508   : > { %v1611_v32 = vmax.f32 %v1515_v24, 0.0 }
 0x509   : > { %v1803_v9 = vpop.f32.mrf.mxu0 }
 0x50a   : > { %v1804_v47 = vadd.f32 %v5082_v59, %v1803_v9  ;;  %v5290_v31 = vpop.f32.mrf.mxu1  ;;  %3917 = vmatmul.msk.bf16.gmra.mxu1 %vm308_vm0, %v4612_v16  ;;  %v5302_v16 = vld [vmem:[%s5943_s3 + $0x5] ss:$0 sm:$0xff] }
 0x50b   : > { %v1229_v42 = vpop.f32.mrf.mxu2 }
 0x50c   : > { %v1926_v2 = vmax.f32 %v1804_v47, 0.0  ;;  %v1230_v37 = vadd.f32 %v5177_v1, %v1229_v42 }
 0x50d   : > { %v1516_v36 = vpop.f32.mrf.mxu3 }
 0x50e   : > { %v1298_v51 = vmax.f32 %v1230_v37, 0.0  ;;  %v1517_v10 = vadd.f32 %v5270_v45, %v1516_v36  ;;  %v5273_v3 = vpack.c.bf16 %v1926_v2, %v1925_v26 }
 0x510   : > { %v1612_v0 = vmax.f32 %v1517_v10, 0.0  ;;  %2283 = vmatmul.bf16.gmra.mxu2 %v5184_v20  ;;  %v1331_v60 = vpack.c.bf16 %v1298_v51, %v1297_v15 }
 0x511   : > { %v1806_v33 = vpop.f32.mrf.mxu0 }
 0x512   : > { %1558 = vmatmul.bf16.gmra.mxu3 %v1331_v60  ;;  %v1654_v25 = vpack.c.bf16 %v1612_v0, %v1611_v32  ;;  %v1807_v12 = vadd.f32 %v5082_v59, %v1806_v33  ;;  %v5296_v15 = vpop.f32.mrf.mxu1 }
 0x513   : > { %v1232_v43 = vpop.f32.mrf.mxu2 }
 0x514   : > { %1845 = vmatmul.bf16.gmra.mxu0 %v1654_v25  ;;  %v1233_v56 = vadd.f32 %v5177_v1, %v1232_v43  ;;  %v1927_v7 = vmax.f32 %v1807_v12, 0.0 }
 0x515   : > { %v1519_v29 = vpop.f32.mrf.mxu3 }
 0x516   : > { %v1520_v20 = vadd.f32 %v5270_v45, %v1519_v29  ;;  %v1299_v6 = vmax.f32 %v1233_v56, 0.0 }
 0x518   : > { %v1613_v47 = vmax.f32 %v1520_v20, 0.0 }
 0x519   : > { %v1808_v13 = vpop.f32.mrf.mxu0 }
 0x51a   : > { %v1809_v61 = vadd.f32 %v5082_v59, %v1808_v13 }
 0x51b   : > { %v1234_v28 = vpop.f32.mrf.mxu2 }
 0x51c   : > { %v1928_v40 = vmax.f32 %v1809_v61, 0.0  ;;  %v1235_v19 = vadd.f32 %v5177_v1, %v1234_v28  ;;  %v5315_v61 = vpop.f32.mrf.mxu1  ;;  %3918 = vmatmul.msk.bf16.gmra.mxu1 %vm308_vm0, %v4626_v34 }
 0x51d   : > { %v1521_v62 = vpop.f32.mrf.mxu3 }
 0x51e   : > { %v1300_v17 = vmax.f32 %v1235_v19, 0.0  ;;  %v1522_v23 = vadd.f32 %v5270_v45, %v1521_v62  ;;  %v5288_v9 = vpack.c.bf16 %v1928_v40, %v1927_v7 }
 0x520   : > { %v1614_v42 = vmax.f32 %v1522_v23, 0.0  ;;  %2288 = vmatmul.bf16.gmra.mxu2 %v5199_v49  ;;  %v1332_v26 = vpack.c.bf16 %v1300_v17, %v1299_v6  ;;  %v4159_v49 = vld [vmem:[%s5942_s2 + $0x188] sm:$0xff]  ;;  %v4169_v17 = vld [vmem:[%s5942_s2 + $0x1d8] sm:$0xff] }
 0x521   : > { %v1811_v24 = vpop.f32.mrf.mxu0  ;;  %2976 = vmatpush.bf16.msra.mxu0 %v4159_v49  ;;  %3306 = vmatpush.bf16.msra.mxu1 %v4169_v17 }
 0x522   : > { %1563 = vmatmul.bf16.gmra.mxu3 %v1332_v26  ;;  %v1655_v1 = vpack.c.bf16 %v1614_v42, %v1613_v47  ;;  %v1812_v36 = vadd.f32 %v5082_v59, %v1811_v24 }
 0x523   : > { %v2249_v2 = vpop.f32.mrf.mxu2 }
 0x524   : > { %1850 = vmatmul.bf16.gmra.mxu0 %v1655_v1  ;;  %v2250_v51 = vadd.f32 %v2249_v2, %v5150_v55  ;;  %v1929_v0 = vmax.f32 %v1812_v36, 0.0  ;;  %v5324_v47 = vpop.f32.mrf.mxu1 }
 0x525   : > { %v1524_v37 = vpop.f32.mrf.mxu3 }
 0x526   : > { %v2411_v33 = vadd.f32 %v5302_v16, %v2250_v51  ;;  %v1525_v25 = vadd.f32 %v5270_v45, %v1524_v37 }
 0x528   : > { %v2475_v28 = vmax.f32 %v2411_v33, 0.0  ;;  %v1615_v7 = vmax.f32 %v1525_v25, 0.0 }
 0x529   : > { %v1813_v10 = vpop.f32.mrf.mxu0 }
 0x52a   : > { %v1814_v32 = vadd.f32 %v5082_v59, %v1813_v10 }
 0x52b   : > { %v2251_v60 = vpop.f32.mrf.mxu2 }
 0x52c   : > { %v1930_v55 = vmax.f32 %v1814_v32, 0.0  ;;  %v2252_v43 = vadd.f32 %v2251_v60, %v5163_v21 }
 0x52d   : > { %v1526_v29 = vpop.f32.mrf.mxu3 }
 0x52e   : > { %v2412_v12 = vadd.f32 %v5302_v16, %v2252_v43  ;;  %v1527_v13 = vadd.f32 %v5270_v45, %v1526_v29  ;;  %v5313_v56 = vpack.c.bf16 %v1930_v55, %v1929_v0 }
 0x530   : > { %v2476_v20 = vmax.f32 %v2412_v12, 0.0  ;;  %v1616_v40 = vmax.f32 %v1527_v13, 0.0  ;;  %2293 = vmatmul.bf16.gmra.mxu2 %v5217_v63 }
 0x531   : > { %v1816_v19 = vpop.f32.mrf.mxu0 }
 0x532   : > { %v2539_v21 = vpack.c.bf16 %v2476_v20, %v2475_v28  ;;  %v1656_v62 = vpack.c.bf16 %v1616_v40, %v1615_v7  ;;  %v1817_v34 = vadd.f32 %v5082_v59, %v1816_v19 }
 0x533   : > { %v2254_v6 = vpop.f32.mrf.mxu2 }
 0x534   : > { %1855 = vmatmul.bf16.gmra.mxu0 %v1656_v62  ;;  %2646 = vmatmul.bf16.vlgmr.msra.gmra.mxu3 %v2539_v21  ;;  %v2255_v42 = vadd.f32 %v2254_v6, %v5171_v44  ;;  %v1931_v24 = vmax.f32 %v1817_v34, 0.0  ;;  %v5335_v44 = vpop.f32.mrf.mxu1 }
 0x535   : > { %v1529_v23 = vpop.f32.mrf.mxu3  ;;  %3919 = vmatmul.msk.bf16.gmra.mxu1 %vm308_vm0, %v4638_v58 }
 0x536   : > { %v2413_v2 = vadd.f32 %v5302_v16, %v2255_v42  ;;  %v1530_v37 = vadd.f32 %v5270_v45, %v1529_v23 }
 0x538   : > { %v2477_v60 = vmax.f32 %v2413_v2, 0.0  ;;  %v1617_v33 = vmax.f32 %v1530_v37, 0.0 }
 0x539   : > { %v1818_v26 = vpop.f32.mrf.mxu0 }
 0x53a   : > { %v1819_v63 = vadd.f32 %v5082_v59, %v1818_v26 }
 0x53b   : > { %v2256_v1 = vpop.f32.mrf.mxu2 }
 0x53c   : > { %v1932_v36 = vmax.f32 %v1819_v63, 0.0  ;;  %v2257_v51 = vadd.f32 %v2256_v1, %v5186_v46  ;;  %v5341_v7 = vpop.f32.mrf.mxu1 }
 0x53d   : > { %v1531_v49 = vpop.f32.mrf.mxu3 }
 0x53e   : > { %v2414_v10 = vadd.f32 %v5302_v16, %v2257_v51  ;;  %v1532_v32 = vadd.f32 %v5270_v45, %v1531_v49  ;;  %v5333_v0 = vpack.c.bf16 %v1932_v36, %v1931_v24 }
 0x540   : > { %v2478_v25 = vmax.f32 %v2414_v10, 0.0  ;;  %v1618_v55 = vmax.f32 %v1532_v32, 0.0  ;;  %2298 = vmatmul.bf16.gmra.mxu2 %v5235_v27 }
 0x541   : > { %v1821_v43 = vpop.f32.mrf.mxu0 }
 0x542   : > { %v1657_v46 = vpack.c.bf16 %v1618_v55, %v1617_v33  ;;  %v2540_v29 = vpack.c.bf16 %v2478_v25, %v2477_v60  ;;  %v1822_v28 = vadd.f32 %v5082_v59, %v1821_v43 }
 0x543   : > { %v2259_v12 = vpop.f32.mrf.mxu2 }
 0x544   : > { %1860 = vmatmul.bf16.gmra.mxu0 %v1657_v46  ;;  %2651 = vmatmul.bf16.gmra.mxu3 %v2540_v29  ;;  %v2260_v20 = vadd.f32 %v2259_v12, %v5191_v5  ;;  %v1933_v19 = vmax.f32 %v1822_v28, 0.0  ;;  %v5352_v5 = vpop.f32.mrf.mxu1 }
 0x545   : > { %v1534_v13 = vpop.f32.mrf.mxu3  ;;  %3920 = vmatmul.msk.bf16.gmra.mxu1 %vm308_vm0, %v4650_v22 }
 0x546   : > { %v2415_v27 = vadd.f32 %v5302_v16, %v2260_v20  ;;  %v1535_v62 = vadd.f32 %v5270_v45, %v1534_v13 }
 0x548   : > { %v2479_v63 = vmax.f32 %v2415_v27, 0.0  ;;  %v1619_v24 = vmax.f32 %v1535_v62, 0.0 }
 0x549   : > { %v1823_v58 = vpop.f32.mrf.mxu0 }
 0x54a   : > { %v1824_v40 = vadd.f32 %v5082_v59, %v1823_v58 }
 0x54b   : > { %v2261_v21 = vpop.f32.mrf.mxu2 }
 0x54c   : > { %v1934_v6 = vmax.f32 %v1824_v40, 0.0  ;;  %v2262_v17 = vadd.f32 %v2261_v21, %v5201_v52  ;;  %v5358_v32 = vpop.f32.mrf.mxu1 }
 0x54d   : > { %v1536_v23 = vpop.f32.mrf.mxu3 }
 0x54e   : > { %v2416_v34 = vadd.f32 %v5302_v16, %v2262_v17  ;;  %v1537_v42 = vadd.f32 %v5270_v45, %v1536_v23  ;;  %v5350_v26 = vpack.c.bf16 %v1934_v6, %v1933_v19 }
 0x550   : > { %v2480_v1 = vmax.f32 %v2416_v34, 0.0  ;;  %v1620_v2 = vmax.f32 %v1537_v42, 0.0  ;;  %2303 = vmatmul.bf16.gmra.mxu2 %v5253_v35 }
 0x551   : > { %v1826_v37 = vpop.f32.mrf.mxu0 }
 0x552   : > { %v1658_v52 = vpack.c.bf16 %v1620_v2, %v1619_v24  ;;  %v2541_v36 = vpack.c.bf16 %v2480_v1, %v2479_v63  ;;  %v1827_v10 = vadd.f32 %v5082_v59, %v1826_v37 }
 0x553   : > { %v2264_v51 = vpop.f32.mrf.mxu2 }
 0x554   : > { %1865 = vmatmul.bf16.gmra.mxu0 %v1658_v52  ;;  %2656 = vmatmul.bf16.gmra.mxu3 %v2541_v36  ;;  %v2265_v60 = vadd.f32 %v2264_v51, %v5209_v41  ;;  %v1935_v25 = vmax.f32 %v1827_v10, 0.0  ;;  %v5369_v41 = vpop.f32.mrf.mxu1 }
 0x555   : > { %v1539_v49 = vpop.f32.mrf.mxu3  ;;  %3921 = vmatmul.msk.bf16.gmra.mxu1 %vm308_vm0, %v4662_v50  ;;  %v4158_v50 = vld [vmem:[%s5942_s2 + $0x180] sm:$0xff] }
 0x556   : > { %v2417_v35 = vadd.f32 %v5302_v16, %v2265_v60  ;;  %v1540_v43 = vadd.f32 %v5270_v45, %v1539_v49  ;;  %2977 = vmatpush.bf16.msra.mxu0 %v4158_v50 }
 0x558   : > { %v2481_v58 = vmax.f32 %v2417_v35, 0.0  ;;  %v1621_v40 = vmax.f32 %v1540_v43, 0.0 }
 0x559   : > { %v1828_v22 = vpop.f32.mrf.mxu0 }
 0x55a   : > { %v1829_v33 = vadd.f32 %v5082_v59, %v1828_v22 }
 0x55b   : > { %v2266_v55 = vpop.f32.mrf.mxu2 }
 0x55c   : > { %v1936_v46 = vmax.f32 %v1829_v33, 0.0  ;;  %v2267_v29 = vadd.f32 %v2266_v55, %v5219_v39  ;;  %v5375_v34 = vpop.f32.mrf.mxu1 }
 0x55d   : > { %v1541_v12 = vpop.f32.mrf.mxu3 }
 0x55e   : > { %v2418_v13 = vadd.f32 %v5302_v16, %v2267_v29  ;;  %v1542_v28 = vadd.f32 %v5270_v45, %v1541_v12  ;;  %v5367_v20 = vpack.c.bf16 %v1936_v46, %v1935_v25  ;;  %v4168_v46 = vld [vmem:[%s5942_s2 + $0x1d0] sm:$0xff] }
 0x55f   : > { %3307 = vmatpush.bf16.msra.mxu1 %v4168_v46 }
 0x560   : > { %v2482_v19 = vmax.f32 %v2418_v13, 0.0  ;;  %v1622_v21 = vmax.f32 %v1542_v28, 0.0  ;;  %2308 = vmatmul.bf16.gmra.mxu2 %v5273_v3 }
 0x561   : > { %v1831_v27 = vpop.f32.mrf.mxu0 }
 0x562   : > { %v1659_v39 = vpack.c.bf16 %v1622_v21, %v1621_v40  ;;  %v2542_v62 = vpack.c.bf16 %v2482_v19, %v2481_v58  ;;  %v1832_v23 = vadd.f32 %v5082_v59, %v1831_v27 }
 0x563   : > { %v2269_v6 = vpop.f32.mrf.mxu2 }
 0x564   : > { %1870 = vmatmul.bf16.gmra.mxu0 %v1659_v39  ;;  %2661 = vmatmul.bf16.gmra.mxu3 %v2542_v62  ;;  %v2270_v42 = vadd.f32 %v2269_v6, %v5224_v48  ;;  %v1937_v24 = vmax.f32 %v1832_v23, 0.0  ;;  %v5389_v60 = vpop.f32.mrf.mxu1 }
 0x565   : > { %v1544_v17 = vpop.f32.mrf.mxu3  ;;  %3922 = vmatmul.msk.bf16.gmra.mxu1 %vm308_vm0, %v4673_v11  ;;  %v5400_v11 = vld [vmem:[%s5943_s3 + $0x4] ss:$0 sm:$0xff] }
 0x566   : > { %v2419_v2 = vadd.f32 %v5302_v16, %v2270_v42  ;;  %v1545_v37 = vadd.f32 %v5270_v45, %v1544_v17 }
 0x568   : > { %v1623_v22 = vmax.f32 %v1545_v37, 0.0 }
 0x569   : > { %v1833_v63 = vpop.f32.mrf.mxu0 }
 0x56a   : > { %v1834_v3 = vadd.f32 %v5082_v59, %v1833_v63  ;;  %v2483_v59 = vmax.f32 %v2419_v2, 0.0 }
 0x56b   : > { %v2271_v1 = vpop.f32.mrf.mxu2 }
 0x56c   : > { %v1938_v52 = vmax.f32 %v1834_v3, 0.0  ;;  %v2272_v36 = vadd.f32 %v2271_v1, %v5237_v18 }
 0x56d   : > { %v1546_v51 = vpop.f32.mrf.mxu3 }
 0x56e   : > { %v2420_v48 = vadd.f32 %v5302_v16, %v2272_v36  ;;  %v1547_v49 = vadd.f32 %v5270_v45, %v1546_v51  ;;  %v5387_v10 = vpack.c.bf16 %v1938_v52, %v1937_v24 }
 0x570   : > { %v2484_v33 = vmax.f32 %v2420_v48, 0.0  ;;  %v1624_v25 = vmax.f32 %v1547_v49, 0.0  ;;  %2313 = vmatmul.bf16.gmra.mxu2 %v5288_v9  ;;  %v5403_v9 = vpop.f32.mrf.mxu1 }
 0x571   : > { %v1836_v55 = vpop.f32.mrf.mxu0 }
 0x572   : > { %v1660_v18 = vpack.c.bf16 %v1624_v25, %v1623_v22  ;;  %v2543_v35 = vpack.c.bf16 %v2484_v33, %v2483_v59  ;;  %v1837_v12 = vadd.f32 %v5400_v11, %v1836_v55 }
 0x573   : > { %v2274_v43 = vpop.f32.mrf.mxu2 }
 0x574   : > { %1875 = vmatmul.bf16.gmra.mxu0 %v1660_v18  ;;  %2666 = vmatmul.bf16.gmra.mxu3 %v2543_v35  ;;  %v2275_v13 = vadd.f32 %v2274_v43, %v5245_v54  ;;  %v1939_v40 = vmax.f32 %v1837_v12, 0.0 }
 0x575   : > { %v1549_v29 = vpop.f32.mrf.mxu3 }
 0x576   : > { %v2421_v21 = vadd.f32 %v5302_v16, %v2275_v13  ;;  %v1550_v27 = vadd.f32 %v5270_v45, %v1549_v29 }
 0x578   : > { %v5414_v54 = vpop.f32.mrf.mxu1  ;;  %3923 = vmatmul.msk.bf16.gmra.mxu1 %vm308_vm0, %v4681_v30  ;;  %v2485_v50 = vmax.f32 %v2421_v21, 0.0  ;;  %v1625_v63 = vmax.f32 %v1550_v27, 0.0 }
 0x579   : > { %v1838_v28 = vpop.f32.mrf.mxu0 }
 0x57a   : > { %v1839_v58 = vadd.f32 %v5400_v11, %v1838_v28 }
 0x57b   : > { %v2276_v19 = vpop.f32.mrf.mxu2 }
 0x57c   : > { %v1940_v39 = vmax.f32 %v1839_v58, 0.0  ;;  %v2277_v62 = vadd.f32 %v2276_v19, %v5255_v57 }
 0x57d   : > { %v1551_v6 = vpop.f32.mrf.mxu3 }
 0x57e   : > { %v2422_v17 = vadd.f32 %v5302_v16, %v2277_v62  ;;  %v1552_v23 = vadd.f32 %v5270_v45, %v1551_v6  ;;  %v5412_v42 = vpack.c.bf16 %v1940_v39, %v1939_v40 }
 0x580   : > { %v2486_v3 = vmax.f32 %v2422_v17, 0.0  ;;  %v1626_v24 = vmax.f32 %v1552_v23, 0.0  ;;  %2318 = vmatmul.bf16.gmra.mxu2 %v5313_v56  ;;  %v5420_v51 = vpop.f32.mrf.mxu1 }
 0x581   : > { %v1841_v1 = vpop.f32.mrf.mxu0 }
 0x582   : > { %v1661_v57 = vpack.c.bf16 %v1626_v24, %v1625_v63  ;;  %v2544_v2 = vpack.c.bf16 %v2486_v3, %v2485_v50  ;;  %v1842_v36 = vadd.f32 %v5400_v11, %v1841_v1 }
 0x583   : > { %v2279_v37 = vpop.f32.mrf.mxu2 }
 0x584   : > { %1880 = vmatmul.bf16.gmra.mxu0 %v1661_v57  ;;  %2671 = vmatmul.bf16.gmra.mxu3 %v2544_v2  ;;  %v2280_v48 = vadd.f32 %v2279_v37, %v5260_v8  ;;  %v1941_v59 = vmax.f32 %v1842_v36, 0.0 }
 0x585   : > { %v1554_v52 = vpop.f32.mrf.mxu3 }
 0x586   : > { %v2423_v56 = vadd.f32 %v5302_v16, %v2280_v48  ;;  %v1555_v33 = vadd.f32 %v5270_v45, %v1554_v52 }
 0x588   : > { %v5431_v8 = vpop.f32.mrf.mxu1  ;;  %3924 = vmatmul.msk.bf16.gmra.mxu1 %vm308_vm0, %v4692_v53  ;;  %v2487_v29 = vmax.f32 %v2423_v56, 0.0  ;;  %v1627_v12 = vmax.f32 %v1555_v33, 0.0 }
 0x589   : > { %v1843_v30 = vpop.f32.mrf.mxu0 }
 0x58a   : > { %v1844_v49 = vadd.f32 %v5400_v11, %v1843_v30 }
 0x58b   : > { %v2281_v22 = vpop.f32.mrf.mxu2 }
 0x58c   : > { %v1942_v25 = vmax.f32 %v1844_v49, 0.0  ;;  %v2282_v55 = vadd.f32 %v2281_v22, %v5275_v4 }
 0x58d   : > { %v1556_v18 = vpop.f32.mrf.mxu3 }
 0x58e   : > { %v2424_v35 = vadd.f32 %v5302_v16, %v2282_v55  ;;  %v1557_v43 = vadd.f32 %v5270_v45, %v1556_v18  ;;  %v5429_v46 = vpack.c.bf16 %v1942_v25, %v1941_v59 }
 0x590   : > { %v2488_v13 = vmax.f32 %v2424_v35, 0.0  ;;  %v1628_v28 = vmax.f32 %v1557_v43, 0.0  ;;  %2323 = vmatmul.bf16.gmra.mxu2 %v5333_v0  ;;  %v5437_v39 = vpop.f32.mrf.mxu1 }
 0x591   : > { %v1846_v58 = vpop.f32.mrf.mxu0 }
 0x592   : > { %v1662_v4 = vpack.c.bf16 %v1628_v28, %v1627_v12  ;;  %v2545_v40 = vpack.c.bf16 %v2488_v13, %v2487_v29  ;;  %v1847_v27 = vadd.f32 %v5400_v11, %v1846_v58 }
 0x593   : > { %v2284_v19 = vpop.f32.mrf.mxu2 }
 0x594   : > { %1885 = vmatmul.bf16.gmra.mxu0 %v1662_v4  ;;  %2676 = vmatmul.bf16.gmra.mxu3 %v2545_v40  ;;  %v2285_v62 = vadd.f32 %v2284_v19, %v5280_v38  ;;  %v1943_v17 = vmax.f32 %v1847_v27, 0.0  ;;  %v5953_v40 = vld [vmem:[#allocation2_spill] sm:$0xff] }
 0x595   : > { %v1559_v21 = vpop.f32.mrf.mxu3 }
 0x596   : > { %v2425_v0 = vadd.f32 %v5302_v16, %v2285_v62  ;;  %v1560_v50 = vadd.f32 %v5270_v45, %v1559_v21 }
 0x598   : > { %v5448_v38 = vpop.f32.mrf.mxu1  ;;  %3925 = vmatmul.msk.bf16.gmra.mxu1 %vm308_vm0, %v4700_v14  ;;  %v2489_v37 = vmax.f32 %v2425_v0, 0.0  ;;  %v1629_v52 = vmax.f32 %v1560_v50, 0.0 }
 0x599   : > { %v1848_v53 = vpop.f32.mrf.mxu0 }
 0x59a   : > { %v1849_v6 = vadd.f32 %v5400_v11, %v1848_v53 }
 0x59b   : > { %v2286_v23 = vpop.f32.mrf.mxu2 }
 0x59c   : > { %v1944_v63 = vmax.f32 %v1849_v6, 0.0  ;;  %v2287_v3 = vadd.f32 %v2286_v23, %v5290_v31 }
 0x59d   : > { %v1561_v24 = vpop.f32.mrf.mxu3 }
 0x59e   : > { %v2426_v1 = vadd.f32 %v5302_v16, %v2287_v3  ;;  %v1562_v57 = vadd.f32 %v5270_v45, %v1561_v24  ;;  %v5446_v2 = vpack.c.bf16 %v1944_v63, %v1943_v17 }
 0x5a0   : > { %v2490_v36 = vmax.f32 %v2426_v1, 0.0  ;;  %v1630_v48 = vmax.f32 %v1562_v57, 0.0  ;;  %2328 = vmatmul.bf16.gmra.mxu2 %v5350_v26  ;;  %v5454_v33 = vpop.f32.mrf.mxu1 }
 0x5a1   : > { %v1851_v30 = vpop.f32.mrf.mxu0 }
 0x5a2   : > { %v1663_v31 = vpack.c.bf16 %v1630_v48, %v1629_v52  ;;  %v2546_v49 = vpack.c.bf16 %v2490_v36, %v2489_v37  ;;  %v1852_v56 = vadd.f32 %v5400_v11, %v1851_v30 }
 0x5a3   : > { %v2289_v59 = vpop.f32.mrf.mxu2 }
 0x5a4   : > { %1890 = vmatmul.bf16.gmra.mxu0 %v1663_v31  ;;  %2681 = vmatmul.bf16.gmra.mxu3 %v2546_v49  ;;  %v2290_v25 = vadd.f32 %v2289_v59, %v5296_v15  ;;  %v1945_v18 = vmax.f32 %v1852_v56, 0.0  ;;  %v5954_v59 = vld [vmem:[#allocation3_spill] sm:$0xff] }
 0x5a5   : > { %v1564_v22 = vpop.f32.mrf.mxu3 }
 0x5a6   : > { %v2427_v26 = vadd.f32 %v5302_v16, %v2290_v25  ;;  %v1565_v43 = vadd.f32 %v5270_v45, %v1564_v22 }
 0x5a8   : > { %v5465_v15 = vpop.f32.mrf.mxu1  ;;  %3926 = vmatmul.msk.bf16.gmra.mxu1 %vm308_vm0, %v5953_v40  ;;  %v2491_v19 = vmax.f32 %v2427_v26, 0.0  ;;  %v1631_v21 = vmax.f32 %v1565_v43, 0.0 }
 0x5a9   : > { %v1853_v14 = vpop.f32.mrf.mxu0 }
 0x5aa   : > { %v1854_v55 = vadd.f32 %v5400_v11, %v1853_v14 }
 0x5ab   : > { %v2291_v35 = vpop.f32.mrf.mxu2 }
 0x5ac   : > { %v1946_v29 = vmax.f32 %v1854_v55, 0.0  ;;  %v2292_v12 = vadd.f32 %v2291_v35, %v5315_v61 }
 0x5ad   : > { %v1566_v13 = vpop.f32.mrf.mxu3 }
 0x5ae   : > { %v2428_v28 = vadd.f32 %v5302_v16, %v2292_v12  ;;  %v1567_v58 = vadd.f32 %v5270_v45, %v1566_v13  ;;  %v5463_v4 = vpack.c.bf16 %v1946_v29, %v1945_v18  ;;  %v4167_v45 = vld [vmem:[%s5942_s2 + $0x1c8] sm:$0xff] }
 0x5af   : > { %3308 = vmatpush.bf16.msra.mxu1 %v4167_v45 }
 0x5b0   : > { %v2492_v27 = vmax.f32 %v2428_v28, 0.0  ;;  %v1632_v62 = vmax.f32 %v1567_v58, 0.0  ;;  %2333 = vmatmul.bf16.gmra.mxu2 %v5367_v20  ;;  %v5473_v0 = vpop.f32.mrf.mxu1  ;;  %v5480_v20 = vld [vmem:[%s5943_s3 + $0x6] ss:$0 sm:$0xff] }
 0x5b1   : > { %v1856_v53 = vpop.f32.mrf.mxu0 }
 0x5b2   : > { %v1664_v61 = vpack.c.bf16 %v1632_v62, %v1631_v21  ;;  %v2547_v6 = vpack.c.bf16 %v2492_v27, %v2491_v19  ;;  %v1857_v50 = vadd.f32 %v5400_v11, %v1856_v53 }
 0x5b3   : > { %v2294_v17 = vpop.f32.mrf.mxu2 }
 0x5b4   : > { %1895 = vmatmul.bf16.gmra.mxu0 %v1664_v61  ;;  %2686 = vmatmul.bf16.gmra.mxu3 %v2547_v6  ;;  %v2295_v63 = vadd.f32 %v2294_v17, %v5324_v47  ;;  %v1947_v57 = vmax.f32 %v1857_v50, 0.0 }
 0x5b6   : > { %v2429_v37 = vadd.f32 %v5302_v16, %v2295_v63 }
 0x5b7   : > { %v2647_v23 = vpop.f32.mrf.mxu3 }
 0x5b8   : > { %v2648_v48 = vadd.f32 %v5480_v20, %v2647_v23  ;;  %v5489_v49 = vpop.f32.mrf.mxu1  ;;  %3927 = vmatmul.msk.bf16.gmra.mxu1 %vm308_vm0, %v5954_v59  ;;  %v2493_v22 = vmax.f32 %v2429_v37, 0.0 }
 0x5b9   : > { %v1858_v3 = vpop.f32.mrf.mxu0 }
 0x5ba   : > { %v1859_v24 = vadd.f32 %v5400_v11, %v1858_v3 }
 0x5bb   : > { %v2296_v1 = vpop.f32.mrf.mxu2 }
 0x5bc   : > { %v1948_v52 = vmax.f32 %v1859_v24, 0.0  ;;  %v2297_v36 = vadd.f32 %v2296_v1, %v5335_v44  ;;  %v2807_v44 = vmax.f32 %v2648_v48, 0.0 }
 0x5be   : > { %v2430_v30 = vadd.f32 %v5302_v16, %v2297_v36  ;;  %v5487_v47 = vpack.c.bf16 %v1948_v52, %v1947_v57 }
 0x5bf   : > { %v2649_v31 = vpop.f32.mrf.mxu3 }
 0x5c0   : > { %v2494_v56 = vmax.f32 %v2430_v30, 0.0  ;;  %v2650_v25 = vadd.f32 %v5480_v20, %v2649_v31  ;;  %2338 = vmatmul.bf16.gmra.mxu2 %v5387_v10  ;;  %v5495_v29 = vpop.f32.mrf.mxu1 }
 0x5c1   : > { %v1861_v14 = vpop.f32.mrf.mxu0 }
 0x5c2   : > { %v2808_v55 = vmax.f32 %v2650_v25, 0.0  ;;  %v2548_v18 = vpack.c.bf16 %v2494_v56, %v2493_v22  ;;  %v1862_v12 = vadd.f32 %v5400_v11, %v1861_v14 }
 0x5c3   : > { %v2299_v35 = vpop.f32.mrf.mxu2 }
 0x5c4   : > { %v2871_v26 = vpack.c.bf16 %v2808_v55, %v2807_v44  ;;  %2691 = vmatmul.bf16.gmra.mxu3 %v2548_v18  ;;  %v2300_v13 = vadd.f32 %v2299_v35, %v5341_v7  ;;  %v1949_v10 = vmax.f32 %v1862_v12, 0.0  ;;  %v5955_v7 = vld [vmem:[#allocation4_spill] sm:$0xff] }
 0x5c6   : > { %2978 = vmatmul.bf16.vlgmr.msra.gmra.mxu0 %v2871_v26  ;;  %v2431_v19 = vadd.f32 %v5302_v16, %v2300_v13 }
 0x5c7   : > { %v2652_v43 = vpop.f32.mrf.mxu3 }
 0x5c8   : > { %v2653_v62 = vadd.f32 %v5480_v20, %v2652_v43  ;;  %v5506_v17 = vpop.f32.mrf.mxu1  ;;  %3928 = vmatmul.msk.bf16.gmra.mxu1 %vm308_vm0, %v5955_v7  ;;  %v2495_v45 = vmax.f32 %v2431_v19, 0.0 }
 0x5c9   : > { %v1863_v28 = vpop.f32.mrf.mxu0 }
 0x5ca   : > { %v1864_v58 = vadd.f32 %v5400_v11, %v1863_v28 }
 0x5cb   : > { %v2301_v40 = vpop.f32.mrf.mxu2 }
 0x5cc   : > { %v1950_v21 = vmax.f32 %v1864_v58, 0.0  ;;  %v2302_v27 = vadd.f32 %v2301_v40, %v5352_v5  ;;  %v2809_v5 = vmax.f32 %v2653_v62, 0.0 }
 0x5ce   : > { %v2432_v53 = vadd.f32 %v5302_v16, %v2302_v27  ;;  %v5504_v61 = vpack.c.bf16 %v1950_v21, %v1949_v10 }
 0x5cf   : > { %v2654_v6 = vpop.f32.mrf.mxu3 }
 0x5d0   : > { %v2496_v23 = vmax.f32 %v2432_v53, 0.0  ;;  %v2655_v50 = vadd.f32 %v5480_v20, %v2654_v6  ;;  %2343 = vmatmul.bf16.gmra.mxu2 %v5412_v42  ;;  %v5512_v52 = vpop.f32.mrf.mxu1 }
 0x5d1   : > { %v1866_v63 = vpop.f32.mrf.mxu0 }
 0x5d2   : > { %v2810_v3 = vmax.f32 %v2655_v50, 0.0  ;;  %v2549_v24 = vpack.c.bf16 %v2496_v23, %v2495_v45  ;;  %v1867_v36 = vadd.f32 %v5400_v11, %v1866_v63 }
 0x5d3   : > { %v2304_v1 = vpop.f32.mrf.mxu2 }
 0x5d4   : > { %2696 = vmatmul.bf16.gmra.mxu3 %v2549_v24  ;;  %v2872_v57 = vpack.c.bf16 %v2810_v3, %v2809_v5  ;;  %v2305_v48 = vadd.f32 %v2304_v1, %v5358_v32  ;;  %v1951_v42 = vmax.f32 %v1867_v36, 0.0  ;;  %v5956_v32 = vld [vmem:[#allocation5_spill] sm:$0xff] }
 0x5d6   : > { %2983 = vmatmul.bf16.gmra.mxu0 %v2872_v57  ;;  %v2433_v22 = vadd.f32 %v5302_v16, %v2305_v48 }
 0x5d7   : > { %v2657_v37 = vpop.f32.mrf.mxu3 }
 0x5d8   : > { %v2658_v14 = vadd.f32 %v5480_v20, %v2657_v37  ;;  %v5523_v35 = vpop.f32.mrf.mxu1  ;;  %3929 = vmatmul.msk.bf16.gmra.mxu1 %vm308_vm0, %v5956_v32  ;;  %v2497_v26 = vmax.f32 %v2433_v22, 0.0 }
 0x5d9   : > { %v1868_v30 = vpop.f32.mrf.mxu0 }
 0x5da   : > { %v1869_v31 = vadd.f32 %v5400_v11, %v1868_v30 }
 0x5db   : > { %v2306_v59 = vpop.f32.mrf.mxu2 }
 0x5dc   : > { %v1952_v56 = vmax.f32 %v1869_v31, 0.0  ;;  %v2307_v25 = vadd.f32 %v2306_v59, %v5369_v41  ;;  %v2811_v41 = vmax.f32 %v2658_v14, 0.0 }
 0x5de   : > { %v2434_v44 = vadd.f32 %v5302_v16, %v2307_v25  ;;  %v5521_v55 = vpack.c.bf16 %v1952_v56, %v1951_v42  ;;  %v4166_v42 = vld [vmem:[%s5942_s2 + $0x1c0] sm:$0xff] }
 0x5df   : > { %v2659_v18 = vpop.f32.mrf.mxu3  ;;  %3309 = vmatpush.bf16.msra.mxu1 %v4166_v42 }
 0x5e0   : > { %v2498_v43 = vmax.f32 %v2434_v44, 0.0  ;;  %v2660_v12 = vadd.f32 %v5480_v20, %v2659_v18  ;;  %2348 = vmatmul.bf16.gmra.mxu2 %v5429_v46  ;;  %v5529_v21 = vpop.f32.mrf.mxu1 }
 0x5e1   : > { %v1871_v13 = vpop.f32.mrf.mxu0 }
 0x5e2   : > { %v2812_v28 = vmax.f32 %v2660_v12, 0.0  ;;  %v2550_v58 = vpack.c.bf16 %v2498_v43, %v2497_v26  ;;  %v1872_v27 = vadd.f32 %v5400_v11, %v1871_v13 }
 0x5e3   : > { %v2309_v40 = vpop.f32.mrf.mxu2 }
 0x5e4   : > { %2701 = vmatmul.bf16.gmra.mxu3 %v2550_v58  ;;  %v2873_v10 = vpack.c.bf16 %v2812_v28, %v2811_v41  ;;  %v2310_v62 = vadd.f32 %v2309_v40, %v5375_v34  ;;  %v1953_v46 = vmax.f32 %v1872_v27, 0.0 }
 0x5e6   : > { %2988 = vmatmul.bf16.gmra.mxu0 %v2873_v10  ;;  %v2435_v45 = vadd.f32 %v5302_v16, %v2310_v62 }
 0x5e7   : > { %v2662_v19 = vpop.f32.mrf.mxu3 }
 0x5e8   : > { %v2663_v63 = vadd.f32 %v5480_v20, %v2662_v19  ;;  %v5540_v1 = vpop.f32.mrf.mxu1  ;;  %v2499_v34 = vmax.f32 %v2435_v45, 0.0 }
 0x5e9   : > { %v1873_v53 = vpop.f32.mrf.mxu0 }
 0x5ea   : > { %v1874_v6 = vadd.f32 %v5400_v11, %v1873_v53  ;;  %v2813_v48 = vmax.f32 %v2663_v63, 0.0 }
 0x5eb   : > { %v2311_v7 = vpop.f32.mrf.mxu2 }
 0x5ec   : > { %v1954_v23 = vmax.f32 %v1874_v6, 0.0  ;;  %v2312_v50 = vadd.f32 %v2311_v7, %v5389_v60 }
 0x5ee   : > { %v2436_v5 = vadd.f32 %v5302_v16, %v2312_v50  ;;  %v5538_v3 = vpack.c.bf16 %v1954_v23, %v1953_v46 }
 0x5ef   : > { %v2664_v24 = vpop.f32.mrf.mxu3 }
 0x5f0   : > { %v2500_v57 = vmax.f32 %v2436_v5, 0.0  ;;  %v2665_v37 = vadd.f32 %v5480_v20, %v2664_v24  ;;  %2353 = vmatmul.bf16.gmra.mxu2 %v5446_v2  ;;  %v5547_v56 = vpop.f32.mrf.mxu1 }
 0x5f1   : > { %v1876_v36 = vpop.f32.mrf.mxu0 }
 0x5f2   : > { %v2814_v30 = vmax.f32 %v2665_v37, 0.0  ;;  %v2551_v31 = vpack.c.bf16 %v2500_v57, %v2499_v34  ;;  %v1877_v25 = vadd.f32 %v5400_v11, %v1876_v36 }
 0x5f3   : > { %v2314_v60 = vpop.f32.mrf.mxu2 }
 0x5f4   : > { %2706 = vmatmul.bf16.gmra.mxu3 %v2551_v31  ;;  %v2874_v59 = vpack.c.bf16 %v2814_v30, %v2813_v48  ;;  %v2315_v2 = vadd.f32 %v2314_v60, %v5403_v9  ;;  %v1955_v32 = vmax.f32 %v1877_v25, 0.0 }
 0x5f6   : > { %2993 = vmatmul.bf16.gmra.mxu0 %v2874_v59  ;;  %v2437_v26 = vadd.f32 %v5302_v16, %v2315_v2 }
 0x5f7   : > { %v2667_v22 = vpop.f32.mrf.mxu3 }
 0x5f8   : > { %v2668_v13 = vadd.f32 %v5480_v20, %v2667_v22  ;;  %v5558_v40 = vpop.f32.mrf.mxu1  ;;  %v2501_v9 = vmax.f32 %v2437_v26, 0.0 }
 0x5f9   : > { %v1878_v14 = vpop.f32.mrf.mxu0 }
 0x5fa   : > { %v1879_v44 = vadd.f32 %v5400_v11, %v1878_v14  ;;  %v2815_v62 = vmax.f32 %v2668_v13, 0.0 }
 0x5fb   : > { %v2316_v18 = vpop.f32.mrf.mxu2 }
 0x5fc   : > { %v1956_v43 = vmax.f32 %v1879_v44, 0.0  ;;  %v2317_v12 = vadd.f32 %v2316_v18, %v5414_v54 }
 0x5fe   : > { %v2438_v41 = vadd.f32 %v5302_v16, %v2317_v12  ;;  %v5556_v28 = vpack.c.bf16 %v1956_v43, %v1955_v32 }
 0x5ff   : > { %v2669_v58 = vpop.f32.mrf.mxu3 }
 0x600   : > { %v2502_v10 = vmax.f32 %v2438_v41, 0.0  ;;  %v2670_v19 = vadd.f32 %v5480_v20, %v2669_v58  ;;  %2358 = vmatmul.bf16.gmra.mxu2 %v5463_v4  ;;  %v5564_v50 = vpop.f32.mrf.mxu1 }
 0x601   : > { %v1881_v27 = vpop.f32.mrf.mxu0 }
 0x602   : > { %v2816_v53 = vmax.f32 %v2670_v19, 0.0  ;;  %v2552_v6 = vpack.c.bf16 %v2502_v10, %v2501_v9  ;;  %v1882_v45 = vadd.f32 %v5400_v11, %v1881_v27 }
 0x603   : > { %v2319_v54 = vpop.f32.mrf.mxu2 }
 0x604   : > { %2711 = vmatmul.bf16.gmra.mxu3 %v2552_v6  ;;  %v2875_v7 = vpack.c.bf16 %v2816_v53, %v2815_v62  ;;  %v2320_v23 = vadd.f32 %v2319_v54, %v5420_v51  ;;  %v1957_v4 = vmax.f32 %v1882_v45, 0.0 }
 0x606   : > { %2998 = vmatmul.bf16.gmra.mxu0 %v2875_v7  ;;  %v2439_v34 = vadd.f32 %v5302_v16, %v2320_v23 }
 0x607   : > { %v2672_v46 = vpop.f32.mrf.mxu3 }
 0x608   : > { %v2673_v36 = vadd.f32 %v5480_v20, %v2672_v46  ;;  %v2503_v51 = vmax.f32 %v2439_v34, 0.0  ;;  %v5575_v14 = vpop.f32.mrf.mxu1 }
 0x609   : > { %v1883_v63 = vpop.f32.mrf.mxu0 }
 0x60a   : > { %v1884_v5 = vadd.f32 %v5400_v11, %v1883_v63  ;;  %v2817_v22 = vmax.f32 %v2673_v36, 0.0 }
 0x60b   : > { %v2321_v24 = vpop.f32.mrf.mxu2 }
 0x60c   : > { %v1958_v57 = vmax.f32 %v1884_v5, 0.0  ;;  %v2322_v37 = vadd.f32 %v2321_v24, %v5431_v8 }
 0x60e   : > { %v2440_v48 = vadd.f32 %v5302_v16, %v2322_v37  ;;  %v5571_v30 = vpack.c.bf16 %v1958_v57, %v1957_v4 }
 0x60f   : > { %v2674_v31 = vpop.f32.mrf.mxu3 }
 0x610   : > { %v2504_v60 = vmax.f32 %v2440_v48, 0.0  ;;  %v2675_v59 = vadd.f32 %v5480_v20, %v2674_v31  ;;  %2363 = vmatmul.bf16.gmra.mxu2 %v5487_v47  ;;  %v5582_v10 = vpop.f32.mrf.mxu1 }
 0x611   : > { %v1886_v42 = vpop.f32.mrf.mxu0 }
 0x612   : > { %v2818_v25 = vmax.f32 %v2675_v59, 0.0  ;;  %v2553_v2 = vpack.c.bf16 %v2504_v60, %v2503_v51  ;;  %v1887_v32 = vadd.f32 %v5400_v11, %v1886_v42 }
 0x613   : > { %v2324_v8 = vpop.f32.mrf.mxu2 }
 0x614   : > { %2716 = vmatmul.bf16.gmra.mxu3 %v2553_v2  ;;  %v2876_v44 = vpack.c.bf16 %v2818_v25, %v2817_v22  ;;  %v2325_v26 = vadd.f32 %v2324_v8, %v5437_v39  ;;  %v1959_v47 = vmax.f32 %v1887_v32, 0.0 }
 0x616   : > { %3003 = vmatmul.bf16.gmra.mxu0 %v2876_v44  ;;  %v2441_v41 = vadd.f32 %v5302_v16, %v2325_v26 }
 0x617   : > { %v2677_v18 = vpop.f32.mrf.mxu3 }
 0x618   : > { %v2678_v19 = vadd.f32 %v5480_v20, %v2677_v18  ;;  %v2505_v39 = vmax.f32 %v2441_v41, 0.0  ;;  %v5590_v5 = vpop.f32.mrf.mxu1 }
 0x619   : > { %v1888_v43 = vpop.f32.mrf.mxu0 }
 0x61a   : > { %v1889_v12 = vadd.f32 %v5400_v11, %v1888_v43  ;;  %v2819_v46 = vmax.f32 %v2678_v19, 0.0 }
 0x61b   : > { %v2326_v13 = vpop.f32.mrf.mxu2 }
 0x61c   : > { %v1960_v58 = vmax.f32 %v1889_v12, 0.0  ;;  %v2327_v9 = vadd.f32 %v2326_v13, %v5448_v38 }
 0x61e   : > { %v2442_v27 = vadd.f32 %v5302_v16, %v2327_v9  ;;  %v5586_v62 = vpack.c.bf16 %v1960_v58, %v1959_v47 }
 0x61f   : > { %v2679_v53 = vpop.f32.mrf.mxu3 }
 0x620   : > { %v2506_v6 = vmax.f32 %v2442_v27, 0.0  ;;  %v2680_v54 = vadd.f32 %v5480_v20, %v2679_v53  ;;  %2368 = vmatmul.bf16.gmra.mxu2 %v5504_v61  ;;  %v5603_v8 = vpop.f32.mrf.mxu1 }
 0x621   : > { %v1891_v7 = vpop.f32.mrf.mxu0 }
 0x622   : > { %v2820_v45 = vmax.f32 %v2680_v54, 0.0  ;;  %v2554_v23 = vpack.c.bf16 %v2506_v6, %v2505_v39  ;;  %v1892_v4 = vadd.f32 %v5400_v11, %v1891_v7 }
 0x623   : > { %v2329_v38 = vpop.f32.mrf.mxu2 }
 0x624   : > { %2721 = vmatmul.bf16.gmra.mxu3 %v2554_v23  ;;  %v2877_v63 = vpack.c.bf16 %v2820_v45, %v2819_v46  ;;  %v2330_v34 = vadd.f32 %v2329_v38, %v5454_v33  ;;  %v1961_v61 = vmax.f32 %v1892_v4, 0.0 }
 0x626   : > { %3008 = vmatmul.bf16.gmra.mxu0 %v2877_v63  ;;  %v2443_v48 = vadd.f32 %v5302_v16, %v2330_v34 }
 0x627   : > { %v2682_v24 = vpop.f32.mrf.mxu3 }
 0x628   : > { %v2683_v60 = vadd.f32 %v5480_v20, %v2682_v24  ;;  %v2507_v25 = vmax.f32 %v2443_v48, 0.0  ;;  %v5608_v9 = vpop.f32.mrf.mxu1  ;;  %v5630_v48 = vld [vmem:[%s5943_s3 + $0x5] ss:$0 sm:$0xff] }
 0x629   : > { %v1893_v57 = vpop.f32.mrf.mxu0 }
 0x62a   : > { %v1894_v37 = vadd.f32 %v5400_v11, %v1893_v57  ;;  %v2821_v18 = vmax.f32 %v2683_v60, 0.0 }
 0x62b   : > { %v2331_v36 = vpop.f32.mrf.mxu2 }
 0x62c   : > { %v1962_v31 = vmax.f32 %v1894_v37, 0.0  ;;  %v2332_v51 = vadd.f32 %v2331_v36, %v5465_v15 }
 0x62e   : > { %v2444_v59 = vadd.f32 %v5302_v16, %v2332_v51  ;;  %v5599_v42 = vpack.c.bf16 %v1962_v31, %v1961_v61 }
 0x62f   : > { %v2684_v22 = vpop.f32.mrf.mxu3 }
 0x630   : > { %v2508_v2 = vmax.f32 %v2444_v59, 0.0  ;;  %v2685_v33 = vadd.f32 %v5480_v20, %v2684_v22  ;;  %2373 = vmatmul.bf16.gmra.mxu2 %v5521_v55  ;;  %v5618_v34 = vpop.f32.mrf.mxu1 }
 0x631   : > { %v1896_v44 = vpop.f32.mrf.mxu0 }
 0x632   : > { %v2822_v32 = vmax.f32 %v2685_v33, 0.0  ;;  %v2555_v26 = vpack.c.bf16 %v2508_v2, %v2507_v25  ;;  %v1897_v13 = vadd.f32 %v5400_v11, %v1896_v44 }
 0x633   : > { %v2334_v15 = vpop.f32.mrf.mxu2 }
 0x634   : > { %2726 = vmatmul.bf16.gmra.mxu3 %v2555_v26  ;;  %v2878_v43 = vpack.c.bf16 %v2822_v32, %v2821_v18  ;;  %v2335_v47 = vadd.f32 %v2334_v15, %v5473_v0  ;;  %v1963_v19 = vmax.f32 %v1897_v13, 0.0 }
 0x636   : > { %3013 = vmatmul.bf16.gmra.mxu0 %v2878_v43  ;;  %v2445_v27 = vadd.f32 %v5302_v16, %v2335_v47 }
 0x637   : > { %v2687_v12 = vpop.f32.mrf.mxu3 }
 0x638   : > { %v2688_v6 = vadd.f32 %v5480_v20, %v2687_v12  ;;  %v2509_v0 = vmax.f32 %v2445_v27, 0.0  ;;  %v5637_v2 = vpop.f32.mrf.mxu1 }
 0x639   : > { %v1898_v41 = vpop.f32.mrf.mxu0 }
 0x63a   : > { %v1899_v58 = vadd.f32 %v5400_v11, %v1898_v41  ;;  %v2823_v23 = vmax.f32 %v2688_v6, 0.0 }
 0x63b   : > { %v2336_v55 = vpop.f32.mrf.mxu2 }
 0x63c   : > { %v1964_v53 = vmax.f32 %v1899_v58, 0.0  ;;  %v2337_v39 = vadd.f32 %v2336_v55, %v5489_v49 }
 0x63e   : > { %v2446_v54 = vadd.f32 %v5302_v16, %v2337_v39  ;;  %v5614_v7 = vpack.c.bf16 %v1964_v53, %v1963_v19  ;;  %v5623_v16 = vld [vmem:[%s5943_s3 + $0x7] ss:$0 sm:$0xff] }
 0x63f   : > { %v2689_v46 = vpop.f32.mrf.mxu3 }
 0x640   : > { %v2510_v45 = vmax.f32 %v2446_v54, 0.0  ;;  %v2690_v11 = vadd.f32 %v5480_v20, %v2689_v46  ;;  %2378 = vmatmul.bf16.gmra.mxu2 %v5538_v3  ;;  %v5642_v55 = vpop.f32.mrf.mxu1 }
 0x642   : > { %v2824_v38 = vmax.f32 %v2690_v11, 0.0  ;;  %v2556_v63 = vpack.c.bf16 %v2510_v45, %v2509_v0 }
 0x643   : > { %v2339_v24 = vpop.f32.mrf.mxu2  ;;  %v2979_v4 = vpop.f32.mrf.mxu0 }
 0x644   : > { %2731 = vmatmul.bf16.gmra.mxu3 %v2556_v63  ;;  %v2879_v49 = vpack.c.bf16 %v2824_v38, %v2823_v23  ;;  %v2340_v37 = vadd.f32 %v2339_v24, %v5495_v29  ;;  %v2980_v3 = vadd.f32 %v5623_v16, %v2979_v4 }
 0x646   : > { %3018 = vmatmul.bf16.gmra.mxu0 %v2879_v49  ;;  %v2447_v31 = vadd.f32 %v5630_v48, %v2340_v37  ;;  %v3139_v59 = vmax.f32 %v2980_v3, 0.0 }
 0x647   : > { %v2692_v57 = vpop.f32.mrf.mxu3 }
 0x648   : > { %v2693_v22 = vadd.f32 %v5480_v20, %v2692_v57  ;;  %v2511_v44 = vmax.f32 %v2447_v31, 0.0  ;;  %v5652_v49 = vpop.f32.mrf.mxu1 }
 0x64a   : > { %v2825_v15 = vmax.f32 %v2693_v22, 0.0 }
 0x64b   : > { %v2341_v36 = vpop.f32.mrf.mxu2  ;;  %v2981_v61 = vpop.f32.mrf.mxu0 }
 0x64c   : > { %v2342_v51 = vadd.f32 %v2341_v36, %v5506_v17  ;;  %v2982_v60 = vadd.f32 %v5623_v16, %v2981_v61 }
 0x64e   : > { %v2448_v29 = vadd.f32 %v5630_v48, %v2342_v51  ;;  %v3140_v25 = vmax.f32 %v2982_v60, 0.0 }
 0x64f   : > { %v2694_v33 = vpop.f32.mrf.mxu3 }
 0x650   : > { %v2512_v18 = vmax.f32 %v2448_v29, 0.0  ;;  %v3203_v32 = vpack.c.bf16 %v3140_v25, %v3139_v59  ;;  %v2695_v26 = vadd.f32 %v5480_v20, %v2694_v33  ;;  %2383 = vmatmul.bf16.gmra.mxu2 %v5556_v28  ;;  %v5659_v29 = vpop.f32.mrf.mxu1 }
 0x652   : > { %v2826_v17 = vmax.f32 %v2695_v26, 0.0  ;;  %3310 = vmatmul.bf16.vlgmr.msra.gmra.mxu1 %v3203_v32  ;;  %v2557_v43 = vpack.c.bf16 %v2512_v18, %v2511_v44 }
 0x653   : > { %v2344_v12 = vpop.f32.mrf.mxu2  ;;  %v2984_v13 = vpop.f32.mrf.mxu0 }
 0x654   : > { %2736 = vmatmul.bf16.gmra.mxu3 %v2557_v43  ;;  %v2880_v47 = vpack.c.bf16 %v2826_v17, %v2825_v15  ;;  %v2345_v58 = vadd.f32 %v2344_v12, %v5512_v52  ;;  %v2985_v19 = vadd.f32 %v5623_v16, %v2984_v13 }
 0x656   : > { %3023 = vmatmul.bf16.gmra.mxu0 %v2880_v47  ;;  %v2449_v28 = vadd.f32 %v5630_v48, %v2345_v58  ;;  %v3141_v54 = vmax.f32 %v2985_v19, 0.0 }
 0x657   : > { %v2697_v41 = vpop.f32.mrf.mxu3 }
 0x658   : > { %v2698_v46 = vadd.f32 %v5480_v20, %v2697_v41  ;;  %v2513_v52 = vmax.f32 %v2449_v28, 0.0  ;;  %v5665_v58 = vpop.f32.mrf.mxu1 }
 0x65a   : > { %v2827_v24 = vmax.f32 %v2698_v46, 0.0 }
 0x65b   : > { %v2346_v27 = vpop.f32.mrf.mxu2  ;;  %v2986_v53 = vpop.f32.mrf.mxu0 }
 0x65c   : > { %v2347_v39 = vadd.f32 %v2346_v27, %v5523_v35  ;;  %v2987_v6 = vadd.f32 %v5623_v16, %v2986_v53 }
 0x65e   : > { %v2450_v0 = vadd.f32 %v5630_v48, %v2347_v39  ;;  %v3142_v45 = vmax.f32 %v2987_v6, 0.0 }
 0x65f   : > { %v2699_v11 = vpop.f32.mrf.mxu3 }
 0x660   : > { %v2514_v23 = vmax.f32 %v2450_v0, 0.0  ;;  %v2700_v38 = vadd.f32 %v5480_v20, %v2699_v11  ;;  %2388 = vmatmul.bf16.gmra.mxu2 %v5571_v30  ;;  %v3204_v63 = vpack.c.bf16 %v3142_v45, %v3141_v54 }
 0x662   : > { %v2828_v4 = vmax.f32 %v2700_v38, 0.0  ;;  %3315 = vmatmul.bf16.gmra.mxu1 %v3204_v63  ;;  %v2558_v35 = vpack.c.bf16 %v2514_v23, %v2513_v52 }
 0x663   : > { %v2349_v57 = vpop.f32.mrf.mxu2  ;;  %v2989_v37 = vpop.f32.mrf.mxu0 }
 0x664   : > { %2741 = vmatmul.bf16.gmra.mxu3 %v2558_v35  ;;  %v2881_v3 = vpack.c.bf16 %v2828_v4, %v2827_v24  ;;  %v2350_v61 = vadd.f32 %v2349_v57, %v5529_v21  ;;  %v2990_v31 = vadd.f32 %v5623_v16, %v2989_v37  ;;  %v5676_v24 = vpop.f32.mrf.mxu1 }
 0x666   : > { %3028 = vmatmul.bf16.gmra.mxu0 %v2881_v3  ;;  %v2451_v30 = vadd.f32 %v5630_v48, %v2350_v61  ;;  %v3143_v25 = vmax.f32 %v2990_v31, 0.0 }
 0x667   : > { %v2702_v36 = vpop.f32.mrf.mxu3 }
 0x668   : > { %v2703_v33 = vadd.f32 %v5480_v20, %v2702_v36  ;;  %v2515_v21 = vmax.f32 %v2451_v30, 0.0 }
 0x66a   : > { %v2829_v43 = vmax.f32 %v2703_v33, 0.0 }
 0x66b   : > { %v2351_v51 = vpop.f32.mrf.mxu2  ;;  %v2991_v60 = vpop.f32.mrf.mxu0 }
 0x66c   : > { %v2352_v59 = vadd.f32 %v2351_v51, %v5540_v1  ;;  %v2992_v22 = vadd.f32 %v5623_v16, %v2991_v60  ;;  %v5680_v51 = vpop.f32.mrf.mxu1 }
 0x66e   : > { %v2452_v44 = vadd.f32 %v5630_v48, %v2352_v59  ;;  %v3144_v18 = vmax.f32 %v2992_v22, 0.0 }
 0x66f   : > { %v2704_v32 = vpop.f32.mrf.mxu3 }
 0x670   : > { %v2516_v26 = vmax.f32 %v2452_v44, 0.0  ;;  %v2705_v15 = vadd.f32 %v5480_v20, %v2704_v32  ;;  %2393 = vmatmul.bf16.gmra.mxu2 %v5586_v62  ;;  %v3205_v17 = vpack.c.bf16 %v3144_v18, %v3143_v25 }
 0x672   : > { %v2830_v1 = vmax.f32 %v2705_v15, 0.0  ;;  %3320 = vmatmul.bf16.gmra.mxu1 %v3205_v17  ;;  %v2559_v12 = vpack.c.bf16 %v2516_v26, %v2515_v21 }
 0x673   : > { %v2354_v13 = vpop.f32.mrf.mxu2  ;;  %v2994_v47 = vpop.f32.mrf.mxu0 }
 0x674   : > { %2746 = vmatmul.bf16.gmra.mxu3 %v2559_v12  ;;  %v2882_v41 = vpack.c.bf16 %v2830_v1, %v2829_v43  ;;  %v2355_v27 = vadd.f32 %v2354_v13, %v5547_v56  ;;  %v2995_v53 = vadd.f32 %v5623_v16, %v2994_v47  ;;  %v5689_v47 = vpop.f32.mrf.mxu1 }
 0x676   : > { %3033 = vmatmul.bf16.gmra.mxu0 %v2882_v41  ;;  %v2453_v62 = vadd.f32 %v5630_v48, %v2355_v27  ;;  %v3145_v46 = vmax.f32 %v2995_v53, 0.0 }
 0x677   : > { %v2707_v19 = vpop.f32.mrf.mxu3 }
 0x678   : > { %v2708_v0 = vadd.f32 %v5480_v20, %v2707_v19  ;;  %v2517_v23 = vmax.f32 %v2453_v62, 0.0 }
 0x67a   : > { %v2831_v4 = vmax.f32 %v2708_v0, 0.0 }
 0x67b   : > { %v2356_v28 = vpop.f32.mrf.mxu2  ;;  %v2996_v39 = vpop.f32.mrf.mxu0 }
 0x67c   : > { %v2357_v6 = vadd.f32 %v2356_v28, %v5558_v40  ;;  %v2997_v54 = vadd.f32 %v5623_v16, %v2996_v39 }
 0x67e   : > { %v2454_v45 = vadd.f32 %v5630_v48, %v2357_v6  ;;  %v3146_v11 = vmax.f32 %v2997_v54, 0.0 }
 0x67f   : > { %v2709_v52 = vpop.f32.mrf.mxu3 }
 0x680   : > { %v2518_v38 = vmax.f32 %v2454_v45, 0.0  ;;  %v2710_v56 = vadd.f32 %v5480_v20, %v2709_v52  ;;  %2398 = vmatmul.bf16.gmra.mxu2 %v5599_v42  ;;  %v3206_v63 = vpack.c.bf16 %v3146_v11, %v3145_v46  ;;  %v5698_v45 = vpop.f32.mrf.mxu1 }
 0x682   : > { %v2832_v40 = vmax.f32 %v2710_v56, 0.0  ;;  %3325 = vmatmul.bf16.gmra.mxu1 %v3206_v63  ;;  %v2560_v35 = vpack.c.bf16 %v2518_v38, %v2517_v23 }
 0x683   : > { %v2359_v57 = vpop.f32.mrf.mxu2  ;;  %v2999_v37 = vpop.f32.mrf.mxu0 }
 0x684   : > { %2751 = vmatmul.bf16.gmra.mxu3 %v2560_v35  ;;  %v2883_v3 = vpack.c.bf16 %v2832_v40, %v2831_v4  ;;  %v2360_v61 = vadd.f32 %v2359_v57, %v5564_v50  ;;  %v3000_v31 = vadd.f32 %v5623_v16, %v2999_v37 }
 0x686   : > { %3038 = vmatmul.bf16.gmra.mxu0 %v2883_v3  ;;  %v2455_v30 = vadd.f32 %v5630_v48, %v2360_v61  ;;  %v3147_v25 = vmax.f32 %v3000_v31, 0.0 }
 0x687   : > { %v2712_v36 = vpop.f32.mrf.mxu3 }
 0x688   : > { %v2713_v33 = vadd.f32 %v5480_v20, %v2712_v36  ;;  %v2519_v50 = vmax.f32 %v2455_v30, 0.0  ;;  %v5702_v3 = vpop.f32.mrf.mxu1 }
 0x68a   : > { %v2833_v17 = vmax.f32 %v2713_v33, 0.0 }
 0x68b   : > { %v2361_v42 = vpop.f32.mrf.mxu2  ;;  %v3001_v60 = vpop.f32.mrf.mxu0 }
 0x68c   : > { %v2362_v59 = vadd.f32 %v2361_v42, %v5575_v14  ;;  %v3002_v22 = vadd.f32 %v5623_v16, %v3001_v60 }
 0x68e   : > { %v2456_v44 = vadd.f32 %v5630_v48, %v2362_v59  ;;  %v3148_v18 = vmax.f32 %v3002_v22, 0.0 }
 0x68f   : > { %v2714_v32 = vpop.f32.mrf.mxu3 }
 0x690   : > { %v2520_v21 = vmax.f32 %v2456_v44, 0.0  ;;  %v2715_v26 = vadd.f32 %v5480_v20, %v2714_v32  ;;  %2403 = vmatmul.bf16.gmra.mxu2 %v5614_v7  ;;  %v3207_v15 = vpack.c.bf16 %v3148_v18, %v3147_v25 }
 0x692   : > { %v2834_v43 = vmax.f32 %v2715_v26, 0.0  ;;  %3330 = vmatmul.bf16.gmra.mxu1 %v3207_v15  ;;  %v2561_v14 = vpack.c.bf16 %v2520_v21, %v2519_v50  ;;  %v5711_v26 = vpop.f32.mrf.mxu1 }
 0x693   : > { %v2364_v1 = vpop.f32.mrf.mxu2  ;;  %v3004_v12 = vpop.f32.mrf.mxu0 }
 0x694   : > { %2756 = vmatmul.bf16.gmra.mxu3 %v2561_v14  ;;  %v2884_v13 = vpack.c.bf16 %v2834_v43, %v2833_v17  ;;  %v2365_v19 = vadd.f32 %v2364_v1, %v5582_v10  ;;  %v3005_v27 = vadd.f32 %v5623_v16, %v3004_v12 }
 0x696   : > { %3043 = vmatmul.bf16.gmra.mxu0 %v2884_v13  ;;  %v2457_v7 = vadd.f32 %v5630_v48, %v2365_v19  ;;  %v3149_v6 = vmax.f32 %v3005_v27, 0.0 }
 0x697   : > { %v2717_v41 = vpop.f32.mrf.mxu3 }
 0x698   : > { %v2718_v54 = vadd.f32 %v5480_v20, %v2717_v41  ;;  %v2521_v10 = vmax.f32 %v2457_v7, 0.0 }
 0x69a   : > { %v2835_v56 = vmax.f32 %v2718_v54, 0.0  ;;  %v5718_v7 = vpop.f32.mrf.mxu1 }
 0x69b   : > { %v2366_v53 = vpop.f32.mrf.mxu2  ;;  %v3006_v28 = vpop.f32.mrf.mxu0 }
 0x69c   : > { %v2367_v39 = vadd.f32 %v2366_v53, %v5590_v5  ;;  %v3007_v62 = vadd.f32 %v5623_v16, %v3006_v28 }
 0x69e   : > { %v2458_v46 = vadd.f32 %v5630_v48, %v2367_v39  ;;  %v3150_v0 = vmax.f32 %v3007_v62, 0.0 }
 0x69f   : > { %v2719_v11 = vpop.f32.mrf.mxu3 }
 0x6a0   : > { %v2522_v52 = vmax.f32 %v2458_v46, 0.0  ;;  %v2720_v23 = vadd.f32 %v5480_v20, %v2719_v11  ;;  %v3208_v38 = vpack.c.bf16 %v3150_v0, %v3149_v6 }
 0x6a2   : > { %v2836_v63 = vmax.f32 %v2720_v23, 0.0  ;;  %3335 = vmatmul.bf16.gmra.mxu1 %v3208_v38  ;;  %v2562_v5 = vpack.c.bf16 %v2522_v52, %v2521_v10 }
 0x6a3   : > { %v2369_v4 = vpop.f32.mrf.mxu2  ;;  %v3009_v40 = vpop.f32.mrf.mxu0 }
 0x6a4   : > { %2761 = vmatmul.bf16.gmra.mxu3 %v2562_v5  ;;  %v2885_v35 = vpack.c.bf16 %v2836_v63, %v2835_v56  ;;  %v2370_v37 = vadd.f32 %v2369_v4, %v5603_v8  ;;  %v3010_v36 = vadd.f32 %v5623_v16, %v3009_v40  ;;  %v5723_v5 = vpop.f32.mrf.mxu1 }
 0x6a6   : > { %3048 = vmatmul.bf16.gmra.mxu0 %v2885_v35  ;;  %v2459_v42 = vadd.f32 %v5630_v48, %v2370_v37  ;;  %v3151_v59 = vmax.f32 %v3010_v36, 0.0 }
 0x6a7   : > { %v2722_v57 = vpop.f32.mrf.mxu3 }
 0x6a8   : > { %v2723_v22 = vadd.f32 %v5480_v20, %v2722_v57  ;;  %v2523_v8 = vmax.f32 %v2459_v42, 0.0 }
 0x6aa   : > { %v2837_v21 = vmax.f32 %v2723_v22, 0.0 }
 0x6ab   : > { %v2371_v61 = vpop.f32.mrf.mxu2  ;;  %v3011_v31 = vpop.f32.mrf.mxu0 }
 0x6ac   : > { %v2372_v60 = vadd.f32 %v2371_v61, %v5608_v9  ;;  %v3012_v30 = vadd.f32 %v5623_v16, %v3011_v31 }
 0x6ae   : > { %v2460_v25 = vadd.f32 %v5630_v48, %v2372_v60  ;;  %v3152_v33 = vmax.f32 %v3012_v30, 0.0 }
 0x6af   : > { %v2724_v44 = vpop.f32.mrf.mxu3 }
 0x6b0   : > { %v2524_v18 = vmax.f32 %v2460_v25, 0.0  ;;  %v2725_v32 = vadd.f32 %v5480_v20, %v2724_v44  ;;  %v3209_v50 = vpack.c.bf16 %v3152_v33, %v3151_v59 }
 0x6b2   : > { %v2838_v15 = vmax.f32 %v2725_v32, 0.0  ;;  %3340 = vmatmul.bf16.gmra.mxu1 %v3209_v50  ;;  %v2563_v9 = vpack.c.bf16 %v2524_v18, %v2523_v8 }
 0x6b3   : > { %v2374_v17 = vpop.f32.mrf.mxu2  ;;  %v3014_v43 = vpop.f32.mrf.mxu0 }
 0x6b4   : > { %2766 = vmatmul.bf16.gmra.mxu3 %v2563_v9  ;;  %v2886_v14 = vpack.c.bf16 %v2838_v15, %v2837_v21  ;;  %v2375_v12 = vadd.f32 %v2374_v17, %v5618_v34  ;;  %v3015_v13 = vadd.f32 %v5623_v16, %v3014_v43  ;;  %v5736_v15 = vld [vmem:[%s5943_s3 + $0x8] ss:$0 sm:$0xff] }
 0x6b6   : > { %3053 = vmatmul.bf16.gmra.mxu0 %v2886_v14  ;;  %v2461_v27 = vadd.f32 %v5630_v48, %v2375_v12  ;;  %v3153_v39 = vmax.f32 %v3015_v13, 0.0 }
 0x6b7   : > { %v2727_v1 = vpop.f32.mrf.mxu3 }
 0x6b8   : > { %v2728_v62 = vadd.f32 %v5480_v20, %v2727_v1  ;;  %v2525_v34 = vmax.f32 %v2461_v27, 0.0 }
 0x6ba   : > { %v2839_v52 = vmax.f32 %v2728_v62, 0.0 }
 0x6bb   : > { %v2376_v41 = vpop.f32.mrf.mxu2  ;;  %v3016_v19 = vpop.f32.mrf.mxu0 }
 0x6bc   : > { %v2377_v53 = vadd.f32 %v2376_v41, %v5637_v2  ;;  %v3017_v28 = vadd.f32 %v5623_v16, %v3016_v19 }
 0x6be   : > { %v2462_v6 = vadd.f32 %v5630_v48, %v2377_v53  ;;  %v3154_v54 = vmax.f32 %v3017_v28, 0.0 }
 0x6bf   : > { %v2729_v46 = vpop.f32.mrf.mxu3 }
 0x6c0   : > { %v2526_v0 = vmax.f32 %v2462_v6, 0.0  ;;  %v2730_v11 = vadd.f32 %v5480_v20, %v2729_v46  ;;  %v3210_v10 = vpack.c.bf16 %v3154_v54, %v3153_v39  ;;  %v5755_v39 = vld [vmem:[%s5943_s3 + $0x6] ss:$0 sm:$0xff] }
 0x6c2   : > { %v2840_v23 = vmax.f32 %v2730_v11, 0.0  ;;  %3345 = vmatmul.bf16.gmra.mxu1 %v3210_v10  ;;  %v2564_v2 = vpack.c.bf16 %v2526_v0, %v2525_v34 }
 0x6c3   : > { %v2379_v38 = vpop.f32.mrf.mxu2  ;;  %v3019_v56 = vpop.f32.mrf.mxu0 }
 0x6c4   : > { %2771 = vmatmul.bf16.gmra.mxu3 %v2564_v2  ;;  %v2887_v63 = vpack.c.bf16 %v2840_v23, %v2839_v52  ;;  %v2380_v40 = vadd.f32 %v2379_v38, %v5642_v55  ;;  %v3020_v35 = vadd.f32 %v5623_v16, %v3019_v56 }
 0x6c6   : > { %3058 = vmatmul.bf16.gmra.mxu0 %v2887_v63  ;;  %v2463_v36 = vadd.f32 %v5630_v48, %v2380_v40  ;;  %v3155_v42 = vmax.f32 %v3020_v35, 0.0 }
 0x6c7   : > { %v2732_v4 = vpop.f32.mrf.mxu3 }
 0x6c8   : > { %v2733_v60 = vadd.f32 %v5480_v20, %v2732_v4  ;;  %v2527_v55 = vmax.f32 %v2463_v36, 0.0 }
 0x6ca   : > { %v2841_v18 = vmax.f32 %v2733_v60, 0.0 }
 0x6cb   : > { %v2381_v57 = vpop.f32.mrf.mxu2  ;;  %v3021_v37 = vpop.f32.mrf.mxu0 }
 0x6cc   : > { %v2382_v61 = vadd.f32 %v2381_v57, %v5652_v49  ;;  %v3022_v31 = vadd.f32 %v5623_v16, %v3021_v37 }
 0x6ce   : > { %v2464_v30 = vadd.f32 %v5630_v48, %v2382_v61  ;;  %v3156_v59 = vmax.f32 %v3022_v31, 0.0 }
 0x6cf   : > { %v2734_v22 = vpop.f32.mrf.mxu3  ;;  %v3311_v25 = vpop.f32.mrf.mxu1 }
 0x6d0   : > { %v2528_v33 = vmax.f32 %v2464_v30, 0.0  ;;  %v2735_v44 = vadd.f32 %v5480_v20, %v2734_v22  ;;  %v3211_v8 = vpack.c.bf16 %v3156_v59, %v3155_v42  ;;  %v3312_v20 = vadd.f32 %v5736_v15, %v3311_v25 }
 0x6d2   : > { %v2842_v32 = vmax.f32 %v2735_v44, 0.0  ;;  %3350 = vmatmul.bf16.gmra.mxu1 %v3211_v8  ;;  %v2565_v49 = vpack.c.bf16 %v2528_v33, %v2527_v55 }
 0x6d3   : > { %v2384_v50 = vpop.f32.mrf.mxu2  ;;  %v3024_v21 = vpop.f32.mrf.mxu0 }
 0x6d4   : > { %2776 = vmatmul.bf16.gmra.mxu3 %v2565_v49  ;;  %v2888_v9 = vpack.c.bf16 %v2842_v32, %v2841_v18  ;;  %v2385_v14 = vadd.f32 %v2384_v50, %v5659_v29  ;;  %v3025_v12 = vadd.f32 %v5623_v16, %v3024_v21 }
 0x6d6   : > { %3063 = vmatmul.bf16.gmra.mxu0 %v2888_v9  ;;  %v2465_v27 = vadd.f32 %v5630_v48, %v2385_v14  ;;  %v3157_v28 = vmax.f32 %v3025_v12, 0.0 }
 0x6d7   : > { %v2737_v17 = vpop.f32.mrf.mxu3  ;;  %v3313_v43 = vpop.f32.mrf.mxu1 }
 0x6d8   : > { %v3314_v1 = vadd.f32 %v5736_v15, %v3313_v43  ;;  %v2738_v62 = vadd.f32 %v5755_v39, %v2737_v17  ;;  %v2529_v0 = vmax.f32 %v2465_v27, 0.0 }
 0x6da   : > { %v4177_v13 = vpack.c.bf16 %v3314_v1, %v3312_v20  ;;  %v2843_v52 = vmax.f32 %v2738_v62, 0.0 }
 0x6db   : > { %v2386_v41 = vpop.f32.mrf.mxu2  ;;  %v3026_v19 = vpop.f32.mrf.mxu0 }
 0x6dc   : > { %4178 = vst [vmem:[%s5745_s16] sm:$0xff] %v4177_v13   ;;  %v2387_v53 = vadd.f32 %v2386_v41, %v5665_v58  ;;  %v3027_v29 = vadd.f32 %v5623_v16, %v3026_v19 }
 0x6de   : > { %v2466_v6 = vadd.f32 %v5630_v48, %v2387_v53  ;;  %v3158_v54 = vmax.f32 %v3027_v29, 0.0 }
 0x6df   : > { %v2739_v46 = vpop.f32.mrf.mxu3  ;;  %v3316_v34 = vpop.f32.mrf.mxu1 }
 0x6e0   : > { %v2530_v11 = vmax.f32 %v2466_v6, 0.0  ;;  %v2740_v10 = vadd.f32 %v5755_v39, %v2739_v46  ;;  %v3212_v58 = vpack.c.bf16 %v3158_v54, %v3157_v28  ;;  %v3317_v35 = vadd.f32 %v5736_v15, %v3316_v34 }
 0x6e2   : > { %v2844_v23 = vmax.f32 %v2740_v10, 0.0  ;;  %3355 = vmatmul.bf16.gmra.mxu1 %v3212_v58  ;;  %v2566_v2 = vpack.c.bf16 %v2530_v11, %v2529_v0 }
 0x6e3   : > { %v2389_v38 = vpop.f32.mrf.mxu2  ;;  %v3029_v56 = vpop.f32.mrf.mxu0 }
 0x6e4   : > { %2781 = vmatmul.bf16.gmra.mxu3 %v2566_v2  ;;  %v2889_v63 = vpack.c.bf16 %v2844_v23, %v2843_v52  ;;  %v2390_v57 = vadd.f32 %v2389_v38, %v5676_v24  ;;  %v3030_v36 = vadd.f32 %v5623_v16, %v3029_v56 }
 0x6e6   : > { %3068 = vmatmul.bf16.gmra.mxu0 %v2889_v63  ;;  %v2467_v60 = vadd.f32 %v5630_v48, %v2390_v57  ;;  %v3159_v22 = vmax.f32 %v3030_v36, 0.0 }
 0x6e7   : > { %v2742_v4 = vpop.f32.mrf.mxu3  ;;  %v3318_v40 = vpop.f32.mrf.mxu1 }
 0x6e8   : > { %v3319_v37 = vadd.f32 %v5736_v15, %v3318_v40  ;;  %v2743_v25 = vadd.f32 %v5755_v39, %v2742_v4  ;;  %v2531_v8 = vmax.f32 %v2467_v60, 0.0 }
 0x6ea   : > { %v4182_v61 = vpack.c.bf16 %v3319_v37, %v3317_v35  ;;  %v2845_v50 = vmax.f32 %v2743_v25, 0.0 }
 0x6eb   : > { %v2391_v31 = vpop.f32.mrf.mxu2  ;;  %v3031_v42 = vpop.f32.mrf.mxu0 }
 0x6ec   : > { %4334 = vst [vmem:[%s5745_s16 + $0x8] sm:$0xff] %v4182_v61   ;;  %v2392_v30 = vadd.f32 %v2391_v31, %v5680_v51  ;;  %v3032_v59 = vadd.f32 %v5623_v16, %v3031_v42 }
 0x6ee   : > { %v2468_v55 = vadd.f32 %v5630_v48, %v2392_v30  ;;  %v3160_v24 = vmax.f32 %v3032_v59, 0.0 }
 0x6ef   : > { %v2744_v33 = vpop.f32.mrf.mxu3  ;;  %v3321_v44 = vpop.f32.mrf.mxu1 }
 0x6f0   : > { %v2532_v18 = vmax.f32 %v2468_v55, 0.0  ;;  %v2745_v32 = vadd.f32 %v5755_v39, %v2744_v33  ;;  %v3213_v49 = vpack.c.bf16 %v3160_v24, %v3159_v22  ;;  %v3322_v1 = vadd.f32 %v5736_v15, %v3321_v44 }
 0x6f2   : > { %v2846_v21 = vmax.f32 %v2745_v32, 0.0  ;;  %3360 = vmatmul.bf16.gmra.mxu1 %v3213_v49  ;;  %v2567_v9 = vpack.c.bf16 %v2532_v18, %v2531_v8 }
 0x6f3   : > { %v2394_v51 = vpop.f32.mrf.mxu2  ;;  %v3034_v17 = vpop.f32.mrf.mxu0 }
 0x6f4   : > { %2786 = vmatmul.bf16.gmra.mxu3 %v2567_v9  ;;  %v2890_v43 = vpack.c.bf16 %v2846_v21, %v2845_v50  ;;  %v2395_v12 = vadd.f32 %v2394_v51, %v5689_v47  ;;  %v3035_v41 = vadd.f32 %v5623_v16, %v3034_v17 }
 0x6f6   : > { %3073 = vmatmul.bf16.gmra.mxu0 %v2890_v43  ;;  %v2469_v29 = vadd.f32 %v5630_v48, %v2395_v12  ;;  %v3161_v6 = vmax.f32 %v3035_v41, 0.0 }
 0x6f7   : > { %v2747_v20 = vpop.f32.mrf.mxu3  ;;  %v3323_v14 = vpop.f32.mrf.mxu1 }
 0x6f8   : > { %v3324_v13 = vadd.f32 %v5736_v15, %v3323_v14  ;;  %v2748_v54 = vadd.f32 %v5755_v39, %v2747_v20  ;;  %v2533_v11 = vmax.f32 %v2469_v29, 0.0 }
 0x6fa   : > { %v4187_v19 = vpack.c.bf16 %v3324_v13, %v3322_v1  ;;  %v2847_v23 = vmax.f32 %v2748_v54, 0.0 }
 0x6fb   : > { %v2396_v27 = vpop.f32.mrf.mxu2  ;;  %v3036_v53 = vpop.f32.mrf.mxu0 }
 0x6fc   : > { %4335 = vst [vmem:[%s5745_s16 + $0x10] sm:$0xff] %v4187_v19   ;;  %v2397_v28 = vadd.f32 %v2396_v27, %v5698_v45  ;;  %v3037_v62 = vadd.f32 %v5623_v16, %v3036_v53 }
 0x6fe   : > { %v2470_v46 = vadd.f32 %v5630_v48, %v2397_v28  ;;  %v3162_v47 = vmax.f32 %v3037_v62, 0.0 }
 0x6ff   : > { %v2749_v34 = vpop.f32.mrf.mxu3  ;;  %v3326_v0 = vpop.f32.mrf.mxu1 }
 0x700   : > { %v2534_v10 = vmax.f32 %v2470_v46, 0.0  ;;  %v2750_v58 = vadd.f32 %v5755_v39, %v2749_v34  ;;  %v3214_v52 = vpack.c.bf16 %v3162_v47, %v3161_v6  ;;  %v3327_v35 = vadd.f32 %v5736_v15, %v3326_v0 }
 0x702   : > { %v2848_v2 = vmax.f32 %v2750_v58, 0.0  ;;  %3365 = vmatmul.bf16.gmra.mxu1 %v3214_v52  ;;  %v2568_v38 = vpack.c.bf16 %v2534_v10, %v2533_v11 }
 0x703   : > { %v2399_v45 = vpop.f32.mrf.mxu2  ;;  %v3039_v56 = vpop.f32.mrf.mxu0 }
 0x704   : > { %v2891_v63 = vpack.c.bf16 %v2848_v2, %v2847_v23  ;;  %2791 = vmatmul.bf16.gmra.mxu3 %v2568_v38  ;;  %v2400_v57 = vadd.f32 %v2399_v45, %v5702_v3  ;;  %v3040_v36 = vadd.f32 %v5623_v16, %v3039_v56 }
 0x706   : > { %3078 = vmatmul.bf16.gmra.mxu0 %v2891_v63  ;;  %v2471_v60 = vadd.f32 %v5630_v48, %v2400_v57  ;;  %v3163_v22 = vmax.f32 %v3040_v36, 0.0 }
 0x707   : > { %v2752_v4 = vpop.f32.mrf.mxu3  ;;  %v3328_v40 = vpop.f32.mrf.mxu1 }
 0x708   : > { %v3329_v37 = vadd.f32 %v5736_v15, %v3328_v40  ;;  %v2753_v25 = vadd.f32 %v5755_v39, %v2752_v4  ;;  %v2535_v44 = vmax.f32 %v2471_v60, 0.0 }
 0x70a   : > { %v4192_v61 = vpack.c.bf16 %v3329_v37, %v3327_v35  ;;  %v2849_v49 = vmax.f32 %v2753_v25, 0.0 }
 0x70b   : > { %v2401_v31 = vpop.f32.mrf.mxu2  ;;  %v3041_v42 = vpop.f32.mrf.mxu0 }
 0x70c   : > { %4336 = vst [vmem:[%s5745_s16 + $0x18] sm:$0xff] %v4192_v61   ;;  %v2402_v30 = vadd.f32 %v2401_v31, %v5711_v26  ;;  %v3042_v59 = vadd.f32 %v5623_v16, %v3041_v42 }
 0x70e   : > { %v2472_v55 = vadd.f32 %v5630_v48, %v2402_v30  ;;  %v3164_v3 = vmax.f32 %v3042_v59, 0.0 }
 0x70f   : > { %v2754_v24 = vpop.f32.mrf.mxu3  ;;  %v3331_v33 = vpop.f32.mrf.mxu1 }
 0x710   : > { %v2536_v8 = vmax.f32 %v2472_v55, 0.0  ;;  %v2755_v18 = vadd.f32 %v5755_v39, %v2754_v24  ;;  %v3215_v32 = vpack.c.bf16 %v3164_v3, %v3163_v22  ;;  %v3332_v20 = vadd.f32 %v5736_v15, %v3331_v33 }
 0x712   : > { %v2850_v50 = vmax.f32 %v2755_v18, 0.0  ;;  %3370 = vmatmul.bf16.gmra.mxu1 %v3215_v32  ;;  %v2569_v21 = vpack.c.bf16 %v2536_v8, %v2535_v44 }
 0x713   : > { %v2404_v26 = vpop.f32.mrf.mxu2  ;;  %v3044_v9 = vpop.f32.mrf.mxu0 }
 0x714   : > { %v2892_v51 = vpack.c.bf16 %v2850_v50, %v2849_v49  ;;  %2796 = vmatmul.bf16.gmra.mxu3 %v2569_v21  ;;  %v2405_v14 = vadd.f32 %v2404_v26, %v5718_v7  ;;  %v3045_v12 = vadd.f32 %v5623_v16, %v3044_v9 }
 0x716   : > { %3083 = vmatmul.bf16.gmra.mxu0 %v2892_v51  ;;  %v2473_v27 = vadd.f32 %v5630_v48, %v2405_v14  ;;  %v3165_v28 = vmax.f32 %v3045_v12, 0.0 }
 0x717   : > { %v2757_v17 = vpop.f32.mrf.mxu3  ;;  %v3333_v43 = vpop.f32.mrf.mxu1 }
 0x718   : > { %v3334_v1 = vadd.f32 %v5736_v15, %v3333_v43  ;;  %v2758_v62 = vadd.f32 %v5755_v39, %v2757_v17  ;;  %v2537_v47 = vmax.f32 %v2473_v27, 0.0 }
 0x71a   : > { %v4197_v13 = vpack.c.bf16 %v3334_v1, %v3332_v20  ;;  %v2851_v10 = vmax.f32 %v2758_v62, 0.0 }
 0x71b   : > { %v2406_v41 = vpop.f32.mrf.mxu2  ;;  %v3046_v19 = vpop.f32.mrf.mxu0 }
 0x71c   : > { %4337 = vst [vmem:[%s5745_s16 + $0x20] sm:$0xff] %v4197_v13   ;;  %v2407_v53 = vadd.f32 %v2406_v41, %v5723_v5  ;;  %v3047_v29 = vadd.f32 %v5623_v16, %v3046_v19 }
 0x71e   : > { %v2474_v6 = vadd.f32 %v5630_v48, %v2407_v53  ;;  %v3166_v7 = vmax.f32 %v3047_v29, 0.0 }
 0x71f   : > { %v2759_v54 = vpop.f32.mrf.mxu3  ;;  %v3336_v46 = vpop.f32.mrf.mxu1 }
 0x720   : > { %v2538_v34 = vmax.f32 %v2474_v6, 0.0  ;;  %v2760_v0 = vadd.f32 %v5755_v39, %v2759_v54  ;;  %v3216_v11 = vpack.c.bf16 %v3166_v7, %v3165_v28  ;;  %v3337_v48 = vadd.f32 %v5736_v15, %v3336_v46 }
 0x722   : > { %v2852_v58 = vmax.f32 %v2760_v0, 0.0  ;;  %3375 = vmatmul.bf16.gmra.mxu1 %v3216_v11  ;;  %v2570_v5 = vpack.c.bf16 %v2538_v34, %v2537_v47 }
 0x723   : > { %v3049_v52 = vpop.f32.mrf.mxu0 }
 0x724   : > { %v2893_v23 = vpack.c.bf16 %v2852_v58, %v2851_v10  ;;  %2801 = vmatmul.bf16.gmra.mxu3 %v2570_v5  ;;  %v3050_v56 = vadd.f32 %v5623_v16, %v3049_v52 }
 0x726   : > { %3088 = vmatmul.bf16.gmra.mxu0 %v2893_v23  ;;  %v3167_v35 = vmax.f32 %v3050_v56, 0.0 }
 0x727   : > { %v2762_v2 = vpop.f32.mrf.mxu3  ;;  %v3338_v38 = vpop.f32.mrf.mxu1 }
 0x728   : > { %v3339_v45 = vadd.f32 %v5736_v15, %v3338_v38  ;;  %v2763_v57 = vadd.f32 %v5755_v39, %v2762_v2 }
 0x72a   : > { %v4202_v63 = vpack.c.bf16 %v3339_v45, %v3337_v48  ;;  %v2853_v60 = vmax.f32 %v2763_v57, 0.0 }
 0x72b   : > { %v3051_v4 = vpop.f32.mrf.mxu0 }
 0x72c   : > { %4338 = vst [vmem:[%s5745_s16 + $0x28] sm:$0xff] %v4202_v63   ;;  %v3052_v40 = vadd.f32 %v5623_v16, %v3051_v4 }
 0x72e   : > { %v3168_v37 = vmax.f32 %v3052_v40, 0.0 }
 0x72f   : > { %v2764_v36 = vpop.f32.mrf.mxu3  ;;  %v3341_v61 = vpop.f32.mrf.mxu1 }
 0x730   : > { %v2765_v31 = vadd.f32 %v5755_v39, %v2764_v36  ;;  %v3217_v42 = vpack.c.bf16 %v3168_v37, %v3167_v35  ;;  %v3342_v3 = vadd.f32 %v5736_v15, %v3341_v61 }
 0x732   : > { %v2854_v30 = vmax.f32 %v2765_v31, 0.0  ;;  %3380 = vmatmul.bf16.gmra.mxu1 %v3217_v42 }
 0x733   : > { %v3054_v59 = vpop.f32.mrf.mxu0 }
 0x734   : > { %v2894_v22 = vpack.c.bf16 %v2854_v30, %v2853_v60  ;;  %v3055_v33 = vadd.f32 %v5623_v16, %v3054_v59 }
 0x736   : > { %3093 = vmatmul.bf16.gmra.mxu0 %v2894_v22  ;;  %v3169_v32 = vmax.f32 %v3055_v33, 0.0 }
 0x737   : > { %v2767_v25 = vpop.f32.mrf.mxu3  ;;  %v3343_v55 = vpop.f32.mrf.mxu1 }
 0x738   : > { %v3344_v24 = vadd.f32 %v5736_v15, %v3343_v55  ;;  %v2768_v49 = vadd.f32 %v5755_v39, %v2767_v25 }
 0x73a   : > { %v4207_v44 = vpack.c.bf16 %v3344_v24, %v3342_v3  ;;  %v2855_v17 = vmax.f32 %v2768_v49, 0.0  ;;  %v5839_v24 = vld [vmem:[%s5943_s3 + $0x7] ss:$0 sm:$0xff] }
 0x73b   : > { %v3056_v8 = vpop.f32.mrf.mxu0 }
 0x73c   : > { %4339 = vst [vmem:[%s5745_s16 + $0x30] sm:$0xff] %v4207_v44   ;;  %v3057_v18 = vadd.f32 %v5623_v16, %v3056_v8 }
 0x73e   : > { %v3170_v50 = vmax.f32 %v3057_v18, 0.0 }
 0x73f   : > { %v2769_v21 = vpop.f32.mrf.mxu3  ;;  %v3346_v26 = vpop.f32.mrf.mxu1 }
 0x740   : > { %v2770_v9 = vadd.f32 %v5755_v39, %v2769_v21  ;;  %v3218_v51 = vpack.c.bf16 %v3170_v50, %v3169_v32  ;;  %v3347_v13 = vadd.f32 %v5736_v15, %v3346_v26 }
 0x742   : > { %v2856_v43 = vmax.f32 %v2770_v9, 0.0  ;;  %3385 = vmatmul.bf16.gmra.mxu1 %v3218_v51 }
 0x743   : > { %v3059_v20 = vpop.f32.mrf.mxu0 }
 0x744   : > { %v2895_v14 = vpack.c.bf16 %v2856_v43, %v2855_v17  ;;  %v3060_v19 = vadd.f32 %v5623_v16, %v3059_v20 }
 0x746   : > { %3098 = vmatmul.bf16.gmra.mxu0 %v2895_v14  ;;  %v3171_v28 = vmax.f32 %v3060_v19, 0.0 }
 0x747   : > { %v2772_v1 = vpop.f32.mrf.mxu3  ;;  %v3348_v12 = vpop.f32.mrf.mxu1 }
 0x748   : > { %v3349_v41 = vadd.f32 %v5736_v15, %v3348_v12  ;;  %v2773_v62 = vadd.f32 %v5755_v39, %v2772_v1 }
 0x74a   : > { %v4212_v27 = vpack.c.bf16 %v3349_v41, %v3347_v13  ;;  %v2857_v34 = vmax.f32 %v2773_v62, 0.0 }
 0x74b   : > { %v3061_v53 = vpop.f32.mrf.mxu0 }
 0x74c   : > { %4340 = vst [vmem:[%s5745_s16 + $0x38] sm:$0xff] %v4212_v27   ;;  %v3062_v29 = vadd.f32 %v5623_v16, %v3061_v53 }
 0x74e   : > { %v3172_v6 = vmax.f32 %v3062_v29, 0.0 }
 0x74f   : > { %v2774_v7 = vpop.f32.mrf.mxu3  ;;  %v3351_v54 = vpop.f32.mrf.mxu1 }
 0x750   : > { %v2775_v46 = vadd.f32 %v5755_v39, %v2774_v7  ;;  %v3219_v47 = vpack.c.bf16 %v3172_v6, %v3171_v28  ;;  %v3352_v52 = vadd.f32 %v5736_v15, %v3351_v54 }
 0x752   : > { %v2858_v0 = vmax.f32 %v2775_v46, 0.0  ;;  %3390 = vmatmul.bf16.gmra.mxu1 %v3219_v47 }
 0x753   : > { %v3064_v11 = vpop.f32.mrf.mxu0 }
 0x754   : > { %v2896_v10 = vpack.c.bf16 %v2858_v0, %v2857_v34  ;;  %v3065_v2 = vadd.f32 %v5623_v16, %v3064_v11 }
 0x756   : > { %3103 = vmatmul.bf16.gmra.mxu0 %v2896_v10  ;;  %v3173_v56 = vmax.f32 %v3065_v2, 0.0 }
 0x757   : > { %v2777_v58 = vpop.f32.mrf.mxu3  ;;  %v3353_v5 = vpop.f32.mrf.mxu1 }
 0x758   : > { %v3354_v23 = vadd.f32 %v5736_v15, %v3353_v5  ;;  %v2778_v63 = vadd.f32 %v5755_v39, %v2777_v58 }
 0x75a   : > { %v4217_v38 = vpack.c.bf16 %v3354_v23, %v3352_v52  ;;  %v2859_v36 = vmax.f32 %v2778_v63, 0.0 }
 0x75b   : > { %v3066_v48 = vpop.f32.mrf.mxu0 }
 0x75c   : > { %4341 = vst [vmem:[%s5745_s16 + $0x40] sm:$0xff] %v4217_v38   ;;  %v3067_v45 = vadd.f32 %v5623_v16, %v3066_v48 }
 0x75e   : > { %v3174_v4 = vmax.f32 %v3067_v45, 0.0 }
 0x75f   : > { %v2779_v40 = vpop.f32.mrf.mxu3  ;;  %v3356_v35 = vpop.f32.mrf.mxu1 }
 0x760   : > { %v2780_v57 = vadd.f32 %v5755_v39, %v2779_v40  ;;  %v3220_v37 = vpack.c.bf16 %v3174_v4, %v3173_v56  ;;  %v3357_v59 = vadd.f32 %v5736_v15, %v3356_v35 }
 0x762   : > { %v2860_v61 = vmax.f32 %v2780_v57, 0.0  ;;  %3395 = vmatmul.bf16.gmra.mxu1 %v3220_v37 }
 0x763   : > { %v3069_v31 = vpop.f32.mrf.mxu0 }
 0x764   : > { %v2897_v42 = vpack.c.bf16 %v2860_v61, %v2859_v36  ;;  %v3070_v25 = vadd.f32 %v5623_v16, %v3069_v31 }
 0x766   : > { %3108 = vmatmul.bf16.gmra.mxu0 %v2897_v42  ;;  %v3175_v44 = vmax.f32 %v3070_v25, 0.0 }
 0x767   : > { %v2782_v60 = vpop.f32.mrf.mxu3  ;;  %v3358_v30 = vpop.f32.mrf.mxu1 }
 0x768   : > { %v3359_v22 = vadd.f32 %v5736_v15, %v3358_v30  ;;  %v2783_v8 = vadd.f32 %v5755_v39, %v2782_v60 }
 0x76a   : > { %v4222_v55 = vpack.c.bf16 %v3359_v22, %v3357_v59  ;;  %v2861_v21 = vmax.f32 %v2783_v8, 0.0 }
 0x76b   : > { %v3071_v3 = vpop.f32.mrf.mxu0 }
 0x76c   : > { %4342 = vst [vmem:[%s5745_s16 + $0x48] sm:$0xff] %v4222_v55   ;;  %v3072_v33 = vadd.f32 %v5839_v24, %v3071_v3 }
 0x76e   : > { %v3176_v18 = vmax.f32 %v3072_v33, 0.0 }
 0x76f   : > { %v2784_v32 = vpop.f32.mrf.mxu3  ;;  %v3361_v49 = vpop.f32.mrf.mxu1 }
 0x770   : > { %v2785_v50 = vadd.f32 %v5755_v39, %v2784_v32  ;;  %v3221_v16 = vpack.c.bf16 %v3176_v18, %v3175_v44  ;;  %v3362_v20 = vadd.f32 %v5736_v15, %v3361_v49 }
 0x772   : > { %v2862_v26 = vmax.f32 %v2785_v50, 0.0  ;;  %3400 = vmatmul.bf16.gmra.mxu1 %v3221_v16 }
 0x773   : > { %v3074_v9 = vpop.f32.mrf.mxu0 }
 0x774   : > { %v2898_v51 = vpack.c.bf16 %v2862_v26, %v2861_v21  ;;  %v3075_v1 = vadd.f32 %v5839_v24, %v3074_v9 }
 0x776   : > { %3113 = vmatmul.bf16.gmra.mxu0 %v2898_v51  ;;  %v3177_v19 = vmax.f32 %v3075_v1, 0.0 }
 0x777   : > { %v2787_v17 = vpop.f32.mrf.mxu3  ;;  %v3363_v43 = vpop.f32.mrf.mxu1 }
 0x778   : > { %v3364_v14 = vadd.f32 %v5736_v15, %v3363_v43  ;;  %v2788_v27 = vadd.f32 %v5755_v39, %v2787_v17 }
 0x77a   : > { %v4227_v12 = vpack.c.bf16 %v3364_v14, %v3362_v20  ;;  %v2863_v7 = vmax.f32 %v2788_v27, 0.0 }
 0x77b   : > { %v3076_v13 = vpop.f32.mrf.mxu0 }
 0x77c   : > { %4343 = vst [vmem:[%s5745_s16 + $0x50] sm:$0xff] %v4227_v12   ;;  %v3077_v41 = vadd.f32 %v5839_v24, %v3076_v13 }
 0x77e   : > { %v3178_v53 = vmax.f32 %v3077_v41, 0.0 }
 0x77f   : > { %v2789_v29 = vpop.f32.mrf.mxu3  ;;  %v3366_v28 = vpop.f32.mrf.mxu1 }
 0x780   : > { %v2790_v62 = vadd.f32 %v5755_v39, %v2789_v29  ;;  %v3222_v6 = vpack.c.bf16 %v3178_v53, %v3177_v19  ;;  %v3367_v11 = vadd.f32 %v5736_v15, %v3366_v28 }
 0x782   : > { %v2864_v54 = vmax.f32 %v2790_v62, 0.0  ;;  %3405 = vmatmul.bf16.gmra.mxu1 %v3222_v6 }
 0x783   : > { %v3079_v46 = vpop.f32.mrf.mxu0 }
 0x784   : > { %v2899_v47 = vpack.c.bf16 %v2864_v54, %v2863_v7  ;;  %v3080_v58 = vadd.f32 %v5839_v24, %v3079_v46 }
 0x786   : > { %3118 = vmatmul.bf16.gmra.mxu0 %v2899_v47  ;;  %v3179_v2 = vmax.f32 %v3080_v58, 0.0 }
 0x787   : > { %v2792_v34 = vpop.f32.mrf.mxu3  ;;  %v3368_v0 = vpop.f32.mrf.mxu1 }
 0x788   : > { %v3369_v10 = vadd.f32 %v5736_v15, %v3368_v0  ;;  %v2793_v38 = vadd.f32 %v5755_v39, %v2792_v34 }
 0x78a   : > { %v4232_v5 = vpack.c.bf16 %v3369_v10, %v3367_v11  ;;  %v2865_v40 = vmax.f32 %v2793_v38, 0.0 }
 0x78b   : > { %v3081_v52 = vpop.f32.mrf.mxu0 }
 0x78c   : > { %4344 = vst [vmem:[%s5745_s16 + $0x58] sm:$0xff] %v4232_v5   ;;  %v3082_v23 = vadd.f32 %v5839_v24, %v3081_v52 }
 0x78e   : > { %v3180_v48 = vmax.f32 %v3082_v23, 0.0 }
 0x78f   : > { %v2794_v45 = vpop.f32.mrf.mxu3  ;;  %v3371_v56 = vpop.f32.mrf.mxu1 }
 0x790   : > { %v3223_v63 = vpack.c.bf16 %v3180_v48, %v3179_v2  ;;  %v2795_v4 = vadd.f32 %v5755_v39, %v2794_v45  ;;  %v3372_v31 = vadd.f32 %v5736_v15, %v3371_v56 }
 0x792   : > { %v2866_v35 = vmax.f32 %v2795_v4, 0.0  ;;  %3410 = vmatmul.bf16.gmra.mxu1 %v3223_v63 }
 0x793   : > { %v3084_v57 = vpop.f32.mrf.mxu0 }
 0x794   : > { %v2900_v37 = vpack.c.bf16 %v2866_v35, %v2865_v40  ;;  %v3085_v60 = vadd.f32 %v5839_v24, %v3084_v57 }
 0x796   : > { %3123 = vmatmul.bf16.gmra.mxu0 %v2900_v37  ;;  %v3181_v25 = vmax.f32 %v3085_v60, 0.0 }
 0x797   : > { %v2797_v36 = vpop.f32.mrf.mxu3  ;;  %v3373_v61 = vpop.f32.mrf.mxu1 }
 0x798   : > { %v3374_v42 = vadd.f32 %v5736_v15, %v3373_v61  ;;  %v2798_v55 = vadd.f32 %v5755_v39, %v2797_v36 }
 0x79a   : > { %v4237_v30 = vpack.c.bf16 %v3374_v42, %v3372_v31  ;;  %v2867_v32 = vmax.f32 %v2798_v55, 0.0 }
 0x79b   : > { %v3086_v59 = vpop.f32.mrf.mxu0 }
 0x79c   : > { %4345 = vst [vmem:[%s5745_s16 + $0x60] sm:$0xff] %v4237_v30   ;;  %v3087_v22 = vadd.f32 %v5839_v24, %v3086_v59 }
 0x79e   : > { %v3182_v3 = vmax.f32 %v3087_v22, 0.0 }
 0x79f   : > { %v2799_v33 = vpop.f32.mrf.mxu3  ;;  %v3376_v44 = vpop.f32.mrf.mxu1 }
 0x7a0   : > { %v3224_v8 = vpack.c.bf16 %v3182_v3, %v3181_v25  ;;  %v2800_v18 = vadd.f32 %v5755_v39, %v2799_v33  ;;  %v3377_v9 = vadd.f32 %v5736_v15, %v3376_v44 }
 0x7a2   : > { %v2868_v49 = vmax.f32 %v2800_v18, 0.0  ;;  %3415 = vmatmul.bf16.gmra.mxu1 %v3224_v8 }
 0x7a3   : > { %v3089_v50 = vpop.f32.mrf.mxu0 }
 0x7a4   : > { %v2901_v16 = vpack.c.bf16 %v2868_v49, %v2867_v32  ;;  %v3090_v17 = vadd.f32 %v5839_v24, %v3089_v50 }
 0x7a6   : > { %3128 = vmatmul.bf16.gmra.mxu0 %v2901_v16  ;;  %v3183_v1 = vmax.f32 %v3090_v17, 0.0 }
 0x7a7   : > { %v2802_v21 = vpop.f32.mrf.mxu3  ;;  %v3378_v26 = vpop.f32.mrf.mxu1 }
 0x7a8   : > { %v3379_v51 = vadd.f32 %v5736_v15, %v3378_v26  ;;  %v2803_v12 = vadd.f32 %v5755_v39, %v2802_v21 }
 0x7aa   : > { %v4242_v43 = vpack.c.bf16 %v3379_v51, %v3377_v9  ;;  %v2869_v29 = vmax.f32 %v2803_v12, 0.0 }
 0x7ab   : > { %v3091_v20 = vpop.f32.mrf.mxu0 }
 0x7ac   : > { %4346 = vst [vmem:[%s5745_s16 + $0x68] sm:$0xff] %v4242_v43   ;;  %v3092_v14 = vadd.f32 %v5839_v24, %v3091_v20 }
 0x7ae   : > { %v3184_v13 = vmax.f32 %v3092_v14, 0.0 }
 0x7af   : > { %v2804_v41 = vpop.f32.mrf.mxu3  ;;  %v3381_v19 = vpop.f32.mrf.mxu1 }
 0x7b0   : > { %v3225_v27 = vpack.c.bf16 %v3184_v13, %v3183_v1  ;;  %v2805_v53 = vadd.f32 %v5755_v39, %v2804_v41  ;;  %v3382_v54 = vadd.f32 %v5736_v15, %v3381_v19 }
 0x7b2   : > { %v2870_v28 = vmax.f32 %v2805_v53, 0.0  ;;  %3420 = vmatmul.bf16.gmra.mxu1 %v3225_v27 }
 0x7b3   : > { %v3094_v62 = vpop.f32.mrf.mxu0 }
 0x7b4   : > { %v2902_v6 = vpack.c.bf16 %v2870_v28, %v2869_v29  ;;  %v3095_v47 = vadd.f32 %v5839_v24, %v3094_v62 }
 0x7b6   : > { %3133 = vmatmul.bf16.gmra.mxu0 %v2902_v6  ;;  %v3185_v39 = vmax.f32 %v3095_v47, 0.0 }
 0x7b7   : > { %v3383_v7 = vpop.f32.mrf.mxu1 }
 0x7b8   : > { %v3384_v46 = vadd.f32 %v5736_v15, %v3383_v7 }
 0x7ba   : > { %v4247_v34 = vpack.c.bf16 %v3384_v46, %v3382_v54 }
 0x7bb   : > { %v3096_v0 = vpop.f32.mrf.mxu0 }
 0x7bc   : > { %4347 = vst [vmem:[%s5745_s16 + $0x70] sm:$0xff] %v4247_v34   ;;  %v3097_v11 = vadd.f32 %v5839_v24, %v3096_v0 }
 0x7be   : > { %v3186_v10 = vmax.f32 %v3097_v11, 0.0 }
 0x7bf   : > { %v3386_v58 = vpop.f32.mrf.mxu1 }
 0x7c0   : > { %v3226_v5 = vpack.c.bf16 %v3186_v10, %v3185_v39  ;;  %v3387_v2 = vadd.f32 %v5736_v15, %v3386_v58 }
 0x7c2   : > { %3425 = vmatmul.bf16.gmra.mxu1 %v3226_v5 }
 0x7c3   : > { %v3099_v52 = vpop.f32.mrf.mxu0 }
 0x7c4   : > { %v3100_v48 = vadd.f32 %v5839_v24, %v3099_v52 }
 0x7c6   : > { %v3187_v4 = vmax.f32 %v3100_v48, 0.0 }
 0x7c7   : > { %v3388_v23 = vpop.f32.mrf.mxu1 }
 0x7c8   : > { %v3389_v38 = vadd.f32 %v5736_v15, %v3388_v23 }
 0x7ca   : > { %v4252_v45 = vpack.c.bf16 %v3389_v38, %v3387_v2 }
 0x7cb   : > { %v3101_v56 = vpop.f32.mrf.mxu0 }
 0x7cc   : > { %4348 = vst [vmem:[%s5745_s16 + $0x78] sm:$0xff] %v4252_v45   ;;  %v3102_v63 = vadd.f32 %v5839_v24, %v3101_v56 }
 0x7ce   : > { %v3188_v40 = vmax.f32 %v3102_v63, 0.0 }
 0x7cf   : > { %v3391_v35 = vpop.f32.mrf.mxu1 }
 0x7d0   : > { %v3227_v57 = vpack.c.bf16 %v3188_v40, %v3187_v4  ;;  %v3392_v61 = vadd.f32 %v5736_v15, %v3391_v35 }
 0x7d2   : > { %3430 = vmatmul.bf16.gmra.mxu1 %v3227_v57 }
 0x7d3   : > { %v3104_v37 = vpop.f32.mrf.mxu0 }
 0x7d4   : > { %v3105_v42 = vadd.f32 %v5839_v24, %v3104_v37 }
 0x7d6   : > { %v3189_v22 = vmax.f32 %v3105_v42, 0.0 }
 0x7d7   : > { %v3393_v36 = vpop.f32.mrf.mxu1 }
 0x7d8   : > { %v3394_v31 = vadd.f32 %v5736_v15, %v3393_v36 }
 0x7da   : > { %v4257_v60 = vpack.c.bf16 %v3394_v31, %v3392_v61 }
 0x7db   : > { %v3106_v30 = vpop.f32.mrf.mxu0 }
 0x7dc   : > { %4349 = vst [vmem:[%s5745_s16 + $0x80] sm:$0xff] %v4257_v60   ;;  %v3107_v59 = vadd.f32 %v5839_v24, %v3106_v30 }
 0x7de   : > { %v3190_v25 = vmax.f32 %v3107_v59, 0.0 }
 0x7df   : > { %v3396_v55 = vpop.f32.mrf.mxu1 }
 0x7e0   : > { %v3228_v3 = vpack.c.bf16 %v3190_v25, %v3189_v22  ;;  %v3397_v8 = vadd.f32 %v5736_v15, %v3396_v55 }
 0x7e2   : > { %3435 = vmatmul.bf16.gmra.mxu1 %v3228_v3 }
 0x7e3   : > { %v3109_v33 = vpop.f32.mrf.mxu0 }
 0x7e4   : > { %v3110_v32 = vadd.f32 %v5839_v24, %v3109_v33 }
 0x7e6   : > { %v3191_v21 = vmax.f32 %v3110_v32, 0.0 }
 0x7e7   : > { %v3398_v44 = vpop.f32.mrf.mxu1 }
 0x7e8   : > { %v3399_v18 = vadd.f32 %v5736_v15, %v3398_v44 }
 0x7ea   : > { %v4262_v49 = vpack.c.bf16 %v3399_v18, %v3397_v8 }
 0x7eb   : > { %v3111_v50 = vpop.f32.mrf.mxu0 }
 0x7ec   : > { %4350 = vst [vmem:[%s5745_s16 + $0x88] sm:$0xff] %v4262_v49   ;;  %v3112_v16 = vadd.f32 %v5839_v24, %v3111_v50 }
 0x7ee   : > { %v3192_v26 = vmax.f32 %v3112_v16, 0.0 }
 0x7ef   : > { %v3401_v9 = vpop.f32.mrf.mxu1 }
 0x7f0   : > { %v3229_v51 = vpack.c.bf16 %v3192_v26, %v3191_v21  ;;  %v3402_v20 = vadd.f32 %v5736_v15, %v3401_v9 }
 0x7f2   : > { %3440 = vmatmul.bf16.gmra.mxu1 %v3229_v51 }
 0x7f3   : > { %v3114_v17 = vpop.f32.mrf.mxu0 }
 0x7f4   : > { %v3115_v1 = vadd.f32 %v5839_v24, %v3114_v17 }
 0x7f6   : > { %v3193_v19 = vmax.f32 %v3115_v1, 0.0 }
 0x7f7   : > { %v3403_v43 = vpop.f32.mrf.mxu1 }
 0x7f8   : > { %v3404_v14 = vadd.f32 %v5736_v15, %v3403_v43 }
 0x7fa   : > { %v4267_v12 = vpack.c.bf16 %v3404_v14, %v3402_v20 }
 0x7fb   : > { %v3116_v13 = vpop.f32.mrf.mxu0 }
 0x7fc   : > { %4351 = vst [vmem:[%s5745_s16 + $0x90] sm:$0xff] %v4267_v12   ;;  %v3117_v41 = vadd.f32 %v5839_v24, %v3116_v13 }
 0x7fe   : > { %v3194_v27 = vmax.f32 %v3117_v41, 0.0 }
 0x7ff   : > { %v3406_v53 = vpop.f32.mrf.mxu1 }
 0x800   : > { %v3230_v29 = vpack.c.bf16 %v3194_v27, %v3193_v19  ;;  %v3407_v6 = vadd.f32 %v5736_v15, %v3406_v53 }
 0x802   : > { %3445 = vmatmul.bf16.gmra.mxu1 %v3230_v29 }
 0x803   : > { %v3119_v28 = vpop.f32.mrf.mxu0 }
 0x804   : > { %v3120_v54 = vadd.f32 %v5839_v24, %v3119_v28 }
 0x806   : > { %v3195_v0 = vmax.f32 %v3120_v54, 0.0 }
 0x807   : > { %v3408_v62 = vpop.f32.mrf.mxu1 }
 0x808   : > { %v3409_v7 = vadd.f32 %v5736_v15, %v3408_v62 }
 0x80a   : > { %v4272_v46 = vpack.c.bf16 %v3409_v7, %v3407_v6 }
 0x80b   : > { %v3121_v47 = vpop.f32.mrf.mxu0 }
 0x80c   : > { %4352 = vst [vmem:[%s5745_s16 + $0x98] sm:$0xff] %v4272_v46   ;;  %v3122_v34 = vadd.f32 %v5839_v24, %v3121_v47  ;;  %v4398_v47 = vld [vmem:[%s5943_s3 + $0x8] ss:$0 sm:$0xff] }
 0x80e   : > { %v3196_v11 = vmax.f32 %v3122_v34, 0.0 }
 0x80f   : > { %v3411_v39 = vpop.f32.mrf.mxu1 }
 0x810   : > { %v3231_v10 = vpack.c.bf16 %v3196_v11, %v3195_v0  ;;  %v3412_v52 = vadd.f32 %v5736_v15, %v3411_v39 }
 0x812   : > { %3450 = vmatmul.bf16.gmra.mxu1 %v3231_v10 }
 0x813   : > { %v3124_v58 = vpop.f32.mrf.mxu0 }
 0x814   : > { %v3125_v2 = vadd.f32 %v5839_v24, %v3124_v58 }
 0x816   : > { %v3197_v56 = vmax.f32 %v3125_v2, 0.0 }
 0x817   : > { %v3413_v5 = vpop.f32.mrf.mxu1 }
 0x818   : > { %v3414_v23 = vadd.f32 %v5736_v15, %v3413_v5 }
 0x81a   : > { %v4277_v38 = vpack.c.bf16 %v3414_v23, %v3412_v52 }
 0x81b   : > { %v3126_v48 = vpop.f32.mrf.mxu0 }
 0x81c   : > { %4353 = vst [vmem:[%s5745_s16 + $0xa0] sm:$0xff] %v4277_v38   ;;  %v3127_v45 = vadd.f32 %v5839_v24, %v3126_v48 }
 0x81e   : > { %v3198_v63 = vmax.f32 %v3127_v45, 0.0 }
 0x81f   : > { %v3416_v4 = vpop.f32.mrf.mxu1 }
 0x820   : > { %v3232_v40 = vpack.c.bf16 %v3198_v63, %v3197_v56  ;;  %v3417_v37 = vadd.f32 %v5736_v15, %v3416_v4 }
 0x822   : > { %3455 = vmatmul.bf16.gmra.mxu1 %v3232_v40 }
 0x823   : > { %v3129_v35 = vpop.f32.mrf.mxu0 }
 0x824   : > { %v3130_v61 = vadd.f32 %v5839_v24, %v3129_v35 }
 0x826   : > { %v3199_v30 = vmax.f32 %v3130_v61, 0.0 }
 0x827   : > { %v3418_v57 = vpop.f32.mrf.mxu1 }
 0x828   : > { %v3419_v36 = vadd.f32 %v5736_v15, %v3418_v57 }
 0x82a   : > { %v4282_v31 = vpack.c.bf16 %v3419_v36, %v3417_v37 }
 0x82b   : > { %v3131_v42 = vpop.f32.mrf.mxu0 }
 0x82c   : > { %4354 = vst [vmem:[%s5745_s16 + $0xa8] sm:$0xff] %v4282_v31   ;;  %v3132_v60 = vadd.f32 %v5839_v24, %v3131_v42 }
 0x82e   : > { %v3200_v59 = vmax.f32 %v3132_v60, 0.0 }
 0x82f   : > { %v3421_v22 = vpop.f32.mrf.mxu1 }
 0x830   : > { %v3233_v25 = vpack.c.bf16 %v3200_v59, %v3199_v30  ;;  %v3422_v33 = vadd.f32 %v5736_v15, %v3421_v22 }
 0x832   : > { %3460 = vmatmul.bf16.gmra.mxu1 %v3233_v25 }
 0x833   : > { %v3134_v55 = vpop.f32.mrf.mxu0 }
 0x834   : > { %v3135_v8 = vadd.f32 %v5839_v24, %v3134_v55 }
 0x836   : > { %v3201_v50 = vmax.f32 %v3135_v8, 0.0 }
 0x837   : > { %v3423_v3 = vpop.f32.mrf.mxu1 }
 0x838   : > { %v3424_v44 = vadd.f32 %v5736_v15, %v3423_v3 }
 0x83a   : > { %v4287_v18 = vpack.c.bf16 %v3424_v44, %v3422_v33 }
 0x83b   : > { %v3136_v32 = vpop.f32.mrf.mxu0 }
 0x83c   : > { %4355 = vst [vmem:[%s5745_s16 + $0xb0] sm:$0xff] %v4287_v18   ;;  %v3137_v49 = vadd.f32 %v5839_v24, %v3136_v32 }
 0x83e   : > { %v3202_v16 = vmax.f32 %v3137_v49, 0.0 }
 0x83f   : > { %v3426_v21 = vpop.f32.mrf.mxu1 }
 0x840   : > { %v3234_v26 = vpack.c.bf16 %v3202_v16, %v3201_v50  ;;  %v3427_v51 = vadd.f32 %v5736_v15, %v3426_v21 }
 0x842   : > { %3465 = vmatmul.bf16.gmra.mxu1 %v3234_v26 }
 0x847   : > { %v3428_v9 = vpop.f32.mrf.mxu1 }
 0x848   : > { %v3429_v17 = vadd.f32 %v5736_v15, %v3428_v9 }
 0x84a   : > { %v4292_v43 = vpack.c.bf16 %v3429_v17, %v3427_v51 }
 0x84c   : > { %4356 = vst [vmem:[%s5745_s16 + $0xb8] sm:$0xff] %v4292_v43  }
 0x84f   : > { %v3431_v20 = vpop.f32.mrf.mxu1 }
 0x850   : > { %v3432_v1 = vadd.f32 %v5736_v15, %v3431_v20 }
 0x857   : > { %v3433_v14 = vpop.f32.mrf.mxu1 }
 0x858   : > { %v3434_v24 = vadd.f32 %v5736_v15, %v3433_v14 }
 0x85a   : > { %v4297_v12 = vpack.c.bf16 %v3434_v24, %v3432_v1 }
 0x85c   : > { %4357 = vst [vmem:[%s5745_s16 + $0xc0] sm:$0xff] %v4297_v12  }
 0x85f   : > { %v3436_v13 = vpop.f32.mrf.mxu1 }
 0x860   : > { %v3437_v19 = vadd.f32 %v5736_v15, %v3436_v13 }
 0x867   : > { %v3438_v41 = vpop.f32.mrf.mxu1 }
 0x868   : > { %v3439_v27 = vadd.f32 %v5736_v15, %v3438_v41 }
 0x86a   : > { %v4302_v53 = vpack.c.bf16 %v3439_v27, %v3437_v19 }
 0x86c   : > { %4358 = vst [vmem:[%s5745_s16 + $0xc8] sm:$0xff] %v4302_v53  }
 0x86f   : > { %v3441_v29 = vpop.f32.mrf.mxu1 }
 0x870   : > { %v3442_v62 = vadd.f32 %v5736_v15, %v3441_v29 }
 0x877   : > { %v3443_v28 = vpop.f32.mrf.mxu1 }
 0x878   : > { %v3444_v6 = vadd.f32 %v5736_v15, %v3443_v28 }
 0x87a   : > { %v4307_v7 = vpack.c.bf16 %v3444_v6, %v3442_v62 }
 0x87c   : > { %4359 = vst [vmem:[%s5745_s16 + $0xd0] sm:$0xff] %v4307_v7  }
 0x87f   : > { %v3446_v54 = vpop.f32.mrf.mxu1 }
 0x880   : > { %v3447_v34 = vadd.f32 %v4398_v47, %v3446_v54 }
 0x887   : > { %v3448_v46 = vpop.f32.mrf.mxu1 }
 0x888   : > { %v3449_v0 = vadd.f32 %v4398_v47, %v3448_v46 }
 0x88a   : > { %v4312_v11 = vpack.c.bf16 %v3449_v0, %v3447_v34 }
 0x88c   : > { %4360 = vst [vmem:[%s5745_s16 + $0xd8] sm:$0xff] %v4312_v11  }
 0x88f   : > { %v3451_v39 = vpop.f32.mrf.mxu1 }
 0x890   : > { %v3452_v58 = vadd.f32 %v4398_v47, %v3451_v39 }
 0x897   : > { %v3453_v10 = vpop.f32.mrf.mxu1 }
 0x898   : > { %v3454_v5 = vadd.f32 %v4398_v47, %v3453_v10 }
 0x89a   : > { %v4317_v52 = vpack.c.bf16 %v3454_v5, %v3452_v58 }
 0x89c   : > { %4361 = vst [vmem:[%s5745_s16 + $0xe0] sm:$0xff] %v4317_v52  }
 0x89f   : > { %v3456_v15 = vpop.f32.mrf.mxu1 }
 0x8a0   : > { %v3457_v2 = vadd.f32 %v4398_v47, %v3456_v15 }
 0x8a7   : > { %v3458_v23 = vpop.f32.mrf.mxu1 }
 0x8a8   : > { %v3459_v38 = vadd.f32 %v4398_v47, %v3458_v23 }
 0x8aa   : > { %v4322_v48 = vpack.c.bf16 %v3459_v38, %v3457_v2 }
 0x8ac   : > { %4362 = vst [vmem:[%s5745_s16 + $0xe8] sm:$0xff] %v4322_v48  }
 0x8af   : > { %v3461_v45 = vpop.f32.mrf.mxu1 }
 0x8b0   : > { %v3462_v63 = vadd.f32 %v4398_v47, %v3461_v45 }
 0x8b7   : > { %v3463_v56 = vpop.f32.mrf.mxu1 }
 0x8b8   : > { %v3464_v4 = vadd.f32 %v4398_v47, %v3463_v56 }
 0x8ba   : > { %v4327_v40 = vpack.c.bf16 %v3464_v4, %v3462_v63 }
 0x8bc   : > { %4363 = vst [vmem:[%s5745_s16 + $0xf0] sm:$0xff] %v4327_v40  }
 0x8bf   : > { %v3466_v35 = vpop.f32.mrf.mxu1 }
 0x8c0   : > { %v3467_v37 = vadd.f32 %v4398_v47, %v3466_v35 }
 0x8c7   : > { %v3468_v57 = vpop.f32.mrf.mxu1 }
 0x8c8   : > { %v3469_v36 = vadd.f32 %v4398_v47, %v3468_v57 }
 0x8ca   : > { %v4332_v61 = vpack.c.bf16 %v3469_v36, %v3467_v37 }
 0x8cc   : > { %4364 = vst [vmem:[%s5745_s16 + $0xf8] sm:$0xff] %v4332_v61  }
 0x8cd PF: > { %s14_s15 = sadd.s32 1, %s4405_s15  }
 0x8ce   : > { %p11_p4 = scmp.ge.s32.totalorder %s14_s15, 4  }
 0x8d0   :  { %13 = sbr.rel (!%p11_p4) target bundleno = 1 (0x1), region = 74 }

</bundles_post_ra>
